<compile_context>
chip_gen: v5e
topology: v5e:2x2
jax: 0.10.0
libtpu: 0.0.40
codegen_flags: <defaults>
</compile_context>

<pallas_src>
import math

import jax
import jax.numpy as jnp
from jax.experimental import pallas as pl
from jax.experimental.pallas import tpu as pltpu

# ---- model config (matches the PyTorch module for in_channels=3) ----
IN_CHANNELS = 3
OUT_CHANNELS = 8
NUM_LAYERS = 2
NHEAD = 1            # module sets nhead=1 when in_channels == 3
DIM_FF = 32          # small dim_feedforward for the synthetic test
EPS = 1e-5


def _round_up(a, b):
    return ((a + b - 1) // b) * b


# --------------------------------------------------------------------------------------
# Flat parameter buffer (single SMEM array): canonical ordering shared by the packer
# and the in-kernel scalar reads.
# --------------------------------------------------------------------------------------
def _theta_entries(params=None):
    """Yield (name, size, array-or-None) in canonical order."""
    C = IN_CHANNELS

    def get(nm, l=None):
        if params is None:
            return None
        a = params[nm]
        return a[l] if l is not None else a

    for l in range(NUM_LAYERS):
        for nm in ('wq', 'wk', 'wv', 'ow'):
            yield f'{nm}{l}', C * C, get(nm, l)
        for nm in ('bq', 'bk', 'bv', 'ob', 'ln1w', 'ln1b', 'ln2w', 'ln2b'):
            yield f'{nm}{l}', C, get(nm, l)
        yield f'f1w{l}', DIM_FF * C, get('f1w', l)
        yield f'f1b{l}', DIM_FF, get('f1b', l)
        yield f'f2w{l}', C * DIM_FF, get('f2w', l)
        yield f'f2b{l}', C, get('f2b', l)
    yield 'linw', OUT_CHANNELS * IN_CHANNELS, get('linw')
    yield 'linb', OUT_CHANNELS, get('linb')


def _theta_layout():
    offs, total = {}, 0
    for name, size, _ in _theta_entries(None):
        offs[name] = total
        total += size
    return offs, total


_OFFS, _THETA_SIZE = _theta_layout()


def _pack_theta(params):
    # Fold the attention scale 1/sqrt(C // nhead) into the query projection so the
    # kernel never multiplies score slabs by the scale (saves VALU work per step).
    scale = 1.0 / math.sqrt(IN_CHANNELS // NHEAD)
    pp = dict(params)
    pp['wq'] = jnp.asarray(params['wq'], jnp.float32) * scale
    pp['bq'] = jnp.asarray(params['bq'], jnp.float32) * scale

    parts = []
    for name, size, arr in _theta_entries(pp):
        a = jnp.asarray(arr, jnp.float32).reshape(-1)
        assert a.shape[0] == size, (name, a.shape, size)
        parts.append(a)
    return jnp.concatenate(parts)


# --------------------------------------------------------------------------------------
# Kernel: per grid step processes block_m independent sequences (lanes).
#   x_ref   : (C, NS, block_m)  VMEM
#   pos_ref : (C, NS, 1)        VMEM (positional encoding; lane-broadcast in-kernel)
#   theta   : (P,)              SMEM (all scalar parameters, scale pre-folded)
#   out_ref : (OUT, block_m)    VMEM (lane-dense output)
# --------------------------------------------------------------------------------------
def mesh_transformer_kernel(x_ref, pos_ref, theta_ref, out_ref):
    C, NS, _ = x_ref.shape

    def sc(name, i):                      # scalar parameter read (SMEM)
        return theta_ref[_OFFS[name] + i]

    # input slabs + learnable positional encoding (pos_ref[c] is (NS,1) -> lane-broadcast)
    xs = [x_ref[c] + pos_ref[c] for c in range(C)]      # C x (NS, M)

    def proj(xin, wname, bname):
        out = []
        for d in range(C):
            acc = sc(wname, d * C) * xin[0]
            for c in range(1, C):
                acc = acc + sc(wname, d * C + c) * xin[c]
            out.append(acc + sc(bname, d))
        return out

    def layer_norm(slabs, wname, bname):
        inv_c = 1.0 / C
        mu = slabs[0]
        for c in range(1, C):
            mu = mu + slabs[c]
        mu = mu * inv_c
        var = (slabs[0] - mu) ** 2
        for c in range(1, C):
            var = var + (slabs[c] - mu) ** 2
        var = var * inv_c
        inv = jax.lax.rsqrt(var + EPS)
        return [(slabs[c] - mu) * inv * sc(wname, c) + sc(bname, c) for c in range(C)]

    for l in range(NUM_LAYERS):
        # ---- self attention (post-norm TransformerEncoderLayer, nhead=1) ----
        # scale already folded into wq/bq at pack time
        q = proj(xs, f'wq{l}', f'bq{l}')
        k = proj(xs, f'wk{l}', f'bk{l}')

        # scores (transposed): sT[kn][qn, m] = sum_c q[c][qn,m] * k[c][kn,m]
        sT = []
        for kn in range(NS):
            acc = q[0] * k[0][kn:kn + 1, :]
            for c in range(1, C):
                acc = acc + q[c] * k[c][kn:kn + 1, :]
            sT.append(acc)
        q = k = None   # q/k no longer needed -> let them die before the softmax

        # softmax over kn (list axis -> pure VPU elementwise; reciprocal on EUP)
        mx = sT[0]
        for kn in range(1, NS):
            mx = jnp.maximum(mx, sT[kn])
        es = [jnp.exp(s - mx) for s in sT]
        den = es[0]
        for kn in range(1, NS):
            den = den + es[kn]
        inv_den = pl.reciprocal(den, approx=True)   # EUP slot has slack; VALU is the bottleneck
        p = [e * inv_den for e in es]

        # v is only needed from here on: project it after the softmax to cut the peak live-set
        v = proj(xs, f'wv{l}', f'bv{l}')

        # attention-weighted values: ao[c][qn, m] = sum_kn p[kn][qn,m] * v[c][kn,m]
        ao = []
        for c in range(C):
            acc = p[0] * v[c][0:1, :]
            for kn in range(1, NS):
                acc = acc + p[kn] * v[c][kn:kn + 1, :]
            ao.append(acc)

        # output projection + residual + LN1
        at = []
        for d in range(C):
            acc = sc(f'ow{l}', d * C) * ao[0]
            for c in range(1, C):
                acc = acc + sc(f'ow{l}', d * C + c) * ao[c]
            at.append(acc + sc(f'ob{l}', d))
        xs = layer_norm([xs[c] + at[c] for c in range(C)], f'ln1w{l}', f'ln1b{l}')

        # ---- feed-forward (relu), fused accumulation into C output slabs ----
        y = [None] * C
        for f in range(DIM_FF):
            h = sc(f'f1w{l}', f * C) * xs[0]
            for c in range(1, C):
                h = h + sc(f'f1w{l}', f * C + c) * xs[c]
            h = jnp.maximum(h + sc(f'f1b{l}', f), 0.0)
            for c in range(C):
                term = sc(f'f2w{l}', c * DIM_FF + f) * h
                y[c] = term if y[c] is None else y[c] + term
        xs = layer_norm([xs[c] + y[c] + sc(f'f2b{l}', c) for c in range(C)],
                        f'ln2w{l}', f'ln2b{l}')

    # mean over neighborhood (sublane reduce) -> C x (1, M)
    inv_ns = 1.0 / NS
    xm = [jnp.sum(xs[c], axis=0, keepdims=True) * inv_ns for c in range(C)]

    # final linear C -> OUT, stored lane-dense as (OUT, M) with direct per-row stores
    for o in range(OUT_CHANNELS):
        acc = sc('linw', o * C) * xm[0]
        for c in range(1, C):
            acc = acc + sc('linw', o * C + c) * xm[c]
        out_ref[o:o + 1, :] = (acc + sc('linb', o)).astype(out_ref.dtype)


# --------------------------------------------------------------------------------------
# Wrapper
# --------------------------------------------------------------------------------------
def mesh_transformer(x, params, *, block_m=512):
    B, C, HE, NS = x.shape
    assert C == IN_CHANNELS, C
    assert NS <= params['pos'].shape[0]
    nseq = B * HE

    # lane-aligned block size; pad the sequence axis instead of asserting divisibility
    lane = 128
    block_m = _round_up(max(block_m, lane), lane)
    nseq_lane = _round_up(nseq, lane)
    # Prefer >= 2 grid steps when the problem allows it so v7x can shard the 'parallel'
    # axis across its two TensorCores; v5e/v6e are single-TC and unaffected.
    if nseq_lane >= 2 * lane:
        block_m = min(block_m, max(lane, (nseq_lane // 2) // lane * lane))
    block_m = min(block_m, nseq_lane)
    nseq_pad = _round_up(nseq, block_m)

    # (B, C, HE, NS) -> (C, NS, B*HE) with the sequence-batch dim on lanes
    xs = jnp.transpose(x, (1, 3, 0, 2)).reshape(C, NS, nseq).astype(jnp.float32)
    xs = jnp.pad(xs, ((0, 0), (0, 0), (0, nseq_pad - nseq)))

    # tiny (C, NS, 1) positional-encoding block; lane broadcast happens in-kernel
    pos = jnp.transpose(params['pos'][:NS].astype(jnp.float32))[:, :, None]   # (C, NS, 1)

    theta = _pack_theta(params)                                   # (P,) f32 -> SMEM

    grid = (nseq_pad // block_m,)
    out = pl.pallas_call(
        mesh_transformer_kernel,
        out_shape=jax.ShapeDtypeStruct((OUT_CHANNELS, nseq_pad), jnp.float32),
        grid_spec=pltpu.PrefetchScalarGridSpec(
            num_scalar_prefetch=0,
            grid=grid,
            in_specs=[
                pl.BlockSpec((C, NS, block_m), lambda i: (0, 0, i)),
                pl.BlockSpec((C, NS, 1), lambda i: (0, 0, 0)),
                # full-array SMEM operand: placed once for the whole grid, scalar reads in-kernel
                pl.BlockSpec(memory_space=pltpu.MemorySpace.SMEM),
            ],
            out_specs=pl.BlockSpec((OUT_CHANNELS, block_m), lambda i: (0, i)),
        ),
        compiler_params=pltpu.CompilerParams(
            dimension_semantics=("parallel",)),
    )(xs, pos, theta)

    out = out[:, :nseq]                                           # (OUT, B*HE)
    return jnp.transpose(out.reshape(OUT_CHANNELS, B, HE), (1, 0, 2))[..., None]


# --------------------------------------------------------------------------------------
# Parameters + pure-JAX reference (mirrors the PyTorch forward in eval mode)
# --------------------------------------------------------------------------------------
def init_params(key, c, out_c, ff, nl, max_len):
    ks = jax.random.split(key, 20)
    n = lambda k, shape, s=0.1: jax.random.normal(k, shape, jnp.float32) * s
    return dict(
        pos=n(ks[0], (max_len, c)),                       # LearnablePositionalEncoding
        wq=n(ks[1], (nl, c, c)), bq=n(ks[2], (nl, c), 0.02),
        wk=n(ks[3], (nl, c, c)), bk=n(ks[4], (nl, c), 0.02),
        wv=n(ks[5], (nl, c, c)), bv=n(ks[6], (nl, c), 0.02),
        ow=n(ks[7], (nl, c, c)), ob=n(ks[8], (nl, c), 0.02),
        ln1w=jnp.ones((nl, c), jnp.float32) + n(ks[9], (nl, c), 0.05),
        ln1b=n(ks[10], (nl, c), 0.05),
        ln2w=jnp.ones((nl, c), jnp.float32) + n(ks[11], (nl, c), 0.05),
        ln2b=n(ks[12], (nl, c), 0.05),
        f1w=n(ks[13], (nl, ff, c)), f1b=n(ks[14], (nl, ff), 0.02),
        f2w=n(ks[15], (nl, c, ff)), f2b=n(ks[16], (nl, c), 0.02),
        linw=n(ks[17], (out_c, c)), linb=n(ks[18], (out_c,), 0.02),
    )


def _layer_norm_ref(x, w, b):
    mu = jnp.mean(x, axis=-1, keepdims=True)
    var = jnp.mean((x - mu) ** 2, axis=-1, keepdims=True)
    return (x - mu) * jax.lax.rsqrt(var + EPS) * w + b


def reference(x, params):
    B, C, HE, NS = x.shape
    with jax.default_matmul_precision('highest'):
        h = jnp.transpose(x, (0, 2, 3, 1)).reshape(B * HE, NS, C)
        h = h + params['pos'][:NS]
        scale = 1.0 / jnp.sqrt(jnp.float32(C // NHEAD))
        for l in range(NUM_LAYERS):
            q = h @ params['wq'][l].T + params['bq'][l]
            k = h @ params['wk'][l].T + params['bk'][l]
            v = h @ params['wv'][l].T + params['bv'][l]
            s = jnp.einsum('mqc,mkc->mqk', q, k) * scale
            p = jax.nn.softmax(s, axis=-1)
            a = jnp.einsum('mqk,mkc->mqc', p, v) @ params['ow'][l].T + params['ob'][l]
            h = _layer_norm_ref(h + a, params['ln1w'][l], params['ln1b'][l])
            f = jnp.maximum(h @ params['f1w'][l].T + params['f1b'][l], 0.0)
            f = f @ params['f2w'][l].T + params['f2b'][l]
            h = _layer_norm_ref(h + f, params['ln2w'][l], params['ln2b'][l])
        m = h.mean(axis=1)
        o = m @ params['linw'].T + params['linb']
    return jnp.transpose(o.reshape(B, HE, OUT_CHANNELS), (0, 2, 1))[..., None]


if __name__ == "__main__":
    key = jax.random.PRNGKey(0)
    kx, kp = jax.random.split(key)
    B, HE, NS = 2, 16, 8
    x = jax.random.normal(kx, (B, IN_CHANNELS, HE, NS), jnp.float32)
    params = init_params(kp, IN_CHANNELS, OUT_CHANNELS, DIM_FF, NUM_LAYERS, max_len=64)

    out = mesh_transformer(x, params)
    out = jax.block_until_ready(out)
    assert out.shape == (B, OUT_CHANNELS, HE, 1), out.shape

    ref = reference(x, params)
    err = float(jnp.max(jnp.abs(out - ref)))
    assert jnp.allclose(out, ref, atol=1e-3, rtol=1e-3), f"max abs err {err}"
    print("KERNEL_OK")
</pallas_src>

<mosaic_0001>
module attributes {stable_mosaic.version = 11 : i64} {
  func.func @mesh_transformer_kernel(%arg0: i32, %arg1: memref<3x8x128xf32, #tpu.memory_space<vmem>>, %arg2: memref<3x8x1xf32, #tpu.memory_space<vmem>>, %arg3: memref<606xf32, #tpu.memory_space<smem>>, %arg4: memref<8x128xf32, #tpu.memory_space<vmem>>) attributes {dimension_semantics = [#tpu.dimension_semantics<parallel>], iteration_bounds = array<i64: 1>, scalar_prefetch = 0 : i64, scratch_operands = 0 : i64, tpu.core_type = #tpu.core_type<tc>, window_params = [{transform_indices = @transform_0, window_bounds = array<i64: 3, 8, 128>}, {pipeline_mode = #tpu.pipeline_mode<synchronous>, transform_indices = @transform_1, window_bounds = array<i64: 3, 8, 1>}, {transform_indices = @transform_2, window_bounds = array<i64: 606>}, {transform_indices = @transform_3, window_bounds = array<i64: 8, 128>}]} {
    %c0 = arith.constant 0 : index
    %c0_0 = arith.constant 0 : index
    %c0_1 = arith.constant 0 : index
    %0 = vector.load %arg1[%c0, %c0_0, %c0_1] : memref<3x8x128xf32, #tpu.memory_space<vmem>>, vector<1x8x128xf32>
    %1 = vector.shape_cast %0 : vector<1x8x128xf32> to vector<8x128xf32>
    %c0_2 = arith.constant 0 : index
    %c0_3 = arith.constant 0 : index
    %c0_4 = arith.constant 0 : index
    %2 = vector.load %arg2[%c0_2, %c0_3, %c0_4] : memref<3x8x1xf32, #tpu.memory_space<vmem>>, vector<1x8x1xf32>
    %3 = vector.shape_cast %2 : vector<1x8x1xf32> to vector<8x1xf32>
    %4 = vector.broadcast %3 : vector<8x1xf32> to vector<8x128xf32>
    %5 = arith.addf %1, %4 : vector<8x128xf32>
    %c1 = arith.constant 1 : index
    %c0_5 = arith.constant 0 : index
    %c0_6 = arith.constant 0 : index
    %6 = vector.load %arg1[%c1, %c0_5, %c0_6] : memref<3x8x128xf32, #tpu.memory_space<vmem>>, vector<1x8x128xf32>
    %7 = vector.shape_cast %6 : vector<1x8x128xf32> to vector<8x128xf32>
    %c1_7 = arith.constant 1 : index
    %c0_8 = arith.constant 0 : index
    %c0_9 = arith.constant 0 : index
    %8 = vector.load %arg2[%c1_7, %c0_8, %c0_9] : memref<3x8x1xf32, #tpu.memory_space<vmem>>, vector<1x8x1xf32>
    %9 = vector.shape_cast %8 : vector<1x8x1xf32> to vector<8x1xf32>
    %10 = vector.broadcast %9 : vector<8x1xf32> to vector<8x128xf32>
    %11 = arith.addf %7, %10 : vector<8x128xf32>
    %c2 = arith.constant 2 : index
    %c0_10 = arith.constant 0 : index
    %c0_11 = arith.constant 0 : index
    %12 = vector.load %arg1[%c2, %c0_10, %c0_11] : memref<3x8x128xf32, #tpu.memory_space<vmem>>, vector<1x8x128xf32>
    %13 = vector.shape_cast %12 : vector<1x8x128xf32> to vector<8x128xf32>
    %c2_12 = arith.constant 2 : index
    %c0_13 = arith.constant 0 : index
    %c0_14 = arith.constant 0 : index
    %14 = vector.load %arg2[%c2_12, %c0_13, %c0_14] : memref<3x8x1xf32, #tpu.memory_space<vmem>>, vector<1x8x1xf32>
    %15 = vector.shape_cast %14 : vector<1x8x1xf32> to vector<8x1xf32>
    %16 = vector.broadcast %15 : vector<8x1xf32> to vector<8x128xf32>
    %17 = arith.addf %13, %16 : vector<8x128xf32>
    %c0_15 = arith.constant 0 : index
    %18 = memref.load %arg3[%c0_15] : memref<606xf32, #tpu.memory_space<smem>>
    %19 = vector.broadcast %18 : f32 to vector<8x128xf32>
    %20 = arith.mulf %19, %5 : vector<8x128xf32>
    %c1_16 = arith.constant 1 : index
    %21 = memref.load %arg3[%c1_16] : memref<606xf32, #tpu.memory_space<smem>>
    %22 = vector.broadcast %21 : f32 to vector<8x128xf32>
    %23 = arith.mulf %22, %11 : vector<8x128xf32>
    %24 = arith.addf %20, %23 : vector<8x128xf32>
    %c2_17 = arith.constant 2 : index
    %25 = memref.load %arg3[%c2_17] : memref<606xf32, #tpu.memory_space<smem>>
    %26 = vector.broadcast %25 : f32 to vector<8x128xf32>
    %27 = arith.mulf %26, %17 : vector<8x128xf32>
    %28 = arith.addf %24, %27 : vector<8x128xf32>
    %c36 = arith.constant 36 : index
    %29 = memref.load %arg3[%c36] : memref<606xf32, #tpu.memory_space<smem>>
    %30 = vector.broadcast %29 : f32 to vector<8x128xf32>
    %31 = arith.addf %28, %30 : vector<8x128xf32>
    %c3 = arith.constant 3 : index
    %32 = memref.load %arg3[%c3] : memref<606xf32, #tpu.memory_space<smem>>
    %33 = vector.broadcast %32 : f32 to vector<8x128xf32>
    %34 = arith.mulf %33, %5 : vector<8x128xf32>
    %c4 = arith.constant 4 : index
    %35 = memref.load %arg3[%c4] : memref<606xf32, #tpu.memory_space<smem>>
    %36 = vector.broadcast %35 : f32 to vector<8x128xf32>
    %37 = arith.mulf %36, %11 : vector<8x128xf32>
    %38 = arith.addf %34, %37 : vector<8x128xf32>
    %c5 = arith.constant 5 : index
    %39 = memref.load %arg3[%c5] : memref<606xf32, #tpu.memory_space<smem>>
    %40 = vector.broadcast %39 : f32 to vector<8x128xf32>
    %41 = arith.mulf %40, %17 : vector<8x128xf32>
    %42 = arith.addf %38, %41 : vector<8x128xf32>
    %c37 = arith.constant 37 : index
    %43 = memref.load %arg3[%c37] : memref<606xf32, #tpu.memory_space<smem>>
    %44 = vector.broadcast %43 : f32 to vector<8x128xf32>
    %45 = arith.addf %42, %44 : vector<8x128xf32>
    %c6 = arith.constant 6 : index
    %46 = memref.load %arg3[%c6] : memref<606xf32, #tpu.memory_space<smem>>
    %47 = vector.broadcast %46 : f32 to vector<8x128xf32>
    %48 = arith.mulf %47, %5 : vector<8x128xf32>
    %c7 = arith.constant 7 : index
    %49 = memref.load %arg3[%c7] : memref<606xf32, #tpu.memory_space<smem>>
    %50 = vector.broadcast %49 : f32 to vector<8x128xf32>
    %51 = arith.mulf %50, %11 : vector<8x128xf32>
    %52 = arith.addf %48, %51 : vector<8x128xf32>
    %c8 = arith.constant 8 : index
    %53 = memref.load %arg3[%c8] : memref<606xf32, #tpu.memory_space<smem>>
    %54 = vector.broadcast %53 : f32 to vector<8x128xf32>
    %55 = arith.mulf %54, %17 : vector<8x128xf32>
    %56 = arith.addf %52, %55 : vector<8x128xf32>
    %c38 = arith.constant 38 : index
    %57 = memref.load %arg3[%c38] : memref<606xf32, #tpu.memory_space<smem>>
    %58 = vector.broadcast %57 : f32 to vector<8x128xf32>
    %59 = arith.addf %56, %58 : vector<8x128xf32>
    %c9 = arith.constant 9 : index
    %60 = memref.load %arg3[%c9] : memref<606xf32, #tpu.memory_space<smem>>
    %61 = vector.broadcast %60 : f32 to vector<8x128xf32>
    %62 = arith.mulf %61, %5 : vector<8x128xf32>
    %c10 = arith.constant 10 : index
    %63 = memref.load %arg3[%c10] : memref<606xf32, #tpu.memory_space<smem>>
    %64 = vector.broadcast %63 : f32 to vector<8x128xf32>
    %65 = arith.mulf %64, %11 : vector<8x128xf32>
    %66 = arith.addf %62, %65 : vector<8x128xf32>
    %c11 = arith.constant 11 : index
    %67 = memref.load %arg3[%c11] : memref<606xf32, #tpu.memory_space<smem>>
    %68 = vector.broadcast %67 : f32 to vector<8x128xf32>
    %69 = arith.mulf %68, %17 : vector<8x128xf32>
    %70 = arith.addf %66, %69 : vector<8x128xf32>
    %c39 = arith.constant 39 : index
    %71 = memref.load %arg3[%c39] : memref<606xf32, #tpu.memory_space<smem>>
    %72 = vector.broadcast %71 : f32 to vector<8x128xf32>
    %73 = arith.addf %70, %72 : vector<8x128xf32>
    %c12 = arith.constant 12 : index
    %74 = memref.load %arg3[%c12] : memref<606xf32, #tpu.memory_space<smem>>
    %75 = vector.broadcast %74 : f32 to vector<8x128xf32>
    %76 = arith.mulf %75, %5 : vector<8x128xf32>
    %c13 = arith.constant 13 : index
    %77 = memref.load %arg3[%c13] : memref<606xf32, #tpu.memory_space<smem>>
    %78 = vector.broadcast %77 : f32 to vector<8x128xf32>
    %79 = arith.mulf %78, %11 : vector<8x128xf32>
    %80 = arith.addf %76, %79 : vector<8x128xf32>
    %c14 = arith.constant 14 : index
    %81 = memref.load %arg3[%c14] : memref<606xf32, #tpu.memory_space<smem>>
    %82 = vector.broadcast %81 : f32 to vector<8x128xf32>
    %83 = arith.mulf %82, %17 : vector<8x128xf32>
    %84 = arith.addf %80, %83 : vector<8x128xf32>
    %c40 = arith.constant 40 : index
    %85 = memref.load %arg3[%c40] : memref<606xf32, #tpu.memory_space<smem>>
    %86 = vector.broadcast %85 : f32 to vector<8x128xf32>
    %87 = arith.addf %84, %86 : vector<8x128xf32>
    %c15 = arith.constant 15 : index
    %88 = memref.load %arg3[%c15] : memref<606xf32, #tpu.memory_space<smem>>
    %89 = vector.broadcast %88 : f32 to vector<8x128xf32>
    %90 = arith.mulf %89, %5 : vector<8x128xf32>
    %c16 = arith.constant 16 : index
    %91 = memref.load %arg3[%c16] : memref<606xf32, #tpu.memory_space<smem>>
    %92 = vector.broadcast %91 : f32 to vector<8x128xf32>
    %93 = arith.mulf %92, %11 : vector<8x128xf32>
    %94 = arith.addf %90, %93 : vector<8x128xf32>
    %c17 = arith.constant 17 : index
    %95 = memref.load %arg3[%c17] : memref<606xf32, #tpu.memory_space<smem>>
    %96 = vector.broadcast %95 : f32 to vector<8x128xf32>
    %97 = arith.mulf %96, %17 : vector<8x128xf32>
    %98 = arith.addf %94, %97 : vector<8x128xf32>
    %c41 = arith.constant 41 : index
    %99 = memref.load %arg3[%c41] : memref<606xf32, #tpu.memory_space<smem>>
    %100 = vector.broadcast %99 : f32 to vector<8x128xf32>
    %101 = arith.addf %98, %100 : vector<8x128xf32>
    %102 = vector.extract_strided_slice %73 {offsets = [0, 0], sizes = [1, 128], strides = [1, 1]} : vector<8x128xf32> to vector<1x128xf32>
    %103 = vector.broadcast %102 : vector<1x128xf32> to vector<8x128xf32>
    %104 = arith.mulf %31, %103 : vector<8x128xf32>
    %105 = vector.extract_strided_slice %87 {offsets = [0, 0], sizes = [1, 128], strides = [1, 1]} : vector<8x128xf32> to vector<1x128xf32>
    %106 = vector.broadcast %105 : vector<1x128xf32> to vector<8x128xf32>
    %107 = arith.mulf %45, %106 : vector<8x128xf32>
    %108 = arith.addf %104, %107 : vector<8x128xf32>
    %109 = vector.extract_strided_slice %101 {offsets = [0, 0], sizes = [1, 128], strides = [1, 1]} : vector<8x128xf32> to vector<1x128xf32>
    %110 = vector.broadcast %109 : vector<1x128xf32> to vector<8x128xf32>
    %111 = arith.mulf %59, %110 : vector<8x128xf32>
    %112 = arith.addf %108, %111 : vector<8x128xf32>
    %113 = vector.extract_strided_slice %73 {offsets = [1, 0], sizes = [1, 128], strides = [1, 1]} : vector<8x128xf32> to vector<1x128xf32>
    %114 = vector.broadcast %113 : vector<1x128xf32> to vector<8x128xf32>
    %115 = arith.mulf %31, %114 : vector<8x128xf32>
    %116 = vector.extract_strided_slice %87 {offsets = [1, 0], sizes = [1, 128], strides = [1, 1]} : vector<8x128xf32> to vector<1x128xf32>
    %117 = vector.broadcast %116 : vector<1x128xf32> to vector<8x128xf32>
    %118 = arith.mulf %45, %117 : vector<8x128xf32>
    %119 = arith.addf %115, %118 : vector<8x128xf32>
    %120 = vector.extract_strided_slice %101 {offsets = [1, 0], sizes = [1, 128], strides = [1, 1]} : vector<8x128xf32> to vector<1x128xf32>
    %121 = vector.broadcast %120 : vector<1x128xf32> to vector<8x128xf32>
    %122 = arith.mulf %59, %121 : vector<8x128xf32>
    %123 = arith.addf %119, %122 : vector<8x128xf32>
    %124 = vector.extract_strided_slice %73 {offsets = [2, 0], sizes = [1, 128], strides = [1, 1]} : vector<8x128xf32> to vector<1x128xf32>
    %125 = vector.broadcast %124 : vector<1x128xf32> to vector<8x128xf32>
    %126 = arith.mulf %31, %125 : vector<8x128xf32>
    %127 = vector.extract_strided_slice %87 {offsets = [2, 0], sizes = [1, 128], strides = [1, 1]} : vector<8x128xf32> to vector<1x128xf32>
    %128 = vector.broadcast %127 : vector<1x128xf32> to vector<8x128xf32>
    %129 = arith.mulf %45, %128 : vector<8x128xf32>
    %130 = arith.addf %126, %129 : vector<8x128xf32>
    %131 = vector.extract_strided_slice %101 {offsets = [2, 0], sizes = [1, 128], strides = [1, 1]} : vector<8x128xf32> to vector<1x128xf32>
    %132 = vector.broadcast %131 : vector<1x128xf32> to vector<8x128xf32>
    %133 = arith.mulf %59, %132 : vector<8x128xf32>
    %134 = arith.addf %130, %133 : vector<8x128xf32>
    %135 = vector.extract_strided_slice %73 {offsets = [3, 0], sizes = [1, 128], strides = [1, 1]} : vector<8x128xf32> to vector<1x128xf32>
    %136 = vector.broadcast %135 : vector<1x128xf32> to vector<8x128xf32>
    %137 = arith.mulf %31, %136 : vector<8x128xf32>
    %138 = vector.extract_strided_slice %87 {offsets = [3, 0], sizes = [1, 128], strides = [1, 1]} : vector<8x128xf32> to vector<1x128xf32>
    %139 = vector.broadcast %138 : vector<1x128xf32> to vector<8x128xf32>
    %140 = arith.mulf %45, %139 : vector<8x128xf32>
    %141 = arith.addf %137, %140 : vector<8x128xf32>
    %142 = vector.extract_strided_slice %101 {offsets = [3, 0], sizes = [1, 128], strides = [1, 1]} : vector<8x128xf32> to vector<1x128xf32>
    %143 = vector.broadcast %142 : vector<1x128xf32> to vector<8x128xf32>
    %144 = arith.mulf %59, %143 : vector<8x128xf32>
    %145 = arith.addf %141, %144 : vector<8x128xf32>
    %146 = vector.extract_strided_slice %73 {offsets = [4, 0], sizes = [1, 128], strides = [1, 1]} : vector<8x128xf32> to vector<1x128xf32>
    %147 = vector.broadcast %146 : vector<1x128xf32> to vector<8x128xf32>
    %148 = arith.mulf %31, %147 : vector<8x128xf32>
    %149 = vector.extract_strided_slice %87 {offsets = [4, 0], sizes = [1, 128], strides = [1, 1]} : vector<8x128xf32> to vector<1x128xf32>
    %150 = vector.broadcast %149 : vector<1x128xf32> to vector<8x128xf32>
    %151 = arith.mulf %45, %150 : vector<8x128xf32>
    %152 = arith.addf %148, %151 : vector<8x128xf32>
    %153 = vector.extract_strided_slice %101 {offsets = [4, 0], sizes = [1, 128], strides = [1, 1]} : vector<8x128xf32> to vector<1x128xf32>
    %154 = vector.broadcast %153 : vector<1x128xf32> to vector<8x128xf32>
    %155 = arith.mulf %59, %154 : vector<8x128xf32>
    %156 = arith.addf %152, %155 : vector<8x128xf32>
    %157 = vector.extract_strided_slice %73 {offsets = [5, 0], sizes = [1, 128], strides = [1, 1]} : vector<8x128xf32> to vector<1x128xf32>
    %158 = vector.broadcast %157 : vector<1x128xf32> to vector<8x128xf32>
    %159 = arith.mulf %31, %158 : vector<8x128xf32>
    %160 = vector.extract_strided_slice %87 {offsets = [5, 0], sizes = [1, 128], strides = [1, 1]} : vector<8x128xf32> to vector<1x128xf32>
    %161 = vector.broadcast %160 : vector<1x128xf32> to vector<8x128xf32>
    %162 = arith.mulf %45, %161 : vector<8x128xf32>
    %163 = arith.addf %159, %162 : vector<8x128xf32>
    %164 = vector.extract_strided_slice %101 {offsets = [5, 0], sizes = [1, 128], strides = [1, 1]} : vector<8x128xf32> to vector<1x128xf32>
    %165 = vector.broadcast %164 : vector<1x128xf32> to vector<8x128xf32>
    %166 = arith.mulf %59, %165 : vector<8x128xf32>
    %167 = arith.addf %163, %166 : vector<8x128xf32>
    %168 = vector.extract_strided_slice %73 {offsets = [6, 0], sizes = [1, 128], strides = [1, 1]} : vector<8x128xf32> to vector<1x128xf32>
    %169 = vector.broadcast %168 : vector<1x128xf32> to vector<8x128xf32>
    %170 = arith.mulf %31, %169 : vector<8x128xf32>
    %171 = vector.extract_strided_slice %87 {offsets = [6, 0], sizes = [1, 128], strides = [1, 1]} : vector<8x128xf32> to vector<1x128xf32>
    %172 = vector.broadcast %171 : vector<1x128xf32> to vector<8x128xf32>
    %173 = arith.mulf %45, %172 : vector<8x128xf32>
    %174 = arith.addf %170, %173 : vector<8x128xf32>
    %175 = vector.extract_strided_slice %101 {offsets = [6, 0], sizes = [1, 128], strides = [1, 1]} : vector<8x128xf32> to vector<1x128xf32>
    %176 = vector.broadcast %175 : vector<1x128xf32> to vector<8x128xf32>
    %177 = arith.mulf %59, %176 : vector<8x128xf32>
    %178 = arith.addf %174, %177 : vector<8x128xf32>
    %179 = vector.extract_strided_slice %73 {offsets = [7, 0], sizes = [1, 128], strides = [1, 1]} : vector<8x128xf32> to vector<1x128xf32>
    %180 = vector.broadcast %179 : vector<1x128xf32> to vector<8x128xf32>
    %181 = arith.mulf %31, %180 : vector<8x128xf32>
    %182 = vector.extract_strided_slice %87 {offsets = [7, 0], sizes = [1, 128], strides = [1, 1]} : vector<8x128xf32> to vector<1x128xf32>
    %183 = vector.broadcast %182 : vector<1x128xf32> to vector<8x128xf32>
    %184 = arith.mulf %45, %183 : vector<8x128xf32>
    %185 = arith.addf %181, %184 : vector<8x128xf32>
    %186 = vector.extract_strided_slice %101 {offsets = [7, 0], sizes = [1, 128], strides = [1, 1]} : vector<8x128xf32> to vector<1x128xf32>
    %187 = vector.broadcast %186 : vector<1x128xf32> to vector<8x128xf32>
    %188 = arith.mulf %59, %187 : vector<8x128xf32>
    %189 = arith.addf %185, %188 : vector<8x128xf32>
    %190 = arith.maximumf %112, %123 : vector<8x128xf32>
    %191 = arith.maximumf %190, %134 : vector<8x128xf32>
    %192 = arith.maximumf %191, %145 : vector<8x128xf32>
    %193 = arith.maximumf %192, %156 : vector<8x128xf32>
    %194 = arith.maximumf %193, %167 : vector<8x128xf32>
    %195 = arith.maximumf %194, %178 : vector<8x128xf32>
    %196 = arith.maximumf %195, %189 : vector<8x128xf32>
    %197 = arith.subf %112, %196 : vector<8x128xf32>
    %198 = math.exp %197 : vector<8x128xf32>
    %199 = arith.subf %123, %196 : vector<8x128xf32>
    %200 = math.exp %199 : vector<8x128xf32>
    %201 = arith.subf %134, %196 : vector<8x128xf32>
    %202 = math.exp %201 : vector<8x128xf32>
    %203 = arith.subf %145, %196 : vector<8x128xf32>
    %204 = math.exp %203 : vector<8x128xf32>
    %205 = arith.subf %156, %196 : vector<8x128xf32>
    %206 = math.exp %205 : vector<8x128xf32>
    %207 = arith.subf %167, %196 : vector<8x128xf32>
    %208 = math.exp %207 : vector<8x128xf32>
    %209 = arith.subf %178, %196 : vector<8x128xf32>
    %210 = math.exp %209 : vector<8x128xf32>
    %211 = arith.subf %189, %196 : vector<8x128xf32>
    %212 = math.exp %211 : vector<8x128xf32>
    %213 = arith.addf %198, %200 : vector<8x128xf32>
    %214 = arith.addf %213, %202 : vector<8x128xf32>
    %215 = arith.addf %214, %204 : vector<8x128xf32>
    %216 = arith.addf %215, %206 : vector<8x128xf32>
    %217 = arith.addf %216, %208 : vector<8x128xf32>
    %218 = arith.addf %217, %210 : vector<8x128xf32>
    %219 = arith.addf %218, %212 : vector<8x128xf32>
    %220 = tpu.reciprocal %219 {approx = true} : vector<8x128xf32> -> vector<8x128xf32>
    %221 = arith.mulf %198, %220 : vector<8x128xf32>
    %222 = arith.mulf %200, %220 : vector<8x128xf32>
    %223 = arith.mulf %202, %220 : vector<8x128xf32>
    %224 = arith.mulf %204, %220 : vector<8x128xf32>
    %225 = arith.mulf %206, %220 : vector<8x128xf32>
    %226 = arith.mulf %208, %220 : vector<8x128xf32>
    %227 = arith.mulf %210, %220 : vector<8x128xf32>
    %228 = arith.mulf %212, %220 : vector<8x128xf32>
    %c18 = arith.constant 18 : index
    %229 = memref.load %arg3[%c18] : memref<606xf32, #tpu.memory_space<smem>>
    %230 = vector.broadcast %229 : f32 to vector<8x128xf32>
    %231 = arith.mulf %230, %5 : vector<8x128xf32>
    %c19 = arith.constant 19 : index
    %232 = memref.load %arg3[%c19] : memref<606xf32, #tpu.memory_space<smem>>
    %233 = vector.broadcast %232 : f32 to vector<8x128xf32>
    %234 = arith.mulf %233, %11 : vector<8x128xf32>
    %235 = arith.addf %231, %234 : vector<8x128xf32>
    %c20 = arith.constant 20 : index
    %236 = memref.load %arg3[%c20] : memref<606xf32, #tpu.memory_space<smem>>
    %237 = vector.broadcast %236 : f32 to vector<8x128xf32>
    %238 = arith.mulf %237, %17 : vector<8x128xf32>
    %239 = arith.addf %235, %238 : vector<8x128xf32>
    %c42 = arith.constant 42 : index
    %240 = memref.load %arg3[%c42] : memref<606xf32, #tpu.memory_space<smem>>
    %241 = vector.broadcast %240 : f32 to vector<8x128xf32>
    %242 = arith.addf %239, %241 : vector<8x128xf32>
    %c21 = arith.constant 21 : index
    %243 = memref.load %arg3[%c21] : memref<606xf32, #tpu.memory_space<smem>>
    %244 = vector.broadcast %243 : f32 to vector<8x128xf32>
    %245 = arith.mulf %244, %5 : vector<8x128xf32>
    %c22 = arith.constant 22 : index
    %246 = memref.load %arg3[%c22] : memref<606xf32, #tpu.memory_space<smem>>
    %247 = vector.broadcast %246 : f32 to vector<8x128xf32>
    %248 = arith.mulf %247, %11 : vector<8x128xf32>
    %249 = arith.addf %245, %248 : vector<8x128xf32>
    %c23 = arith.constant 23 : index
    %250 = memref.load %arg3[%c23] : memref<606xf32, #tpu.memory_space<smem>>
    %251 = vector.broadcast %250 : f32 to vector<8x128xf32>
    %252 = arith.mulf %251, %17 : vector<8x128xf32>
    %253 = arith.addf %249, %252 : vector<8x128xf32>
    %c43 = arith.constant 43 : index
    %254 = memref.load %arg3[%c43] : memref<606xf32, #tpu.memory_space<smem>>
    %255 = vector.broadcast %254 : f32 to vector<8x128xf32>
    %256 = arith.addf %253, %255 : vector<8x128xf32>
    %c24 = arith.constant 24 : index
    %257 = memref.load %arg3[%c24] : memref<606xf32, #tpu.memory_space<smem>>
    %258 = vector.broadcast %257 : f32 to vector<8x128xf32>
    %259 = arith.mulf %258, %5 : vector<8x128xf32>
    %c25 = arith.constant 25 : index
    %260 = memref.load %arg3[%c25] : memref<606xf32, #tpu.memory_space<smem>>
    %261 = vector.broadcast %260 : f32 to vector<8x128xf32>
    %262 = arith.mulf %261, %11 : vector<8x128xf32>
    %263 = arith.addf %259, %262 : vector<8x128xf32>
    %c26 = arith.constant 26 : index
    %264 = memref.load %arg3[%c26] : memref<606xf32, #tpu.memory_space<smem>>
    %265 = vector.broadcast %264 : f32 to vector<8x128xf32>
    %266 = arith.mulf %265, %17 : vector<8x128xf32>
    %267 = arith.addf %263, %266 : vector<8x128xf32>
    %c44 = arith.constant 44 : index
    %268 = memref.load %arg3[%c44] : memref<606xf32, #tpu.memory_space<smem>>
    %269 = vector.broadcast %268 : f32 to vector<8x128xf32>
    %270 = arith.addf %267, %269 : vector<8x128xf32>
    %271 = vector.extract_strided_slice %242 {offsets = [0, 0], sizes = [1, 128], strides = [1, 1]} : vector<8x128xf32> to vector<1x128xf32>
    %272 = vector.broadcast %271 : vector<1x128xf32> to vector<8x128xf32>
    %273 = arith.mulf %221, %272 : vector<8x128xf32>
    %274 = vector.extract_strided_slice %242 {offsets = [1, 0], sizes = [1, 128], strides = [1, 1]} : vector<8x128xf32> to vector<1x128xf32>
    %275 = vector.broadcast %274 : vector<1x128xf32> to vector<8x128xf32>
    %276 = arith.mulf %222, %275 : vector<8x128xf32>
    %277 = arith.addf %273, %276 : vector<8x128xf32>
    %278 = vector.extract_strided_slice %242 {offsets = [2, 0], sizes = [1, 128], strides = [1, 1]} : vector<8x128xf32> to vector<1x128xf32>
    %279 = vector.broadcast %278 : vector<1x128xf32> to vector<8x128xf32>
    %280 = arith.mulf %223, %279 : vector<8x128xf32>
    %281 = arith.addf %277, %280 : vector<8x128xf32>
    %282 = vector.extract_strided_slice %242 {offsets = [3, 0], sizes = [1, 128], strides = [1, 1]} : vector<8x128xf32> to vector<1x128xf32>
    %283 = vector.broadcast %282 : vector<1x128xf32> to vector<8x128xf32>
    %284 = arith.mulf %224, %283 : vector<8x128xf32>
    %285 = arith.addf %281, %284 : vector<8x128xf32>
    %286 = vector.extract_strided_slice %242 {offsets = [4, 0], sizes = [1, 128], strides = [1, 1]} : vector<8x128xf32> to vector<1x128xf32>
    %287 = vector.broadcast %286 : vector<1x128xf32> to vector<8x128xf32>
    %288 = arith.mulf %225, %287 : vector<8x128xf32>
    %289 = arith.addf %285, %288 : vector<8x128xf32>
    %290 = vector.extract_strided_slice %242 {offsets = [5, 0], sizes = [1, 128], strides = [1, 1]} : vector<8x128xf32> to vector<1x128xf32>
    %291 = vector.broadcast %290 : vector<1x128xf32> to vector<8x128xf32>
    %292 = arith.mulf %226, %291 : vector<8x128xf32>
    %293 = arith.addf %289, %292 : vector<8x128xf32>
    %294 = vector.extract_strided_slice %242 {offsets = [6, 0], sizes = [1, 128], strides = [1, 1]} : vector<8x128xf32> to vector<1x128xf32>
    %295 = vector.broadcast %294 : vector<1x128xf32> to vector<8x128xf32>
    %296 = arith.mulf %227, %295 : vector<8x128xf32>
    %297 = arith.addf %293, %296 : vector<8x128xf32>
    %298 = vector.extract_strided_slice %242 {offsets = [7, 0], sizes = [1, 128], strides = [1, 1]} : vector<8x128xf32> to vector<1x128xf32>
    %299 = vector.broadcast %298 : vector<1x128xf32> to vector<8x128xf32>
    %300 = arith.mulf %228, %299 : vector<8x128xf32>
    %301 = arith.addf %297, %300 : vector<8x128xf32>
    %302 = vector.extract_strided_slice %256 {offsets = [0, 0], sizes = [1, 128], strides = [1, 1]} : vector<8x128xf32> to vector<1x128xf32>
    %303 = vector.broadcast %302 : vector<1x128xf32> to vector<8x128xf32>
    %304 = arith.mulf %221, %303 : vector<8x128xf32>
    %305 = vector.extract_strided_slice %256 {offsets = [1, 0], sizes = [1, 128], strides = [1, 1]} : vector<8x128xf32> to vector<1x128xf32>
    %306 = vector.broadcast %305 : vector<1x128xf32> to vector<8x128xf32>
    %307 = arith.mulf %222, %306 : vector<8x128xf32>
    %308 = arith.addf %304, %307 : vector<8x128xf32>
    %309 = vector.extract_strided_slice %256 {offsets = [2, 0], sizes = [1, 128], strides = [1, 1]} : vector<8x128xf32> to vector<1x128xf32>
    %310 = vector.broadcast %309 : vector<1x128xf32> to vector<8x128xf32>
    %311 = arith.mulf %223, %310 : vector<8x128xf32>
    %312 = arith.addf %308, %311 : vector<8x128xf32>
    %313 = vector.extract_strided_slice %256 {offsets = [3, 0], sizes = [1, 128], strides = [1, 1]} : vector<8x128xf32> to vector<1x128xf32>
    %314 = vector.broadcast %313 : vector<1x128xf32> to vector<8x128xf32>
    %315 = arith.mulf %224, %314 : vector<8x128xf32>
    %316 = arith.addf %312, %315 : vector<8x128xf32>
    %317 = vector.extract_strided_slice %256 {offsets = [4, 0], sizes = [1, 128], strides = [1, 1]} : vector<8x128xf32> to vector<1x128xf32>
    %318 = vector.broadcast %317 : vector<1x128xf32> to vector<8x128xf32>
    %319 = arith.mulf %225, %318 : vector<8x128xf32>
    %320 = arith.addf %316, %319 : vector<8x128xf32>
    %321 = vector.extract_strided_slice %256 {offsets = [5, 0], sizes = [1, 128], strides = [1, 1]} : vector<8x128xf32> to vector<1x128xf32>
    %322 = vector.broadcast %321 : vector<1x128xf32> to vector<8x128xf32>
    %323 = arith.mulf %226, %322 : vector<8x128xf32>
    %324 = arith.addf %320, %323 : vector<8x128xf32>
    %325 = vector.extract_strided_slice %256 {offsets = [6, 0], sizes = [1, 128], strides = [1, 1]} : vector<8x128xf32> to vector<1x128xf32>
    %326 = vector.broadcast %325 : vector<1x128xf32> to vector<8x128xf32>
    %327 = arith.mulf %227, %326 : vector<8x128xf32>
    %328 = arith.addf %324, %327 : vector<8x128xf32>
    %329 = vector.extract_strided_slice %256 {offsets = [7, 0], sizes = [1, 128], strides = [1, 1]} : vector<8x128xf32> to vector<1x128xf32>
    %330 = vector.broadcast %329 : vector<1x128xf32> to vector<8x128xf32>
    %331 = arith.mulf %228, %330 : vector<8x128xf32>
    %332 = arith.addf %328, %331 : vector<8x128xf32>
    %333 = vector.extract_strided_slice %270 {offsets = [0, 0], sizes = [1, 128], strides = [1, 1]} : vector<8x128xf32> to vector<1x128xf32>
    %334 = vector.broadcast %333 : vector<1x128xf32> to vector<8x128xf32>
    %335 = arith.mulf %221, %334 : vector<8x128xf32>
    %336 = vector.extract_strided_slice %270 {offsets = [1, 0], sizes = [1, 128], strides = [1, 1]} : vector<8x128xf32> to vector<1x128xf32>
    %337 = vector.broadcast %336 : vector<1x128xf32> to vector<8x128xf32>
    %338 = arith.mulf %222, %337 : vector<8x128xf32>
    %339 = arith.addf %335, %338 : vector<8x128xf32>
    %340 = vector.extract_strided_slice %270 {offsets = [2, 0], sizes = [1, 128], strides = [1, 1]} : vector<8x128xf32> to vector<1x128xf32>
    %341 = vector.broadcast %340 : vector<1x128xf32> to vector<8x128xf32>
    %342 = arith.mulf %223, %341 : vector<8x128xf32>
    %343 = arith.addf %339, %342 : vector<8x128xf32>
    %344 = vector.extract_strided_slice %270 {offsets = [3, 0], sizes = [1, 128], strides = [1, 1]} : vector<8x128xf32> to vector<1x128xf32>
    %345 = vector.broadcast %344 : vector<1x128xf32> to vector<8x128xf32>
    %346 = arith.mulf %224, %345 : vector<8x128xf32>
    %347 = arith.addf %343, %346 : vector<8x128xf32>
    %348 = vector.extract_strided_slice %270 {offsets = [4, 0], sizes = [1, 128], strides = [1, 1]} : vector<8x128xf32> to vector<1x128xf32>
    %349 = vector.broadcast %348 : vector<1x128xf32> to vector<8x128xf32>
    %350 = arith.mulf %225, %349 : vector<8x128xf32>
    %351 = arith.addf %347, %350 : vector<8x128xf32>
    %352 = vector.extract_strided_slice %270 {offsets = [5, 0], sizes = [1, 128], strides = [1, 1]} : vector<8x128xf32> to vector<1x128xf32>
    %353 = vector.broadcast %352 : vector<1x128xf32> to vector<8x128xf32>
    %354 = arith.mulf %226, %353 : vector<8x128xf32>
    %355 = arith.addf %351, %354 : vector<8x128xf32>
    %356 = vector.extract_strided_slice %270 {offsets = [6, 0], sizes = [1, 128], strides = [1, 1]} : vector<8x128xf32> to vector<1x128xf32>
    %357 = vector.broadcast %356 : vector<1x128xf32> to vector<8x128xf32>
    %358 = arith.mulf %227, %357 : vector<8x128xf32>
    %359 = arith.addf %355, %358 : vector<8x128xf32>
    %360 = vector.extract_strided_slice %270 {offsets = [7, 0], sizes = [1, 128], strides = [1, 1]} : vector<8x128xf32> to vector<1x128xf32>
    %361 = vector.broadcast %360 : vector<1x128xf32> to vector<8x128xf32>
    %362 = arith.mulf %228, %361 : vector<8x128xf32>
    %363 = arith.addf %359, %362 : vector<8x128xf32>
    %c27 = arith.constant 27 : index
    %364 = memref.load %arg3[%c27] : memref<606xf32, #tpu.memory_space<smem>>
    %365 = vector.broadcast %364 : f32 to vector<8x128xf32>
    %366 = arith.mulf %365, %301 : vector<8x128xf32>
    %c28 = arith.constant 28 : index
    %367 = memref.load %arg3[%c28] : memref<606xf32, #tpu.memory_space<smem>>
    %368 = vector.broadcast %367 : f32 to vector<8x128xf32>
    %369 = arith.mulf %368, %332 : vector<8x128xf32>
    %370 = arith.addf %366, %369 : vector<8x128xf32>
    %c29 = arith.constant 29 : index
    %371 = memref.load %arg3[%c29] : memref<606xf32, #tpu.memory_space<smem>>
    %372 = vector.broadcast %371 : f32 to vector<8x128xf32>
    %373 = arith.mulf %372, %363 : vector<8x128xf32>
    %374 = arith.addf %370, %373 : vector<8x128xf32>
    %c45 = arith.constant 45 : index
    %375 = memref.load %arg3[%c45] : memref<606xf32, #tpu.memory_space<smem>>
    %376 = vector.broadcast %375 : f32 to vector<8x128xf32>
    %377 = arith.addf %374, %376 : vector<8x128xf32>
    %c30 = arith.constant 30 : index
    %378 = memref.load %arg3[%c30] : memref<606xf32, #tpu.memory_space<smem>>
    %379 = vector.broadcast %378 : f32 to vector<8x128xf32>
    %380 = arith.mulf %379, %301 : vector<8x128xf32>
    %c31 = arith.constant 31 : index
    %381 = memref.load %arg3[%c31] : memref<606xf32, #tpu.memory_space<smem>>
    %382 = vector.broadcast %381 : f32 to vector<8x128xf32>
    %383 = arith.mulf %382, %332 : vector<8x128xf32>
    %384 = arith.addf %380, %383 : vector<8x128xf32>
    %c32 = arith.constant 32 : index
    %385 = memref.load %arg3[%c32] : memref<606xf32, #tpu.memory_space<smem>>
    %386 = vector.broadcast %385 : f32 to vector<8x128xf32>
    %387 = arith.mulf %386, %363 : vector<8x128xf32>
    %388 = arith.addf %384, %387 : vector<8x128xf32>
    %c46 = arith.constant 46 : index
    %389 = memref.load %arg3[%c46] : memref<606xf32, #tpu.memory_space<smem>>
    %390 = vector.broadcast %389 : f32 to vector<8x128xf32>
    %391 = arith.addf %388, %390 : vector<8x128xf32>
    %c33 = arith.constant 33 : index
    %392 = memref.load %arg3[%c33] : memref<606xf32, #tpu.memory_space<smem>>
    %393 = vector.broadcast %392 : f32 to vector<8x128xf32>
    %394 = arith.mulf %393, %301 : vector<8x128xf32>
    %c34 = arith.constant 34 : index
    %395 = memref.load %arg3[%c34] : memref<606xf32, #tpu.memory_space<smem>>
    %396 = vector.broadcast %395 : f32 to vector<8x128xf32>
    %397 = arith.mulf %396, %332 : vector<8x128xf32>
    %398 = arith.addf %394, %397 : vector<8x128xf32>
    %c35 = arith.constant 35 : index
    %399 = memref.load %arg3[%c35] : memref<606xf32, #tpu.memory_space<smem>>
    %400 = vector.broadcast %399 : f32 to vector<8x128xf32>
    %401 = arith.mulf %400, %363 : vector<8x128xf32>
    %402 = arith.addf %398, %401 : vector<8x128xf32>
    %c47 = arith.constant 47 : index
    %403 = memref.load %arg3[%c47] : memref<606xf32, #tpu.memory_space<smem>>
    %404 = vector.broadcast %403 : f32 to vector<8x128xf32>
    %405 = arith.addf %402, %404 : vector<8x128xf32>
    %406 = arith.addf %5, %377 : vector<8x128xf32>
    %407 = arith.addf %11, %391 : vector<8x128xf32>
    %408 = arith.addf %17, %405 : vector<8x128xf32>
    %409 = arith.addf %406, %407 : vector<8x128xf32>
    %410 = arith.addf %409, %408 : vector<8x128xf32>
    %cst = arith.constant 0.333333343 : f32
    %411 = vector.broadcast %cst : f32 to vector<8x128xf32>
    %412 = arith.mulf %410, %411 : vector<8x128xf32>
    %413 = arith.subf %406, %412 : vector<8x128xf32>
    %414 = arith.mulf %413, %413 : vector<8x128xf32>
    %415 = arith.subf %407, %412 : vector<8x128xf32>
    %416 = arith.mulf %415, %415 : vector<8x128xf32>
    %417 = arith.addf %414, %416 : vector<8x128xf32>
    %418 = arith.subf %408, %412 : vector<8x128xf32>
    %419 = arith.mulf %418, %418 : vector<8x128xf32>
    %420 = arith.addf %417, %419 : vector<8x128xf32>
    %cst_18 = arith.constant 0.333333343 : f32
    %421 = vector.broadcast %cst_18 : f32 to vector<8x128xf32>
    %422 = arith.mulf %420, %421 : vector<8x128xf32>
    %cst_19 = arith.constant 9.99999974E-6 : f32
    %423 = vector.broadcast %cst_19 : f32 to vector<8x128xf32>
    %424 = arith.addf %422, %423 : vector<8x128xf32>
    %425 = math.rsqrt %424 : vector<8x128xf32>
    %426 = arith.subf %406, %412 : vector<8x128xf32>
    %427 = arith.mulf %426, %425 : vector<8x128xf32>
    %c48 = arith.constant 48 : index
    %428 = memref.load %arg3[%c48] : memref<606xf32, #tpu.memory_space<smem>>
    %429 = vector.broadcast %428 : f32 to vector<8x128xf32>
    %430 = arith.mulf %427, %429 : vector<8x128xf32>
    %c51 = arith.constant 51 : index
    %431 = memref.load %arg3[%c51] : memref<606xf32, #tpu.memory_space<smem>>
    %432 = vector.broadcast %431 : f32 to vector<8x128xf32>
    %433 = arith.addf %430, %432 : vector<8x128xf32>
    %434 = arith.subf %407, %412 : vector<8x128xf32>
    %435 = arith.mulf %434, %425 : vector<8x128xf32>
    %c49 = arith.constant 49 : index
    %436 = memref.load %arg3[%c49] : memref<606xf32, #tpu.memory_space<smem>>
    %437 = vector.broadcast %436 : f32 to vector<8x128xf32>
    %438 = arith.mulf %435, %437 : vector<8x128xf32>
    %c52 = arith.constant 52 : index
    %439 = memref.load %arg3[%c52] : memref<606xf32, #tpu.memory_space<smem>>
    %440 = vector.broadcast %439 : f32 to vector<8x128xf32>
    %441 = arith.addf %438, %440 : vector<8x128xf32>
    %442 = arith.subf %408, %412 : vector<8x128xf32>
    %443 = arith.mulf %442, %425 : vector<8x128xf32>
    %c50 = arith.constant 50 : index
    %444 = memref.load %arg3[%c50] : memref<606xf32, #tpu.memory_space<smem>>
    %445 = vector.broadcast %444 : f32 to vector<8x128xf32>
    %446 = arith.mulf %443, %445 : vector<8x128xf32>
    %c53 = arith.constant 53 : index
    %447 = memref.load %arg3[%c53] : memref<606xf32, #tpu.memory_space<smem>>
    %448 = vector.broadcast %447 : f32 to vector<8x128xf32>
    %449 = arith.addf %446, %448 : vector<8x128xf32>
    %c60 = arith.constant 60 : index
    %450 = memref.load %arg3[%c60] : memref<606xf32, #tpu.memory_space<smem>>
    %451 = vector.broadcast %450 : f32 to vector<8x128xf32>
    %452 = arith.mulf %451, %433 : vector<8x128xf32>
    %c61 = arith.constant 61 : index
    %453 = memref.load %arg3[%c61] : memref<606xf32, #tpu.memory_space<smem>>
    %454 = vector.broadcast %453 : f32 to vector<8x128xf32>
    %455 = arith.mulf %454, %441 : vector<8x128xf32>
    %456 = arith.addf %452, %455 : vector<8x128xf32>
    %c62 = arith.constant 62 : index
    %457 = memref.load %arg3[%c62] : memref<606xf32, #tpu.memory_space<smem>>
    %458 = vector.broadcast %457 : f32 to vector<8x128xf32>
    %459 = arith.mulf %458, %449 : vector<8x128xf32>
    %460 = arith.addf %456, %459 : vector<8x128xf32>
    %c156 = arith.constant 156 : index
    %461 = memref.load %arg3[%c156] : memref<606xf32, #tpu.memory_space<smem>>
    %462 = vector.broadcast %461 : f32 to vector<8x128xf32>
    %463 = arith.addf %460, %462 : vector<8x128xf32>
    %cst_20 = arith.constant 0.000000e+00 : f32
    %464 = vector.broadcast %cst_20 : f32 to vector<8x128xf32>
    %465 = arith.maximumf %463, %464 : vector<8x128xf32>
    %c188 = arith.constant 188 : index
    %466 = memref.load %arg3[%c188] : memref<606xf32, #tpu.memory_space<smem>>
    %467 = vector.broadcast %466 : f32 to vector<8x128xf32>
    %468 = arith.mulf %467, %465 : vector<8x128xf32>
    %c220 = arith.constant 220 : index
    %469 = memref.load %arg3[%c220] : memref<606xf32, #tpu.memory_space<smem>>
    %470 = vector.broadcast %469 : f32 to vector<8x128xf32>
    %471 = arith.mulf %470, %465 : vector<8x128xf32>
    %c252 = arith.constant 252 : index
    %472 = memref.load %arg3[%c252] : memref<606xf32, #tpu.memory_space<smem>>
    %473 = vector.broadcast %472 : f32 to vector<8x128xf32>
    %474 = arith.mulf %473, %465 : vector<8x128xf32>
    %c63 = arith.constant 63 : index
    %475 = memref.load %arg3[%c63] : memref<606xf32, #tpu.memory_space<smem>>
    %476 = vector.broadcast %475 : f32 to vector<8x128xf32>
    %477 = arith.mulf %476, %433 : vector<8x128xf32>
    %c64 = arith.constant 64 : index
    %478 = memref.load %arg3[%c64] : memref<606xf32, #tpu.memory_space<smem>>
    %479 = vector.broadcast %478 : f32 to vector<8x128xf32>
    %480 = arith.mulf %479, %441 : vector<8x128xf32>
    %481 = arith.addf %477, %480 : vector<8x128xf32>
    %c65 = arith.constant 65 : index
    %482 = memref.load %arg3[%c65] : memref<606xf32, #tpu.memory_space<smem>>
    %483 = vector.broadcast %482 : f32 to vector<8x128xf32>
    %484 = arith.mulf %483, %449 : vector<8x128xf32>
    %485 = arith.addf %481, %484 : vector<8x128xf32>
    %c157 = arith.constant 157 : index
    %486 = memref.load %arg3[%c157] : memref<606xf32, #tpu.memory_space<smem>>
    %487 = vector.broadcast %486 : f32 to vector<8x128xf32>
    %488 = arith.addf %485, %487 : vector<8x128xf32>
    %cst_21 = arith.constant 0.000000e+00 : f32
    %489 = vector.broadcast %cst_21 : f32 to vector<8x128xf32>
    %490 = arith.maximumf %488, %489 : vector<8x128xf32>
    %c189 = arith.constant 189 : index
    %491 = memref.load %arg3[%c189] : memref<606xf32, #tpu.memory_space<smem>>
    %492 = vector.broadcast %491 : f32 to vector<8x128xf32>
    %493 = arith.mulf %492, %490 : vector<8x128xf32>
    %494 = arith.addf %468, %493 : vector<8x128xf32>
    %c221 = arith.constant 221 : index
    %495 = memref.load %arg3[%c221] : memref<606xf32, #tpu.memory_space<smem>>
    %496 = vector.broadcast %495 : f32 to vector<8x128xf32>
    %497 = arith.mulf %496, %490 : vector<8x128xf32>
    %498 = arith.addf %471, %497 : vector<8x128xf32>
    %c253 = arith.constant 253 : index
    %499 = memref.load %arg3[%c253] : memref<606xf32, #tpu.memory_space<smem>>
    %500 = vector.broadcast %499 : f32 to vector<8x128xf32>
    %501 = arith.mulf %500, %490 : vector<8x128xf32>
    %502 = arith.addf %474, %501 : vector<8x128xf32>
    %c66 = arith.constant 66 : index
    %503 = memref.load %arg3[%c66] : memref<606xf32, #tpu.memory_space<smem>>
    %504 = vector.broadcast %503 : f32 to vector<8x128xf32>
    %505 = arith.mulf %504, %433 : vector<8x128xf32>
    %c67 = arith.constant 67 : index
    %506 = memref.load %arg3[%c67] : memref<606xf32, #tpu.memory_space<smem>>
    %507 = vector.broadcast %506 : f32 to vector<8x128xf32>
    %508 = arith.mulf %507, %441 : vector<8x128xf32>
    %509 = arith.addf %505, %508 : vector<8x128xf32>
    %c68 = arith.constant 68 : index
    %510 = memref.load %arg3[%c68] : memref<606xf32, #tpu.memory_space<smem>>
    %511 = vector.broadcast %510 : f32 to vector<8x128xf32>
    %512 = arith.mulf %511, %449 : vector<8x128xf32>
    %513 = arith.addf %509, %512 : vector<8x128xf32>
    %c158 = arith.constant 158 : index
    %514 = memref.load %arg3[%c158] : memref<606xf32, #tpu.memory_space<smem>>
    %515 = vector.broadcast %514 : f32 to vector<8x128xf32>
    %516 = arith.addf %513, %515 : vector<8x128xf32>
    %cst_22 = arith.constant 0.000000e+00 : f32
    %517 = vector.broadcast %cst_22 : f32 to vector<8x128xf32>
    %518 = arith.maximumf %516, %517 : vector<8x128xf32>
    %c190 = arith.constant 190 : index
    %519 = memref.load %arg3[%c190] : memref<606xf32, #tpu.memory_space<smem>>
    %520 = vector.broadcast %519 : f32 to vector<8x128xf32>
    %521 = arith.mulf %520, %518 : vector<8x128xf32>
    %522 = arith.addf %494, %521 : vector<8x128xf32>
    %c222 = arith.constant 222 : index
    %523 = memref.load %arg3[%c222] : memref<606xf32, #tpu.memory_space<smem>>
    %524 = vector.broadcast %523 : f32 to vector<8x128xf32>
    %525 = arith.mulf %524, %518 : vector<8x128xf32>
    %526 = arith.addf %498, %525 : vector<8x128xf32>
    %c254 = arith.constant 254 : index
    %527 = memref.load %arg3[%c254] : memref<606xf32, #tpu.memory_space<smem>>
    %528 = vector.broadcast %527 : f32 to vector<8x128xf32>
    %529 = arith.mulf %528, %518 : vector<8x128xf32>
    %530 = arith.addf %502, %529 : vector<8x128xf32>
    %c69 = arith.constant 69 : index
    %531 = memref.load %arg3[%c69] : memref<606xf32, #tpu.memory_space<smem>>
    %532 = vector.broadcast %531 : f32 to vector<8x128xf32>
    %533 = arith.mulf %532, %433 : vector<8x128xf32>
    %c70 = arith.constant 70 : index
    %534 = memref.load %arg3[%c70] : memref<606xf32, #tpu.memory_space<smem>>
    %535 = vector.broadcast %534 : f32 to vector<8x128xf32>
    %536 = arith.mulf %535, %441 : vector<8x128xf32>
    %537 = arith.addf %533, %536 : vector<8x128xf32>
    %c71 = arith.constant 71 : index
    %538 = memref.load %arg3[%c71] : memref<606xf32, #tpu.memory_space<smem>>
    %539 = vector.broadcast %538 : f32 to vector<8x128xf32>
    %540 = arith.mulf %539, %449 : vector<8x128xf32>
    %541 = arith.addf %537, %540 : vector<8x128xf32>
    %c159 = arith.constant 159 : index
    %542 = memref.load %arg3[%c159] : memref<606xf32, #tpu.memory_space<smem>>
    %543 = vector.broadcast %542 : f32 to vector<8x128xf32>
    %544 = arith.addf %541, %543 : vector<8x128xf32>
    %cst_23 = arith.constant 0.000000e+00 : f32
    %545 = vector.broadcast %cst_23 : f32 to vector<8x128xf32>
    %546 = arith.maximumf %544, %545 : vector<8x128xf32>
    %c191 = arith.constant 191 : index
    %547 = memref.load %arg3[%c191] : memref<606xf32, #tpu.memory_space<smem>>
    %548 = vector.broadcast %547 : f32 to vector<8x128xf32>
    %549 = arith.mulf %548, %546 : vector<8x128xf32>
    %550 = arith.addf %522, %549 : vector<8x128xf32>
    %c223 = arith.constant 223 : index
    %551 = memref.load %arg3[%c223] : memref<606xf32, #tpu.memory_space<smem>>
    %552 = vector.broadcast %551 : f32 to vector<8x128xf32>
    %553 = arith.mulf %552, %546 : vector<8x128xf32>
    %554 = arith.addf %526, %553 : vector<8x128xf32>
    %c255 = arith.constant 255 : index
    %555 = memref.load %arg3[%c255] : memref<606xf32, #tpu.memory_space<smem>>
    %556 = vector.broadcast %555 : f32 to vector<8x128xf32>
    %557 = arith.mulf %556, %546 : vector<8x128xf32>
    %558 = arith.addf %530, %557 : vector<8x128xf32>
    %c72 = arith.constant 72 : index
    %559 = memref.load %arg3[%c72] : memref<606xf32, #tpu.memory_space<smem>>
    %560 = vector.broadcast %559 : f32 to vector<8x128xf32>
    %561 = arith.mulf %560, %433 : vector<8x128xf32>
    %c73 = arith.constant 73 : index
    %562 = memref.load %arg3[%c73] : memref<606xf32, #tpu.memory_space<smem>>
    %563 = vector.broadcast %562 : f32 to vector<8x128xf32>
    %564 = arith.mulf %563, %441 : vector<8x128xf32>
    %565 = arith.addf %561, %564 : vector<8x128xf32>
    %c74 = arith.constant 74 : index
    %566 = memref.load %arg3[%c74] : memref<606xf32, #tpu.memory_space<smem>>
    %567 = vector.broadcast %566 : f32 to vector<8x128xf32>
    %568 = arith.mulf %567, %449 : vector<8x128xf32>
    %569 = arith.addf %565, %568 : vector<8x128xf32>
    %c160 = arith.constant 160 : index
    %570 = memref.load %arg3[%c160] : memref<606xf32, #tpu.memory_space<smem>>
    %571 = vector.broadcast %570 : f32 to vector<8x128xf32>
    %572 = arith.addf %569, %571 : vector<8x128xf32>
    %cst_24 = arith.constant 0.000000e+00 : f32
    %573 = vector.broadcast %cst_24 : f32 to vector<8x128xf32>
    %574 = arith.maximumf %572, %573 : vector<8x128xf32>
    %c192 = arith.constant 192 : index
    %575 = memref.load %arg3[%c192] : memref<606xf32, #tpu.memory_space<smem>>
    %576 = vector.broadcast %575 : f32 to vector<8x128xf32>
    %577 = arith.mulf %576, %574 : vector<8x128xf32>
    %578 = arith.addf %550, %577 : vector<8x128xf32>
    %c224 = arith.constant 224 : index
    %579 = memref.load %arg3[%c224] : memref<606xf32, #tpu.memory_space<smem>>
    %580 = vector.broadcast %579 : f32 to vector<8x128xf32>
    %581 = arith.mulf %580, %574 : vector<8x128xf32>
    %582 = arith.addf %554, %581 : vector<8x128xf32>
    %c256 = arith.constant 256 : index
    %583 = memref.load %arg3[%c256] : memref<606xf32, #tpu.memory_space<smem>>
    %584 = vector.broadcast %583 : f32 to vector<8x128xf32>
    %585 = arith.mulf %584, %574 : vector<8x128xf32>
    %586 = arith.addf %558, %585 : vector<8x128xf32>
    %c75 = arith.constant 75 : index
    %587 = memref.load %arg3[%c75] : memref<606xf32, #tpu.memory_space<smem>>
    %588 = vector.broadcast %587 : f32 to vector<8x128xf32>
    %589 = arith.mulf %588, %433 : vector<8x128xf32>
    %c76 = arith.constant 76 : index
    %590 = memref.load %arg3[%c76] : memref<606xf32, #tpu.memory_space<smem>>
    %591 = vector.broadcast %590 : f32 to vector<8x128xf32>
    %592 = arith.mulf %591, %441 : vector<8x128xf32>
    %593 = arith.addf %589, %592 : vector<8x128xf32>
    %c77 = arith.constant 77 : index
    %594 = memref.load %arg3[%c77] : memref<606xf32, #tpu.memory_space<smem>>
    %595 = vector.broadcast %594 : f32 to vector<8x128xf32>
    %596 = arith.mulf %595, %449 : vector<8x128xf32>
    %597 = arith.addf %593, %596 : vector<8x128xf32>
    %c161 = arith.constant 161 : index
    %598 = memref.load %arg3[%c161] : memref<606xf32, #tpu.memory_space<smem>>
    %599 = vector.broadcast %598 : f32 to vector<8x128xf32>
    %600 = arith.addf %597, %599 : vector<8x128xf32>
    %cst_25 = arith.constant 0.000000e+00 : f32
    %601 = vector.broadcast %cst_25 : f32 to vector<8x128xf32>
    %602 = arith.maximumf %600, %601 : vector<8x128xf32>
    %c193 = arith.constant 193 : index
    %603 = memref.load %arg3[%c193] : memref<606xf32, #tpu.memory_space<smem>>
    %604 = vector.broadcast %603 : f32 to vector<8x128xf32>
    %605 = arith.mulf %604, %602 : vector<8x128xf32>
    %606 = arith.addf %578, %605 : vector<8x128xf32>
    %c225 = arith.constant 225 : index
    %607 = memref.load %arg3[%c225] : memref<606xf32, #tpu.memory_space<smem>>
    %608 = vector.broadcast %607 : f32 to vector<8x128xf32>
    %609 = arith.mulf %608, %602 : vector<8x128xf32>
    %610 = arith.addf %582, %609 : vector<8x128xf32>
    %c257 = arith.constant 257 : index
    %611 = memref.load %arg3[%c257] : memref<606xf32, #tpu.memory_space<smem>>
    %612 = vector.broadcast %611 : f32 to vector<8x128xf32>
    %613 = arith.mulf %612, %602 : vector<8x128xf32>
    %614 = arith.addf %586, %613 : vector<8x128xf32>
    %c78 = arith.constant 78 : index
    %615 = memref.load %arg3[%c78] : memref<606xf32, #tpu.memory_space<smem>>
    %616 = vector.broadcast %615 : f32 to vector<8x128xf32>
    %617 = arith.mulf %616, %433 : vector<8x128xf32>
    %c79 = arith.constant 79 : index
    %618 = memref.load %arg3[%c79] : memref<606xf32, #tpu.memory_space<smem>>
    %619 = vector.broadcast %618 : f32 to vector<8x128xf32>
    %620 = arith.mulf %619, %441 : vector<8x128xf32>
    %621 = arith.addf %617, %620 : vector<8x128xf32>
    %c80 = arith.constant 80 : index
    %622 = memref.load %arg3[%c80] : memref<606xf32, #tpu.memory_space<smem>>
    %623 = vector.broadcast %622 : f32 to vector<8x128xf32>
    %624 = arith.mulf %623, %449 : vector<8x128xf32>
    %625 = arith.addf %621, %624 : vector<8x128xf32>
    %c162 = arith.constant 162 : index
    %626 = memref.load %arg3[%c162] : memref<606xf32, #tpu.memory_space<smem>>
    %627 = vector.broadcast %626 : f32 to vector<8x128xf32>
    %628 = arith.addf %625, %627 : vector<8x128xf32>
    %cst_26 = arith.constant 0.000000e+00 : f32
    %629 = vector.broadcast %cst_26 : f32 to vector<8x128xf32>
    %630 = arith.maximumf %628, %629 : vector<8x128xf32>
    %c194 = arith.constant 194 : index
    %631 = memref.load %arg3[%c194] : memref<606xf32, #tpu.memory_space<smem>>
    %632 = vector.broadcast %631 : f32 to vector<8x128xf32>
    %633 = arith.mulf %632, %630 : vector<8x128xf32>
    %634 = arith.addf %606, %633 : vector<8x128xf32>
    %c226 = arith.constant 226 : index
    %635 = memref.load %arg3[%c226] : memref<606xf32, #tpu.memory_space<smem>>
    %636 = vector.broadcast %635 : f32 to vector<8x128xf32>
    %637 = arith.mulf %636, %630 : vector<8x128xf32>
    %638 = arith.addf %610, %637 : vector<8x128xf32>
    %c258 = arith.constant 258 : index
    %639 = memref.load %arg3[%c258] : memref<606xf32, #tpu.memory_space<smem>>
    %640 = vector.broadcast %639 : f32 to vector<8x128xf32>
    %641 = arith.mulf %640, %630 : vector<8x128xf32>
    %642 = arith.addf %614, %641 : vector<8x128xf32>
    %c81 = arith.constant 81 : index
    %643 = memref.load %arg3[%c81] : memref<606xf32, #tpu.memory_space<smem>>
    %644 = vector.broadcast %643 : f32 to vector<8x128xf32>
    %645 = arith.mulf %644, %433 : vector<8x128xf32>
    %c82 = arith.constant 82 : index
    %646 = memref.load %arg3[%c82] : memref<606xf32, #tpu.memory_space<smem>>
    %647 = vector.broadcast %646 : f32 to vector<8x128xf32>
    %648 = arith.mulf %647, %441 : vector<8x128xf32>
    %649 = arith.addf %645, %648 : vector<8x128xf32>
    %c83 = arith.constant 83 : index
    %650 = memref.load %arg3[%c83] : memref<606xf32, #tpu.memory_space<smem>>
    %651 = vector.broadcast %650 : f32 to vector<8x128xf32>
    %652 = arith.mulf %651, %449 : vector<8x128xf32>
    %653 = arith.addf %649, %652 : vector<8x128xf32>
    %c163 = arith.constant 163 : index
    %654 = memref.load %arg3[%c163] : memref<606xf32, #tpu.memory_space<smem>>
    %655 = vector.broadcast %654 : f32 to vector<8x128xf32>
    %656 = arith.addf %653, %655 : vector<8x128xf32>
    %cst_27 = arith.constant 0.000000e+00 : f32
    %657 = vector.broadcast %cst_27 : f32 to vector<8x128xf32>
    %658 = arith.maximumf %656, %657 : vector<8x128xf32>
    %c195 = arith.constant 195 : index
    %659 = memref.load %arg3[%c195] : memref<606xf32, #tpu.memory_space<smem>>
    %660 = vector.broadcast %659 : f32 to vector<8x128xf32>
    %661 = arith.mulf %660, %658 : vector<8x128xf32>
    %662 = arith.addf %634, %661 : vector<8x128xf32>
    %c227 = arith.constant 227 : index
    %663 = memref.load %arg3[%c227] : memref<606xf32, #tpu.memory_space<smem>>
    %664 = vector.broadcast %663 : f32 to vector<8x128xf32>
    %665 = arith.mulf %664, %658 : vector<8x128xf32>
    %666 = arith.addf %638, %665 : vector<8x128xf32>
    %c259 = arith.constant 259 : index
    %667 = memref.load %arg3[%c259] : memref<606xf32, #tpu.memory_space<smem>>
    %668 = vector.broadcast %667 : f32 to vector<8x128xf32>
    %669 = arith.mulf %668, %658 : vector<8x128xf32>
    %670 = arith.addf %642, %669 : vector<8x128xf32>
    %c84 = arith.constant 84 : index
    %671 = memref.load %arg3[%c84] : memref<606xf32, #tpu.memory_space<smem>>
    %672 = vector.broadcast %671 : f32 to vector<8x128xf32>
    %673 = arith.mulf %672, %433 : vector<8x128xf32>
    %c85 = arith.constant 85 : index
    %674 = memref.load %arg3[%c85] : memref<606xf32, #tpu.memory_space<smem>>
    %675 = vector.broadcast %674 : f32 to vector<8x128xf32>
    %676 = arith.mulf %675, %441 : vector<8x128xf32>
    %677 = arith.addf %673, %676 : vector<8x128xf32>
    %c86 = arith.constant 86 : index
    %678 = memref.load %arg3[%c86] : memref<606xf32, #tpu.memory_space<smem>>
    %679 = vector.broadcast %678 : f32 to vector<8x128xf32>
    %680 = arith.mulf %679, %449 : vector<8x128xf32>
    %681 = arith.addf %677, %680 : vector<8x128xf32>
    %c164 = arith.constant 164 : index
    %682 = memref.load %arg3[%c164] : memref<606xf32, #tpu.memory_space<smem>>
    %683 = vector.broadcast %682 : f32 to vector<8x128xf32>
    %684 = arith.addf %681, %683 : vector<8x128xf32>
    %cst_28 = arith.constant 0.000000e+00 : f32
    %685 = vector.broadcast %cst_28 : f32 to vector<8x128xf32>
    %686 = arith.maximumf %684, %685 : vector<8x128xf32>
    %c196 = arith.constant 196 : index
    %687 = memref.load %arg3[%c196] : memref<606xf32, #tpu.memory_space<smem>>
    %688 = vector.broadcast %687 : f32 to vector<8x128xf32>
    %689 = arith.mulf %688, %686 : vector<8x128xf32>
    %690 = arith.addf %662, %689 : vector<8x128xf32>
    %c228 = arith.constant 228 : index
    %691 = memref.load %arg3[%c228] : memref<606xf32, #tpu.memory_space<smem>>
    %692 = vector.broadcast %691 : f32 to vector<8x128xf32>
    %693 = arith.mulf %692, %686 : vector<8x128xf32>
    %694 = arith.addf %666, %693 : vector<8x128xf32>
    %c260 = arith.constant 260 : index
    %695 = memref.load %arg3[%c260] : memref<606xf32, #tpu.memory_space<smem>>
    %696 = vector.broadcast %695 : f32 to vector<8x128xf32>
    %697 = arith.mulf %696, %686 : vector<8x128xf32>
    %698 = arith.addf %670, %697 : vector<8x128xf32>
    %c87 = arith.constant 87 : index
    %699 = memref.load %arg3[%c87] : memref<606xf32, #tpu.memory_space<smem>>
    %700 = vector.broadcast %699 : f32 to vector<8x128xf32>
    %701 = arith.mulf %700, %433 : vector<8x128xf32>
    %c88 = arith.constant 88 : index
    %702 = memref.load %arg3[%c88] : memref<606xf32, #tpu.memory_space<smem>>
    %703 = vector.broadcast %702 : f32 to vector<8x128xf32>
    %704 = arith.mulf %703, %441 : vector<8x128xf32>
    %705 = arith.addf %701, %704 : vector<8x128xf32>
    %c89 = arith.constant 89 : index
    %706 = memref.load %arg3[%c89] : memref<606xf32, #tpu.memory_space<smem>>
    %707 = vector.broadcast %706 : f32 to vector<8x128xf32>
    %708 = arith.mulf %707, %449 : vector<8x128xf32>
    %709 = arith.addf %705, %708 : vector<8x128xf32>
    %c165 = arith.constant 165 : index
    %710 = memref.load %arg3[%c165] : memref<606xf32, #tpu.memory_space<smem>>
    %711 = vector.broadcast %710 : f32 to vector<8x128xf32>
    %712 = arith.addf %709, %711 : vector<8x128xf32>
    %cst_29 = arith.constant 0.000000e+00 : f32
    %713 = vector.broadcast %cst_29 : f32 to vector<8x128xf32>
    %714 = arith.maximumf %712, %713 : vector<8x128xf32>
    %c197 = arith.constant 197 : index
    %715 = memref.load %arg3[%c197] : memref<606xf32, #tpu.memory_space<smem>>
    %716 = vector.broadcast %715 : f32 to vector<8x128xf32>
    %717 = arith.mulf %716, %714 : vector<8x128xf32>
    %718 = arith.addf %690, %717 : vector<8x128xf32>
    %c229 = arith.constant 229 : index
    %719 = memref.load %arg3[%c229] : memref<606xf32, #tpu.memory_space<smem>>
    %720 = vector.broadcast %719 : f32 to vector<8x128xf32>
    %721 = arith.mulf %720, %714 : vector<8x128xf32>
    %722 = arith.addf %694, %721 : vector<8x128xf32>
    %c261 = arith.constant 261 : index
    %723 = memref.load %arg3[%c261] : memref<606xf32, #tpu.memory_space<smem>>
    %724 = vector.broadcast %723 : f32 to vector<8x128xf32>
    %725 = arith.mulf %724, %714 : vector<8x128xf32>
    %726 = arith.addf %698, %725 : vector<8x128xf32>
    %c90 = arith.constant 90 : index
    %727 = memref.load %arg3[%c90] : memref<606xf32, #tpu.memory_space<smem>>
    %728 = vector.broadcast %727 : f32 to vector<8x128xf32>
    %729 = arith.mulf %728, %433 : vector<8x128xf32>
    %c91 = arith.constant 91 : index
    %730 = memref.load %arg3[%c91] : memref<606xf32, #tpu.memory_space<smem>>
    %731 = vector.broadcast %730 : f32 to vector<8x128xf32>
    %732 = arith.mulf %731, %441 : vector<8x128xf32>
    %733 = arith.addf %729, %732 : vector<8x128xf32>
    %c92 = arith.constant 92 : index
    %734 = memref.load %arg3[%c92] : memref<606xf32, #tpu.memory_space<smem>>
    %735 = vector.broadcast %734 : f32 to vector<8x128xf32>
    %736 = arith.mulf %735, %449 : vector<8x128xf32>
    %737 = arith.addf %733, %736 : vector<8x128xf32>
    %c166 = arith.constant 166 : index
    %738 = memref.load %arg3[%c166] : memref<606xf32, #tpu.memory_space<smem>>
    %739 = vector.broadcast %738 : f32 to vector<8x128xf32>
    %740 = arith.addf %737, %739 : vector<8x128xf32>
    %cst_30 = arith.constant 0.000000e+00 : f32
    %741 = vector.broadcast %cst_30 : f32 to vector<8x128xf32>
    %742 = arith.maximumf %740, %741 : vector<8x128xf32>
    %c198 = arith.constant 198 : index
    %743 = memref.load %arg3[%c198] : memref<606xf32, #tpu.memory_space<smem>>
    %744 = vector.broadcast %743 : f32 to vector<8x128xf32>
    %745 = arith.mulf %744, %742 : vector<8x128xf32>
    %746 = arith.addf %718, %745 : vector<8x128xf32>
    %c230 = arith.constant 230 : index
    %747 = memref.load %arg3[%c230] : memref<606xf32, #tpu.memory_space<smem>>
    %748 = vector.broadcast %747 : f32 to vector<8x128xf32>
    %749 = arith.mulf %748, %742 : vector<8x128xf32>
    %750 = arith.addf %722, %749 : vector<8x128xf32>
    %c262 = arith.constant 262 : index
    %751 = memref.load %arg3[%c262] : memref<606xf32, #tpu.memory_space<smem>>
    %752 = vector.broadcast %751 : f32 to vector<8x128xf32>
    %753 = arith.mulf %752, %742 : vector<8x128xf32>
    %754 = arith.addf %726, %753 : vector<8x128xf32>
    %c93 = arith.constant 93 : index
    %755 = memref.load %arg3[%c93] : memref<606xf32, #tpu.memory_space<smem>>
    %756 = vector.broadcast %755 : f32 to vector<8x128xf32>
    %757 = arith.mulf %756, %433 : vector<8x128xf32>
    %c94 = arith.constant 94 : index
    %758 = memref.load %arg3[%c94] : memref<606xf32, #tpu.memory_space<smem>>
    %759 = vector.broadcast %758 : f32 to vector<8x128xf32>
    %760 = arith.mulf %759, %441 : vector<8x128xf32>
    %761 = arith.addf %757, %760 : vector<8x128xf32>
    %c95 = arith.constant 95 : index
    %762 = memref.load %arg3[%c95] : memref<606xf32, #tpu.memory_space<smem>>
    %763 = vector.broadcast %762 : f32 to vector<8x128xf32>
    %764 = arith.mulf %763, %449 : vector<8x128xf32>
    %765 = arith.addf %761, %764 : vector<8x128xf32>
    %c167 = arith.constant 167 : index
    %766 = memref.load %arg3[%c167] : memref<606xf32, #tpu.memory_space<smem>>
    %767 = vector.broadcast %766 : f32 to vector<8x128xf32>
    %768 = arith.addf %765, %767 : vector<8x128xf32>
    %cst_31 = arith.constant 0.000000e+00 : f32
    %769 = vector.broadcast %cst_31 : f32 to vector<8x128xf32>
    %770 = arith.maximumf %768, %769 : vector<8x128xf32>
    %c199 = arith.constant 199 : index
    %771 = memref.load %arg3[%c199] : memref<606xf32, #tpu.memory_space<smem>>
    %772 = vector.broadcast %771 : f32 to vector<8x128xf32>
    %773 = arith.mulf %772, %770 : vector<8x128xf32>
    %774 = arith.addf %746, %773 : vector<8x128xf32>
    %c231 = arith.constant 231 : index
    %775 = memref.load %arg3[%c231] : memref<606xf32, #tpu.memory_space<smem>>
    %776 = vector.broadcast %775 : f32 to vector<8x128xf32>
    %777 = arith.mulf %776, %770 : vector<8x128xf32>
    %778 = arith.addf %750, %777 : vector<8x128xf32>
    %c263 = arith.constant 263 : index
    %779 = memref.load %arg3[%c263] : memref<606xf32, #tpu.memory_space<smem>>
    %780 = vector.broadcast %779 : f32 to vector<8x128xf32>
    %781 = arith.mulf %780, %770 : vector<8x128xf32>
    %782 = arith.addf %754, %781 : vector<8x128xf32>
    %c96 = arith.constant 96 : index
    %783 = memref.load %arg3[%c96] : memref<606xf32, #tpu.memory_space<smem>>
    %784 = vector.broadcast %783 : f32 to vector<8x128xf32>
    %785 = arith.mulf %784, %433 : vector<8x128xf32>
    %c97 = arith.constant 97 : index
    %786 = memref.load %arg3[%c97] : memref<606xf32, #tpu.memory_space<smem>>
    %787 = vector.broadcast %786 : f32 to vector<8x128xf32>
    %788 = arith.mulf %787, %441 : vector<8x128xf32>
    %789 = arith.addf %785, %788 : vector<8x128xf32>
    %c98 = arith.constant 98 : index
    %790 = memref.load %arg3[%c98] : memref<606xf32, #tpu.memory_space<smem>>
    %791 = vector.broadcast %790 : f32 to vector<8x128xf32>
    %792 = arith.mulf %791, %449 : vector<8x128xf32>
    %793 = arith.addf %789, %792 : vector<8x128xf32>
    %c168 = arith.constant 168 : index
    %794 = memref.load %arg3[%c168] : memref<606xf32, #tpu.memory_space<smem>>
    %795 = vector.broadcast %794 : f32 to vector<8x128xf32>
    %796 = arith.addf %793, %795 : vector<8x128xf32>
    %cst_32 = arith.constant 0.000000e+00 : f32
    %797 = vector.broadcast %cst_32 : f32 to vector<8x128xf32>
    %798 = arith.maximumf %796, %797 : vector<8x128xf32>
    %c200 = arith.constant 200 : index
    %799 = memref.load %arg3[%c200] : memref<606xf32, #tpu.memory_space<smem>>
    %800 = vector.broadcast %799 : f32 to vector<8x128xf32>
    %801 = arith.mulf %800, %798 : vector<8x128xf32>
    %802 = arith.addf %774, %801 : vector<8x128xf32>
    %c232 = arith.constant 232 : index
    %803 = memref.load %arg3[%c232] : memref<606xf32, #tpu.memory_space<smem>>
    %804 = vector.broadcast %803 : f32 to vector<8x128xf32>
    %805 = arith.mulf %804, %798 : vector<8x128xf32>
    %806 = arith.addf %778, %805 : vector<8x128xf32>
    %c264 = arith.constant 264 : index
    %807 = memref.load %arg3[%c264] : memref<606xf32, #tpu.memory_space<smem>>
    %808 = vector.broadcast %807 : f32 to vector<8x128xf32>
    %809 = arith.mulf %808, %798 : vector<8x128xf32>
    %810 = arith.addf %782, %809 : vector<8x128xf32>
    %c99 = arith.constant 99 : index
    %811 = memref.load %arg3[%c99] : memref<606xf32, #tpu.memory_space<smem>>
    %812 = vector.broadcast %811 : f32 to vector<8x128xf32>
    %813 = arith.mulf %812, %433 : vector<8x128xf32>
    %c100 = arith.constant 100 : index
    %814 = memref.load %arg3[%c100] : memref<606xf32, #tpu.memory_space<smem>>
    %815 = vector.broadcast %814 : f32 to vector<8x128xf32>
    %816 = arith.mulf %815, %441 : vector<8x128xf32>
    %817 = arith.addf %813, %816 : vector<8x128xf32>
    %c101 = arith.constant 101 : index
    %818 = memref.load %arg3[%c101] : memref<606xf32, #tpu.memory_space<smem>>
    %819 = vector.broadcast %818 : f32 to vector<8x128xf32>
    %820 = arith.mulf %819, %449 : vector<8x128xf32>
    %821 = arith.addf %817, %820 : vector<8x128xf32>
    %c169 = arith.constant 169 : index
    %822 = memref.load %arg3[%c169] : memref<606xf32, #tpu.memory_space<smem>>
    %823 = vector.broadcast %822 : f32 to vector<8x128xf32>
    %824 = arith.addf %821, %823 : vector<8x128xf32>
    %cst_33 = arith.constant 0.000000e+00 : f32
    %825 = vector.broadcast %cst_33 : f32 to vector<8x128xf32>
    %826 = arith.maximumf %824, %825 : vector<8x128xf32>
    %c201 = arith.constant 201 : index
    %827 = memref.load %arg3[%c201] : memref<606xf32, #tpu.memory_space<smem>>
    %828 = vector.broadcast %827 : f32 to vector<8x128xf32>
    %829 = arith.mulf %828, %826 : vector<8x128xf32>
    %830 = arith.addf %802, %829 : vector<8x128xf32>
    %c233 = arith.constant 233 : index
    %831 = memref.load %arg3[%c233] : memref<606xf32, #tpu.memory_space<smem>>
    %832 = vector.broadcast %831 : f32 to vector<8x128xf32>
    %833 = arith.mulf %832, %826 : vector<8x128xf32>
    %834 = arith.addf %806, %833 : vector<8x128xf32>
    %c265 = arith.constant 265 : index
    %835 = memref.load %arg3[%c265] : memref<606xf32, #tpu.memory_space<smem>>
    %836 = vector.broadcast %835 : f32 to vector<8x128xf32>
    %837 = arith.mulf %836, %826 : vector<8x128xf32>
    %838 = arith.addf %810, %837 : vector<8x128xf32>
    %c102 = arith.constant 102 : index
    %839 = memref.load %arg3[%c102] : memref<606xf32, #tpu.memory_space<smem>>
    %840 = vector.broadcast %839 : f32 to vector<8x128xf32>
    %841 = arith.mulf %840, %433 : vector<8x128xf32>
    %c103 = arith.constant 103 : index
    %842 = memref.load %arg3[%c103] : memref<606xf32, #tpu.memory_space<smem>>
    %843 = vector.broadcast %842 : f32 to vector<8x128xf32>
    %844 = arith.mulf %843, %441 : vector<8x128xf32>
    %845 = arith.addf %841, %844 : vector<8x128xf32>
    %c104 = arith.constant 104 : index
    %846 = memref.load %arg3[%c104] : memref<606xf32, #tpu.memory_space<smem>>
    %847 = vector.broadcast %846 : f32 to vector<8x128xf32>
    %848 = arith.mulf %847, %449 : vector<8x128xf32>
    %849 = arith.addf %845, %848 : vector<8x128xf32>
    %c170 = arith.constant 170 : index
    %850 = memref.load %arg3[%c170] : memref<606xf32, #tpu.memory_space<smem>>
    %851 = vector.broadcast %850 : f32 to vector<8x128xf32>
    %852 = arith.addf %849, %851 : vector<8x128xf32>
    %cst_34 = arith.constant 0.000000e+00 : f32
    %853 = vector.broadcast %cst_34 : f32 to vector<8x128xf32>
    %854 = arith.maximumf %852, %853 : vector<8x128xf32>
    %c202 = arith.constant 202 : index
    %855 = memref.load %arg3[%c202] : memref<606xf32, #tpu.memory_space<smem>>
    %856 = vector.broadcast %855 : f32 to vector<8x128xf32>
    %857 = arith.mulf %856, %854 : vector<8x128xf32>
    %858 = arith.addf %830, %857 : vector<8x128xf32>
    %c234 = arith.constant 234 : index
    %859 = memref.load %arg3[%c234] : memref<606xf32, #tpu.memory_space<smem>>
    %860 = vector.broadcast %859 : f32 to vector<8x128xf32>
    %861 = arith.mulf %860, %854 : vector<8x128xf32>
    %862 = arith.addf %834, %861 : vector<8x128xf32>
    %c266 = arith.constant 266 : index
    %863 = memref.load %arg3[%c266] : memref<606xf32, #tpu.memory_space<smem>>
    %864 = vector.broadcast %863 : f32 to vector<8x128xf32>
    %865 = arith.mulf %864, %854 : vector<8x128xf32>
    %866 = arith.addf %838, %865 : vector<8x128xf32>
    %c105 = arith.constant 105 : index
    %867 = memref.load %arg3[%c105] : memref<606xf32, #tpu.memory_space<smem>>
    %868 = vector.broadcast %867 : f32 to vector<8x128xf32>
    %869 = arith.mulf %868, %433 : vector<8x128xf32>
    %c106 = arith.constant 106 : index
    %870 = memref.load %arg3[%c106] : memref<606xf32, #tpu.memory_space<smem>>
    %871 = vector.broadcast %870 : f32 to vector<8x128xf32>
    %872 = arith.mulf %871, %441 : vector<8x128xf32>
    %873 = arith.addf %869, %872 : vector<8x128xf32>
    %c107 = arith.constant 107 : index
    %874 = memref.load %arg3[%c107] : memref<606xf32, #tpu.memory_space<smem>>
    %875 = vector.broadcast %874 : f32 to vector<8x128xf32>
    %876 = arith.mulf %875, %449 : vector<8x128xf32>
    %877 = arith.addf %873, %876 : vector<8x128xf32>
    %c171 = arith.constant 171 : index
    %878 = memref.load %arg3[%c171] : memref<606xf32, #tpu.memory_space<smem>>
    %879 = vector.broadcast %878 : f32 to vector<8x128xf32>
    %880 = arith.addf %877, %879 : vector<8x128xf32>
    %cst_35 = arith.constant 0.000000e+00 : f32
    %881 = vector.broadcast %cst_35 : f32 to vector<8x128xf32>
    %882 = arith.maximumf %880, %881 : vector<8x128xf32>
    %c203 = arith.constant 203 : index
    %883 = memref.load %arg3[%c203] : memref<606xf32, #tpu.memory_space<smem>>
    %884 = vector.broadcast %883 : f32 to vector<8x128xf32>
    %885 = arith.mulf %884, %882 : vector<8x128xf32>
    %886 = arith.addf %858, %885 : vector<8x128xf32>
    %c235 = arith.constant 235 : index
    %887 = memref.load %arg3[%c235] : memref<606xf32, #tpu.memory_space<smem>>
    %888 = vector.broadcast %887 : f32 to vector<8x128xf32>
    %889 = arith.mulf %888, %882 : vector<8x128xf32>
    %890 = arith.addf %862, %889 : vector<8x128xf32>
    %c267 = arith.constant 267 : index
    %891 = memref.load %arg3[%c267] : memref<606xf32, #tpu.memory_space<smem>>
    %892 = vector.broadcast %891 : f32 to vector<8x128xf32>
    %893 = arith.mulf %892, %882 : vector<8x128xf32>
    %894 = arith.addf %866, %893 : vector<8x128xf32>
    %c108 = arith.constant 108 : index
    %895 = memref.load %arg3[%c108] : memref<606xf32, #tpu.memory_space<smem>>
    %896 = vector.broadcast %895 : f32 to vector<8x128xf32>
    %897 = arith.mulf %896, %433 : vector<8x128xf32>
    %c109 = arith.constant 109 : index
    %898 = memref.load %arg3[%c109] : memref<606xf32, #tpu.memory_space<smem>>
    %899 = vector.broadcast %898 : f32 to vector<8x128xf32>
    %900 = arith.mulf %899, %441 : vector<8x128xf32>
    %901 = arith.addf %897, %900 : vector<8x128xf32>
    %c110 = arith.constant 110 : index
    %902 = memref.load %arg3[%c110] : memref<606xf32, #tpu.memory_space<smem>>
    %903 = vector.broadcast %902 : f32 to vector<8x128xf32>
    %904 = arith.mulf %903, %449 : vector<8x128xf32>
    %905 = arith.addf %901, %904 : vector<8x128xf32>
    %c172 = arith.constant 172 : index
    %906 = memref.load %arg3[%c172] : memref<606xf32, #tpu.memory_space<smem>>
    %907 = vector.broadcast %906 : f32 to vector<8x128xf32>
    %908 = arith.addf %905, %907 : vector<8x128xf32>
    %cst_36 = arith.constant 0.000000e+00 : f32
    %909 = vector.broadcast %cst_36 : f32 to vector<8x128xf32>
    %910 = arith.maximumf %908, %909 : vector<8x128xf32>
    %c204 = arith.constant 204 : index
    %911 = memref.load %arg3[%c204] : memref<606xf32, #tpu.memory_space<smem>>
    %912 = vector.broadcast %911 : f32 to vector<8x128xf32>
    %913 = arith.mulf %912, %910 : vector<8x128xf32>
    %914 = arith.addf %886, %913 : vector<8x128xf32>
    %c236 = arith.constant 236 : index
    %915 = memref.load %arg3[%c236] : memref<606xf32, #tpu.memory_space<smem>>
    %916 = vector.broadcast %915 : f32 to vector<8x128xf32>
    %917 = arith.mulf %916, %910 : vector<8x128xf32>
    %918 = arith.addf %890, %917 : vector<8x128xf32>
    %c268 = arith.constant 268 : index
    %919 = memref.load %arg3[%c268] : memref<606xf32, #tpu.memory_space<smem>>
    %920 = vector.broadcast %919 : f32 to vector<8x128xf32>
    %921 = arith.mulf %920, %910 : vector<8x128xf32>
    %922 = arith.addf %894, %921 : vector<8x128xf32>
    %c111 = arith.constant 111 : index
    %923 = memref.load %arg3[%c111] : memref<606xf32, #tpu.memory_space<smem>>
    %924 = vector.broadcast %923 : f32 to vector<8x128xf32>
    %925 = arith.mulf %924, %433 : vector<8x128xf32>
    %c112 = arith.constant 112 : index
    %926 = memref.load %arg3[%c112] : memref<606xf32, #tpu.memory_space<smem>>
    %927 = vector.broadcast %926 : f32 to vector<8x128xf32>
    %928 = arith.mulf %927, %441 : vector<8x128xf32>
    %929 = arith.addf %925, %928 : vector<8x128xf32>
    %c113 = arith.constant 113 : index
    %930 = memref.load %arg3[%c113] : memref<606xf32, #tpu.memory_space<smem>>
    %931 = vector.broadcast %930 : f32 to vector<8x128xf32>
    %932 = arith.mulf %931, %449 : vector<8x128xf32>
    %933 = arith.addf %929, %932 : vector<8x128xf32>
    %c173 = arith.constant 173 : index
    %934 = memref.load %arg3[%c173] : memref<606xf32, #tpu.memory_space<smem>>
    %935 = vector.broadcast %934 : f32 to vector<8x128xf32>
    %936 = arith.addf %933, %935 : vector<8x128xf32>
    %cst_37 = arith.constant 0.000000e+00 : f32
    %937 = vector.broadcast %cst_37 : f32 to vector<8x128xf32>
    %938 = arith.maximumf %936, %937 : vector<8x128xf32>
    %c205 = arith.constant 205 : index
    %939 = memref.load %arg3[%c205] : memref<606xf32, #tpu.memory_space<smem>>
    %940 = vector.broadcast %939 : f32 to vector<8x128xf32>
    %941 = arith.mulf %940, %938 : vector<8x128xf32>
    %942 = arith.addf %914, %941 : vector<8x128xf32>
    %c237 = arith.constant 237 : index
    %943 = memref.load %arg3[%c237] : memref<606xf32, #tpu.memory_space<smem>>
    %944 = vector.broadcast %943 : f32 to vector<8x128xf32>
    %945 = arith.mulf %944, %938 : vector<8x128xf32>
    %946 = arith.addf %918, %945 : vector<8x128xf32>
    %c269 = arith.constant 269 : index
    %947 = memref.load %arg3[%c269] : memref<606xf32, #tpu.memory_space<smem>>
    %948 = vector.broadcast %947 : f32 to vector<8x128xf32>
    %949 = arith.mulf %948, %938 : vector<8x128xf32>
    %950 = arith.addf %922, %949 : vector<8x128xf32>
    %c114 = arith.constant 114 : index
    %951 = memref.load %arg3[%c114] : memref<606xf32, #tpu.memory_space<smem>>
    %952 = vector.broadcast %951 : f32 to vector<8x128xf32>
    %953 = arith.mulf %952, %433 : vector<8x128xf32>
    %c115 = arith.constant 115 : index
    %954 = memref.load %arg3[%c115] : memref<606xf32, #tpu.memory_space<smem>>
    %955 = vector.broadcast %954 : f32 to vector<8x128xf32>
    %956 = arith.mulf %955, %441 : vector<8x128xf32>
    %957 = arith.addf %953, %956 : vector<8x128xf32>
    %c116 = arith.constant 116 : index
    %958 = memref.load %arg3[%c116] : memref<606xf32, #tpu.memory_space<smem>>
    %959 = vector.broadcast %958 : f32 to vector<8x128xf32>
    %960 = arith.mulf %959, %449 : vector<8x128xf32>
    %961 = arith.addf %957, %960 : vector<8x128xf32>
    %c174 = arith.constant 174 : index
    %962 = memref.load %arg3[%c174] : memref<606xf32, #tpu.memory_space<smem>>
    %963 = vector.broadcast %962 : f32 to vector<8x128xf32>
    %964 = arith.addf %961, %963 : vector<8x128xf32>
    %cst_38 = arith.constant 0.000000e+00 : f32
    %965 = vector.broadcast %cst_38 : f32 to vector<8x128xf32>
    %966 = arith.maximumf %964, %965 : vector<8x128xf32>
    %c206 = arith.constant 206 : index
    %967 = memref.load %arg3[%c206] : memref<606xf32, #tpu.memory_space<smem>>
    %968 = vector.broadcast %967 : f32 to vector<8x128xf32>
    %969 = arith.mulf %968, %966 : vector<8x128xf32>
    %970 = arith.addf %942, %969 : vector<8x128xf32>
    %c238 = arith.constant 238 : index
    %971 = memref.load %arg3[%c238] : memref<606xf32, #tpu.memory_space<smem>>
    %972 = vector.broadcast %971 : f32 to vector<8x128xf32>
    %973 = arith.mulf %972, %966 : vector<8x128xf32>
    %974 = arith.addf %946, %973 : vector<8x128xf32>
    %c270 = arith.constant 270 : index
    %975 = memref.load %arg3[%c270] : memref<606xf32, #tpu.memory_space<smem>>
    %976 = vector.broadcast %975 : f32 to vector<8x128xf32>
    %977 = arith.mulf %976, %966 : vector<8x128xf32>
    %978 = arith.addf %950, %977 : vector<8x128xf32>
    %c117 = arith.constant 117 : index
    %979 = memref.load %arg3[%c117] : memref<606xf32, #tpu.memory_space<smem>>
    %980 = vector.broadcast %979 : f32 to vector<8x128xf32>
    %981 = arith.mulf %980, %433 : vector<8x128xf32>
    %c118 = arith.constant 118 : index
    %982 = memref.load %arg3[%c118] : memref<606xf32, #tpu.memory_space<smem>>
    %983 = vector.broadcast %982 : f32 to vector<8x128xf32>
    %984 = arith.mulf %983, %441 : vector<8x128xf32>
    %985 = arith.addf %981, %984 : vector<8x128xf32>
    %c119 = arith.constant 119 : index
    %986 = memref.load %arg3[%c119] : memref<606xf32, #tpu.memory_space<smem>>
    %987 = vector.broadcast %986 : f32 to vector<8x128xf32>
    %988 = arith.mulf %987, %449 : vector<8x128xf32>
    %989 = arith.addf %985, %988 : vector<8x128xf32>
    %c175 = arith.constant 175 : index
    %990 = memref.load %arg3[%c175] : memref<606xf32, #tpu.memory_space<smem>>
    %991 = vector.broadcast %990 : f32 to vector<8x128xf32>
    %992 = arith.addf %989, %991 : vector<8x128xf32>
    %cst_39 = arith.constant 0.000000e+00 : f32
    %993 = vector.broadcast %cst_39 : f32 to vector<8x128xf32>
    %994 = arith.maximumf %992, %993 : vector<8x128xf32>
    %c207 = arith.constant 207 : index
    %995 = memref.load %arg3[%c207] : memref<606xf32, #tpu.memory_space<smem>>
    %996 = vector.broadcast %995 : f32 to vector<8x128xf32>
    %997 = arith.mulf %996, %994 : vector<8x128xf32>
    %998 = arith.addf %970, %997 : vector<8x128xf32>
    %c239 = arith.constant 239 : index
    %999 = memref.load %arg3[%c239] : memref<606xf32, #tpu.memory_space<smem>>
    %1000 = vector.broadcast %999 : f32 to vector<8x128xf32>
    %1001 = arith.mulf %1000, %994 : vector<8x128xf32>
    %1002 = arith.addf %974, %1001 : vector<8x128xf32>
    %c271 = arith.constant 271 : index
    %1003 = memref.load %arg3[%c271] : memref<606xf32, #tpu.memory_space<smem>>
    %1004 = vector.broadcast %1003 : f32 to vector<8x128xf32>
    %1005 = arith.mulf %1004, %994 : vector<8x128xf32>
    %1006 = arith.addf %978, %1005 : vector<8x128xf32>
    %c120 = arith.constant 120 : index
    %1007 = memref.load %arg3[%c120] : memref<606xf32, #tpu.memory_space<smem>>
    %1008 = vector.broadcast %1007 : f32 to vector<8x128xf32>
    %1009 = arith.mulf %1008, %433 : vector<8x128xf32>
    %c121 = arith.constant 121 : index
    %1010 = memref.load %arg3[%c121] : memref<606xf32, #tpu.memory_space<smem>>
    %1011 = vector.broadcast %1010 : f32 to vector<8x128xf32>
    %1012 = arith.mulf %1011, %441 : vector<8x128xf32>
    %1013 = arith.addf %1009, %1012 : vector<8x128xf32>
    %c122 = arith.constant 122 : index
    %1014 = memref.load %arg3[%c122] : memref<606xf32, #tpu.memory_space<smem>>
    %1015 = vector.broadcast %1014 : f32 to vector<8x128xf32>
    %1016 = arith.mulf %1015, %449 : vector<8x128xf32>
    %1017 = arith.addf %1013, %1016 : vector<8x128xf32>
    %c176 = arith.constant 176 : index
    %1018 = memref.load %arg3[%c176] : memref<606xf32, #tpu.memory_space<smem>>
    %1019 = vector.broadcast %1018 : f32 to vector<8x128xf32>
    %1020 = arith.addf %1017, %1019 : vector<8x128xf32>
    %cst_40 = arith.constant 0.000000e+00 : f32
    %1021 = vector.broadcast %cst_40 : f32 to vector<8x128xf32>
    %1022 = arith.maximumf %1020, %1021 : vector<8x128xf32>
    %c208 = arith.constant 208 : index
    %1023 = memref.load %arg3[%c208] : memref<606xf32, #tpu.memory_space<smem>>
    %1024 = vector.broadcast %1023 : f32 to vector<8x128xf32>
    %1025 = arith.mulf %1024, %1022 : vector<8x128xf32>
    %1026 = arith.addf %998, %1025 : vector<8x128xf32>
    %c240 = arith.constant 240 : index
    %1027 = memref.load %arg3[%c240] : memref<606xf32, #tpu.memory_space<smem>>
    %1028 = vector.broadcast %1027 : f32 to vector<8x128xf32>
    %1029 = arith.mulf %1028, %1022 : vector<8x128xf32>
    %1030 = arith.addf %1002, %1029 : vector<8x128xf32>
    %c272 = arith.constant 272 : index
    %1031 = memref.load %arg3[%c272] : memref<606xf32, #tpu.memory_space<smem>>
    %1032 = vector.broadcast %1031 : f32 to vector<8x128xf32>
    %1033 = arith.mulf %1032, %1022 : vector<8x128xf32>
    %1034 = arith.addf %1006, %1033 : vector<8x128xf32>
    %c123 = arith.constant 123 : index
    %1035 = memref.load %arg3[%c123] : memref<606xf32, #tpu.memory_space<smem>>
    %1036 = vector.broadcast %1035 : f32 to vector<8x128xf32>
    %1037 = arith.mulf %1036, %433 : vector<8x128xf32>
    %c124 = arith.constant 124 : index
    %1038 = memref.load %arg3[%c124] : memref<606xf32, #tpu.memory_space<smem>>
    %1039 = vector.broadcast %1038 : f32 to vector<8x128xf32>
    %1040 = arith.mulf %1039, %441 : vector<8x128xf32>
    %1041 = arith.addf %1037, %1040 : vector<8x128xf32>
    %c125 = arith.constant 125 : index
    %1042 = memref.load %arg3[%c125] : memref<606xf32, #tpu.memory_space<smem>>
    %1043 = vector.broadcast %1042 : f32 to vector<8x128xf32>
    %1044 = arith.mulf %1043, %449 : vector<8x128xf32>
    %1045 = arith.addf %1041, %1044 : vector<8x128xf32>
    %c177 = arith.constant 177 : index
    %1046 = memref.load %arg3[%c177] : memref<606xf32, #tpu.memory_space<smem>>
    %1047 = vector.broadcast %1046 : f32 to vector<8x128xf32>
    %1048 = arith.addf %1045, %1047 : vector<8x128xf32>
    %cst_41 = arith.constant 0.000000e+00 : f32
    %1049 = vector.broadcast %cst_41 : f32 to vector<8x128xf32>
    %1050 = arith.maximumf %1048, %1049 : vector<8x128xf32>
    %c209 = arith.constant 209 : index
    %1051 = memref.load %arg3[%c209] : memref<606xf32, #tpu.memory_space<smem>>
    %1052 = vector.broadcast %1051 : f32 to vector<8x128xf32>
    %1053 = arith.mulf %1052, %1050 : vector<8x128xf32>
    %1054 = arith.addf %1026, %1053 : vector<8x128xf32>
    %c241 = arith.constant 241 : index
    %1055 = memref.load %arg3[%c241] : memref<606xf32, #tpu.memory_space<smem>>
    %1056 = vector.broadcast %1055 : f32 to vector<8x128xf32>
    %1057 = arith.mulf %1056, %1050 : vector<8x128xf32>
    %1058 = arith.addf %1030, %1057 : vector<8x128xf32>
    %c273 = arith.constant 273 : index
    %1059 = memref.load %arg3[%c273] : memref<606xf32, #tpu.memory_space<smem>>
    %1060 = vector.broadcast %1059 : f32 to vector<8x128xf32>
    %1061 = arith.mulf %1060, %1050 : vector<8x128xf32>
    %1062 = arith.addf %1034, %1061 : vector<8x128xf32>
    %c126 = arith.constant 126 : index
    %1063 = memref.load %arg3[%c126] : memref<606xf32, #tpu.memory_space<smem>>
    %1064 = vector.broadcast %1063 : f32 to vector<8x128xf32>
    %1065 = arith.mulf %1064, %433 : vector<8x128xf32>
    %c127 = arith.constant 127 : index
    %1066 = memref.load %arg3[%c127] : memref<606xf32, #tpu.memory_space<smem>>
    %1067 = vector.broadcast %1066 : f32 to vector<8x128xf32>
    %1068 = arith.mulf %1067, %441 : vector<8x128xf32>
    %1069 = arith.addf %1065, %1068 : vector<8x128xf32>
    %c128 = arith.constant 128 : index
    %1070 = memref.load %arg3[%c128] : memref<606xf32, #tpu.memory_space<smem>>
    %1071 = vector.broadcast %1070 : f32 to vector<8x128xf32>
    %1072 = arith.mulf %1071, %449 : vector<8x128xf32>
    %1073 = arith.addf %1069, %1072 : vector<8x128xf32>
    %c178 = arith.constant 178 : index
    %1074 = memref.load %arg3[%c178] : memref<606xf32, #tpu.memory_space<smem>>
    %1075 = vector.broadcast %1074 : f32 to vector<8x128xf32>
    %1076 = arith.addf %1073, %1075 : vector<8x128xf32>
    %cst_42 = arith.constant 0.000000e+00 : f32
    %1077 = vector.broadcast %cst_42 : f32 to vector<8x128xf32>
    %1078 = arith.maximumf %1076, %1077 : vector<8x128xf32>
    %c210 = arith.constant 210 : index
    %1079 = memref.load %arg3[%c210] : memref<606xf32, #tpu.memory_space<smem>>
    %1080 = vector.broadcast %1079 : f32 to vector<8x128xf32>
    %1081 = arith.mulf %1080, %1078 : vector<8x128xf32>
    %1082 = arith.addf %1054, %1081 : vector<8x128xf32>
    %c242 = arith.constant 242 : index
    %1083 = memref.load %arg3[%c242] : memref<606xf32, #tpu.memory_space<smem>>
    %1084 = vector.broadcast %1083 : f32 to vector<8x128xf32>
    %1085 = arith.mulf %1084, %1078 : vector<8x128xf32>
    %1086 = arith.addf %1058, %1085 : vector<8x128xf32>
    %c274 = arith.constant 274 : index
    %1087 = memref.load %arg3[%c274] : memref<606xf32, #tpu.memory_space<smem>>
    %1088 = vector.broadcast %1087 : f32 to vector<8x128xf32>
    %1089 = arith.mulf %1088, %1078 : vector<8x128xf32>
    %1090 = arith.addf %1062, %1089 : vector<8x128xf32>
    %c129 = arith.constant 129 : index
    %1091 = memref.load %arg3[%c129] : memref<606xf32, #tpu.memory_space<smem>>
    %1092 = vector.broadcast %1091 : f32 to vector<8x128xf32>
    %1093 = arith.mulf %1092, %433 : vector<8x128xf32>
    %c130 = arith.constant 130 : index
    %1094 = memref.load %arg3[%c130] : memref<606xf32, #tpu.memory_space<smem>>
    %1095 = vector.broadcast %1094 : f32 to vector<8x128xf32>
    %1096 = arith.mulf %1095, %441 : vector<8x128xf32>
    %1097 = arith.addf %1093, %1096 : vector<8x128xf32>
    %c131 = arith.constant 131 : index
    %1098 = memref.load %arg3[%c131] : memref<606xf32, #tpu.memory_space<smem>>
    %1099 = vector.broadcast %1098 : f32 to vector<8x128xf32>
    %1100 = arith.mulf %1099, %449 : vector<8x128xf32>
    %1101 = arith.addf %1097, %1100 : vector<8x128xf32>
    %c179 = arith.constant 179 : index
    %1102 = memref.load %arg3[%c179] : memref<606xf32, #tpu.memory_space<smem>>
    %1103 = vector.broadcast %1102 : f32 to vector<8x128xf32>
    %1104 = arith.addf %1101, %1103 : vector<8x128xf32>
    %cst_43 = arith.constant 0.000000e+00 : f32
    %1105 = vector.broadcast %cst_43 : f32 to vector<8x128xf32>
    %1106 = arith.maximumf %1104, %1105 : vector<8x128xf32>
    %c211 = arith.constant 211 : index
    %1107 = memref.load %arg3[%c211] : memref<606xf32, #tpu.memory_space<smem>>
    %1108 = vector.broadcast %1107 : f32 to vector<8x128xf32>
    %1109 = arith.mulf %1108, %1106 : vector<8x128xf32>
    %1110 = arith.addf %1082, %1109 : vector<8x128xf32>
    %c243 = arith.constant 243 : index
    %1111 = memref.load %arg3[%c243] : memref<606xf32, #tpu.memory_space<smem>>
    %1112 = vector.broadcast %1111 : f32 to vector<8x128xf32>
    %1113 = arith.mulf %1112, %1106 : vector<8x128xf32>
    %1114 = arith.addf %1086, %1113 : vector<8x128xf32>
    %c275 = arith.constant 275 : index
    %1115 = memref.load %arg3[%c275] : memref<606xf32, #tpu.memory_space<smem>>
    %1116 = vector.broadcast %1115 : f32 to vector<8x128xf32>
    %1117 = arith.mulf %1116, %1106 : vector<8x128xf32>
    %1118 = arith.addf %1090, %1117 : vector<8x128xf32>
    %c132 = arith.constant 132 : index
    %1119 = memref.load %arg3[%c132] : memref<606xf32, #tpu.memory_space<smem>>
    %1120 = vector.broadcast %1119 : f32 to vector<8x128xf32>
    %1121 = arith.mulf %1120, %433 : vector<8x128xf32>
    %c133 = arith.constant 133 : index
    %1122 = memref.load %arg3[%c133] : memref<606xf32, #tpu.memory_space<smem>>
    %1123 = vector.broadcast %1122 : f32 to vector<8x128xf32>
    %1124 = arith.mulf %1123, %441 : vector<8x128xf32>
    %1125 = arith.addf %1121, %1124 : vector<8x128xf32>
    %c134 = arith.constant 134 : index
    %1126 = memref.load %arg3[%c134] : memref<606xf32, #tpu.memory_space<smem>>
    %1127 = vector.broadcast %1126 : f32 to vector<8x128xf32>
    %1128 = arith.mulf %1127, %449 : vector<8x128xf32>
    %1129 = arith.addf %1125, %1128 : vector<8x128xf32>
    %c180 = arith.constant 180 : index
    %1130 = memref.load %arg3[%c180] : memref<606xf32, #tpu.memory_space<smem>>
    %1131 = vector.broadcast %1130 : f32 to vector<8x128xf32>
    %1132 = arith.addf %1129, %1131 : vector<8x128xf32>
    %cst_44 = arith.constant 0.000000e+00 : f32
    %1133 = vector.broadcast %cst_44 : f32 to vector<8x128xf32>
    %1134 = arith.maximumf %1132, %1133 : vector<8x128xf32>
    %c212 = arith.constant 212 : index
    %1135 = memref.load %arg3[%c212] : memref<606xf32, #tpu.memory_space<smem>>
    %1136 = vector.broadcast %1135 : f32 to vector<8x128xf32>
    %1137 = arith.mulf %1136, %1134 : vector<8x128xf32>
    %1138 = arith.addf %1110, %1137 : vector<8x128xf32>
    %c244 = arith.constant 244 : index
    %1139 = memref.load %arg3[%c244] : memref<606xf32, #tpu.memory_space<smem>>
    %1140 = vector.broadcast %1139 : f32 to vector<8x128xf32>
    %1141 = arith.mulf %1140, %1134 : vector<8x128xf32>
    %1142 = arith.addf %1114, %1141 : vector<8x128xf32>
    %c276 = arith.constant 276 : index
    %1143 = memref.load %arg3[%c276] : memref<606xf32, #tpu.memory_space<smem>>
    %1144 = vector.broadcast %1143 : f32 to vector<8x128xf32>
    %1145 = arith.mulf %1144, %1134 : vector<8x128xf32>
    %1146 = arith.addf %1118, %1145 : vector<8x128xf32>
    %c135 = arith.constant 135 : index
    %1147 = memref.load %arg3[%c135] : memref<606xf32, #tpu.memory_space<smem>>
    %1148 = vector.broadcast %1147 : f32 to vector<8x128xf32>
    %1149 = arith.mulf %1148, %433 : vector<8x128xf32>
    %c136 = arith.constant 136 : index
    %1150 = memref.load %arg3[%c136] : memref<606xf32, #tpu.memory_space<smem>>
    %1151 = vector.broadcast %1150 : f32 to vector<8x128xf32>
    %1152 = arith.mulf %1151, %441 : vector<8x128xf32>
    %1153 = arith.addf %1149, %1152 : vector<8x128xf32>
    %c137 = arith.constant 137 : index
    %1154 = memref.load %arg3[%c137] : memref<606xf32, #tpu.memory_space<smem>>
    %1155 = vector.broadcast %1154 : f32 to vector<8x128xf32>
    %1156 = arith.mulf %1155, %449 : vector<8x128xf32>
    %1157 = arith.addf %1153, %1156 : vector<8x128xf32>
    %c181 = arith.constant 181 : index
    %1158 = memref.load %arg3[%c181] : memref<606xf32, #tpu.memory_space<smem>>
    %1159 = vector.broadcast %1158 : f32 to vector<8x128xf32>
    %1160 = arith.addf %1157, %1159 : vector<8x128xf32>
    %cst_45 = arith.constant 0.000000e+00 : f32
    %1161 = vector.broadcast %cst_45 : f32 to vector<8x128xf32>
    %1162 = arith.maximumf %1160, %1161 : vector<8x128xf32>
    %c213 = arith.constant 213 : index
    %1163 = memref.load %arg3[%c213] : memref<606xf32, #tpu.memory_space<smem>>
    %1164 = vector.broadcast %1163 : f32 to vector<8x128xf32>
    %1165 = arith.mulf %1164, %1162 : vector<8x128xf32>
    %1166 = arith.addf %1138, %1165 : vector<8x128xf32>
    %c245 = arith.constant 245 : index
    %1167 = memref.load %arg3[%c245] : memref<606xf32, #tpu.memory_space<smem>>
    %1168 = vector.broadcast %1167 : f32 to vector<8x128xf32>
    %1169 = arith.mulf %1168, %1162 : vector<8x128xf32>
    %1170 = arith.addf %1142, %1169 : vector<8x128xf32>
    %c277 = arith.constant 277 : index
    %1171 = memref.load %arg3[%c277] : memref<606xf32, #tpu.memory_space<smem>>
    %1172 = vector.broadcast %1171 : f32 to vector<8x128xf32>
    %1173 = arith.mulf %1172, %1162 : vector<8x128xf32>
    %1174 = arith.addf %1146, %1173 : vector<8x128xf32>
    %c138 = arith.constant 138 : index
    %1175 = memref.load %arg3[%c138] : memref<606xf32, #tpu.memory_space<smem>>
    %1176 = vector.broadcast %1175 : f32 to vector<8x128xf32>
    %1177 = arith.mulf %1176, %433 : vector<8x128xf32>
    %c139 = arith.constant 139 : index
    %1178 = memref.load %arg3[%c139] : memref<606xf32, #tpu.memory_space<smem>>
    %1179 = vector.broadcast %1178 : f32 to vector<8x128xf32>
    %1180 = arith.mulf %1179, %441 : vector<8x128xf32>
    %1181 = arith.addf %1177, %1180 : vector<8x128xf32>
    %c140 = arith.constant 140 : index
    %1182 = memref.load %arg3[%c140] : memref<606xf32, #tpu.memory_space<smem>>
    %1183 = vector.broadcast %1182 : f32 to vector<8x128xf32>
    %1184 = arith.mulf %1183, %449 : vector<8x128xf32>
    %1185 = arith.addf %1181, %1184 : vector<8x128xf32>
    %c182 = arith.constant 182 : index
    %1186 = memref.load %arg3[%c182] : memref<606xf32, #tpu.memory_space<smem>>
    %1187 = vector.broadcast %1186 : f32 to vector<8x128xf32>
    %1188 = arith.addf %1185, %1187 : vector<8x128xf32>
    %cst_46 = arith.constant 0.000000e+00 : f32
    %1189 = vector.broadcast %cst_46 : f32 to vector<8x128xf32>
    %1190 = arith.maximumf %1188, %1189 : vector<8x128xf32>
    %c214 = arith.constant 214 : index
    %1191 = memref.load %arg3[%c214] : memref<606xf32, #tpu.memory_space<smem>>
    %1192 = vector.broadcast %1191 : f32 to vector<8x128xf32>
    %1193 = arith.mulf %1192, %1190 : vector<8x128xf32>
    %1194 = arith.addf %1166, %1193 : vector<8x128xf32>
    %c246 = arith.constant 246 : index
    %1195 = memref.load %arg3[%c246] : memref<606xf32, #tpu.memory_space<smem>>
    %1196 = vector.broadcast %1195 : f32 to vector<8x128xf32>
    %1197 = arith.mulf %1196, %1190 : vector<8x128xf32>
    %1198 = arith.addf %1170, %1197 : vector<8x128xf32>
    %c278 = arith.constant 278 : index
    %1199 = memref.load %arg3[%c278] : memref<606xf32, #tpu.memory_space<smem>>
    %1200 = vector.broadcast %1199 : f32 to vector<8x128xf32>
    %1201 = arith.mulf %1200, %1190 : vector<8x128xf32>
    %1202 = arith.addf %1174, %1201 : vector<8x128xf32>
    %c141 = arith.constant 141 : index
    %1203 = memref.load %arg3[%c141] : memref<606xf32, #tpu.memory_space<smem>>
    %1204 = vector.broadcast %1203 : f32 to vector<8x128xf32>
    %1205 = arith.mulf %1204, %433 : vector<8x128xf32>
    %c142 = arith.constant 142 : index
    %1206 = memref.load %arg3[%c142] : memref<606xf32, #tpu.memory_space<smem>>
    %1207 = vector.broadcast %1206 : f32 to vector<8x128xf32>
    %1208 = arith.mulf %1207, %441 : vector<8x128xf32>
    %1209 = arith.addf %1205, %1208 : vector<8x128xf32>
    %c143 = arith.constant 143 : index
    %1210 = memref.load %arg3[%c143] : memref<606xf32, #tpu.memory_space<smem>>
    %1211 = vector.broadcast %1210 : f32 to vector<8x128xf32>
    %1212 = arith.mulf %1211, %449 : vector<8x128xf32>
    %1213 = arith.addf %1209, %1212 : vector<8x128xf32>
    %c183 = arith.constant 183 : index
    %1214 = memref.load %arg3[%c183] : memref<606xf32, #tpu.memory_space<smem>>
    %1215 = vector.broadcast %1214 : f32 to vector<8x128xf32>
    %1216 = arith.addf %1213, %1215 : vector<8x128xf32>
    %cst_47 = arith.constant 0.000000e+00 : f32
    %1217 = vector.broadcast %cst_47 : f32 to vector<8x128xf32>
    %1218 = arith.maximumf %1216, %1217 : vector<8x128xf32>
    %c215 = arith.constant 215 : index
    %1219 = memref.load %arg3[%c215] : memref<606xf32, #tpu.memory_space<smem>>
    %1220 = vector.broadcast %1219 : f32 to vector<8x128xf32>
    %1221 = arith.mulf %1220, %1218 : vector<8x128xf32>
    %1222 = arith.addf %1194, %1221 : vector<8x128xf32>
    %c247 = arith.constant 247 : index
    %1223 = memref.load %arg3[%c247] : memref<606xf32, #tpu.memory_space<smem>>
    %1224 = vector.broadcast %1223 : f32 to vector<8x128xf32>
    %1225 = arith.mulf %1224, %1218 : vector<8x128xf32>
    %1226 = arith.addf %1198, %1225 : vector<8x128xf32>
    %c279 = arith.constant 279 : index
    %1227 = memref.load %arg3[%c279] : memref<606xf32, #tpu.memory_space<smem>>
    %1228 = vector.broadcast %1227 : f32 to vector<8x128xf32>
    %1229 = arith.mulf %1228, %1218 : vector<8x128xf32>
    %1230 = arith.addf %1202, %1229 : vector<8x128xf32>
    %c144 = arith.constant 144 : index
    %1231 = memref.load %arg3[%c144] : memref<606xf32, #tpu.memory_space<smem>>
    %1232 = vector.broadcast %1231 : f32 to vector<8x128xf32>
    %1233 = arith.mulf %1232, %433 : vector<8x128xf32>
    %c145 = arith.constant 145 : index
    %1234 = memref.load %arg3[%c145] : memref<606xf32, #tpu.memory_space<smem>>
    %1235 = vector.broadcast %1234 : f32 to vector<8x128xf32>
    %1236 = arith.mulf %1235, %441 : vector<8x128xf32>
    %1237 = arith.addf %1233, %1236 : vector<8x128xf32>
    %c146 = arith.constant 146 : index
    %1238 = memref.load %arg3[%c146] : memref<606xf32, #tpu.memory_space<smem>>
    %1239 = vector.broadcast %1238 : f32 to vector<8x128xf32>
    %1240 = arith.mulf %1239, %449 : vector<8x128xf32>
    %1241 = arith.addf %1237, %1240 : vector<8x128xf32>
    %c184 = arith.constant 184 : index
    %1242 = memref.load %arg3[%c184] : memref<606xf32, #tpu.memory_space<smem>>
    %1243 = vector.broadcast %1242 : f32 to vector<8x128xf32>
    %1244 = arith.addf %1241, %1243 : vector<8x128xf32>
    %cst_48 = arith.constant 0.000000e+00 : f32
    %1245 = vector.broadcast %cst_48 : f32 to vector<8x128xf32>
    %1246 = arith.maximumf %1244, %1245 : vector<8x128xf32>
    %c216 = arith.constant 216 : index
    %1247 = memref.load %arg3[%c216] : memref<606xf32, #tpu.memory_space<smem>>
    %1248 = vector.broadcast %1247 : f32 to vector<8x128xf32>
    %1249 = arith.mulf %1248, %1246 : vector<8x128xf32>
    %1250 = arith.addf %1222, %1249 : vector<8x128xf32>
    %c248 = arith.constant 248 : index
    %1251 = memref.load %arg3[%c248] : memref<606xf32, #tpu.memory_space<smem>>
    %1252 = vector.broadcast %1251 : f32 to vector<8x128xf32>
    %1253 = arith.mulf %1252, %1246 : vector<8x128xf32>
    %1254 = arith.addf %1226, %1253 : vector<8x128xf32>
    %c280 = arith.constant 280 : index
    %1255 = memref.load %arg3[%c280] : memref<606xf32, #tpu.memory_space<smem>>
    %1256 = vector.broadcast %1255 : f32 to vector<8x128xf32>
    %1257 = arith.mulf %1256, %1246 : vector<8x128xf32>
    %1258 = arith.addf %1230, %1257 : vector<8x128xf32>
    %c147 = arith.constant 147 : index
    %1259 = memref.load %arg3[%c147] : memref<606xf32, #tpu.memory_space<smem>>
    %1260 = vector.broadcast %1259 : f32 to vector<8x128xf32>
    %1261 = arith.mulf %1260, %433 : vector<8x128xf32>
    %c148 = arith.constant 148 : index
    %1262 = memref.load %arg3[%c148] : memref<606xf32, #tpu.memory_space<smem>>
    %1263 = vector.broadcast %1262 : f32 to vector<8x128xf32>
    %1264 = arith.mulf %1263, %441 : vector<8x128xf32>
    %1265 = arith.addf %1261, %1264 : vector<8x128xf32>
    %c149 = arith.constant 149 : index
    %1266 = memref.load %arg3[%c149] : memref<606xf32, #tpu.memory_space<smem>>
    %1267 = vector.broadcast %1266 : f32 to vector<8x128xf32>
    %1268 = arith.mulf %1267, %449 : vector<8x128xf32>
    %1269 = arith.addf %1265, %1268 : vector<8x128xf32>
    %c185 = arith.constant 185 : index
    %1270 = memref.load %arg3[%c185] : memref<606xf32, #tpu.memory_space<smem>>
    %1271 = vector.broadcast %1270 : f32 to vector<8x128xf32>
    %1272 = arith.addf %1269, %1271 : vector<8x128xf32>
    %cst_49 = arith.constant 0.000000e+00 : f32
    %1273 = vector.broadcast %cst_49 : f32 to vector<8x128xf32>
    %1274 = arith.maximumf %1272, %1273 : vector<8x128xf32>
    %c217 = arith.constant 217 : index
    %1275 = memref.load %arg3[%c217] : memref<606xf32, #tpu.memory_space<smem>>
    %1276 = vector.broadcast %1275 : f32 to vector<8x128xf32>
    %1277 = arith.mulf %1276, %1274 : vector<8x128xf32>
    %1278 = arith.addf %1250, %1277 : vector<8x128xf32>
    %c249 = arith.constant 249 : index
    %1279 = memref.load %arg3[%c249] : memref<606xf32, #tpu.memory_space<smem>>
    %1280 = vector.broadcast %1279 : f32 to vector<8x128xf32>
    %1281 = arith.mulf %1280, %1274 : vector<8x128xf32>
    %1282 = arith.addf %1254, %1281 : vector<8x128xf32>
    %c281 = arith.constant 281 : index
    %1283 = memref.load %arg3[%c281] : memref<606xf32, #tpu.memory_space<smem>>
    %1284 = vector.broadcast %1283 : f32 to vector<8x128xf32>
    %1285 = arith.mulf %1284, %1274 : vector<8x128xf32>
    %1286 = arith.addf %1258, %1285 : vector<8x128xf32>
    %c150 = arith.constant 150 : index
    %1287 = memref.load %arg3[%c150] : memref<606xf32, #tpu.memory_space<smem>>
    %1288 = vector.broadcast %1287 : f32 to vector<8x128xf32>
    %1289 = arith.mulf %1288, %433 : vector<8x128xf32>
    %c151 = arith.constant 151 : index
    %1290 = memref.load %arg3[%c151] : memref<606xf32, #tpu.memory_space<smem>>
    %1291 = vector.broadcast %1290 : f32 to vector<8x128xf32>
    %1292 = arith.mulf %1291, %441 : vector<8x128xf32>
    %1293 = arith.addf %1289, %1292 : vector<8x128xf32>
    %c152 = arith.constant 152 : index
    %1294 = memref.load %arg3[%c152] : memref<606xf32, #tpu.memory_space<smem>>
    %1295 = vector.broadcast %1294 : f32 to vector<8x128xf32>
    %1296 = arith.mulf %1295, %449 : vector<8x128xf32>
    %1297 = arith.addf %1293, %1296 : vector<8x128xf32>
    %c186 = arith.constant 186 : index
    %1298 = memref.load %arg3[%c186] : memref<606xf32, #tpu.memory_space<smem>>
    %1299 = vector.broadcast %1298 : f32 to vector<8x128xf32>
    %1300 = arith.addf %1297, %1299 : vector<8x128xf32>
    %cst_50 = arith.constant 0.000000e+00 : f32
    %1301 = vector.broadcast %cst_50 : f32 to vector<8x128xf32>
    %1302 = arith.maximumf %1300, %1301 : vector<8x128xf32>
    %c218 = arith.constant 218 : index
    %1303 = memref.load %arg3[%c218] : memref<606xf32, #tpu.memory_space<smem>>
    %1304 = vector.broadcast %1303 : f32 to vector<8x128xf32>
    %1305 = arith.mulf %1304, %1302 : vector<8x128xf32>
    %1306 = arith.addf %1278, %1305 : vector<8x128xf32>
    %c250 = arith.constant 250 : index
    %1307 = memref.load %arg3[%c250] : memref<606xf32, #tpu.memory_space<smem>>
    %1308 = vector.broadcast %1307 : f32 to vector<8x128xf32>
    %1309 = arith.mulf %1308, %1302 : vector<8x128xf32>
    %1310 = arith.addf %1282, %1309 : vector<8x128xf32>
    %c282 = arith.constant 282 : index
    %1311 = memref.load %arg3[%c282] : memref<606xf32, #tpu.memory_space<smem>>
    %1312 = vector.broadcast %1311 : f32 to vector<8x128xf32>
    %1313 = arith.mulf %1312, %1302 : vector<8x128xf32>
    %1314 = arith.addf %1286, %1313 : vector<8x128xf32>
    %c153 = arith.constant 153 : index
    %1315 = memref.load %arg3[%c153] : memref<606xf32, #tpu.memory_space<smem>>
    %1316 = vector.broadcast %1315 : f32 to vector<8x128xf32>
    %1317 = arith.mulf %1316, %433 : vector<8x128xf32>
    %c154 = arith.constant 154 : index
    %1318 = memref.load %arg3[%c154] : memref<606xf32, #tpu.memory_space<smem>>
    %1319 = vector.broadcast %1318 : f32 to vector<8x128xf32>
    %1320 = arith.mulf %1319, %441 : vector<8x128xf32>
    %1321 = arith.addf %1317, %1320 : vector<8x128xf32>
    %c155 = arith.constant 155 : index
    %1322 = memref.load %arg3[%c155] : memref<606xf32, #tpu.memory_space<smem>>
    %1323 = vector.broadcast %1322 : f32 to vector<8x128xf32>
    %1324 = arith.mulf %1323, %449 : vector<8x128xf32>
    %1325 = arith.addf %1321, %1324 : vector<8x128xf32>
    %c187 = arith.constant 187 : index
    %1326 = memref.load %arg3[%c187] : memref<606xf32, #tpu.memory_space<smem>>
    %1327 = vector.broadcast %1326 : f32 to vector<8x128xf32>
    %1328 = arith.addf %1325, %1327 : vector<8x128xf32>
    %cst_51 = arith.constant 0.000000e+00 : f32
    %1329 = vector.broadcast %cst_51 : f32 to vector<8x128xf32>
    %1330 = arith.maximumf %1328, %1329 : vector<8x128xf32>
    %c219 = arith.constant 219 : index
    %1331 = memref.load %arg3[%c219] : memref<606xf32, #tpu.memory_space<smem>>
    %1332 = vector.broadcast %1331 : f32 to vector<8x128xf32>
    %1333 = arith.mulf %1332, %1330 : vector<8x128xf32>
    %1334 = arith.addf %1306, %1333 : vector<8x128xf32>
    %c251 = arith.constant 251 : index
    %1335 = memref.load %arg3[%c251] : memref<606xf32, #tpu.memory_space<smem>>
    %1336 = vector.broadcast %1335 : f32 to vector<8x128xf32>
    %1337 = arith.mulf %1336, %1330 : vector<8x128xf32>
    %1338 = arith.addf %1310, %1337 : vector<8x128xf32>
    %c283 = arith.constant 283 : index
    %1339 = memref.load %arg3[%c283] : memref<606xf32, #tpu.memory_space<smem>>
    %1340 = vector.broadcast %1339 : f32 to vector<8x128xf32>
    %1341 = arith.mulf %1340, %1330 : vector<8x128xf32>
    %1342 = arith.addf %1314, %1341 : vector<8x128xf32>
    %1343 = arith.addf %433, %1334 : vector<8x128xf32>
    %c284 = arith.constant 284 : index
    %1344 = memref.load %arg3[%c284] : memref<606xf32, #tpu.memory_space<smem>>
    %1345 = vector.broadcast %1344 : f32 to vector<8x128xf32>
    %1346 = arith.addf %1343, %1345 : vector<8x128xf32>
    %1347 = arith.addf %441, %1338 : vector<8x128xf32>
    %c285 = arith.constant 285 : index
    %1348 = memref.load %arg3[%c285] : memref<606xf32, #tpu.memory_space<smem>>
    %1349 = vector.broadcast %1348 : f32 to vector<8x128xf32>
    %1350 = arith.addf %1347, %1349 : vector<8x128xf32>
    %1351 = arith.addf %449, %1342 : vector<8x128xf32>
    %c286 = arith.constant 286 : index
    %1352 = memref.load %arg3[%c286] : memref<606xf32, #tpu.memory_space<smem>>
    %1353 = vector.broadcast %1352 : f32 to vector<8x128xf32>
    %1354 = arith.addf %1351, %1353 : vector<8x128xf32>
    %1355 = arith.addf %1346, %1350 : vector<8x128xf32>
    %1356 = arith.addf %1355, %1354 : vector<8x128xf32>
    %cst_52 = arith.constant 0.333333343 : f32
    %1357 = vector.broadcast %cst_52 : f32 to vector<8x128xf32>
    %1358 = arith.mulf %1356, %1357 : vector<8x128xf32>
    %1359 = arith.subf %1346, %1358 : vector<8x128xf32>
    %1360 = arith.mulf %1359, %1359 : vector<8x128xf32>
    %1361 = arith.subf %1350, %1358 : vector<8x128xf32>
    %1362 = arith.mulf %1361, %1361 : vector<8x128xf32>
    %1363 = arith.addf %1360, %1362 : vector<8x128xf32>
    %1364 = arith.subf %1354, %1358 : vector<8x128xf32>
    %1365 = arith.mulf %1364, %1364 : vector<8x128xf32>
    %1366 = arith.addf %1363, %1365 : vector<8x128xf32>
    %cst_53 = arith.constant 0.333333343 : f32
    %1367 = vector.broadcast %cst_53 : f32 to vector<8x128xf32>
    %1368 = arith.mulf %1366, %1367 : vector<8x128xf32>
    %cst_54 = arith.constant 9.99999974E-6 : f32
    %1369 = vector.broadcast %cst_54 : f32 to vector<8x128xf32>
    %1370 = arith.addf %1368, %1369 : vector<8x128xf32>
    %1371 = math.rsqrt %1370 : vector<8x128xf32>
    %1372 = arith.subf %1346, %1358 : vector<8x128xf32>
    %1373 = arith.mulf %1372, %1371 : vector<8x128xf32>
    %c54 = arith.constant 54 : index
    %1374 = memref.load %arg3[%c54] : memref<606xf32, #tpu.memory_space<smem>>
    %1375 = vector.broadcast %1374 : f32 to vector<8x128xf32>
    %1376 = arith.mulf %1373, %1375 : vector<8x128xf32>
    %c57 = arith.constant 57 : index
    %1377 = memref.load %arg3[%c57] : memref<606xf32, #tpu.memory_space<smem>>
    %1378 = vector.broadcast %1377 : f32 to vector<8x128xf32>
    %1379 = arith.addf %1376, %1378 : vector<8x128xf32>
    %1380 = arith.subf %1350, %1358 : vector<8x128xf32>
    %1381 = arith.mulf %1380, %1371 : vector<8x128xf32>
    %c55 = arith.constant 55 : index
    %1382 = memref.load %arg3[%c55] : memref<606xf32, #tpu.memory_space<smem>>
    %1383 = vector.broadcast %1382 : f32 to vector<8x128xf32>
    %1384 = arith.mulf %1381, %1383 : vector<8x128xf32>
    %c58 = arith.constant 58 : index
    %1385 = memref.load %arg3[%c58] : memref<606xf32, #tpu.memory_space<smem>>
    %1386 = vector.broadcast %1385 : f32 to vector<8x128xf32>
    %1387 = arith.addf %1384, %1386 : vector<8x128xf32>
    %1388 = arith.subf %1354, %1358 : vector<8x128xf32>
    %1389 = arith.mulf %1388, %1371 : vector<8x128xf32>
    %c56 = arith.constant 56 : index
    %1390 = memref.load %arg3[%c56] : memref<606xf32, #tpu.memory_space<smem>>
    %1391 = vector.broadcast %1390 : f32 to vector<8x128xf32>
    %1392 = arith.mulf %1389, %1391 : vector<8x128xf32>
    %c59 = arith.constant 59 : index
    %1393 = memref.load %arg3[%c59] : memref<606xf32, #tpu.memory_space<smem>>
    %1394 = vector.broadcast %1393 : f32 to vector<8x128xf32>
    %1395 = arith.addf %1392, %1394 : vector<8x128xf32>
    %c287 = arith.constant 287 : index
    %1396 = memref.load %arg3[%c287] : memref<606xf32, #tpu.memory_space<smem>>
    %1397 = vector.broadcast %1396 : f32 to vector<8x128xf32>
    %1398 = arith.mulf %1397, %1379 : vector<8x128xf32>
    %c288 = arith.constant 288 : index
    %1399 = memref.load %arg3[%c288] : memref<606xf32, #tpu.memory_space<smem>>
    %1400 = vector.broadcast %1399 : f32 to vector<8x128xf32>
    %1401 = arith.mulf %1400, %1387 : vector<8x128xf32>
    %1402 = arith.addf %1398, %1401 : vector<8x128xf32>
    %c289 = arith.constant 289 : index
    %1403 = memref.load %arg3[%c289] : memref<606xf32, #tpu.memory_space<smem>>
    %1404 = vector.broadcast %1403 : f32 to vector<8x128xf32>
    %1405 = arith.mulf %1404, %1395 : vector<8x128xf32>
    %1406 = arith.addf %1402, %1405 : vector<8x128xf32>
    %c323 = arith.constant 323 : index
    %1407 = memref.load %arg3[%c323] : memref<606xf32, #tpu.memory_space<smem>>
    %1408 = vector.broadcast %1407 : f32 to vector<8x128xf32>
    %1409 = arith.addf %1406, %1408 : vector<8x128xf32>
    %c290 = arith.constant 290 : index
    %1410 = memref.load %arg3[%c290] : memref<606xf32, #tpu.memory_space<smem>>
    %1411 = vector.broadcast %1410 : f32 to vector<8x128xf32>
    %1412 = arith.mulf %1411, %1379 : vector<8x128xf32>
    %c291 = arith.constant 291 : index
    %1413 = memref.load %arg3[%c291] : memref<606xf32, #tpu.memory_space<smem>>
    %1414 = vector.broadcast %1413 : f32 to vector<8x128xf32>
    %1415 = arith.mulf %1414, %1387 : vector<8x128xf32>
    %1416 = arith.addf %1412, %1415 : vector<8x128xf32>
    %c292 = arith.constant 292 : index
    %1417 = memref.load %arg3[%c292] : memref<606xf32, #tpu.memory_space<smem>>
    %1418 = vector.broadcast %1417 : f32 to vector<8x128xf32>
    %1419 = arith.mulf %1418, %1395 : vector<8x128xf32>
    %1420 = arith.addf %1416, %1419 : vector<8x128xf32>
    %c324 = arith.constant 324 : index
    %1421 = memref.load %arg3[%c324] : memref<606xf32, #tpu.memory_space<smem>>
    %1422 = vector.broadcast %1421 : f32 to vector<8x128xf32>
    %1423 = arith.addf %1420, %1422 : vector<8x128xf32>
    %c293 = arith.constant 293 : index
    %1424 = memref.load %arg3[%c293] : memref<606xf32, #tpu.memory_space<smem>>
    %1425 = vector.broadcast %1424 : f32 to vector<8x128xf32>
    %1426 = arith.mulf %1425, %1379 : vector<8x128xf32>
    %c294 = arith.constant 294 : index
    %1427 = memref.load %arg3[%c294] : memref<606xf32, #tpu.memory_space<smem>>
    %1428 = vector.broadcast %1427 : f32 to vector<8x128xf32>
    %1429 = arith.mulf %1428, %1387 : vector<8x128xf32>
    %1430 = arith.addf %1426, %1429 : vector<8x128xf32>
    %c295 = arith.constant 295 : index
    %1431 = memref.load %arg3[%c295] : memref<606xf32, #tpu.memory_space<smem>>
    %1432 = vector.broadcast %1431 : f32 to vector<8x128xf32>
    %1433 = arith.mulf %1432, %1395 : vector<8x128xf32>
    %1434 = arith.addf %1430, %1433 : vector<8x128xf32>
    %c325 = arith.constant 325 : index
    %1435 = memref.load %arg3[%c325] : memref<606xf32, #tpu.memory_space<smem>>
    %1436 = vector.broadcast %1435 : f32 to vector<8x128xf32>
    %1437 = arith.addf %1434, %1436 : vector<8x128xf32>
    %c296 = arith.constant 296 : index
    %1438 = memref.load %arg3[%c296] : memref<606xf32, #tpu.memory_space<smem>>
    %1439 = vector.broadcast %1438 : f32 to vector<8x128xf32>
    %1440 = arith.mulf %1439, %1379 : vector<8x128xf32>
    %c297 = arith.constant 297 : index
    %1441 = memref.load %arg3[%c297] : memref<606xf32, #tpu.memory_space<smem>>
    %1442 = vector.broadcast %1441 : f32 to vector<8x128xf32>
    %1443 = arith.mulf %1442, %1387 : vector<8x128xf32>
    %1444 = arith.addf %1440, %1443 : vector<8x128xf32>
    %c298 = arith.constant 298 : index
    %1445 = memref.load %arg3[%c298] : memref<606xf32, #tpu.memory_space<smem>>
    %1446 = vector.broadcast %1445 : f32 to vector<8x128xf32>
    %1447 = arith.mulf %1446, %1395 : vector<8x128xf32>
    %1448 = arith.addf %1444, %1447 : vector<8x128xf32>
    %c326 = arith.constant 326 : index
    %1449 = memref.load %arg3[%c326] : memref<606xf32, #tpu.memory_space<smem>>
    %1450 = vector.broadcast %1449 : f32 to vector<8x128xf32>
    %1451 = arith.addf %1448, %1450 : vector<8x128xf32>
    %c299 = arith.constant 299 : index
    %1452 = memref.load %arg3[%c299] : memref<606xf32, #tpu.memory_space<smem>>
    %1453 = vector.broadcast %1452 : f32 to vector<8x128xf32>
    %1454 = arith.mulf %1453, %1379 : vector<8x128xf32>
    %c300 = arith.constant 300 : index
    %1455 = memref.load %arg3[%c300] : memref<606xf32, #tpu.memory_space<smem>>
    %1456 = vector.broadcast %1455 : f32 to vector<8x128xf32>
    %1457 = arith.mulf %1456, %1387 : vector<8x128xf32>
    %1458 = arith.addf %1454, %1457 : vector<8x128xf32>
    %c301 = arith.constant 301 : index
    %1459 = memref.load %arg3[%c301] : memref<606xf32, #tpu.memory_space<smem>>
    %1460 = vector.broadcast %1459 : f32 to vector<8x128xf32>
    %1461 = arith.mulf %1460, %1395 : vector<8x128xf32>
    %1462 = arith.addf %1458, %1461 : vector<8x128xf32>
    %c327 = arith.constant 327 : index
    %1463 = memref.load %arg3[%c327] : memref<606xf32, #tpu.memory_space<smem>>
    %1464 = vector.broadcast %1463 : f32 to vector<8x128xf32>
    %1465 = arith.addf %1462, %1464 : vector<8x128xf32>
    %c302 = arith.constant 302 : index
    %1466 = memref.load %arg3[%c302] : memref<606xf32, #tpu.memory_space<smem>>
    %1467 = vector.broadcast %1466 : f32 to vector<8x128xf32>
    %1468 = arith.mulf %1467, %1379 : vector<8x128xf32>
    %c303 = arith.constant 303 : index
    %1469 = memref.load %arg3[%c303] : memref<606xf32, #tpu.memory_space<smem>>
    %1470 = vector.broadcast %1469 : f32 to vector<8x128xf32>
    %1471 = arith.mulf %1470, %1387 : vector<8x128xf32>
    %1472 = arith.addf %1468, %1471 : vector<8x128xf32>
    %c304 = arith.constant 304 : index
    %1473 = memref.load %arg3[%c304] : memref<606xf32, #tpu.memory_space<smem>>
    %1474 = vector.broadcast %1473 : f32 to vector<8x128xf32>
    %1475 = arith.mulf %1474, %1395 : vector<8x128xf32>
    %1476 = arith.addf %1472, %1475 : vector<8x128xf32>
    %c328 = arith.constant 328 : index
    %1477 = memref.load %arg3[%c328] : memref<606xf32, #tpu.memory_space<smem>>
    %1478 = vector.broadcast %1477 : f32 to vector<8x128xf32>
    %1479 = arith.addf %1476, %1478 : vector<8x128xf32>
    %1480 = vector.extract_strided_slice %1451 {offsets = [0, 0], sizes = [1, 128], strides = [1, 1]} : vector<8x128xf32> to vector<1x128xf32>
    %1481 = vector.broadcast %1480 : vector<1x128xf32> to vector<8x128xf32>
    %1482 = arith.mulf %1409, %1481 : vector<8x128xf32>
    %1483 = vector.extract_strided_slice %1465 {offsets = [0, 0], sizes = [1, 128], strides = [1, 1]} : vector<8x128xf32> to vector<1x128xf32>
    %1484 = vector.broadcast %1483 : vector<1x128xf32> to vector<8x128xf32>
    %1485 = arith.mulf %1423, %1484 : vector<8x128xf32>
    %1486 = arith.addf %1482, %1485 : vector<8x128xf32>
    %1487 = vector.extract_strided_slice %1479 {offsets = [0, 0], sizes = [1, 128], strides = [1, 1]} : vector<8x128xf32> to vector<1x128xf32>
    %1488 = vector.broadcast %1487 : vector<1x128xf32> to vector<8x128xf32>
    %1489 = arith.mulf %1437, %1488 : vector<8x128xf32>
    %1490 = arith.addf %1486, %1489 : vector<8x128xf32>
    %1491 = vector.extract_strided_slice %1451 {offsets = [1, 0], sizes = [1, 128], strides = [1, 1]} : vector<8x128xf32> to vector<1x128xf32>
    %1492 = vector.broadcast %1491 : vector<1x128xf32> to vector<8x128xf32>
    %1493 = arith.mulf %1409, %1492 : vector<8x128xf32>
    %1494 = vector.extract_strided_slice %1465 {offsets = [1, 0], sizes = [1, 128], strides = [1, 1]} : vector<8x128xf32> to vector<1x128xf32>
    %1495 = vector.broadcast %1494 : vector<1x128xf32> to vector<8x128xf32>
    %1496 = arith.mulf %1423, %1495 : vector<8x128xf32>
    %1497 = arith.addf %1493, %1496 : vector<8x128xf32>
    %1498 = vector.extract_strided_slice %1479 {offsets = [1, 0], sizes = [1, 128], strides = [1, 1]} : vector<8x128xf32> to vector<1x128xf32>
    %1499 = vector.broadcast %1498 : vector<1x128xf32> to vector<8x128xf32>
    %1500 = arith.mulf %1437, %1499 : vector<8x128xf32>
    %1501 = arith.addf %1497, %1500 : vector<8x128xf32>
    %1502 = vector.extract_strided_slice %1451 {offsets = [2, 0], sizes = [1, 128], strides = [1, 1]} : vector<8x128xf32> to vector<1x128xf32>
    %1503 = vector.broadcast %1502 : vector<1x128xf32> to vector<8x128xf32>
    %1504 = arith.mulf %1409, %1503 : vector<8x128xf32>
    %1505 = vector.extract_strided_slice %1465 {offsets = [2, 0], sizes = [1, 128], strides = [1, 1]} : vector<8x128xf32> to vector<1x128xf32>
    %1506 = vector.broadcast %1505 : vector<1x128xf32> to vector<8x128xf32>
    %1507 = arith.mulf %1423, %1506 : vector<8x128xf32>
    %1508 = arith.addf %1504, %1507 : vector<8x128xf32>
    %1509 = vector.extract_strided_slice %1479 {offsets = [2, 0], sizes = [1, 128], strides = [1, 1]} : vector<8x128xf32> to vector<1x128xf32>
    %1510 = vector.broadcast %1509 : vector<1x128xf32> to vector<8x128xf32>
    %1511 = arith.mulf %1437, %1510 : vector<8x128xf32>
    %1512 = arith.addf %1508, %1511 : vector<8x128xf32>
    %1513 = vector.extract_strided_slice %1451 {offsets = [3, 0], sizes = [1, 128], strides = [1, 1]} : vector<8x128xf32> to vector<1x128xf32>
    %1514 = vector.broadcast %1513 : vector<1x128xf32> to vector<8x128xf32>
    %1515 = arith.mulf %1409, %1514 : vector<8x128xf32>
    %1516 = vector.extract_strided_slice %1465 {offsets = [3, 0], sizes = [1, 128], strides = [1, 1]} : vector<8x128xf32> to vector<1x128xf32>
    %1517 = vector.broadcast %1516 : vector<1x128xf32> to vector<8x128xf32>
    %1518 = arith.mulf %1423, %1517 : vector<8x128xf32>
    %1519 = arith.addf %1515, %1518 : vector<8x128xf32>
    %1520 = vector.extract_strided_slice %1479 {offsets = [3, 0], sizes = [1, 128], strides = [1, 1]} : vector<8x128xf32> to vector<1x128xf32>
    %1521 = vector.broadcast %1520 : vector<1x128xf32> to vector<8x128xf32>
    %1522 = arith.mulf %1437, %1521 : vector<8x128xf32>
    %1523 = arith.addf %1519, %1522 : vector<8x128xf32>
    %1524 = vector.extract_strided_slice %1451 {offsets = [4, 0], sizes = [1, 128], strides = [1, 1]} : vector<8x128xf32> to vector<1x128xf32>
    %1525 = vector.broadcast %1524 : vector<1x128xf32> to vector<8x128xf32>
    %1526 = arith.mulf %1409, %1525 : vector<8x128xf32>
    %1527 = vector.extract_strided_slice %1465 {offsets = [4, 0], sizes = [1, 128], strides = [1, 1]} : vector<8x128xf32> to vector<1x128xf32>
    %1528 = vector.broadcast %1527 : vector<1x128xf32> to vector<8x128xf32>
    %1529 = arith.mulf %1423, %1528 : vector<8x128xf32>
    %1530 = arith.addf %1526, %1529 : vector<8x128xf32>
    %1531 = vector.extract_strided_slice %1479 {offsets = [4, 0], sizes = [1, 128], strides = [1, 1]} : vector<8x128xf32> to vector<1x128xf32>
    %1532 = vector.broadcast %1531 : vector<1x128xf32> to vector<8x128xf32>
    %1533 = arith.mulf %1437, %1532 : vector<8x128xf32>
    %1534 = arith.addf %1530, %1533 : vector<8x128xf32>
    %1535 = vector.extract_strided_slice %1451 {offsets = [5, 0], sizes = [1, 128], strides = [1, 1]} : vector<8x128xf32> to vector<1x128xf32>
    %1536 = vector.broadcast %1535 : vector<1x128xf32> to vector<8x128xf32>
    %1537 = arith.mulf %1409, %1536 : vector<8x128xf32>
    %1538 = vector.extract_strided_slice %1465 {offsets = [5, 0], sizes = [1, 128], strides = [1, 1]} : vector<8x128xf32> to vector<1x128xf32>
    %1539 = vector.broadcast %1538 : vector<1x128xf32> to vector<8x128xf32>
    %1540 = arith.mulf %1423, %1539 : vector<8x128xf32>
    %1541 = arith.addf %1537, %1540 : vector<8x128xf32>
    %1542 = vector.extract_strided_slice %1479 {offsets = [5, 0], sizes = [1, 128], strides = [1, 1]} : vector<8x128xf32> to vector<1x128xf32>
    %1543 = vector.broadcast %1542 : vector<1x128xf32> to vector<8x128xf32>
    %1544 = arith.mulf %1437, %1543 : vector<8x128xf32>
    %1545 = arith.addf %1541, %1544 : vector<8x128xf32>
    %1546 = vector.extract_strided_slice %1451 {offsets = [6, 0], sizes = [1, 128], strides = [1, 1]} : vector<8x128xf32> to vector<1x128xf32>
    %1547 = vector.broadcast %1546 : vector<1x128xf32> to vector<8x128xf32>
    %1548 = arith.mulf %1409, %1547 : vector<8x128xf32>
    %1549 = vector.extract_strided_slice %1465 {offsets = [6, 0], sizes = [1, 128], strides = [1, 1]} : vector<8x128xf32> to vector<1x128xf32>
    %1550 = vector.broadcast %1549 : vector<1x128xf32> to vector<8x128xf32>
    %1551 = arith.mulf %1423, %1550 : vector<8x128xf32>
    %1552 = arith.addf %1548, %1551 : vector<8x128xf32>
    %1553 = vector.extract_strided_slice %1479 {offsets = [6, 0], sizes = [1, 128], strides = [1, 1]} : vector<8x128xf32> to vector<1x128xf32>
    %1554 = vector.broadcast %1553 : vector<1x128xf32> to vector<8x128xf32>
    %1555 = arith.mulf %1437, %1554 : vector<8x128xf32>
    %1556 = arith.addf %1552, %1555 : vector<8x128xf32>
    %1557 = vector.extract_strided_slice %1451 {offsets = [7, 0], sizes = [1, 128], strides = [1, 1]} : vector<8x128xf32> to vector<1x128xf32>
    %1558 = vector.broadcast %1557 : vector<1x128xf32> to vector<8x128xf32>
    %1559 = arith.mulf %1409, %1558 : vector<8x128xf32>
    %1560 = vector.extract_strided_slice %1465 {offsets = [7, 0], sizes = [1, 128], strides = [1, 1]} : vector<8x128xf32> to vector<1x128xf32>
    %1561 = vector.broadcast %1560 : vector<1x128xf32> to vector<8x128xf32>
    %1562 = arith.mulf %1423, %1561 : vector<8x128xf32>
    %1563 = arith.addf %1559, %1562 : vector<8x128xf32>
    %1564 = vector.extract_strided_slice %1479 {offsets = [7, 0], sizes = [1, 128], strides = [1, 1]} : vector<8x128xf32> to vector<1x128xf32>
    %1565 = vector.broadcast %1564 : vector<1x128xf32> to vector<8x128xf32>
    %1566 = arith.mulf %1437, %1565 : vector<8x128xf32>
    %1567 = arith.addf %1563, %1566 : vector<8x128xf32>
    %1568 = arith.maximumf %1490, %1501 : vector<8x128xf32>
    %1569 = arith.maximumf %1568, %1512 : vector<8x128xf32>
    %1570 = arith.maximumf %1569, %1523 : vector<8x128xf32>
    %1571 = arith.maximumf %1570, %1534 : vector<8x128xf32>
    %1572 = arith.maximumf %1571, %1545 : vector<8x128xf32>
    %1573 = arith.maximumf %1572, %1556 : vector<8x128xf32>
    %1574 = arith.maximumf %1573, %1567 : vector<8x128xf32>
    %1575 = arith.subf %1490, %1574 : vector<8x128xf32>
    %1576 = math.exp %1575 : vector<8x128xf32>
    %1577 = arith.subf %1501, %1574 : vector<8x128xf32>
    %1578 = math.exp %1577 : vector<8x128xf32>
    %1579 = arith.subf %1512, %1574 : vector<8x128xf32>
    %1580 = math.exp %1579 : vector<8x128xf32>
    %1581 = arith.subf %1523, %1574 : vector<8x128xf32>
    %1582 = math.exp %1581 : vector<8x128xf32>
    %1583 = arith.subf %1534, %1574 : vector<8x128xf32>
    %1584 = math.exp %1583 : vector<8x128xf32>
    %1585 = arith.subf %1545, %1574 : vector<8x128xf32>
    %1586 = math.exp %1585 : vector<8x128xf32>
    %1587 = arith.subf %1556, %1574 : vector<8x128xf32>
    %1588 = math.exp %1587 : vector<8x128xf32>
    %1589 = arith.subf %1567, %1574 : vector<8x128xf32>
    %1590 = math.exp %1589 : vector<8x128xf32>
    %1591 = arith.addf %1576, %1578 : vector<8x128xf32>
    %1592 = arith.addf %1591, %1580 : vector<8x128xf32>
    %1593 = arith.addf %1592, %1582 : vector<8x128xf32>
    %1594 = arith.addf %1593, %1584 : vector<8x128xf32>
    %1595 = arith.addf %1594, %1586 : vector<8x128xf32>
    %1596 = arith.addf %1595, %1588 : vector<8x128xf32>
    %1597 = arith.addf %1596, %1590 : vector<8x128xf32>
    %1598 = tpu.reciprocal %1597 {approx = true} : vector<8x128xf32> -> vector<8x128xf32>
    %1599 = arith.mulf %1576, %1598 : vector<8x128xf32>
    %1600 = arith.mulf %1578, %1598 : vector<8x128xf32>
    %1601 = arith.mulf %1580, %1598 : vector<8x128xf32>
    %1602 = arith.mulf %1582, %1598 : vector<8x128xf32>
    %1603 = arith.mulf %1584, %1598 : vector<8x128xf32>
    %1604 = arith.mulf %1586, %1598 : vector<8x128xf32>
    %1605 = arith.mulf %1588, %1598 : vector<8x128xf32>
    %1606 = arith.mulf %1590, %1598 : vector<8x128xf32>
    %c305 = arith.constant 305 : index
    %1607 = memref.load %arg3[%c305] : memref<606xf32, #tpu.memory_space<smem>>
    %1608 = vector.broadcast %1607 : f32 to vector<8x128xf32>
    %1609 = arith.mulf %1608, %1379 : vector<8x128xf32>
    %c306 = arith.constant 306 : index
    %1610 = memref.load %arg3[%c306] : memref<606xf32, #tpu.memory_space<smem>>
    %1611 = vector.broadcast %1610 : f32 to vector<8x128xf32>
    %1612 = arith.mulf %1611, %1387 : vector<8x128xf32>
    %1613 = arith.addf %1609, %1612 : vector<8x128xf32>
    %c307 = arith.constant 307 : index
    %1614 = memref.load %arg3[%c307] : memref<606xf32, #tpu.memory_space<smem>>
    %1615 = vector.broadcast %1614 : f32 to vector<8x128xf32>
    %1616 = arith.mulf %1615, %1395 : vector<8x128xf32>
    %1617 = arith.addf %1613, %1616 : vector<8x128xf32>
    %c329 = arith.constant 329 : index
    %1618 = memref.load %arg3[%c329] : memref<606xf32, #tpu.memory_space<smem>>
    %1619 = vector.broadcast %1618 : f32 to vector<8x128xf32>
    %1620 = arith.addf %1617, %1619 : vector<8x128xf32>
    %c308 = arith.constant 308 : index
    %1621 = memref.load %arg3[%c308] : memref<606xf32, #tpu.memory_space<smem>>
    %1622 = vector.broadcast %1621 : f32 to vector<8x128xf32>
    %1623 = arith.mulf %1622, %1379 : vector<8x128xf32>
    %c309 = arith.constant 309 : index
    %1624 = memref.load %arg3[%c309] : memref<606xf32, #tpu.memory_space<smem>>
    %1625 = vector.broadcast %1624 : f32 to vector<8x128xf32>
    %1626 = arith.mulf %1625, %1387 : vector<8x128xf32>
    %1627 = arith.addf %1623, %1626 : vector<8x128xf32>
    %c310 = arith.constant 310 : index
    %1628 = memref.load %arg3[%c310] : memref<606xf32, #tpu.memory_space<smem>>
    %1629 = vector.broadcast %1628 : f32 to vector<8x128xf32>
    %1630 = arith.mulf %1629, %1395 : vector<8x128xf32>
    %1631 = arith.addf %1627, %1630 : vector<8x128xf32>
    %c330 = arith.constant 330 : index
    %1632 = memref.load %arg3[%c330] : memref<606xf32, #tpu.memory_space<smem>>
    %1633 = vector.broadcast %1632 : f32 to vector<8x128xf32>
    %1634 = arith.addf %1631, %1633 : vector<8x128xf32>
    %c311 = arith.constant 311 : index
    %1635 = memref.load %arg3[%c311] : memref<606xf32, #tpu.memory_space<smem>>
    %1636 = vector.broadcast %1635 : f32 to vector<8x128xf32>
    %1637 = arith.mulf %1636, %1379 : vector<8x128xf32>
    %c312 = arith.constant 312 : index
    %1638 = memref.load %arg3[%c312] : memref<606xf32, #tpu.memory_space<smem>>
    %1639 = vector.broadcast %1638 : f32 to vector<8x128xf32>
    %1640 = arith.mulf %1639, %1387 : vector<8x128xf32>
    %1641 = arith.addf %1637, %1640 : vector<8x128xf32>
    %c313 = arith.constant 313 : index
    %1642 = memref.load %arg3[%c313] : memref<606xf32, #tpu.memory_space<smem>>
    %1643 = vector.broadcast %1642 : f32 to vector<8x128xf32>
    %1644 = arith.mulf %1643, %1395 : vector<8x128xf32>
    %1645 = arith.addf %1641, %1644 : vector<8x128xf32>
    %c331 = arith.constant 331 : index
    %1646 = memref.load %arg3[%c331] : memref<606xf32, #tpu.memory_space<smem>>
    %1647 = vector.broadcast %1646 : f32 to vector<8x128xf32>
    %1648 = arith.addf %1645, %1647 : vector<8x128xf32>
    %1649 = vector.extract_strided_slice %1620 {offsets = [0, 0], sizes = [1, 128], strides = [1, 1]} : vector<8x128xf32> to vector<1x128xf32>
    %1650 = vector.broadcast %1649 : vector<1x128xf32> to vector<8x128xf32>
    %1651 = arith.mulf %1599, %1650 : vector<8x128xf32>
    %1652 = vector.extract_strided_slice %1620 {offsets = [1, 0], sizes = [1, 128], strides = [1, 1]} : vector<8x128xf32> to vector<1x128xf32>
    %1653 = vector.broadcast %1652 : vector<1x128xf32> to vector<8x128xf32>
    %1654 = arith.mulf %1600, %1653 : vector<8x128xf32>
    %1655 = arith.addf %1651, %1654 : vector<8x128xf32>
    %1656 = vector.extract_strided_slice %1620 {offsets = [2, 0], sizes = [1, 128], strides = [1, 1]} : vector<8x128xf32> to vector<1x128xf32>
    %1657 = vector.broadcast %1656 : vector<1x128xf32> to vector<8x128xf32>
    %1658 = arith.mulf %1601, %1657 : vector<8x128xf32>
    %1659 = arith.addf %1655, %1658 : vector<8x128xf32>
    %1660 = vector.extract_strided_slice %1620 {offsets = [3, 0], sizes = [1, 128], strides = [1, 1]} : vector<8x128xf32> to vector<1x128xf32>
    %1661 = vector.broadcast %1660 : vector<1x128xf32> to vector<8x128xf32>
    %1662 = arith.mulf %1602, %1661 : vector<8x128xf32>
    %1663 = arith.addf %1659, %1662 : vector<8x128xf32>
    %1664 = vector.extract_strided_slice %1620 {offsets = [4, 0], sizes = [1, 128], strides = [1, 1]} : vector<8x128xf32> to vector<1x128xf32>
    %1665 = vector.broadcast %1664 : vector<1x128xf32> to vector<8x128xf32>
    %1666 = arith.mulf %1603, %1665 : vector<8x128xf32>
    %1667 = arith.addf %1663, %1666 : vector<8x128xf32>
    %1668 = vector.extract_strided_slice %1620 {offsets = [5, 0], sizes = [1, 128], strides = [1, 1]} : vector<8x128xf32> to vector<1x128xf32>
    %1669 = vector.broadcast %1668 : vector<1x128xf32> to vector<8x128xf32>
    %1670 = arith.mulf %1604, %1669 : vector<8x128xf32>
    %1671 = arith.addf %1667, %1670 : vector<8x128xf32>
    %1672 = vector.extract_strided_slice %1620 {offsets = [6, 0], sizes = [1, 128], strides = [1, 1]} : vector<8x128xf32> to vector<1x128xf32>
    %1673 = vector.broadcast %1672 : vector<1x128xf32> to vector<8x128xf32>
    %1674 = arith.mulf %1605, %1673 : vector<8x128xf32>
    %1675 = arith.addf %1671, %1674 : vector<8x128xf32>
    %1676 = vector.extract_strided_slice %1620 {offsets = [7, 0], sizes = [1, 128], strides = [1, 1]} : vector<8x128xf32> to vector<1x128xf32>
    %1677 = vector.broadcast %1676 : vector<1x128xf32> to vector<8x128xf32>
    %1678 = arith.mulf %1606, %1677 : vector<8x128xf32>
    %1679 = arith.addf %1675, %1678 : vector<8x128xf32>
    %1680 = vector.extract_strided_slice %1634 {offsets = [0, 0], sizes = [1, 128], strides = [1, 1]} : vector<8x128xf32> to vector<1x128xf32>
    %1681 = vector.broadcast %1680 : vector<1x128xf32> to vector<8x128xf32>
    %1682 = arith.mulf %1599, %1681 : vector<8x128xf32>
    %1683 = vector.extract_strided_slice %1634 {offsets = [1, 0], sizes = [1, 128], strides = [1, 1]} : vector<8x128xf32> to vector<1x128xf32>
    %1684 = vector.broadcast %1683 : vector<1x128xf32> to vector<8x128xf32>
    %1685 = arith.mulf %1600, %1684 : vector<8x128xf32>
    %1686 = arith.addf %1682, %1685 : vector<8x128xf32>
    %1687 = vector.extract_strided_slice %1634 {offsets = [2, 0], sizes = [1, 128], strides = [1, 1]} : vector<8x128xf32> to vector<1x128xf32>
    %1688 = vector.broadcast %1687 : vector<1x128xf32> to vector<8x128xf32>
    %1689 = arith.mulf %1601, %1688 : vector<8x128xf32>
    %1690 = arith.addf %1686, %1689 : vector<8x128xf32>
    %1691 = vector.extract_strided_slice %1634 {offsets = [3, 0], sizes = [1, 128], strides = [1, 1]} : vector<8x128xf32> to vector<1x128xf32>
    %1692 = vector.broadcast %1691 : vector<1x128xf32> to vector<8x128xf32>
    %1693 = arith.mulf %1602, %1692 : vector<8x128xf32>
    %1694 = arith.addf %1690, %1693 : vector<8x128xf32>
    %1695 = vector.extract_strided_slice %1634 {offsets = [4, 0], sizes = [1, 128], strides = [1, 1]} : vector<8x128xf32> to vector<1x128xf32>
    %1696 = vector.broadcast %1695 : vector<1x128xf32> to vector<8x128xf32>
    %1697 = arith.mulf %1603, %1696 : vector<8x128xf32>
    %1698 = arith.addf %1694, %1697 : vector<8x128xf32>
    %1699 = vector.extract_strided_slice %1634 {offsets = [5, 0], sizes = [1, 128], strides = [1, 1]} : vector<8x128xf32> to vector<1x128xf32>
    %1700 = vector.broadcast %1699 : vector<1x128xf32> to vector<8x128xf32>
    %1701 = arith.mulf %1604, %1700 : vector<8x128xf32>
    %1702 = arith.addf %1698, %1701 : vector<8x128xf32>
    %1703 = vector.extract_strided_slice %1634 {offsets = [6, 0], sizes = [1, 128], strides = [1, 1]} : vector<8x128xf32> to vector<1x128xf32>
    %1704 = vector.broadcast %1703 : vector<1x128xf32> to vector<8x128xf32>
    %1705 = arith.mulf %1605, %1704 : vector<8x128xf32>
    %1706 = arith.addf %1702, %1705 : vector<8x128xf32>
    %1707 = vector.extract_strided_slice %1634 {offsets = [7, 0], sizes = [1, 128], strides = [1, 1]} : vector<8x128xf32> to vector<1x128xf32>
    %1708 = vector.broadcast %1707 : vector<1x128xf32> to vector<8x128xf32>
    %1709 = arith.mulf %1606, %1708 : vector<8x128xf32>
    %1710 = arith.addf %1706, %1709 : vector<8x128xf32>
    %1711 = vector.extract_strided_slice %1648 {offsets = [0, 0], sizes = [1, 128], strides = [1, 1]} : vector<8x128xf32> to vector<1x128xf32>
    %1712 = vector.broadcast %1711 : vector<1x128xf32> to vector<8x128xf32>
    %1713 = arith.mulf %1599, %1712 : vector<8x128xf32>
    %1714 = vector.extract_strided_slice %1648 {offsets = [1, 0], sizes = [1, 128], strides = [1, 1]} : vector<8x128xf32> to vector<1x128xf32>
    %1715 = vector.broadcast %1714 : vector<1x128xf32> to vector<8x128xf32>
    %1716 = arith.mulf %1600, %1715 : vector<8x128xf32>
    %1717 = arith.addf %1713, %1716 : vector<8x128xf32>
    %1718 = vector.extract_strided_slice %1648 {offsets = [2, 0], sizes = [1, 128], strides = [1, 1]} : vector<8x128xf32> to vector<1x128xf32>
    %1719 = vector.broadcast %1718 : vector<1x128xf32> to vector<8x128xf32>
    %1720 = arith.mulf %1601, %1719 : vector<8x128xf32>
    %1721 = arith.addf %1717, %1720 : vector<8x128xf32>
    %1722 = vector.extract_strided_slice %1648 {offsets = [3, 0], sizes = [1, 128], strides = [1, 1]} : vector<8x128xf32> to vector<1x128xf32>
    %1723 = vector.broadcast %1722 : vector<1x128xf32> to vector<8x128xf32>
    %1724 = arith.mulf %1602, %1723 : vector<8x128xf32>
    %1725 = arith.addf %1721, %1724 : vector<8x128xf32>
    %1726 = vector.extract_strided_slice %1648 {offsets = [4, 0], sizes = [1, 128], strides = [1, 1]} : vector<8x128xf32> to vector<1x128xf32>
    %1727 = vector.broadcast %1726 : vector<1x128xf32> to vector<8x128xf32>
    %1728 = arith.mulf %1603, %1727 : vector<8x128xf32>
    %1729 = arith.addf %1725, %1728 : vector<8x128xf32>
    %1730 = vector.extract_strided_slice %1648 {offsets = [5, 0], sizes = [1, 128], strides = [1, 1]} : vector<8x128xf32> to vector<1x128xf32>
    %1731 = vector.broadcast %1730 : vector<1x128xf32> to vector<8x128xf32>
    %1732 = arith.mulf %1604, %1731 : vector<8x128xf32>
    %1733 = arith.addf %1729, %1732 : vector<8x128xf32>
    %1734 = vector.extract_strided_slice %1648 {offsets = [6, 0], sizes = [1, 128], strides = [1, 1]} : vector<8x128xf32> to vector<1x128xf32>
    %1735 = vector.broadcast %1734 : vector<1x128xf32> to vector<8x128xf32>
    %1736 = arith.mulf %1605, %1735 : vector<8x128xf32>
    %1737 = arith.addf %1733, %1736 : vector<8x128xf32>
    %1738 = vector.extract_strided_slice %1648 {offsets = [7, 0], sizes = [1, 128], strides = [1, 1]} : vector<8x128xf32> to vector<1x128xf32>
    %1739 = vector.broadcast %1738 : vector<1x128xf32> to vector<8x128xf32>
    %1740 = arith.mulf %1606, %1739 : vector<8x128xf32>
    %1741 = arith.addf %1737, %1740 : vector<8x128xf32>
    %c314 = arith.constant 314 : index
    %1742 = memref.load %arg3[%c314] : memref<606xf32, #tpu.memory_space<smem>>
    %1743 = vector.broadcast %1742 : f32 to vector<8x128xf32>
    %1744 = arith.mulf %1743, %1679 : vector<8x128xf32>
    %c315 = arith.constant 315 : index
    %1745 = memref.load %arg3[%c315] : memref<606xf32, #tpu.memory_space<smem>>
    %1746 = vector.broadcast %1745 : f32 to vector<8x128xf32>
    %1747 = arith.mulf %1746, %1710 : vector<8x128xf32>
    %1748 = arith.addf %1744, %1747 : vector<8x128xf32>
    %c316 = arith.constant 316 : index
    %1749 = memref.load %arg3[%c316] : memref<606xf32, #tpu.memory_space<smem>>
    %1750 = vector.broadcast %1749 : f32 to vector<8x128xf32>
    %1751 = arith.mulf %1750, %1741 : vector<8x128xf32>
    %1752 = arith.addf %1748, %1751 : vector<8x128xf32>
    %c332 = arith.constant 332 : index
    %1753 = memref.load %arg3[%c332] : memref<606xf32, #tpu.memory_space<smem>>
    %1754 = vector.broadcast %1753 : f32 to vector<8x128xf32>
    %1755 = arith.addf %1752, %1754 : vector<8x128xf32>
    %c317 = arith.constant 317 : index
    %1756 = memref.load %arg3[%c317] : memref<606xf32, #tpu.memory_space<smem>>
    %1757 = vector.broadcast %1756 : f32 to vector<8x128xf32>
    %1758 = arith.mulf %1757, %1679 : vector<8x128xf32>
    %c318 = arith.constant 318 : index
    %1759 = memref.load %arg3[%c318] : memref<606xf32, #tpu.memory_space<smem>>
    %1760 = vector.broadcast %1759 : f32 to vector<8x128xf32>
    %1761 = arith.mulf %1760, %1710 : vector<8x128xf32>
    %1762 = arith.addf %1758, %1761 : vector<8x128xf32>
    %c319 = arith.constant 319 : index
    %1763 = memref.load %arg3[%c319] : memref<606xf32, #tpu.memory_space<smem>>
    %1764 = vector.broadcast %1763 : f32 to vector<8x128xf32>
    %1765 = arith.mulf %1764, %1741 : vector<8x128xf32>
    %1766 = arith.addf %1762, %1765 : vector<8x128xf32>
    %c333 = arith.constant 333 : index
    %1767 = memref.load %arg3[%c333] : memref<606xf32, #tpu.memory_space<smem>>
    %1768 = vector.broadcast %1767 : f32 to vector<8x128xf32>
    %1769 = arith.addf %1766, %1768 : vector<8x128xf32>
    %c320 = arith.constant 320 : index
    %1770 = memref.load %arg3[%c320] : memref<606xf32, #tpu.memory_space<smem>>
    %1771 = vector.broadcast %1770 : f32 to vector<8x128xf32>
    %1772 = arith.mulf %1771, %1679 : vector<8x128xf32>
    %c321 = arith.constant 321 : index
    %1773 = memref.load %arg3[%c321] : memref<606xf32, #tpu.memory_space<smem>>
    %1774 = vector.broadcast %1773 : f32 to vector<8x128xf32>
    %1775 = arith.mulf %1774, %1710 : vector<8x128xf32>
    %1776 = arith.addf %1772, %1775 : vector<8x128xf32>
    %c322 = arith.constant 322 : index
    %1777 = memref.load %arg3[%c322] : memref<606xf32, #tpu.memory_space<smem>>
    %1778 = vector.broadcast %1777 : f32 to vector<8x128xf32>
    %1779 = arith.mulf %1778, %1741 : vector<8x128xf32>
    %1780 = arith.addf %1776, %1779 : vector<8x128xf32>
    %c334 = arith.constant 334 : index
    %1781 = memref.load %arg3[%c334] : memref<606xf32, #tpu.memory_space<smem>>
    %1782 = vector.broadcast %1781 : f32 to vector<8x128xf32>
    %1783 = arith.addf %1780, %1782 : vector<8x128xf32>
    %1784 = arith.addf %1379, %1755 : vector<8x128xf32>
    %1785 = arith.addf %1387, %1769 : vector<8x128xf32>
    %1786 = arith.addf %1395, %1783 : vector<8x128xf32>
    %1787 = arith.addf %1784, %1785 : vector<8x128xf32>
    %1788 = arith.addf %1787, %1786 : vector<8x128xf32>
    %cst_55 = arith.constant 0.333333343 : f32
    %1789 = vector.broadcast %cst_55 : f32 to vector<8x128xf32>
    %1790 = arith.mulf %1788, %1789 : vector<8x128xf32>
    %1791 = arith.subf %1784, %1790 : vector<8x128xf32>
    %1792 = arith.mulf %1791, %1791 : vector<8x128xf32>
    %1793 = arith.subf %1785, %1790 : vector<8x128xf32>
    %1794 = arith.mulf %1793, %1793 : vector<8x128xf32>
    %1795 = arith.addf %1792, %1794 : vector<8x128xf32>
    %1796 = arith.subf %1786, %1790 : vector<8x128xf32>
    %1797 = arith.mulf %1796, %1796 : vector<8x128xf32>
    %1798 = arith.addf %1795, %1797 : vector<8x128xf32>
    %cst_56 = arith.constant 0.333333343 : f32
    %1799 = vector.broadcast %cst_56 : f32 to vector<8x128xf32>
    %1800 = arith.mulf %1798, %1799 : vector<8x128xf32>
    %cst_57 = arith.constant 9.99999974E-6 : f32
    %1801 = vector.broadcast %cst_57 : f32 to vector<8x128xf32>
    %1802 = arith.addf %1800, %1801 : vector<8x128xf32>
    %1803 = math.rsqrt %1802 : vector<8x128xf32>
    %1804 = arith.subf %1784, %1790 : vector<8x128xf32>
    %1805 = arith.mulf %1804, %1803 : vector<8x128xf32>
    %c335 = arith.constant 335 : index
    %1806 = memref.load %arg3[%c335] : memref<606xf32, #tpu.memory_space<smem>>
    %1807 = vector.broadcast %1806 : f32 to vector<8x128xf32>
    %1808 = arith.mulf %1805, %1807 : vector<8x128xf32>
    %c338 = arith.constant 338 : index
    %1809 = memref.load %arg3[%c338] : memref<606xf32, #tpu.memory_space<smem>>
    %1810 = vector.broadcast %1809 : f32 to vector<8x128xf32>
    %1811 = arith.addf %1808, %1810 : vector<8x128xf32>
    %1812 = arith.subf %1785, %1790 : vector<8x128xf32>
    %1813 = arith.mulf %1812, %1803 : vector<8x128xf32>
    %c336 = arith.constant 336 : index
    %1814 = memref.load %arg3[%c336] : memref<606xf32, #tpu.memory_space<smem>>
    %1815 = vector.broadcast %1814 : f32 to vector<8x128xf32>
    %1816 = arith.mulf %1813, %1815 : vector<8x128xf32>
    %c339 = arith.constant 339 : index
    %1817 = memref.load %arg3[%c339] : memref<606xf32, #tpu.memory_space<smem>>
    %1818 = vector.broadcast %1817 : f32 to vector<8x128xf32>
    %1819 = arith.addf %1816, %1818 : vector<8x128xf32>
    %1820 = arith.subf %1786, %1790 : vector<8x128xf32>
    %1821 = arith.mulf %1820, %1803 : vector<8x128xf32>
    %c337 = arith.constant 337 : index
    %1822 = memref.load %arg3[%c337] : memref<606xf32, #tpu.memory_space<smem>>
    %1823 = vector.broadcast %1822 : f32 to vector<8x128xf32>
    %1824 = arith.mulf %1821, %1823 : vector<8x128xf32>
    %c340 = arith.constant 340 : index
    %1825 = memref.load %arg3[%c340] : memref<606xf32, #tpu.memory_space<smem>>
    %1826 = vector.broadcast %1825 : f32 to vector<8x128xf32>
    %1827 = arith.addf %1824, %1826 : vector<8x128xf32>
    %c347 = arith.constant 347 : index
    %1828 = memref.load %arg3[%c347] : memref<606xf32, #tpu.memory_space<smem>>
    %1829 = vector.broadcast %1828 : f32 to vector<8x128xf32>
    %1830 = arith.mulf %1829, %1811 : vector<8x128xf32>
    %c348 = arith.constant 348 : index
    %1831 = memref.load %arg3[%c348] : memref<606xf32, #tpu.memory_space<smem>>
    %1832 = vector.broadcast %1831 : f32 to vector<8x128xf32>
    %1833 = arith.mulf %1832, %1819 : vector<8x128xf32>
    %1834 = arith.addf %1830, %1833 : vector<8x128xf32>
    %c349 = arith.constant 349 : index
    %1835 = memref.load %arg3[%c349] : memref<606xf32, #tpu.memory_space<smem>>
    %1836 = vector.broadcast %1835 : f32 to vector<8x128xf32>
    %1837 = arith.mulf %1836, %1827 : vector<8x128xf32>
    %1838 = arith.addf %1834, %1837 : vector<8x128xf32>
    %c443 = arith.constant 443 : index
    %1839 = memref.load %arg3[%c443] : memref<606xf32, #tpu.memory_space<smem>>
    %1840 = vector.broadcast %1839 : f32 to vector<8x128xf32>
    %1841 = arith.addf %1838, %1840 : vector<8x128xf32>
    %cst_58 = arith.constant 0.000000e+00 : f32
    %1842 = vector.broadcast %cst_58 : f32 to vector<8x128xf32>
    %1843 = arith.maximumf %1841, %1842 : vector<8x128xf32>
    %c475 = arith.constant 475 : index
    %1844 = memref.load %arg3[%c475] : memref<606xf32, #tpu.memory_space<smem>>
    %1845 = vector.broadcast %1844 : f32 to vector<8x128xf32>
    %1846 = arith.mulf %1845, %1843 : vector<8x128xf32>
    %c507 = arith.constant 507 : index
    %1847 = memref.load %arg3[%c507] : memref<606xf32, #tpu.memory_space<smem>>
    %1848 = vector.broadcast %1847 : f32 to vector<8x128xf32>
    %1849 = arith.mulf %1848, %1843 : vector<8x128xf32>
    %c539 = arith.constant 539 : index
    %1850 = memref.load %arg3[%c539] : memref<606xf32, #tpu.memory_space<smem>>
    %1851 = vector.broadcast %1850 : f32 to vector<8x128xf32>
    %1852 = arith.mulf %1851, %1843 : vector<8x128xf32>
    %c350 = arith.constant 350 : index
    %1853 = memref.load %arg3[%c350] : memref<606xf32, #tpu.memory_space<smem>>
    %1854 = vector.broadcast %1853 : f32 to vector<8x128xf32>
    %1855 = arith.mulf %1854, %1811 : vector<8x128xf32>
    %c351 = arith.constant 351 : index
    %1856 = memref.load %arg3[%c351] : memref<606xf32, #tpu.memory_space<smem>>
    %1857 = vector.broadcast %1856 : f32 to vector<8x128xf32>
    %1858 = arith.mulf %1857, %1819 : vector<8x128xf32>
    %1859 = arith.addf %1855, %1858 : vector<8x128xf32>
    %c352 = arith.constant 352 : index
    %1860 = memref.load %arg3[%c352] : memref<606xf32, #tpu.memory_space<smem>>
    %1861 = vector.broadcast %1860 : f32 to vector<8x128xf32>
    %1862 = arith.mulf %1861, %1827 : vector<8x128xf32>
    %1863 = arith.addf %1859, %1862 : vector<8x128xf32>
    %c444 = arith.constant 444 : index
    %1864 = memref.load %arg3[%c444] : memref<606xf32, #tpu.memory_space<smem>>
    %1865 = vector.broadcast %1864 : f32 to vector<8x128xf32>
    %1866 = arith.addf %1863, %1865 : vector<8x128xf32>
    %cst_59 = arith.constant 0.000000e+00 : f32
    %1867 = vector.broadcast %cst_59 : f32 to vector<8x128xf32>
    %1868 = arith.maximumf %1866, %1867 : vector<8x128xf32>
    %c476 = arith.constant 476 : index
    %1869 = memref.load %arg3[%c476] : memref<606xf32, #tpu.memory_space<smem>>
    %1870 = vector.broadcast %1869 : f32 to vector<8x128xf32>
    %1871 = arith.mulf %1870, %1868 : vector<8x128xf32>
    %1872 = arith.addf %1846, %1871 : vector<8x128xf32>
    %c508 = arith.constant 508 : index
    %1873 = memref.load %arg3[%c508] : memref<606xf32, #tpu.memory_space<smem>>
    %1874 = vector.broadcast %1873 : f32 to vector<8x128xf32>
    %1875 = arith.mulf %1874, %1868 : vector<8x128xf32>
    %1876 = arith.addf %1849, %1875 : vector<8x128xf32>
    %c540 = arith.constant 540 : index
    %1877 = memref.load %arg3[%c540] : memref<606xf32, #tpu.memory_space<smem>>
    %1878 = vector.broadcast %1877 : f32 to vector<8x128xf32>
    %1879 = arith.mulf %1878, %1868 : vector<8x128xf32>
    %1880 = arith.addf %1852, %1879 : vector<8x128xf32>
    %c353 = arith.constant 353 : index
    %1881 = memref.load %arg3[%c353] : memref<606xf32, #tpu.memory_space<smem>>
    %1882 = vector.broadcast %1881 : f32 to vector<8x128xf32>
    %1883 = arith.mulf %1882, %1811 : vector<8x128xf32>
    %c354 = arith.constant 354 : index
    %1884 = memref.load %arg3[%c354] : memref<606xf32, #tpu.memory_space<smem>>
    %1885 = vector.broadcast %1884 : f32 to vector<8x128xf32>
    %1886 = arith.mulf %1885, %1819 : vector<8x128xf32>
    %1887 = arith.addf %1883, %1886 : vector<8x128xf32>
    %c355 = arith.constant 355 : index
    %1888 = memref.load %arg3[%c355] : memref<606xf32, #tpu.memory_space<smem>>
    %1889 = vector.broadcast %1888 : f32 to vector<8x128xf32>
    %1890 = arith.mulf %1889, %1827 : vector<8x128xf32>
    %1891 = arith.addf %1887, %1890 : vector<8x128xf32>
    %c445 = arith.constant 445 : index
    %1892 = memref.load %arg3[%c445] : memref<606xf32, #tpu.memory_space<smem>>
    %1893 = vector.broadcast %1892 : f32 to vector<8x128xf32>
    %1894 = arith.addf %1891, %1893 : vector<8x128xf32>
    %cst_60 = arith.constant 0.000000e+00 : f32
    %1895 = vector.broadcast %cst_60 : f32 to vector<8x128xf32>
    %1896 = arith.maximumf %1894, %1895 : vector<8x128xf32>
    %c477 = arith.constant 477 : index
    %1897 = memref.load %arg3[%c477] : memref<606xf32, #tpu.memory_space<smem>>
    %1898 = vector.broadcast %1897 : f32 to vector<8x128xf32>
    %1899 = arith.mulf %1898, %1896 : vector<8x128xf32>
    %1900 = arith.addf %1872, %1899 : vector<8x128xf32>
    %c509 = arith.constant 509 : index
    %1901 = memref.load %arg3[%c509] : memref<606xf32, #tpu.memory_space<smem>>
    %1902 = vector.broadcast %1901 : f32 to vector<8x128xf32>
    %1903 = arith.mulf %1902, %1896 : vector<8x128xf32>
    %1904 = arith.addf %1876, %1903 : vector<8x128xf32>
    %c541 = arith.constant 541 : index
    %1905 = memref.load %arg3[%c541] : memref<606xf32, #tpu.memory_space<smem>>
    %1906 = vector.broadcast %1905 : f32 to vector<8x128xf32>
    %1907 = arith.mulf %1906, %1896 : vector<8x128xf32>
    %1908 = arith.addf %1880, %1907 : vector<8x128xf32>
    %c356 = arith.constant 356 : index
    %1909 = memref.load %arg3[%c356] : memref<606xf32, #tpu.memory_space<smem>>
    %1910 = vector.broadcast %1909 : f32 to vector<8x128xf32>
    %1911 = arith.mulf %1910, %1811 : vector<8x128xf32>
    %c357 = arith.constant 357 : index
    %1912 = memref.load %arg3[%c357] : memref<606xf32, #tpu.memory_space<smem>>
    %1913 = vector.broadcast %1912 : f32 to vector<8x128xf32>
    %1914 = arith.mulf %1913, %1819 : vector<8x128xf32>
    %1915 = arith.addf %1911, %1914 : vector<8x128xf32>
    %c358 = arith.constant 358 : index
    %1916 = memref.load %arg3[%c358] : memref<606xf32, #tpu.memory_space<smem>>
    %1917 = vector.broadcast %1916 : f32 to vector<8x128xf32>
    %1918 = arith.mulf %1917, %1827 : vector<8x128xf32>
    %1919 = arith.addf %1915, %1918 : vector<8x128xf32>
    %c446 = arith.constant 446 : index
    %1920 = memref.load %arg3[%c446] : memref<606xf32, #tpu.memory_space<smem>>
    %1921 = vector.broadcast %1920 : f32 to vector<8x128xf32>
    %1922 = arith.addf %1919, %1921 : vector<8x128xf32>
    %cst_61 = arith.constant 0.000000e+00 : f32
    %1923 = vector.broadcast %cst_61 : f32 to vector<8x128xf32>
    %1924 = arith.maximumf %1922, %1923 : vector<8x128xf32>
    %c478 = arith.constant 478 : index
    %1925 = memref.load %arg3[%c478] : memref<606xf32, #tpu.memory_space<smem>>
    %1926 = vector.broadcast %1925 : f32 to vector<8x128xf32>
    %1927 = arith.mulf %1926, %1924 : vector<8x128xf32>
    %1928 = arith.addf %1900, %1927 : vector<8x128xf32>
    %c510 = arith.constant 510 : index
    %1929 = memref.load %arg3[%c510] : memref<606xf32, #tpu.memory_space<smem>>
    %1930 = vector.broadcast %1929 : f32 to vector<8x128xf32>
    %1931 = arith.mulf %1930, %1924 : vector<8x128xf32>
    %1932 = arith.addf %1904, %1931 : vector<8x128xf32>
    %c542 = arith.constant 542 : index
    %1933 = memref.load %arg3[%c542] : memref<606xf32, #tpu.memory_space<smem>>
    %1934 = vector.broadcast %1933 : f32 to vector<8x128xf32>
    %1935 = arith.mulf %1934, %1924 : vector<8x128xf32>
    %1936 = arith.addf %1908, %1935 : vector<8x128xf32>
    %c359 = arith.constant 359 : index
    %1937 = memref.load %arg3[%c359] : memref<606xf32, #tpu.memory_space<smem>>
    %1938 = vector.broadcast %1937 : f32 to vector<8x128xf32>
    %1939 = arith.mulf %1938, %1811 : vector<8x128xf32>
    %c360 = arith.constant 360 : index
    %1940 = memref.load %arg3[%c360] : memref<606xf32, #tpu.memory_space<smem>>
    %1941 = vector.broadcast %1940 : f32 to vector<8x128xf32>
    %1942 = arith.mulf %1941, %1819 : vector<8x128xf32>
    %1943 = arith.addf %1939, %1942 : vector<8x128xf32>
    %c361 = arith.constant 361 : index
    %1944 = memref.load %arg3[%c361] : memref<606xf32, #tpu.memory_space<smem>>
    %1945 = vector.broadcast %1944 : f32 to vector<8x128xf32>
    %1946 = arith.mulf %1945, %1827 : vector<8x128xf32>
    %1947 = arith.addf %1943, %1946 : vector<8x128xf32>
    %c447 = arith.constant 447 : index
    %1948 = memref.load %arg3[%c447] : memref<606xf32, #tpu.memory_space<smem>>
    %1949 = vector.broadcast %1948 : f32 to vector<8x128xf32>
    %1950 = arith.addf %1947, %1949 : vector<8x128xf32>
    %cst_62 = arith.constant 0.000000e+00 : f32
    %1951 = vector.broadcast %cst_62 : f32 to vector<8x128xf32>
    %1952 = arith.maximumf %1950, %1951 : vector<8x128xf32>
    %c479 = arith.constant 479 : index
    %1953 = memref.load %arg3[%c479] : memref<606xf32, #tpu.memory_space<smem>>
    %1954 = vector.broadcast %1953 : f32 to vector<8x128xf32>
    %1955 = arith.mulf %1954, %1952 : vector<8x128xf32>
    %1956 = arith.addf %1928, %1955 : vector<8x128xf32>
    %c511 = arith.constant 511 : index
    %1957 = memref.load %arg3[%c511] : memref<606xf32, #tpu.memory_space<smem>>
    %1958 = vector.broadcast %1957 : f32 to vector<8x128xf32>
    %1959 = arith.mulf %1958, %1952 : vector<8x128xf32>
    %1960 = arith.addf %1932, %1959 : vector<8x128xf32>
    %c543 = arith.constant 543 : index
    %1961 = memref.load %arg3[%c543] : memref<606xf32, #tpu.memory_space<smem>>
    %1962 = vector.broadcast %1961 : f32 to vector<8x128xf32>
    %1963 = arith.mulf %1962, %1952 : vector<8x128xf32>
    %1964 = arith.addf %1936, %1963 : vector<8x128xf32>
    %c362 = arith.constant 362 : index
    %1965 = memref.load %arg3[%c362] : memref<606xf32, #tpu.memory_space<smem>>
    %1966 = vector.broadcast %1965 : f32 to vector<8x128xf32>
    %1967 = arith.mulf %1966, %1811 : vector<8x128xf32>
    %c363 = arith.constant 363 : index
    %1968 = memref.load %arg3[%c363] : memref<606xf32, #tpu.memory_space<smem>>
    %1969 = vector.broadcast %1968 : f32 to vector<8x128xf32>
    %1970 = arith.mulf %1969, %1819 : vector<8x128xf32>
    %1971 = arith.addf %1967, %1970 : vector<8x128xf32>
    %c364 = arith.constant 364 : index
    %1972 = memref.load %arg3[%c364] : memref<606xf32, #tpu.memory_space<smem>>
    %1973 = vector.broadcast %1972 : f32 to vector<8x128xf32>
    %1974 = arith.mulf %1973, %1827 : vector<8x128xf32>
    %1975 = arith.addf %1971, %1974 : vector<8x128xf32>
    %c448 = arith.constant 448 : index
    %1976 = memref.load %arg3[%c448] : memref<606xf32, #tpu.memory_space<smem>>
    %1977 = vector.broadcast %1976 : f32 to vector<8x128xf32>
    %1978 = arith.addf %1975, %1977 : vector<8x128xf32>
    %cst_63 = arith.constant 0.000000e+00 : f32
    %1979 = vector.broadcast %cst_63 : f32 to vector<8x128xf32>
    %1980 = arith.maximumf %1978, %1979 : vector<8x128xf32>
    %c480 = arith.constant 480 : index
    %1981 = memref.load %arg3[%c480] : memref<606xf32, #tpu.memory_space<smem>>
    %1982 = vector.broadcast %1981 : f32 to vector<8x128xf32>
    %1983 = arith.mulf %1982, %1980 : vector<8x128xf32>
    %1984 = arith.addf %1956, %1983 : vector<8x128xf32>
    %c512 = arith.constant 512 : index
    %1985 = memref.load %arg3[%c512] : memref<606xf32, #tpu.memory_space<smem>>
    %1986 = vector.broadcast %1985 : f32 to vector<8x128xf32>
    %1987 = arith.mulf %1986, %1980 : vector<8x128xf32>
    %1988 = arith.addf %1960, %1987 : vector<8x128xf32>
    %c544 = arith.constant 544 : index
    %1989 = memref.load %arg3[%c544] : memref<606xf32, #tpu.memory_space<smem>>
    %1990 = vector.broadcast %1989 : f32 to vector<8x128xf32>
    %1991 = arith.mulf %1990, %1980 : vector<8x128xf32>
    %1992 = arith.addf %1964, %1991 : vector<8x128xf32>
    %c365 = arith.constant 365 : index
    %1993 = memref.load %arg3[%c365] : memref<606xf32, #tpu.memory_space<smem>>
    %1994 = vector.broadcast %1993 : f32 to vector<8x128xf32>
    %1995 = arith.mulf %1994, %1811 : vector<8x128xf32>
    %c366 = arith.constant 366 : index
    %1996 = memref.load %arg3[%c366] : memref<606xf32, #tpu.memory_space<smem>>
    %1997 = vector.broadcast %1996 : f32 to vector<8x128xf32>
    %1998 = arith.mulf %1997, %1819 : vector<8x128xf32>
    %1999 = arith.addf %1995, %1998 : vector<8x128xf32>
    %c367 = arith.constant 367 : index
    %2000 = memref.load %arg3[%c367] : memref<606xf32, #tpu.memory_space<smem>>
    %2001 = vector.broadcast %2000 : f32 to vector<8x128xf32>
    %2002 = arith.mulf %2001, %1827 : vector<8x128xf32>
    %2003 = arith.addf %1999, %2002 : vector<8x128xf32>
    %c449 = arith.constant 449 : index
    %2004 = memref.load %arg3[%c449] : memref<606xf32, #tpu.memory_space<smem>>
    %2005 = vector.broadcast %2004 : f32 to vector<8x128xf32>
    %2006 = arith.addf %2003, %2005 : vector<8x128xf32>
    %cst_64 = arith.constant 0.000000e+00 : f32
    %2007 = vector.broadcast %cst_64 : f32 to vector<8x128xf32>
    %2008 = arith.maximumf %2006, %2007 : vector<8x128xf32>
    %c481 = arith.constant 481 : index
    %2009 = memref.load %arg3[%c481] : memref<606xf32, #tpu.memory_space<smem>>
    %2010 = vector.broadcast %2009 : f32 to vector<8x128xf32>
    %2011 = arith.mulf %2010, %2008 : vector<8x128xf32>
    %2012 = arith.addf %1984, %2011 : vector<8x128xf32>
    %c513 = arith.constant 513 : index
    %2013 = memref.load %arg3[%c513] : memref<606xf32, #tpu.memory_space<smem>>
    %2014 = vector.broadcast %2013 : f32 to vector<8x128xf32>
    %2015 = arith.mulf %2014, %2008 : vector<8x128xf32>
    %2016 = arith.addf %1988, %2015 : vector<8x128xf32>
    %c545 = arith.constant 545 : index
    %2017 = memref.load %arg3[%c545] : memref<606xf32, #tpu.memory_space<smem>>
    %2018 = vector.broadcast %2017 : f32 to vector<8x128xf32>
    %2019 = arith.mulf %2018, %2008 : vector<8x128xf32>
    %2020 = arith.addf %1992, %2019 : vector<8x128xf32>
    %c368 = arith.constant 368 : index
    %2021 = memref.load %arg3[%c368] : memref<606xf32, #tpu.memory_space<smem>>
    %2022 = vector.broadcast %2021 : f32 to vector<8x128xf32>
    %2023 = arith.mulf %2022, %1811 : vector<8x128xf32>
    %c369 = arith.constant 369 : index
    %2024 = memref.load %arg3[%c369] : memref<606xf32, #tpu.memory_space<smem>>
    %2025 = vector.broadcast %2024 : f32 to vector<8x128xf32>
    %2026 = arith.mulf %2025, %1819 : vector<8x128xf32>
    %2027 = arith.addf %2023, %2026 : vector<8x128xf32>
    %c370 = arith.constant 370 : index
    %2028 = memref.load %arg3[%c370] : memref<606xf32, #tpu.memory_space<smem>>
    %2029 = vector.broadcast %2028 : f32 to vector<8x128xf32>
    %2030 = arith.mulf %2029, %1827 : vector<8x128xf32>
    %2031 = arith.addf %2027, %2030 : vector<8x128xf32>
    %c450 = arith.constant 450 : index
    %2032 = memref.load %arg3[%c450] : memref<606xf32, #tpu.memory_space<smem>>
    %2033 = vector.broadcast %2032 : f32 to vector<8x128xf32>
    %2034 = arith.addf %2031, %2033 : vector<8x128xf32>
    %cst_65 = arith.constant 0.000000e+00 : f32
    %2035 = vector.broadcast %cst_65 : f32 to vector<8x128xf32>
    %2036 = arith.maximumf %2034, %2035 : vector<8x128xf32>
    %c482 = arith.constant 482 : index
    %2037 = memref.load %arg3[%c482] : memref<606xf32, #tpu.memory_space<smem>>
    %2038 = vector.broadcast %2037 : f32 to vector<8x128xf32>
    %2039 = arith.mulf %2038, %2036 : vector<8x128xf32>
    %2040 = arith.addf %2012, %2039 : vector<8x128xf32>
    %c514 = arith.constant 514 : index
    %2041 = memref.load %arg3[%c514] : memref<606xf32, #tpu.memory_space<smem>>
    %2042 = vector.broadcast %2041 : f32 to vector<8x128xf32>
    %2043 = arith.mulf %2042, %2036 : vector<8x128xf32>
    %2044 = arith.addf %2016, %2043 : vector<8x128xf32>
    %c546 = arith.constant 546 : index
    %2045 = memref.load %arg3[%c546] : memref<606xf32, #tpu.memory_space<smem>>
    %2046 = vector.broadcast %2045 : f32 to vector<8x128xf32>
    %2047 = arith.mulf %2046, %2036 : vector<8x128xf32>
    %2048 = arith.addf %2020, %2047 : vector<8x128xf32>
    %c371 = arith.constant 371 : index
    %2049 = memref.load %arg3[%c371] : memref<606xf32, #tpu.memory_space<smem>>
    %2050 = vector.broadcast %2049 : f32 to vector<8x128xf32>
    %2051 = arith.mulf %2050, %1811 : vector<8x128xf32>
    %c372 = arith.constant 372 : index
    %2052 = memref.load %arg3[%c372] : memref<606xf32, #tpu.memory_space<smem>>
    %2053 = vector.broadcast %2052 : f32 to vector<8x128xf32>
    %2054 = arith.mulf %2053, %1819 : vector<8x128xf32>
    %2055 = arith.addf %2051, %2054 : vector<8x128xf32>
    %c373 = arith.constant 373 : index
    %2056 = memref.load %arg3[%c373] : memref<606xf32, #tpu.memory_space<smem>>
    %2057 = vector.broadcast %2056 : f32 to vector<8x128xf32>
    %2058 = arith.mulf %2057, %1827 : vector<8x128xf32>
    %2059 = arith.addf %2055, %2058 : vector<8x128xf32>
    %c451 = arith.constant 451 : index
    %2060 = memref.load %arg3[%c451] : memref<606xf32, #tpu.memory_space<smem>>
    %2061 = vector.broadcast %2060 : f32 to vector<8x128xf32>
    %2062 = arith.addf %2059, %2061 : vector<8x128xf32>
    %cst_66 = arith.constant 0.000000e+00 : f32
    %2063 = vector.broadcast %cst_66 : f32 to vector<8x128xf32>
    %2064 = arith.maximumf %2062, %2063 : vector<8x128xf32>
    %c483 = arith.constant 483 : index
    %2065 = memref.load %arg3[%c483] : memref<606xf32, #tpu.memory_space<smem>>
    %2066 = vector.broadcast %2065 : f32 to vector<8x128xf32>
    %2067 = arith.mulf %2066, %2064 : vector<8x128xf32>
    %2068 = arith.addf %2040, %2067 : vector<8x128xf32>
    %c515 = arith.constant 515 : index
    %2069 = memref.load %arg3[%c515] : memref<606xf32, #tpu.memory_space<smem>>
    %2070 = vector.broadcast %2069 : f32 to vector<8x128xf32>
    %2071 = arith.mulf %2070, %2064 : vector<8x128xf32>
    %2072 = arith.addf %2044, %2071 : vector<8x128xf32>
    %c547 = arith.constant 547 : index
    %2073 = memref.load %arg3[%c547] : memref<606xf32, #tpu.memory_space<smem>>
    %2074 = vector.broadcast %2073 : f32 to vector<8x128xf32>
    %2075 = arith.mulf %2074, %2064 : vector<8x128xf32>
    %2076 = arith.addf %2048, %2075 : vector<8x128xf32>
    %c374 = arith.constant 374 : index
    %2077 = memref.load %arg3[%c374] : memref<606xf32, #tpu.memory_space<smem>>
    %2078 = vector.broadcast %2077 : f32 to vector<8x128xf32>
    %2079 = arith.mulf %2078, %1811 : vector<8x128xf32>
    %c375 = arith.constant 375 : index
    %2080 = memref.load %arg3[%c375] : memref<606xf32, #tpu.memory_space<smem>>
    %2081 = vector.broadcast %2080 : f32 to vector<8x128xf32>
    %2082 = arith.mulf %2081, %1819 : vector<8x128xf32>
    %2083 = arith.addf %2079, %2082 : vector<8x128xf32>
    %c376 = arith.constant 376 : index
    %2084 = memref.load %arg3[%c376] : memref<606xf32, #tpu.memory_space<smem>>
    %2085 = vector.broadcast %2084 : f32 to vector<8x128xf32>
    %2086 = arith.mulf %2085, %1827 : vector<8x128xf32>
    %2087 = arith.addf %2083, %2086 : vector<8x128xf32>
    %c452 = arith.constant 452 : index
    %2088 = memref.load %arg3[%c452] : memref<606xf32, #tpu.memory_space<smem>>
    %2089 = vector.broadcast %2088 : f32 to vector<8x128xf32>
    %2090 = arith.addf %2087, %2089 : vector<8x128xf32>
    %cst_67 = arith.constant 0.000000e+00 : f32
    %2091 = vector.broadcast %cst_67 : f32 to vector<8x128xf32>
    %2092 = arith.maximumf %2090, %2091 : vector<8x128xf32>
    %c484 = arith.constant 484 : index
    %2093 = memref.load %arg3[%c484] : memref<606xf32, #tpu.memory_space<smem>>
    %2094 = vector.broadcast %2093 : f32 to vector<8x128xf32>
    %2095 = arith.mulf %2094, %2092 : vector<8x128xf32>
    %2096 = arith.addf %2068, %2095 : vector<8x128xf32>
    %c516 = arith.constant 516 : index
    %2097 = memref.load %arg3[%c516] : memref<606xf32, #tpu.memory_space<smem>>
    %2098 = vector.broadcast %2097 : f32 to vector<8x128xf32>
    %2099 = arith.mulf %2098, %2092 : vector<8x128xf32>
    %2100 = arith.addf %2072, %2099 : vector<8x128xf32>
    %c548 = arith.constant 548 : index
    %2101 = memref.load %arg3[%c548] : memref<606xf32, #tpu.memory_space<smem>>
    %2102 = vector.broadcast %2101 : f32 to vector<8x128xf32>
    %2103 = arith.mulf %2102, %2092 : vector<8x128xf32>
    %2104 = arith.addf %2076, %2103 : vector<8x128xf32>
    %c377 = arith.constant 377 : index
    %2105 = memref.load %arg3[%c377] : memref<606xf32, #tpu.memory_space<smem>>
    %2106 = vector.broadcast %2105 : f32 to vector<8x128xf32>
    %2107 = arith.mulf %2106, %1811 : vector<8x128xf32>
    %c378 = arith.constant 378 : index
    %2108 = memref.load %arg3[%c378] : memref<606xf32, #tpu.memory_space<smem>>
    %2109 = vector.broadcast %2108 : f32 to vector<8x128xf32>
    %2110 = arith.mulf %2109, %1819 : vector<8x128xf32>
    %2111 = arith.addf %2107, %2110 : vector<8x128xf32>
    %c379 = arith.constant 379 : index
    %2112 = memref.load %arg3[%c379] : memref<606xf32, #tpu.memory_space<smem>>
    %2113 = vector.broadcast %2112 : f32 to vector<8x128xf32>
    %2114 = arith.mulf %2113, %1827 : vector<8x128xf32>
    %2115 = arith.addf %2111, %2114 : vector<8x128xf32>
    %c453 = arith.constant 453 : index
    %2116 = memref.load %arg3[%c453] : memref<606xf32, #tpu.memory_space<smem>>
    %2117 = vector.broadcast %2116 : f32 to vector<8x128xf32>
    %2118 = arith.addf %2115, %2117 : vector<8x128xf32>
    %cst_68 = arith.constant 0.000000e+00 : f32
    %2119 = vector.broadcast %cst_68 : f32 to vector<8x128xf32>
    %2120 = arith.maximumf %2118, %2119 : vector<8x128xf32>
    %c485 = arith.constant 485 : index
    %2121 = memref.load %arg3[%c485] : memref<606xf32, #tpu.memory_space<smem>>
    %2122 = vector.broadcast %2121 : f32 to vector<8x128xf32>
    %2123 = arith.mulf %2122, %2120 : vector<8x128xf32>
    %2124 = arith.addf %2096, %2123 : vector<8x128xf32>
    %c517 = arith.constant 517 : index
    %2125 = memref.load %arg3[%c517] : memref<606xf32, #tpu.memory_space<smem>>
    %2126 = vector.broadcast %2125 : f32 to vector<8x128xf32>
    %2127 = arith.mulf %2126, %2120 : vector<8x128xf32>
    %2128 = arith.addf %2100, %2127 : vector<8x128xf32>
    %c549 = arith.constant 549 : index
    %2129 = memref.load %arg3[%c549] : memref<606xf32, #tpu.memory_space<smem>>
    %2130 = vector.broadcast %2129 : f32 to vector<8x128xf32>
    %2131 = arith.mulf %2130, %2120 : vector<8x128xf32>
    %2132 = arith.addf %2104, %2131 : vector<8x128xf32>
    %c380 = arith.constant 380 : index
    %2133 = memref.load %arg3[%c380] : memref<606xf32, #tpu.memory_space<smem>>
    %2134 = vector.broadcast %2133 : f32 to vector<8x128xf32>
    %2135 = arith.mulf %2134, %1811 : vector<8x128xf32>
    %c381 = arith.constant 381 : index
    %2136 = memref.load %arg3[%c381] : memref<606xf32, #tpu.memory_space<smem>>
    %2137 = vector.broadcast %2136 : f32 to vector<8x128xf32>
    %2138 = arith.mulf %2137, %1819 : vector<8x128xf32>
    %2139 = arith.addf %2135, %2138 : vector<8x128xf32>
    %c382 = arith.constant 382 : index
    %2140 = memref.load %arg3[%c382] : memref<606xf32, #tpu.memory_space<smem>>
    %2141 = vector.broadcast %2140 : f32 to vector<8x128xf32>
    %2142 = arith.mulf %2141, %1827 : vector<8x128xf32>
    %2143 = arith.addf %2139, %2142 : vector<8x128xf32>
    %c454 = arith.constant 454 : index
    %2144 = memref.load %arg3[%c454] : memref<606xf32, #tpu.memory_space<smem>>
    %2145 = vector.broadcast %2144 : f32 to vector<8x128xf32>
    %2146 = arith.addf %2143, %2145 : vector<8x128xf32>
    %cst_69 = arith.constant 0.000000e+00 : f32
    %2147 = vector.broadcast %cst_69 : f32 to vector<8x128xf32>
    %2148 = arith.maximumf %2146, %2147 : vector<8x128xf32>
    %c486 = arith.constant 486 : index
    %2149 = memref.load %arg3[%c486] : memref<606xf32, #tpu.memory_space<smem>>
    %2150 = vector.broadcast %2149 : f32 to vector<8x128xf32>
    %2151 = arith.mulf %2150, %2148 : vector<8x128xf32>
    %2152 = arith.addf %2124, %2151 : vector<8x128xf32>
    %c518 = arith.constant 518 : index
    %2153 = memref.load %arg3[%c518] : memref<606xf32, #tpu.memory_space<smem>>
    %2154 = vector.broadcast %2153 : f32 to vector<8x128xf32>
    %2155 = arith.mulf %2154, %2148 : vector<8x128xf32>
    %2156 = arith.addf %2128, %2155 : vector<8x128xf32>
    %c550 = arith.constant 550 : index
    %2157 = memref.load %arg3[%c550] : memref<606xf32, #tpu.memory_space<smem>>
    %2158 = vector.broadcast %2157 : f32 to vector<8x128xf32>
    %2159 = arith.mulf %2158, %2148 : vector<8x128xf32>
    %2160 = arith.addf %2132, %2159 : vector<8x128xf32>
    %c383 = arith.constant 383 : index
    %2161 = memref.load %arg3[%c383] : memref<606xf32, #tpu.memory_space<smem>>
    %2162 = vector.broadcast %2161 : f32 to vector<8x128xf32>
    %2163 = arith.mulf %2162, %1811 : vector<8x128xf32>
    %c384 = arith.constant 384 : index
    %2164 = memref.load %arg3[%c384] : memref<606xf32, #tpu.memory_space<smem>>
    %2165 = vector.broadcast %2164 : f32 to vector<8x128xf32>
    %2166 = arith.mulf %2165, %1819 : vector<8x128xf32>
    %2167 = arith.addf %2163, %2166 : vector<8x128xf32>
    %c385 = arith.constant 385 : index
    %2168 = memref.load %arg3[%c385] : memref<606xf32, #tpu.memory_space<smem>>
    %2169 = vector.broadcast %2168 : f32 to vector<8x128xf32>
    %2170 = arith.mulf %2169, %1827 : vector<8x128xf32>
    %2171 = arith.addf %2167, %2170 : vector<8x128xf32>
    %c455 = arith.constant 455 : index
    %2172 = memref.load %arg3[%c455] : memref<606xf32, #tpu.memory_space<smem>>
    %2173 = vector.broadcast %2172 : f32 to vector<8x128xf32>
    %2174 = arith.addf %2171, %2173 : vector<8x128xf32>
    %cst_70 = arith.constant 0.000000e+00 : f32
    %2175 = vector.broadcast %cst_70 : f32 to vector<8x128xf32>
    %2176 = arith.maximumf %2174, %2175 : vector<8x128xf32>
    %c487 = arith.constant 487 : index
    %2177 = memref.load %arg3[%c487] : memref<606xf32, #tpu.memory_space<smem>>
    %2178 = vector.broadcast %2177 : f32 to vector<8x128xf32>
    %2179 = arith.mulf %2178, %2176 : vector<8x128xf32>
    %2180 = arith.addf %2152, %2179 : vector<8x128xf32>
    %c519 = arith.constant 519 : index
    %2181 = memref.load %arg3[%c519] : memref<606xf32, #tpu.memory_space<smem>>
    %2182 = vector.broadcast %2181 : f32 to vector<8x128xf32>
    %2183 = arith.mulf %2182, %2176 : vector<8x128xf32>
    %2184 = arith.addf %2156, %2183 : vector<8x128xf32>
    %c551 = arith.constant 551 : index
    %2185 = memref.load %arg3[%c551] : memref<606xf32, #tpu.memory_space<smem>>
    %2186 = vector.broadcast %2185 : f32 to vector<8x128xf32>
    %2187 = arith.mulf %2186, %2176 : vector<8x128xf32>
    %2188 = arith.addf %2160, %2187 : vector<8x128xf32>
    %c386 = arith.constant 386 : index
    %2189 = memref.load %arg3[%c386] : memref<606xf32, #tpu.memory_space<smem>>
    %2190 = vector.broadcast %2189 : f32 to vector<8x128xf32>
    %2191 = arith.mulf %2190, %1811 : vector<8x128xf32>
    %c387 = arith.constant 387 : index
    %2192 = memref.load %arg3[%c387] : memref<606xf32, #tpu.memory_space<smem>>
    %2193 = vector.broadcast %2192 : f32 to vector<8x128xf32>
    %2194 = arith.mulf %2193, %1819 : vector<8x128xf32>
    %2195 = arith.addf %2191, %2194 : vector<8x128xf32>
    %c388 = arith.constant 388 : index
    %2196 = memref.load %arg3[%c388] : memref<606xf32, #tpu.memory_space<smem>>
    %2197 = vector.broadcast %2196 : f32 to vector<8x128xf32>
    %2198 = arith.mulf %2197, %1827 : vector<8x128xf32>
    %2199 = arith.addf %2195, %2198 : vector<8x128xf32>
    %c456 = arith.constant 456 : index
    %2200 = memref.load %arg3[%c456] : memref<606xf32, #tpu.memory_space<smem>>
    %2201 = vector.broadcast %2200 : f32 to vector<8x128xf32>
    %2202 = arith.addf %2199, %2201 : vector<8x128xf32>
    %cst_71 = arith.constant 0.000000e+00 : f32
    %2203 = vector.broadcast %cst_71 : f32 to vector<8x128xf32>
    %2204 = arith.maximumf %2202, %2203 : vector<8x128xf32>
    %c488 = arith.constant 488 : index
    %2205 = memref.load %arg3[%c488] : memref<606xf32, #tpu.memory_space<smem>>
    %2206 = vector.broadcast %2205 : f32 to vector<8x128xf32>
    %2207 = arith.mulf %2206, %2204 : vector<8x128xf32>
    %2208 = arith.addf %2180, %2207 : vector<8x128xf32>
    %c520 = arith.constant 520 : index
    %2209 = memref.load %arg3[%c520] : memref<606xf32, #tpu.memory_space<smem>>
    %2210 = vector.broadcast %2209 : f32 to vector<8x128xf32>
    %2211 = arith.mulf %2210, %2204 : vector<8x128xf32>
    %2212 = arith.addf %2184, %2211 : vector<8x128xf32>
    %c552 = arith.constant 552 : index
    %2213 = memref.load %arg3[%c552] : memref<606xf32, #tpu.memory_space<smem>>
    %2214 = vector.broadcast %2213 : f32 to vector<8x128xf32>
    %2215 = arith.mulf %2214, %2204 : vector<8x128xf32>
    %2216 = arith.addf %2188, %2215 : vector<8x128xf32>
    %c389 = arith.constant 389 : index
    %2217 = memref.load %arg3[%c389] : memref<606xf32, #tpu.memory_space<smem>>
    %2218 = vector.broadcast %2217 : f32 to vector<8x128xf32>
    %2219 = arith.mulf %2218, %1811 : vector<8x128xf32>
    %c390 = arith.constant 390 : index
    %2220 = memref.load %arg3[%c390] : memref<606xf32, #tpu.memory_space<smem>>
    %2221 = vector.broadcast %2220 : f32 to vector<8x128xf32>
    %2222 = arith.mulf %2221, %1819 : vector<8x128xf32>
    %2223 = arith.addf %2219, %2222 : vector<8x128xf32>
    %c391 = arith.constant 391 : index
    %2224 = memref.load %arg3[%c391] : memref<606xf32, #tpu.memory_space<smem>>
    %2225 = vector.broadcast %2224 : f32 to vector<8x128xf32>
    %2226 = arith.mulf %2225, %1827 : vector<8x128xf32>
    %2227 = arith.addf %2223, %2226 : vector<8x128xf32>
    %c457 = arith.constant 457 : index
    %2228 = memref.load %arg3[%c457] : memref<606xf32, #tpu.memory_space<smem>>
    %2229 = vector.broadcast %2228 : f32 to vector<8x128xf32>
    %2230 = arith.addf %2227, %2229 : vector<8x128xf32>
    %cst_72 = arith.constant 0.000000e+00 : f32
    %2231 = vector.broadcast %cst_72 : f32 to vector<8x128xf32>
    %2232 = arith.maximumf %2230, %2231 : vector<8x128xf32>
    %c489 = arith.constant 489 : index
    %2233 = memref.load %arg3[%c489] : memref<606xf32, #tpu.memory_space<smem>>
    %2234 = vector.broadcast %2233 : f32 to vector<8x128xf32>
    %2235 = arith.mulf %2234, %2232 : vector<8x128xf32>
    %2236 = arith.addf %2208, %2235 : vector<8x128xf32>
    %c521 = arith.constant 521 : index
    %2237 = memref.load %arg3[%c521] : memref<606xf32, #tpu.memory_space<smem>>
    %2238 = vector.broadcast %2237 : f32 to vector<8x128xf32>
    %2239 = arith.mulf %2238, %2232 : vector<8x128xf32>
    %2240 = arith.addf %2212, %2239 : vector<8x128xf32>
    %c553 = arith.constant 553 : index
    %2241 = memref.load %arg3[%c553] : memref<606xf32, #tpu.memory_space<smem>>
    %2242 = vector.broadcast %2241 : f32 to vector<8x128xf32>
    %2243 = arith.mulf %2242, %2232 : vector<8x128xf32>
    %2244 = arith.addf %2216, %2243 : vector<8x128xf32>
    %c392 = arith.constant 392 : index
    %2245 = memref.load %arg3[%c392] : memref<606xf32, #tpu.memory_space<smem>>
    %2246 = vector.broadcast %2245 : f32 to vector<8x128xf32>
    %2247 = arith.mulf %2246, %1811 : vector<8x128xf32>
    %c393 = arith.constant 393 : index
    %2248 = memref.load %arg3[%c393] : memref<606xf32, #tpu.memory_space<smem>>
    %2249 = vector.broadcast %2248 : f32 to vector<8x128xf32>
    %2250 = arith.mulf %2249, %1819 : vector<8x128xf32>
    %2251 = arith.addf %2247, %2250 : vector<8x128xf32>
    %c394 = arith.constant 394 : index
    %2252 = memref.load %arg3[%c394] : memref<606xf32, #tpu.memory_space<smem>>
    %2253 = vector.broadcast %2252 : f32 to vector<8x128xf32>
    %2254 = arith.mulf %2253, %1827 : vector<8x128xf32>
    %2255 = arith.addf %2251, %2254 : vector<8x128xf32>
    %c458 = arith.constant 458 : index
    %2256 = memref.load %arg3[%c458] : memref<606xf32, #tpu.memory_space<smem>>
    %2257 = vector.broadcast %2256 : f32 to vector<8x128xf32>
    %2258 = arith.addf %2255, %2257 : vector<8x128xf32>
    %cst_73 = arith.constant 0.000000e+00 : f32
    %2259 = vector.broadcast %cst_73 : f32 to vector<8x128xf32>
    %2260 = arith.maximumf %2258, %2259 : vector<8x128xf32>
    %c490 = arith.constant 490 : index
    %2261 = memref.load %arg3[%c490] : memref<606xf32, #tpu.memory_space<smem>>
    %2262 = vector.broadcast %2261 : f32 to vector<8x128xf32>
    %2263 = arith.mulf %2262, %2260 : vector<8x128xf32>
    %2264 = arith.addf %2236, %2263 : vector<8x128xf32>
    %c522 = arith.constant 522 : index
    %2265 = memref.load %arg3[%c522] : memref<606xf32, #tpu.memory_space<smem>>
    %2266 = vector.broadcast %2265 : f32 to vector<8x128xf32>
    %2267 = arith.mulf %2266, %2260 : vector<8x128xf32>
    %2268 = arith.addf %2240, %2267 : vector<8x128xf32>
    %c554 = arith.constant 554 : index
    %2269 = memref.load %arg3[%c554] : memref<606xf32, #tpu.memory_space<smem>>
    %2270 = vector.broadcast %2269 : f32 to vector<8x128xf32>
    %2271 = arith.mulf %2270, %2260 : vector<8x128xf32>
    %2272 = arith.addf %2244, %2271 : vector<8x128xf32>
    %c395 = arith.constant 395 : index
    %2273 = memref.load %arg3[%c395] : memref<606xf32, #tpu.memory_space<smem>>
    %2274 = vector.broadcast %2273 : f32 to vector<8x128xf32>
    %2275 = arith.mulf %2274, %1811 : vector<8x128xf32>
    %c396 = arith.constant 396 : index
    %2276 = memref.load %arg3[%c396] : memref<606xf32, #tpu.memory_space<smem>>
    %2277 = vector.broadcast %2276 : f32 to vector<8x128xf32>
    %2278 = arith.mulf %2277, %1819 : vector<8x128xf32>
    %2279 = arith.addf %2275, %2278 : vector<8x128xf32>
    %c397 = arith.constant 397 : index
    %2280 = memref.load %arg3[%c397] : memref<606xf32, #tpu.memory_space<smem>>
    %2281 = vector.broadcast %2280 : f32 to vector<8x128xf32>
    %2282 = arith.mulf %2281, %1827 : vector<8x128xf32>
    %2283 = arith.addf %2279, %2282 : vector<8x128xf32>
    %c459 = arith.constant 459 : index
    %2284 = memref.load %arg3[%c459] : memref<606xf32, #tpu.memory_space<smem>>
    %2285 = vector.broadcast %2284 : f32 to vector<8x128xf32>
    %2286 = arith.addf %2283, %2285 : vector<8x128xf32>
    %cst_74 = arith.constant 0.000000e+00 : f32
    %2287 = vector.broadcast %cst_74 : f32 to vector<8x128xf32>
    %2288 = arith.maximumf %2286, %2287 : vector<8x128xf32>
    %c491 = arith.constant 491 : index
    %2289 = memref.load %arg3[%c491] : memref<606xf32, #tpu.memory_space<smem>>
    %2290 = vector.broadcast %2289 : f32 to vector<8x128xf32>
    %2291 = arith.mulf %2290, %2288 : vector<8x128xf32>
    %2292 = arith.addf %2264, %2291 : vector<8x128xf32>
    %c523 = arith.constant 523 : index
    %2293 = memref.load %arg3[%c523] : memref<606xf32, #tpu.memory_space<smem>>
    %2294 = vector.broadcast %2293 : f32 to vector<8x128xf32>
    %2295 = arith.mulf %2294, %2288 : vector<8x128xf32>
    %2296 = arith.addf %2268, %2295 : vector<8x128xf32>
    %c555 = arith.constant 555 : index
    %2297 = memref.load %arg3[%c555] : memref<606xf32, #tpu.memory_space<smem>>
    %2298 = vector.broadcast %2297 : f32 to vector<8x128xf32>
    %2299 = arith.mulf %2298, %2288 : vector<8x128xf32>
    %2300 = arith.addf %2272, %2299 : vector<8x128xf32>
    %c398 = arith.constant 398 : index
    %2301 = memref.load %arg3[%c398] : memref<606xf32, #tpu.memory_space<smem>>
    %2302 = vector.broadcast %2301 : f32 to vector<8x128xf32>
    %2303 = arith.mulf %2302, %1811 : vector<8x128xf32>
    %c399 = arith.constant 399 : index
    %2304 = memref.load %arg3[%c399] : memref<606xf32, #tpu.memory_space<smem>>
    %2305 = vector.broadcast %2304 : f32 to vector<8x128xf32>
    %2306 = arith.mulf %2305, %1819 : vector<8x128xf32>
    %2307 = arith.addf %2303, %2306 : vector<8x128xf32>
    %c400 = arith.constant 400 : index
    %2308 = memref.load %arg3[%c400] : memref<606xf32, #tpu.memory_space<smem>>
    %2309 = vector.broadcast %2308 : f32 to vector<8x128xf32>
    %2310 = arith.mulf %2309, %1827 : vector<8x128xf32>
    %2311 = arith.addf %2307, %2310 : vector<8x128xf32>
    %c460 = arith.constant 460 : index
    %2312 = memref.load %arg3[%c460] : memref<606xf32, #tpu.memory_space<smem>>
    %2313 = vector.broadcast %2312 : f32 to vector<8x128xf32>
    %2314 = arith.addf %2311, %2313 : vector<8x128xf32>
    %cst_75 = arith.constant 0.000000e+00 : f32
    %2315 = vector.broadcast %cst_75 : f32 to vector<8x128xf32>
    %2316 = arith.maximumf %2314, %2315 : vector<8x128xf32>
    %c492 = arith.constant 492 : index
    %2317 = memref.load %arg3[%c492] : memref<606xf32, #tpu.memory_space<smem>>
    %2318 = vector.broadcast %2317 : f32 to vector<8x128xf32>
    %2319 = arith.mulf %2318, %2316 : vector<8x128xf32>
    %2320 = arith.addf %2292, %2319 : vector<8x128xf32>
    %c524 = arith.constant 524 : index
    %2321 = memref.load %arg3[%c524] : memref<606xf32, #tpu.memory_space<smem>>
    %2322 = vector.broadcast %2321 : f32 to vector<8x128xf32>
    %2323 = arith.mulf %2322, %2316 : vector<8x128xf32>
    %2324 = arith.addf %2296, %2323 : vector<8x128xf32>
    %c556 = arith.constant 556 : index
    %2325 = memref.load %arg3[%c556] : memref<606xf32, #tpu.memory_space<smem>>
    %2326 = vector.broadcast %2325 : f32 to vector<8x128xf32>
    %2327 = arith.mulf %2326, %2316 : vector<8x128xf32>
    %2328 = arith.addf %2300, %2327 : vector<8x128xf32>
    %c401 = arith.constant 401 : index
    %2329 = memref.load %arg3[%c401] : memref<606xf32, #tpu.memory_space<smem>>
    %2330 = vector.broadcast %2329 : f32 to vector<8x128xf32>
    %2331 = arith.mulf %2330, %1811 : vector<8x128xf32>
    %c402 = arith.constant 402 : index
    %2332 = memref.load %arg3[%c402] : memref<606xf32, #tpu.memory_space<smem>>
    %2333 = vector.broadcast %2332 : f32 to vector<8x128xf32>
    %2334 = arith.mulf %2333, %1819 : vector<8x128xf32>
    %2335 = arith.addf %2331, %2334 : vector<8x128xf32>
    %c403 = arith.constant 403 : index
    %2336 = memref.load %arg3[%c403] : memref<606xf32, #tpu.memory_space<smem>>
    %2337 = vector.broadcast %2336 : f32 to vector<8x128xf32>
    %2338 = arith.mulf %2337, %1827 : vector<8x128xf32>
    %2339 = arith.addf %2335, %2338 : vector<8x128xf32>
    %c461 = arith.constant 461 : index
    %2340 = memref.load %arg3[%c461] : memref<606xf32, #tpu.memory_space<smem>>
    %2341 = vector.broadcast %2340 : f32 to vector<8x128xf32>
    %2342 = arith.addf %2339, %2341 : vector<8x128xf32>
    %cst_76 = arith.constant 0.000000e+00 : f32
    %2343 = vector.broadcast %cst_76 : f32 to vector<8x128xf32>
    %2344 = arith.maximumf %2342, %2343 : vector<8x128xf32>
    %c493 = arith.constant 493 : index
    %2345 = memref.load %arg3[%c493] : memref<606xf32, #tpu.memory_space<smem>>
    %2346 = vector.broadcast %2345 : f32 to vector<8x128xf32>
    %2347 = arith.mulf %2346, %2344 : vector<8x128xf32>
    %2348 = arith.addf %2320, %2347 : vector<8x128xf32>
    %c525 = arith.constant 525 : index
    %2349 = memref.load %arg3[%c525] : memref<606xf32, #tpu.memory_space<smem>>
    %2350 = vector.broadcast %2349 : f32 to vector<8x128xf32>
    %2351 = arith.mulf %2350, %2344 : vector<8x128xf32>
    %2352 = arith.addf %2324, %2351 : vector<8x128xf32>
    %c557 = arith.constant 557 : index
    %2353 = memref.load %arg3[%c557] : memref<606xf32, #tpu.memory_space<smem>>
    %2354 = vector.broadcast %2353 : f32 to vector<8x128xf32>
    %2355 = arith.mulf %2354, %2344 : vector<8x128xf32>
    %2356 = arith.addf %2328, %2355 : vector<8x128xf32>
    %c404 = arith.constant 404 : index
    %2357 = memref.load %arg3[%c404] : memref<606xf32, #tpu.memory_space<smem>>
    %2358 = vector.broadcast %2357 : f32 to vector<8x128xf32>
    %2359 = arith.mulf %2358, %1811 : vector<8x128xf32>
    %c405 = arith.constant 405 : index
    %2360 = memref.load %arg3[%c405] : memref<606xf32, #tpu.memory_space<smem>>
    %2361 = vector.broadcast %2360 : f32 to vector<8x128xf32>
    %2362 = arith.mulf %2361, %1819 : vector<8x128xf32>
    %2363 = arith.addf %2359, %2362 : vector<8x128xf32>
    %c406 = arith.constant 406 : index
    %2364 = memref.load %arg3[%c406] : memref<606xf32, #tpu.memory_space<smem>>
    %2365 = vector.broadcast %2364 : f32 to vector<8x128xf32>
    %2366 = arith.mulf %2365, %1827 : vector<8x128xf32>
    %2367 = arith.addf %2363, %2366 : vector<8x128xf32>
    %c462 = arith.constant 462 : index
    %2368 = memref.load %arg3[%c462] : memref<606xf32, #tpu.memory_space<smem>>
    %2369 = vector.broadcast %2368 : f32 to vector<8x128xf32>
    %2370 = arith.addf %2367, %2369 : vector<8x128xf32>
    %cst_77 = arith.constant 0.000000e+00 : f32
    %2371 = vector.broadcast %cst_77 : f32 to vector<8x128xf32>
    %2372 = arith.maximumf %2370, %2371 : vector<8x128xf32>
    %c494 = arith.constant 494 : index
    %2373 = memref.load %arg3[%c494] : memref<606xf32, #tpu.memory_space<smem>>
    %2374 = vector.broadcast %2373 : f32 to vector<8x128xf32>
    %2375 = arith.mulf %2374, %2372 : vector<8x128xf32>
    %2376 = arith.addf %2348, %2375 : vector<8x128xf32>
    %c526 = arith.constant 526 : index
    %2377 = memref.load %arg3[%c526] : memref<606xf32, #tpu.memory_space<smem>>
    %2378 = vector.broadcast %2377 : f32 to vector<8x128xf32>
    %2379 = arith.mulf %2378, %2372 : vector<8x128xf32>
    %2380 = arith.addf %2352, %2379 : vector<8x128xf32>
    %c558 = arith.constant 558 : index
    %2381 = memref.load %arg3[%c558] : memref<606xf32, #tpu.memory_space<smem>>
    %2382 = vector.broadcast %2381 : f32 to vector<8x128xf32>
    %2383 = arith.mulf %2382, %2372 : vector<8x128xf32>
    %2384 = arith.addf %2356, %2383 : vector<8x128xf32>
    %c407 = arith.constant 407 : index
    %2385 = memref.load %arg3[%c407] : memref<606xf32, #tpu.memory_space<smem>>
    %2386 = vector.broadcast %2385 : f32 to vector<8x128xf32>
    %2387 = arith.mulf %2386, %1811 : vector<8x128xf32>
    %c408 = arith.constant 408 : index
    %2388 = memref.load %arg3[%c408] : memref<606xf32, #tpu.memory_space<smem>>
    %2389 = vector.broadcast %2388 : f32 to vector<8x128xf32>
    %2390 = arith.mulf %2389, %1819 : vector<8x128xf32>
    %2391 = arith.addf %2387, %2390 : vector<8x128xf32>
    %c409 = arith.constant 409 : index
    %2392 = memref.load %arg3[%c409] : memref<606xf32, #tpu.memory_space<smem>>
    %2393 = vector.broadcast %2392 : f32 to vector<8x128xf32>
    %2394 = arith.mulf %2393, %1827 : vector<8x128xf32>
    %2395 = arith.addf %2391, %2394 : vector<8x128xf32>
    %c463 = arith.constant 463 : index
    %2396 = memref.load %arg3[%c463] : memref<606xf32, #tpu.memory_space<smem>>
    %2397 = vector.broadcast %2396 : f32 to vector<8x128xf32>
    %2398 = arith.addf %2395, %2397 : vector<8x128xf32>
    %cst_78 = arith.constant 0.000000e+00 : f32
    %2399 = vector.broadcast %cst_78 : f32 to vector<8x128xf32>
    %2400 = arith.maximumf %2398, %2399 : vector<8x128xf32>
    %c495 = arith.constant 495 : index
    %2401 = memref.load %arg3[%c495] : memref<606xf32, #tpu.memory_space<smem>>
    %2402 = vector.broadcast %2401 : f32 to vector<8x128xf32>
    %2403 = arith.mulf %2402, %2400 : vector<8x128xf32>
    %2404 = arith.addf %2376, %2403 : vector<8x128xf32>
    %c527 = arith.constant 527 : index
    %2405 = memref.load %arg3[%c527] : memref<606xf32, #tpu.memory_space<smem>>
    %2406 = vector.broadcast %2405 : f32 to vector<8x128xf32>
    %2407 = arith.mulf %2406, %2400 : vector<8x128xf32>
    %2408 = arith.addf %2380, %2407 : vector<8x128xf32>
    %c559 = arith.constant 559 : index
    %2409 = memref.load %arg3[%c559] : memref<606xf32, #tpu.memory_space<smem>>
    %2410 = vector.broadcast %2409 : f32 to vector<8x128xf32>
    %2411 = arith.mulf %2410, %2400 : vector<8x128xf32>
    %2412 = arith.addf %2384, %2411 : vector<8x128xf32>
    %c410 = arith.constant 410 : index
    %2413 = memref.load %arg3[%c410] : memref<606xf32, #tpu.memory_space<smem>>
    %2414 = vector.broadcast %2413 : f32 to vector<8x128xf32>
    %2415 = arith.mulf %2414, %1811 : vector<8x128xf32>
    %c411 = arith.constant 411 : index
    %2416 = memref.load %arg3[%c411] : memref<606xf32, #tpu.memory_space<smem>>
    %2417 = vector.broadcast %2416 : f32 to vector<8x128xf32>
    %2418 = arith.mulf %2417, %1819 : vector<8x128xf32>
    %2419 = arith.addf %2415, %2418 : vector<8x128xf32>
    %c412 = arith.constant 412 : index
    %2420 = memref.load %arg3[%c412] : memref<606xf32, #tpu.memory_space<smem>>
    %2421 = vector.broadcast %2420 : f32 to vector<8x128xf32>
    %2422 = arith.mulf %2421, %1827 : vector<8x128xf32>
    %2423 = arith.addf %2419, %2422 : vector<8x128xf32>
    %c464 = arith.constant 464 : index
    %2424 = memref.load %arg3[%c464] : memref<606xf32, #tpu.memory_space<smem>>
    %2425 = vector.broadcast %2424 : f32 to vector<8x128xf32>
    %2426 = arith.addf %2423, %2425 : vector<8x128xf32>
    %cst_79 = arith.constant 0.000000e+00 : f32
    %2427 = vector.broadcast %cst_79 : f32 to vector<8x128xf32>
    %2428 = arith.maximumf %2426, %2427 : vector<8x128xf32>
    %c496 = arith.constant 496 : index
    %2429 = memref.load %arg3[%c496] : memref<606xf32, #tpu.memory_space<smem>>
    %2430 = vector.broadcast %2429 : f32 to vector<8x128xf32>
    %2431 = arith.mulf %2430, %2428 : vector<8x128xf32>
    %2432 = arith.addf %2404, %2431 : vector<8x128xf32>
    %c528 = arith.constant 528 : index
    %2433 = memref.load %arg3[%c528] : memref<606xf32, #tpu.memory_space<smem>>
    %2434 = vector.broadcast %2433 : f32 to vector<8x128xf32>
    %2435 = arith.mulf %2434, %2428 : vector<8x128xf32>
    %2436 = arith.addf %2408, %2435 : vector<8x128xf32>
    %c560 = arith.constant 560 : index
    %2437 = memref.load %arg3[%c560] : memref<606xf32, #tpu.memory_space<smem>>
    %2438 = vector.broadcast %2437 : f32 to vector<8x128xf32>
    %2439 = arith.mulf %2438, %2428 : vector<8x128xf32>
    %2440 = arith.addf %2412, %2439 : vector<8x128xf32>
    %c413 = arith.constant 413 : index
    %2441 = memref.load %arg3[%c413] : memref<606xf32, #tpu.memory_space<smem>>
    %2442 = vector.broadcast %2441 : f32 to vector<8x128xf32>
    %2443 = arith.mulf %2442, %1811 : vector<8x128xf32>
    %c414 = arith.constant 414 : index
    %2444 = memref.load %arg3[%c414] : memref<606xf32, #tpu.memory_space<smem>>
    %2445 = vector.broadcast %2444 : f32 to vector<8x128xf32>
    %2446 = arith.mulf %2445, %1819 : vector<8x128xf32>
    %2447 = arith.addf %2443, %2446 : vector<8x128xf32>
    %c415 = arith.constant 415 : index
    %2448 = memref.load %arg3[%c415] : memref<606xf32, #tpu.memory_space<smem>>
    %2449 = vector.broadcast %2448 : f32 to vector<8x128xf32>
    %2450 = arith.mulf %2449, %1827 : vector<8x128xf32>
    %2451 = arith.addf %2447, %2450 : vector<8x128xf32>
    %c465 = arith.constant 465 : index
    %2452 = memref.load %arg3[%c465] : memref<606xf32, #tpu.memory_space<smem>>
    %2453 = vector.broadcast %2452 : f32 to vector<8x128xf32>
    %2454 = arith.addf %2451, %2453 : vector<8x128xf32>
    %cst_80 = arith.constant 0.000000e+00 : f32
    %2455 = vector.broadcast %cst_80 : f32 to vector<8x128xf32>
    %2456 = arith.maximumf %2454, %2455 : vector<8x128xf32>
    %c497 = arith.constant 497 : index
    %2457 = memref.load %arg3[%c497] : memref<606xf32, #tpu.memory_space<smem>>
    %2458 = vector.broadcast %2457 : f32 to vector<8x128xf32>
    %2459 = arith.mulf %2458, %2456 : vector<8x128xf32>
    %2460 = arith.addf %2432, %2459 : vector<8x128xf32>
    %c529 = arith.constant 529 : index
    %2461 = memref.load %arg3[%c529] : memref<606xf32, #tpu.memory_space<smem>>
    %2462 = vector.broadcast %2461 : f32 to vector<8x128xf32>
    %2463 = arith.mulf %2462, %2456 : vector<8x128xf32>
    %2464 = arith.addf %2436, %2463 : vector<8x128xf32>
    %c561 = arith.constant 561 : index
    %2465 = memref.load %arg3[%c561] : memref<606xf32, #tpu.memory_space<smem>>
    %2466 = vector.broadcast %2465 : f32 to vector<8x128xf32>
    %2467 = arith.mulf %2466, %2456 : vector<8x128xf32>
    %2468 = arith.addf %2440, %2467 : vector<8x128xf32>
    %c416 = arith.constant 416 : index
    %2469 = memref.load %arg3[%c416] : memref<606xf32, #tpu.memory_space<smem>>
    %2470 = vector.broadcast %2469 : f32 to vector<8x128xf32>
    %2471 = arith.mulf %2470, %1811 : vector<8x128xf32>
    %c417 = arith.constant 417 : index
    %2472 = memref.load %arg3[%c417] : memref<606xf32, #tpu.memory_space<smem>>
    %2473 = vector.broadcast %2472 : f32 to vector<8x128xf32>
    %2474 = arith.mulf %2473, %1819 : vector<8x128xf32>
    %2475 = arith.addf %2471, %2474 : vector<8x128xf32>
    %c418 = arith.constant 418 : index
    %2476 = memref.load %arg3[%c418] : memref<606xf32, #tpu.memory_space<smem>>
    %2477 = vector.broadcast %2476 : f32 to vector<8x128xf32>
    %2478 = arith.mulf %2477, %1827 : vector<8x128xf32>
    %2479 = arith.addf %2475, %2478 : vector<8x128xf32>
    %c466 = arith.constant 466 : index
    %2480 = memref.load %arg3[%c466] : memref<606xf32, #tpu.memory_space<smem>>
    %2481 = vector.broadcast %2480 : f32 to vector<8x128xf32>
    %2482 = arith.addf %2479, %2481 : vector<8x128xf32>
    %cst_81 = arith.constant 0.000000e+00 : f32
    %2483 = vector.broadcast %cst_81 : f32 to vector<8x128xf32>
    %2484 = arith.maximumf %2482, %2483 : vector<8x128xf32>
    %c498 = arith.constant 498 : index
    %2485 = memref.load %arg3[%c498] : memref<606xf32, #tpu.memory_space<smem>>
    %2486 = vector.broadcast %2485 : f32 to vector<8x128xf32>
    %2487 = arith.mulf %2486, %2484 : vector<8x128xf32>
    %2488 = arith.addf %2460, %2487 : vector<8x128xf32>
    %c530 = arith.constant 530 : index
    %2489 = memref.load %arg3[%c530] : memref<606xf32, #tpu.memory_space<smem>>
    %2490 = vector.broadcast %2489 : f32 to vector<8x128xf32>
    %2491 = arith.mulf %2490, %2484 : vector<8x128xf32>
    %2492 = arith.addf %2464, %2491 : vector<8x128xf32>
    %c562 = arith.constant 562 : index
    %2493 = memref.load %arg3[%c562] : memref<606xf32, #tpu.memory_space<smem>>
    %2494 = vector.broadcast %2493 : f32 to vector<8x128xf32>
    %2495 = arith.mulf %2494, %2484 : vector<8x128xf32>
    %2496 = arith.addf %2468, %2495 : vector<8x128xf32>
    %c419 = arith.constant 419 : index
    %2497 = memref.load %arg3[%c419] : memref<606xf32, #tpu.memory_space<smem>>
    %2498 = vector.broadcast %2497 : f32 to vector<8x128xf32>
    %2499 = arith.mulf %2498, %1811 : vector<8x128xf32>
    %c420 = arith.constant 420 : index
    %2500 = memref.load %arg3[%c420] : memref<606xf32, #tpu.memory_space<smem>>
    %2501 = vector.broadcast %2500 : f32 to vector<8x128xf32>
    %2502 = arith.mulf %2501, %1819 : vector<8x128xf32>
    %2503 = arith.addf %2499, %2502 : vector<8x128xf32>
    %c421 = arith.constant 421 : index
    %2504 = memref.load %arg3[%c421] : memref<606xf32, #tpu.memory_space<smem>>
    %2505 = vector.broadcast %2504 : f32 to vector<8x128xf32>
    %2506 = arith.mulf %2505, %1827 : vector<8x128xf32>
    %2507 = arith.addf %2503, %2506 : vector<8x128xf32>
    %c467 = arith.constant 467 : index
    %2508 = memref.load %arg3[%c467] : memref<606xf32, #tpu.memory_space<smem>>
    %2509 = vector.broadcast %2508 : f32 to vector<8x128xf32>
    %2510 = arith.addf %2507, %2509 : vector<8x128xf32>
    %cst_82 = arith.constant 0.000000e+00 : f32
    %2511 = vector.broadcast %cst_82 : f32 to vector<8x128xf32>
    %2512 = arith.maximumf %2510, %2511 : vector<8x128xf32>
    %c499 = arith.constant 499 : index
    %2513 = memref.load %arg3[%c499] : memref<606xf32, #tpu.memory_space<smem>>
    %2514 = vector.broadcast %2513 : f32 to vector<8x128xf32>
    %2515 = arith.mulf %2514, %2512 : vector<8x128xf32>
    %2516 = arith.addf %2488, %2515 : vector<8x128xf32>
    %c531 = arith.constant 531 : index
    %2517 = memref.load %arg3[%c531] : memref<606xf32, #tpu.memory_space<smem>>
    %2518 = vector.broadcast %2517 : f32 to vector<8x128xf32>
    %2519 = arith.mulf %2518, %2512 : vector<8x128xf32>
    %2520 = arith.addf %2492, %2519 : vector<8x128xf32>
    %c563 = arith.constant 563 : index
    %2521 = memref.load %arg3[%c563] : memref<606xf32, #tpu.memory_space<smem>>
    %2522 = vector.broadcast %2521 : f32 to vector<8x128xf32>
    %2523 = arith.mulf %2522, %2512 : vector<8x128xf32>
    %2524 = arith.addf %2496, %2523 : vector<8x128xf32>
    %c422 = arith.constant 422 : index
    %2525 = memref.load %arg3[%c422] : memref<606xf32, #tpu.memory_space<smem>>
    %2526 = vector.broadcast %2525 : f32 to vector<8x128xf32>
    %2527 = arith.mulf %2526, %1811 : vector<8x128xf32>
    %c423 = arith.constant 423 : index
    %2528 = memref.load %arg3[%c423] : memref<606xf32, #tpu.memory_space<smem>>
    %2529 = vector.broadcast %2528 : f32 to vector<8x128xf32>
    %2530 = arith.mulf %2529, %1819 : vector<8x128xf32>
    %2531 = arith.addf %2527, %2530 : vector<8x128xf32>
    %c424 = arith.constant 424 : index
    %2532 = memref.load %arg3[%c424] : memref<606xf32, #tpu.memory_space<smem>>
    %2533 = vector.broadcast %2532 : f32 to vector<8x128xf32>
    %2534 = arith.mulf %2533, %1827 : vector<8x128xf32>
    %2535 = arith.addf %2531, %2534 : vector<8x128xf32>
    %c468 = arith.constant 468 : index
    %2536 = memref.load %arg3[%c468] : memref<606xf32, #tpu.memory_space<smem>>
    %2537 = vector.broadcast %2536 : f32 to vector<8x128xf32>
    %2538 = arith.addf %2535, %2537 : vector<8x128xf32>
    %cst_83 = arith.constant 0.000000e+00 : f32
    %2539 = vector.broadcast %cst_83 : f32 to vector<8x128xf32>
    %2540 = arith.maximumf %2538, %2539 : vector<8x128xf32>
    %c500 = arith.constant 500 : index
    %2541 = memref.load %arg3[%c500] : memref<606xf32, #tpu.memory_space<smem>>
    %2542 = vector.broadcast %2541 : f32 to vector<8x128xf32>
    %2543 = arith.mulf %2542, %2540 : vector<8x128xf32>
    %2544 = arith.addf %2516, %2543 : vector<8x128xf32>
    %c532 = arith.constant 532 : index
    %2545 = memref.load %arg3[%c532] : memref<606xf32, #tpu.memory_space<smem>>
    %2546 = vector.broadcast %2545 : f32 to vector<8x128xf32>
    %2547 = arith.mulf %2546, %2540 : vector<8x128xf32>
    %2548 = arith.addf %2520, %2547 : vector<8x128xf32>
    %c564 = arith.constant 564 : index
    %2549 = memref.load %arg3[%c564] : memref<606xf32, #tpu.memory_space<smem>>
    %2550 = vector.broadcast %2549 : f32 to vector<8x128xf32>
    %2551 = arith.mulf %2550, %2540 : vector<8x128xf32>
    %2552 = arith.addf %2524, %2551 : vector<8x128xf32>
    %c425 = arith.constant 425 : index
    %2553 = memref.load %arg3[%c425] : memref<606xf32, #tpu.memory_space<smem>>
    %2554 = vector.broadcast %2553 : f32 to vector<8x128xf32>
    %2555 = arith.mulf %2554, %1811 : vector<8x128xf32>
    %c426 = arith.constant 426 : index
    %2556 = memref.load %arg3[%c426] : memref<606xf32, #tpu.memory_space<smem>>
    %2557 = vector.broadcast %2556 : f32 to vector<8x128xf32>
    %2558 = arith.mulf %2557, %1819 : vector<8x128xf32>
    %2559 = arith.addf %2555, %2558 : vector<8x128xf32>
    %c427 = arith.constant 427 : index
    %2560 = memref.load %arg3[%c427] : memref<606xf32, #tpu.memory_space<smem>>
    %2561 = vector.broadcast %2560 : f32 to vector<8x128xf32>
    %2562 = arith.mulf %2561, %1827 : vector<8x128xf32>
    %2563 = arith.addf %2559, %2562 : vector<8x128xf32>
    %c469 = arith.constant 469 : index
    %2564 = memref.load %arg3[%c469] : memref<606xf32, #tpu.memory_space<smem>>
    %2565 = vector.broadcast %2564 : f32 to vector<8x128xf32>
    %2566 = arith.addf %2563, %2565 : vector<8x128xf32>
    %cst_84 = arith.constant 0.000000e+00 : f32
    %2567 = vector.broadcast %cst_84 : f32 to vector<8x128xf32>
    %2568 = arith.maximumf %2566, %2567 : vector<8x128xf32>
    %c501 = arith.constant 501 : index
    %2569 = memref.load %arg3[%c501] : memref<606xf32, #tpu.memory_space<smem>>
    %2570 = vector.broadcast %2569 : f32 to vector<8x128xf32>
    %2571 = arith.mulf %2570, %2568 : vector<8x128xf32>
    %2572 = arith.addf %2544, %2571 : vector<8x128xf32>
    %c533 = arith.constant 533 : index
    %2573 = memref.load %arg3[%c533] : memref<606xf32, #tpu.memory_space<smem>>
    %2574 = vector.broadcast %2573 : f32 to vector<8x128xf32>
    %2575 = arith.mulf %2574, %2568 : vector<8x128xf32>
    %2576 = arith.addf %2548, %2575 : vector<8x128xf32>
    %c565 = arith.constant 565 : index
    %2577 = memref.load %arg3[%c565] : memref<606xf32, #tpu.memory_space<smem>>
    %2578 = vector.broadcast %2577 : f32 to vector<8x128xf32>
    %2579 = arith.mulf %2578, %2568 : vector<8x128xf32>
    %2580 = arith.addf %2552, %2579 : vector<8x128xf32>
    %c428 = arith.constant 428 : index
    %2581 = memref.load %arg3[%c428] : memref<606xf32, #tpu.memory_space<smem>>
    %2582 = vector.broadcast %2581 : f32 to vector<8x128xf32>
    %2583 = arith.mulf %2582, %1811 : vector<8x128xf32>
    %c429 = arith.constant 429 : index
    %2584 = memref.load %arg3[%c429] : memref<606xf32, #tpu.memory_space<smem>>
    %2585 = vector.broadcast %2584 : f32 to vector<8x128xf32>
    %2586 = arith.mulf %2585, %1819 : vector<8x128xf32>
    %2587 = arith.addf %2583, %2586 : vector<8x128xf32>
    %c430 = arith.constant 430 : index
    %2588 = memref.load %arg3[%c430] : memref<606xf32, #tpu.memory_space<smem>>
    %2589 = vector.broadcast %2588 : f32 to vector<8x128xf32>
    %2590 = arith.mulf %2589, %1827 : vector<8x128xf32>
    %2591 = arith.addf %2587, %2590 : vector<8x128xf32>
    %c470 = arith.constant 470 : index
    %2592 = memref.load %arg3[%c470] : memref<606xf32, #tpu.memory_space<smem>>
    %2593 = vector.broadcast %2592 : f32 to vector<8x128xf32>
    %2594 = arith.addf %2591, %2593 : vector<8x128xf32>
    %cst_85 = arith.constant 0.000000e+00 : f32
    %2595 = vector.broadcast %cst_85 : f32 to vector<8x128xf32>
    %2596 = arith.maximumf %2594, %2595 : vector<8x128xf32>
    %c502 = arith.constant 502 : index
    %2597 = memref.load %arg3[%c502] : memref<606xf32, #tpu.memory_space<smem>>
    %2598 = vector.broadcast %2597 : f32 to vector<8x128xf32>
    %2599 = arith.mulf %2598, %2596 : vector<8x128xf32>
    %2600 = arith.addf %2572, %2599 : vector<8x128xf32>
    %c534 = arith.constant 534 : index
    %2601 = memref.load %arg3[%c534] : memref<606xf32, #tpu.memory_space<smem>>
    %2602 = vector.broadcast %2601 : f32 to vector<8x128xf32>
    %2603 = arith.mulf %2602, %2596 : vector<8x128xf32>
    %2604 = arith.addf %2576, %2603 : vector<8x128xf32>
    %c566 = arith.constant 566 : index
    %2605 = memref.load %arg3[%c566] : memref<606xf32, #tpu.memory_space<smem>>
    %2606 = vector.broadcast %2605 : f32 to vector<8x128xf32>
    %2607 = arith.mulf %2606, %2596 : vector<8x128xf32>
    %2608 = arith.addf %2580, %2607 : vector<8x128xf32>
    %c431 = arith.constant 431 : index
    %2609 = memref.load %arg3[%c431] : memref<606xf32, #tpu.memory_space<smem>>
    %2610 = vector.broadcast %2609 : f32 to vector<8x128xf32>
    %2611 = arith.mulf %2610, %1811 : vector<8x128xf32>
    %c432 = arith.constant 432 : index
    %2612 = memref.load %arg3[%c432] : memref<606xf32, #tpu.memory_space<smem>>
    %2613 = vector.broadcast %2612 : f32 to vector<8x128xf32>
    %2614 = arith.mulf %2613, %1819 : vector<8x128xf32>
    %2615 = arith.addf %2611, %2614 : vector<8x128xf32>
    %c433 = arith.constant 433 : index
    %2616 = memref.load %arg3[%c433] : memref<606xf32, #tpu.memory_space<smem>>
    %2617 = vector.broadcast %2616 : f32 to vector<8x128xf32>
    %2618 = arith.mulf %2617, %1827 : vector<8x128xf32>
    %2619 = arith.addf %2615, %2618 : vector<8x128xf32>
    %c471 = arith.constant 471 : index
    %2620 = memref.load %arg3[%c471] : memref<606xf32, #tpu.memory_space<smem>>
    %2621 = vector.broadcast %2620 : f32 to vector<8x128xf32>
    %2622 = arith.addf %2619, %2621 : vector<8x128xf32>
    %cst_86 = arith.constant 0.000000e+00 : f32
    %2623 = vector.broadcast %cst_86 : f32 to vector<8x128xf32>
    %2624 = arith.maximumf %2622, %2623 : vector<8x128xf32>
    %c503 = arith.constant 503 : index
    %2625 = memref.load %arg3[%c503] : memref<606xf32, #tpu.memory_space<smem>>
    %2626 = vector.broadcast %2625 : f32 to vector<8x128xf32>
    %2627 = arith.mulf %2626, %2624 : vector<8x128xf32>
    %2628 = arith.addf %2600, %2627 : vector<8x128xf32>
    %c535 = arith.constant 535 : index
    %2629 = memref.load %arg3[%c535] : memref<606xf32, #tpu.memory_space<smem>>
    %2630 = vector.broadcast %2629 : f32 to vector<8x128xf32>
    %2631 = arith.mulf %2630, %2624 : vector<8x128xf32>
    %2632 = arith.addf %2604, %2631 : vector<8x128xf32>
    %c567 = arith.constant 567 : index
    %2633 = memref.load %arg3[%c567] : memref<606xf32, #tpu.memory_space<smem>>
    %2634 = vector.broadcast %2633 : f32 to vector<8x128xf32>
    %2635 = arith.mulf %2634, %2624 : vector<8x128xf32>
    %2636 = arith.addf %2608, %2635 : vector<8x128xf32>
    %c434 = arith.constant 434 : index
    %2637 = memref.load %arg3[%c434] : memref<606xf32, #tpu.memory_space<smem>>
    %2638 = vector.broadcast %2637 : f32 to vector<8x128xf32>
    %2639 = arith.mulf %2638, %1811 : vector<8x128xf32>
    %c435 = arith.constant 435 : index
    %2640 = memref.load %arg3[%c435] : memref<606xf32, #tpu.memory_space<smem>>
    %2641 = vector.broadcast %2640 : f32 to vector<8x128xf32>
    %2642 = arith.mulf %2641, %1819 : vector<8x128xf32>
    %2643 = arith.addf %2639, %2642 : vector<8x128xf32>
    %c436 = arith.constant 436 : index
    %2644 = memref.load %arg3[%c436] : memref<606xf32, #tpu.memory_space<smem>>
    %2645 = vector.broadcast %2644 : f32 to vector<8x128xf32>
    %2646 = arith.mulf %2645, %1827 : vector<8x128xf32>
    %2647 = arith.addf %2643, %2646 : vector<8x128xf32>
    %c472 = arith.constant 472 : index
    %2648 = memref.load %arg3[%c472] : memref<606xf32, #tpu.memory_space<smem>>
    %2649 = vector.broadcast %2648 : f32 to vector<8x128xf32>
    %2650 = arith.addf %2647, %2649 : vector<8x128xf32>
    %cst_87 = arith.constant 0.000000e+00 : f32
    %2651 = vector.broadcast %cst_87 : f32 to vector<8x128xf32>
    %2652 = arith.maximumf %2650, %2651 : vector<8x128xf32>
    %c504 = arith.constant 504 : index
    %2653 = memref.load %arg3[%c504] : memref<606xf32, #tpu.memory_space<smem>>
    %2654 = vector.broadcast %2653 : f32 to vector<8x128xf32>
    %2655 = arith.mulf %2654, %2652 : vector<8x128xf32>
    %2656 = arith.addf %2628, %2655 : vector<8x128xf32>
    %c536 = arith.constant 536 : index
    %2657 = memref.load %arg3[%c536] : memref<606xf32, #tpu.memory_space<smem>>
    %2658 = vector.broadcast %2657 : f32 to vector<8x128xf32>
    %2659 = arith.mulf %2658, %2652 : vector<8x128xf32>
    %2660 = arith.addf %2632, %2659 : vector<8x128xf32>
    %c568 = arith.constant 568 : index
    %2661 = memref.load %arg3[%c568] : memref<606xf32, #tpu.memory_space<smem>>
    %2662 = vector.broadcast %2661 : f32 to vector<8x128xf32>
    %2663 = arith.mulf %2662, %2652 : vector<8x128xf32>
    %2664 = arith.addf %2636, %2663 : vector<8x128xf32>
    %c437 = arith.constant 437 : index
    %2665 = memref.load %arg3[%c437] : memref<606xf32, #tpu.memory_space<smem>>
    %2666 = vector.broadcast %2665 : f32 to vector<8x128xf32>
    %2667 = arith.mulf %2666, %1811 : vector<8x128xf32>
    %c438 = arith.constant 438 : index
    %2668 = memref.load %arg3[%c438] : memref<606xf32, #tpu.memory_space<smem>>
    %2669 = vector.broadcast %2668 : f32 to vector<8x128xf32>
    %2670 = arith.mulf %2669, %1819 : vector<8x128xf32>
    %2671 = arith.addf %2667, %2670 : vector<8x128xf32>
    %c439 = arith.constant 439 : index
    %2672 = memref.load %arg3[%c439] : memref<606xf32, #tpu.memory_space<smem>>
    %2673 = vector.broadcast %2672 : f32 to vector<8x128xf32>
    %2674 = arith.mulf %2673, %1827 : vector<8x128xf32>
    %2675 = arith.addf %2671, %2674 : vector<8x128xf32>
    %c473 = arith.constant 473 : index
    %2676 = memref.load %arg3[%c473] : memref<606xf32, #tpu.memory_space<smem>>
    %2677 = vector.broadcast %2676 : f32 to vector<8x128xf32>
    %2678 = arith.addf %2675, %2677 : vector<8x128xf32>
    %cst_88 = arith.constant 0.000000e+00 : f32
    %2679 = vector.broadcast %cst_88 : f32 to vector<8x128xf32>
    %2680 = arith.maximumf %2678, %2679 : vector<8x128xf32>
    %c505 = arith.constant 505 : index
    %2681 = memref.load %arg3[%c505] : memref<606xf32, #tpu.memory_space<smem>>
    %2682 = vector.broadcast %2681 : f32 to vector<8x128xf32>
    %2683 = arith.mulf %2682, %2680 : vector<8x128xf32>
    %2684 = arith.addf %2656, %2683 : vector<8x128xf32>
    %c537 = arith.constant 537 : index
    %2685 = memref.load %arg3[%c537] : memref<606xf32, #tpu.memory_space<smem>>
    %2686 = vector.broadcast %2685 : f32 to vector<8x128xf32>
    %2687 = arith.mulf %2686, %2680 : vector<8x128xf32>
    %2688 = arith.addf %2660, %2687 : vector<8x128xf32>
    %c569 = arith.constant 569 : index
    %2689 = memref.load %arg3[%c569] : memref<606xf32, #tpu.memory_space<smem>>
    %2690 = vector.broadcast %2689 : f32 to vector<8x128xf32>
    %2691 = arith.mulf %2690, %2680 : vector<8x128xf32>
    %2692 = arith.addf %2664, %2691 : vector<8x128xf32>
    %c440 = arith.constant 440 : index
    %2693 = memref.load %arg3[%c440] : memref<606xf32, #tpu.memory_space<smem>>
    %2694 = vector.broadcast %2693 : f32 to vector<8x128xf32>
    %2695 = arith.mulf %2694, %1811 : vector<8x128xf32>
    %c441 = arith.constant 441 : index
    %2696 = memref.load %arg3[%c441] : memref<606xf32, #tpu.memory_space<smem>>
    %2697 = vector.broadcast %2696 : f32 to vector<8x128xf32>
    %2698 = arith.mulf %2697, %1819 : vector<8x128xf32>
    %2699 = arith.addf %2695, %2698 : vector<8x128xf32>
    %c442 = arith.constant 442 : index
    %2700 = memref.load %arg3[%c442] : memref<606xf32, #tpu.memory_space<smem>>
    %2701 = vector.broadcast %2700 : f32 to vector<8x128xf32>
    %2702 = arith.mulf %2701, %1827 : vector<8x128xf32>
    %2703 = arith.addf %2699, %2702 : vector<8x128xf32>
    %c474 = arith.constant 474 : index
    %2704 = memref.load %arg3[%c474] : memref<606xf32, #tpu.memory_space<smem>>
    %2705 = vector.broadcast %2704 : f32 to vector<8x128xf32>
    %2706 = arith.addf %2703, %2705 : vector<8x128xf32>
    %cst_89 = arith.constant 0.000000e+00 : f32
    %2707 = vector.broadcast %cst_89 : f32 to vector<8x128xf32>
    %2708 = arith.maximumf %2706, %2707 : vector<8x128xf32>
    %c506 = arith.constant 506 : index
    %2709 = memref.load %arg3[%c506] : memref<606xf32, #tpu.memory_space<smem>>
    %2710 = vector.broadcast %2709 : f32 to vector<8x128xf32>
    %2711 = arith.mulf %2710, %2708 : vector<8x128xf32>
    %2712 = arith.addf %2684, %2711 : vector<8x128xf32>
    %c538 = arith.constant 538 : index
    %2713 = memref.load %arg3[%c538] : memref<606xf32, #tpu.memory_space<smem>>
    %2714 = vector.broadcast %2713 : f32 to vector<8x128xf32>
    %2715 = arith.mulf %2714, %2708 : vector<8x128xf32>
    %2716 = arith.addf %2688, %2715 : vector<8x128xf32>
    %c570 = arith.constant 570 : index
    %2717 = memref.load %arg3[%c570] : memref<606xf32, #tpu.memory_space<smem>>
    %2718 = vector.broadcast %2717 : f32 to vector<8x128xf32>
    %2719 = arith.mulf %2718, %2708 : vector<8x128xf32>
    %2720 = arith.addf %2692, %2719 : vector<8x128xf32>
    %2721 = arith.addf %1811, %2712 : vector<8x128xf32>
    %c571 = arith.constant 571 : index
    %2722 = memref.load %arg3[%c571] : memref<606xf32, #tpu.memory_space<smem>>
    %2723 = vector.broadcast %2722 : f32 to vector<8x128xf32>
    %2724 = arith.addf %2721, %2723 : vector<8x128xf32>
    %2725 = arith.addf %1819, %2716 : vector<8x128xf32>
    %c572 = arith.constant 572 : index
    %2726 = memref.load %arg3[%c572] : memref<606xf32, #tpu.memory_space<smem>>
    %2727 = vector.broadcast %2726 : f32 to vector<8x128xf32>
    %2728 = arith.addf %2725, %2727 : vector<8x128xf32>
    %2729 = arith.addf %1827, %2720 : vector<8x128xf32>
    %c573 = arith.constant 573 : index
    %2730 = memref.load %arg3[%c573] : memref<606xf32, #tpu.memory_space<smem>>
    %2731 = vector.broadcast %2730 : f32 to vector<8x128xf32>
    %2732 = arith.addf %2729, %2731 : vector<8x128xf32>
    %2733 = arith.addf %2724, %2728 : vector<8x128xf32>
    %2734 = arith.addf %2733, %2732 : vector<8x128xf32>
    %cst_90 = arith.constant 0.333333343 : f32
    %2735 = vector.broadcast %cst_90 : f32 to vector<8x128xf32>
    %2736 = arith.mulf %2734, %2735 : vector<8x128xf32>
    %2737 = arith.subf %2724, %2736 : vector<8x128xf32>
    %2738 = arith.mulf %2737, %2737 : vector<8x128xf32>
    %2739 = arith.subf %2728, %2736 : vector<8x128xf32>
    %2740 = arith.mulf %2739, %2739 : vector<8x128xf32>
    %2741 = arith.addf %2738, %2740 : vector<8x128xf32>
    %2742 = arith.subf %2732, %2736 : vector<8x128xf32>
    %2743 = arith.mulf %2742, %2742 : vector<8x128xf32>
    %2744 = arith.addf %2741, %2743 : vector<8x128xf32>
    %cst_91 = arith.constant 0.333333343 : f32
    %2745 = vector.broadcast %cst_91 : f32 to vector<8x128xf32>
    %2746 = arith.mulf %2744, %2745 : vector<8x128xf32>
    %cst_92 = arith.constant 9.99999974E-6 : f32
    %2747 = vector.broadcast %cst_92 : f32 to vector<8x128xf32>
    %2748 = arith.addf %2746, %2747 : vector<8x128xf32>
    %2749 = math.rsqrt %2748 : vector<8x128xf32>
    %2750 = arith.subf %2724, %2736 : vector<8x128xf32>
    %2751 = arith.mulf %2750, %2749 : vector<8x128xf32>
    %c341 = arith.constant 341 : index
    %2752 = memref.load %arg3[%c341] : memref<606xf32, #tpu.memory_space<smem>>
    %2753 = vector.broadcast %2752 : f32 to vector<8x128xf32>
    %2754 = arith.mulf %2751, %2753 : vector<8x128xf32>
    %c344 = arith.constant 344 : index
    %2755 = memref.load %arg3[%c344] : memref<606xf32, #tpu.memory_space<smem>>
    %2756 = vector.broadcast %2755 : f32 to vector<8x128xf32>
    %2757 = arith.addf %2754, %2756 : vector<8x128xf32>
    %2758 = arith.subf %2728, %2736 : vector<8x128xf32>
    %2759 = arith.mulf %2758, %2749 : vector<8x128xf32>
    %c342 = arith.constant 342 : index
    %2760 = memref.load %arg3[%c342] : memref<606xf32, #tpu.memory_space<smem>>
    %2761 = vector.broadcast %2760 : f32 to vector<8x128xf32>
    %2762 = arith.mulf %2759, %2761 : vector<8x128xf32>
    %c345 = arith.constant 345 : index
    %2763 = memref.load %arg3[%c345] : memref<606xf32, #tpu.memory_space<smem>>
    %2764 = vector.broadcast %2763 : f32 to vector<8x128xf32>
    %2765 = arith.addf %2762, %2764 : vector<8x128xf32>
    %2766 = arith.subf %2732, %2736 : vector<8x128xf32>
    %2767 = arith.mulf %2766, %2749 : vector<8x128xf32>
    %c343 = arith.constant 343 : index
    %2768 = memref.load %arg3[%c343] : memref<606xf32, #tpu.memory_space<smem>>
    %2769 = vector.broadcast %2768 : f32 to vector<8x128xf32>
    %2770 = arith.mulf %2767, %2769 : vector<8x128xf32>
    %c346 = arith.constant 346 : index
    %2771 = memref.load %arg3[%c346] : memref<606xf32, #tpu.memory_space<smem>>
    %2772 = vector.broadcast %2771 : f32 to vector<8x128xf32>
    %2773 = arith.addf %2770, %2772 : vector<8x128xf32>
    %cst_93 = arith.constant dense<0.000000e+00> : vector<128xf32>
    %2774 = vector.multi_reduction <add>, %2757, %cst_93 [0] : vector<8x128xf32> to vector<128xf32>
    %2775 = vector.shape_cast %2774 : vector<128xf32> to vector<1x128xf32>
    %cst_94 = arith.constant 1.250000e-01 : f32
    %2776 = vector.broadcast %cst_94 : f32 to vector<1x128xf32>
    %2777 = arith.mulf %2775, %2776 : vector<1x128xf32>
    %cst_95 = arith.constant dense<0.000000e+00> : vector<128xf32>
    %2778 = vector.multi_reduction <add>, %2765, %cst_95 [0] : vector<8x128xf32> to vector<128xf32>
    %2779 = vector.shape_cast %2778 : vector<128xf32> to vector<1x128xf32>
    %cst_96 = arith.constant 1.250000e-01 : f32
    %2780 = vector.broadcast %cst_96 : f32 to vector<1x128xf32>
    %2781 = arith.mulf %2779, %2780 : vector<1x128xf32>
    %cst_97 = arith.constant dense<0.000000e+00> : vector<128xf32>
    %2782 = vector.multi_reduction <add>, %2773, %cst_97 [0] : vector<8x128xf32> to vector<128xf32>
    %2783 = vector.shape_cast %2782 : vector<128xf32> to vector<1x128xf32>
    %cst_98 = arith.constant 1.250000e-01 : f32
    %2784 = vector.broadcast %cst_98 : f32 to vector<1x128xf32>
    %2785 = arith.mulf %2783, %2784 : vector<1x128xf32>
    %c574 = arith.constant 574 : index
    %2786 = memref.load %arg3[%c574] : memref<606xf32, #tpu.memory_space<smem>>
    %2787 = vector.broadcast %2786 : f32 to vector<1x128xf32>
    %2788 = arith.mulf %2787, %2777 : vector<1x128xf32>
    %c575 = arith.constant 575 : index
    %2789 = memref.load %arg3[%c575] : memref<606xf32, #tpu.memory_space<smem>>
    %2790 = vector.broadcast %2789 : f32 to vector<1x128xf32>
    %2791 = arith.mulf %2790, %2781 : vector<1x128xf32>
    %2792 = arith.addf %2788, %2791 : vector<1x128xf32>
    %c576 = arith.constant 576 : index
    %2793 = memref.load %arg3[%c576] : memref<606xf32, #tpu.memory_space<smem>>
    %2794 = vector.broadcast %2793 : f32 to vector<1x128xf32>
    %2795 = arith.mulf %2794, %2785 : vector<1x128xf32>
    %2796 = arith.addf %2792, %2795 : vector<1x128xf32>
    %c598 = arith.constant 598 : index
    %2797 = memref.load %arg3[%c598] : memref<606xf32, #tpu.memory_space<smem>>
    %2798 = vector.broadcast %2797 : f32 to vector<1x128xf32>
    %2799 = arith.addf %2796, %2798 : vector<1x128xf32>
    %c0_99 = arith.constant 0 : index
    %c0_100 = arith.constant 0 : index
    %2800 = vector.load %arg4[%c0_99, %c0_100] : memref<8x128xf32, #tpu.memory_space<vmem>>, vector<1x128xf32>
    tpu.vector_store %arg4[%c0_99, %c0_100], %2799 {strides = array<i32>} : memref<8x128xf32, #tpu.memory_space<vmem>>, vector<1x128xf32>,
    %c577 = arith.constant 577 : index
    %2801 = memref.load %arg3[%c577] : memref<606xf32, #tpu.memory_space<smem>>
    %2802 = vector.broadcast %2801 : f32 to vector<1x128xf32>
    %2803 = arith.mulf %2802, %2777 : vector<1x128xf32>
    %c578 = arith.constant 578 : index
    %2804 = memref.load %arg3[%c578] : memref<606xf32, #tpu.memory_space<smem>>
    %2805 = vector.broadcast %2804 : f32 to vector<1x128xf32>
    %2806 = arith.mulf %2805, %2781 : vector<1x128xf32>
    %2807 = arith.addf %2803, %2806 : vector<1x128xf32>
    %c579 = arith.constant 579 : index
    %2808 = memref.load %arg3[%c579] : memref<606xf32, #tpu.memory_space<smem>>
    %2809 = vector.broadcast %2808 : f32 to vector<1x128xf32>
    %2810 = arith.mulf %2809, %2785 : vector<1x128xf32>
    %2811 = arith.addf %2807, %2810 : vector<1x128xf32>
    %c599 = arith.constant 599 : index
    %2812 = memref.load %arg3[%c599] : memref<606xf32, #tpu.memory_space<smem>>
    %2813 = vector.broadcast %2812 : f32 to vector<1x128xf32>
    %2814 = arith.addf %2811, %2813 : vector<1x128xf32>
    %c1_101 = arith.constant 1 : index
    %c0_102 = arith.constant 0 : index
    %2815 = vector.load %arg4[%c1_101, %c0_102] : memref<8x128xf32, #tpu.memory_space<vmem>>, vector<1x128xf32>
    tpu.vector_store %arg4[%c1_101, %c0_102], %2814 {strides = array<i32>} : memref<8x128xf32, #tpu.memory_space<vmem>>, vector<1x128xf32>,
    %c580 = arith.constant 580 : index
    %2816 = memref.load %arg3[%c580] : memref<606xf32, #tpu.memory_space<smem>>
    %2817 = vector.broadcast %2816 : f32 to vector<1x128xf32>
    %2818 = arith.mulf %2817, %2777 : vector<1x128xf32>
    %c581 = arith.constant 581 : index
    %2819 = memref.load %arg3[%c581] : memref<606xf32, #tpu.memory_space<smem>>
    %2820 = vector.broadcast %2819 : f32 to vector<1x128xf32>
    %2821 = arith.mulf %2820, %2781 : vector<1x128xf32>
    %2822 = arith.addf %2818, %2821 : vector<1x128xf32>
    %c582 = arith.constant 582 : index
    %2823 = memref.load %arg3[%c582] : memref<606xf32, #tpu.memory_space<smem>>
    %2824 = vector.broadcast %2823 : f32 to vector<1x128xf32>
    %2825 = arith.mulf %2824, %2785 : vector<1x128xf32>
    %2826 = arith.addf %2822, %2825 : vector<1x128xf32>
    %c600 = arith.constant 600 : index
    %2827 = memref.load %arg3[%c600] : memref<606xf32, #tpu.memory_space<smem>>
    %2828 = vector.broadcast %2827 : f32 to vector<1x128xf32>
    %2829 = arith.addf %2826, %2828 : vector<1x128xf32>
    %c2_103 = arith.constant 2 : index
    %c0_104 = arith.constant 0 : index
    %2830 = vector.load %arg4[%c2_103, %c0_104] : memref<8x128xf32, #tpu.memory_space<vmem>>, vector<1x128xf32>
    tpu.vector_store %arg4[%c2_103, %c0_104], %2829 {strides = array<i32>} : memref<8x128xf32, #tpu.memory_space<vmem>>, vector<1x128xf32>,
    %c583 = arith.constant 583 : index
    %2831 = memref.load %arg3[%c583] : memref<606xf32, #tpu.memory_space<smem>>
    %2832 = vector.broadcast %2831 : f32 to vector<1x128xf32>
    %2833 = arith.mulf %2832, %2777 : vector<1x128xf32>
    %c584 = arith.constant 584 : index
    %2834 = memref.load %arg3[%c584] : memref<606xf32, #tpu.memory_space<smem>>
    %2835 = vector.broadcast %2834 : f32 to vector<1x128xf32>
    %2836 = arith.mulf %2835, %2781 : vector<1x128xf32>
    %2837 = arith.addf %2833, %2836 : vector<1x128xf32>
    %c585 = arith.constant 585 : index
    %2838 = memref.load %arg3[%c585] : memref<606xf32, #tpu.memory_space<smem>>
    %2839 = vector.broadcast %2838 : f32 to vector<1x128xf32>
    %2840 = arith.mulf %2839, %2785 : vector<1x128xf32>
    %2841 = arith.addf %2837, %2840 : vector<1x128xf32>
    %c601 = arith.constant 601 : index
    %2842 = memref.load %arg3[%c601] : memref<606xf32, #tpu.memory_space<smem>>
    %2843 = vector.broadcast %2842 : f32 to vector<1x128xf32>
    %2844 = arith.addf %2841, %2843 : vector<1x128xf32>
    %c3_105 = arith.constant 3 : index
    %c0_106 = arith.constant 0 : index
    %2845 = vector.load %arg4[%c3_105, %c0_106] : memref<8x128xf32, #tpu.memory_space<vmem>>, vector<1x128xf32>
    tpu.vector_store %arg4[%c3_105, %c0_106], %2844 {strides = array<i32>} : memref<8x128xf32, #tpu.memory_space<vmem>>, vector<1x128xf32>,
    %c586 = arith.constant 586 : index
    %2846 = memref.load %arg3[%c586] : memref<606xf32, #tpu.memory_space<smem>>
    %2847 = vector.broadcast %2846 : f32 to vector<1x128xf32>
    %2848 = arith.mulf %2847, %2777 : vector<1x128xf32>
    %c587 = arith.constant 587 : index
    %2849 = memref.load %arg3[%c587] : memref<606xf32, #tpu.memory_space<smem>>
    %2850 = vector.broadcast %2849 : f32 to vector<1x128xf32>
    %2851 = arith.mulf %2850, %2781 : vector<1x128xf32>
    %2852 = arith.addf %2848, %2851 : vector<1x128xf32>
    %c588 = arith.constant 588 : index
    %2853 = memref.load %arg3[%c588] : memref<606xf32, #tpu.memory_space<smem>>
    %2854 = vector.broadcast %2853 : f32 to vector<1x128xf32>
    %2855 = arith.mulf %2854, %2785 : vector<1x128xf32>
    %2856 = arith.addf %2852, %2855 : vector<1x128xf32>
    %c602 = arith.constant 602 : index
    %2857 = memref.load %arg3[%c602] : memref<606xf32, #tpu.memory_space<smem>>
    %2858 = vector.broadcast %2857 : f32 to vector<1x128xf32>
    %2859 = arith.addf %2856, %2858 : vector<1x128xf32>
    %c4_107 = arith.constant 4 : index
    %c0_108 = arith.constant 0 : index
    %2860 = vector.load %arg4[%c4_107, %c0_108] : memref<8x128xf32, #tpu.memory_space<vmem>>, vector<1x128xf32>
    tpu.vector_store %arg4[%c4_107, %c0_108], %2859 {strides = array<i32>} : memref<8x128xf32, #tpu.memory_space<vmem>>, vector<1x128xf32>,
    %c589 = arith.constant 589 : index
    %2861 = memref.load %arg3[%c589] : memref<606xf32, #tpu.memory_space<smem>>
    %2862 = vector.broadcast %2861 : f32 to vector<1x128xf32>
    %2863 = arith.mulf %2862, %2777 : vector<1x128xf32>
    %c590 = arith.constant 590 : index
    %2864 = memref.load %arg3[%c590] : memref<606xf32, #tpu.memory_space<smem>>
    %2865 = vector.broadcast %2864 : f32 to vector<1x128xf32>
    %2866 = arith.mulf %2865, %2781 : vector<1x128xf32>
    %2867 = arith.addf %2863, %2866 : vector<1x128xf32>
    %c591 = arith.constant 591 : index
    %2868 = memref.load %arg3[%c591] : memref<606xf32, #tpu.memory_space<smem>>
    %2869 = vector.broadcast %2868 : f32 to vector<1x128xf32>
    %2870 = arith.mulf %2869, %2785 : vector<1x128xf32>
    %2871 = arith.addf %2867, %2870 : vector<1x128xf32>
    %c603 = arith.constant 603 : index
    %2872 = memref.load %arg3[%c603] : memref<606xf32, #tpu.memory_space<smem>>
    %2873 = vector.broadcast %2872 : f32 to vector<1x128xf32>
    %2874 = arith.addf %2871, %2873 : vector<1x128xf32>
    %c5_109 = arith.constant 5 : index
    %c0_110 = arith.constant 0 : index
    %2875 = vector.load %arg4[%c5_109, %c0_110] : memref<8x128xf32, #tpu.memory_space<vmem>>, vector<1x128xf32>
    tpu.vector_store %arg4[%c5_109, %c0_110], %2874 {strides = array<i32>} : memref<8x128xf32, #tpu.memory_space<vmem>>, vector<1x128xf32>,
    %c592 = arith.constant 592 : index
    %2876 = memref.load %arg3[%c592] : memref<606xf32, #tpu.memory_space<smem>>
    %2877 = vector.broadcast %2876 : f32 to vector<1x128xf32>
    %2878 = arith.mulf %2877, %2777 : vector<1x128xf32>
    %c593 = arith.constant 593 : index
    %2879 = memref.load %arg3[%c593] : memref<606xf32, #tpu.memory_space<smem>>
    %2880 = vector.broadcast %2879 : f32 to vector<1x128xf32>
    %2881 = arith.mulf %2880, %2781 : vector<1x128xf32>
    %2882 = arith.addf %2878, %2881 : vector<1x128xf32>
    %c594 = arith.constant 594 : index
    %2883 = memref.load %arg3[%c594] : memref<606xf32, #tpu.memory_space<smem>>
    %2884 = vector.broadcast %2883 : f32 to vector<1x128xf32>
    %2885 = arith.mulf %2884, %2785 : vector<1x128xf32>
    %2886 = arith.addf %2882, %2885 : vector<1x128xf32>
    %c604 = arith.constant 604 : index
    %2887 = memref.load %arg3[%c604] : memref<606xf32, #tpu.memory_space<smem>>
    %2888 = vector.broadcast %2887 : f32 to vector<1x128xf32>
    %2889 = arith.addf %2886, %2888 : vector<1x128xf32>
    %c6_111 = arith.constant 6 : index
    %c0_112 = arith.constant 0 : index
    %2890 = vector.load %arg4[%c6_111, %c0_112] : memref<8x128xf32, #tpu.memory_space<vmem>>, vector<1x128xf32>
    tpu.vector_store %arg4[%c6_111, %c0_112], %2889 {strides = array<i32>} : memref<8x128xf32, #tpu.memory_space<vmem>>, vector<1x128xf32>,
    %c595 = arith.constant 595 : index
    %2891 = memref.load %arg3[%c595] : memref<606xf32, #tpu.memory_space<smem>>
    %2892 = vector.broadcast %2891 : f32 to vector<1x128xf32>
    %2893 = arith.mulf %2892, %2777 : vector<1x128xf32>
    %c596 = arith.constant 596 : index
    %2894 = memref.load %arg3[%c596] : memref<606xf32, #tpu.memory_space<smem>>
    %2895 = vector.broadcast %2894 : f32 to vector<1x128xf32>
    %2896 = arith.mulf %2895, %2781 : vector<1x128xf32>
    %2897 = arith.addf %2893, %2896 : vector<1x128xf32>
    %c597 = arith.constant 597 : index
    %2898 = memref.load %arg3[%c597] : memref<606xf32, #tpu.memory_space<smem>>
    %2899 = vector.broadcast %2898 : f32 to vector<1x128xf32>
    %2900 = arith.mulf %2899, %2785 : vector<1x128xf32>
    %2901 = arith.addf %2897, %2900 : vector<1x128xf32>
    %c605 = arith.constant 605 : index
    %2902 = memref.load %arg3[%c605] : memref<606xf32, #tpu.memory_space<smem>>
    %2903 = vector.broadcast %2902 : f32 to vector<1x128xf32>
    %2904 = arith.addf %2901, %2903 : vector<1x128xf32>
    %c7_113 = arith.constant 7 : index
    %c0_114 = arith.constant 0 : index
    %2905 = vector.load %arg4[%c7_113, %c0_114] : memref<8x128xf32, #tpu.memory_space<vmem>>, vector<1x128xf32>
    tpu.vector_store %arg4[%c7_113, %c0_114], %2904 {strides = array<i32>} : memref<8x128xf32, #tpu.memory_space<vmem>>, vector<1x128xf32>,
    return
  }
  func.func @transform_0(%arg0: i32) -> (i32, i32, i32) {
    %c0_i32 = arith.constant 0 : i32
    %c0_i32_0 = arith.constant 0 : i32
    %c0_i32_1 = arith.constant 0 : i32
    return %c0_i32, %c0_i32_0, %arg0 : i32, i32, i32
  }
  func.func @transform_1(%arg0: i32) -> (i32, i32, i32) {
    %c0_i32 = arith.constant 0 : i32
    %c0_i32_0 = arith.constant 0 : i32
    %c0_i32_1 = arith.constant 0 : i32
    %c0_i32_2 = arith.constant 0 : i32
    return %c0_i32, %c0_i32_0, %c0_i32_1 : i32, i32, i32
  }
  func.func @transform_2(%arg0: i32) -> i32 {
    %c0_i32 = arith.constant 0 : i32
    %c0_i32_0 = arith.constant 0 : i32
    return %c0_i32 : i32
  }
  func.func @transform_3(%arg0: i32) -> (i32, i32) {
    %c0_i32 = arith.constant 0 : i32
    %c0_i32_0 = arith.constant 0 : i32
    return %c0_i32, %arg0 : i32, i32
  }
}

</mosaic_0001>

<bundles_post_ra>
// kernel: tpu_custom_call.1
= control target key start
LH: loop header
LB: loop body
LE: loop exit
PB: predicated region body
PF: predicated region fallthrough
CT: control target
= control target key end

     0   :  { %s6205_s0 = inlined_call_operand.vmem [shape: f32[3,8,128], index: 0, kind: input, shape index: {}]   ;;  %s6206_s1 = inlined_call_operand.vmem [shape: f32[3,8,1], index: 1, kind: input, shape index: {}]   ;;  %s6207_s2 = inlined_call_operand.hbm [shape: f32[606], index: 2, kind: input, shape index: {}]   ;;  %s6208_s3 = inlined_call_operand.hbm [shape: f32[8,128], index: 3, kind: output, shape index: {}]  }
   0x1   :  { %6335 = sst [smem:[#allocation84_spill]] %s6208_s3 }
   0x2   :  { %8 = vsyncpa [#allocation4], 0 }
   0x3   :  { %9 = vsyncpa [#allocation3], 0  ;;  %s19_s14 = sshll.u32 %s6207_s2, 4  ;;  %s3536_s15 = smov [#allocation2]   ;;  %s20_s14 = int_to_ptr.hbm [resolvable:$true] %s19_s14 }
   0x4   :  { %22 = dma.hbm_to_smem %s20_s14, 80, %s3536_s15, [#allocation4]  }
   0x5   :  { %3532 = dma.done.wait [#allocation4], 80  }
   0x6   :  { %3533 = vsyncadd [#allocation4], 4294967216 }
   0x7   :  { %27 = sfence }
   0x8   :  { %v29_v0 = vld [vmem:[%s6206_s1] sm:$0xff]  ;;  %v2841_v1 = vld [vmem:[%s6206_s1 + $0x10] sm:$0xff]  ;;  %v3537_v2 = vmov 0   ;;  %v2839_v3 = vld [vmem:[%s6206_s1 + $0x8] sm:$0xff]  ;;  %s3571_s21 = sld [smem:[#allocation2]] }
   0x9   :  { %3450 = vset.pattern.permute.xlu0 %v3537_v2  ;;  %3451 = vset.pattern.permute.xlu1 %v3537_v2  ;;  %s3573_s22 = sld [smem:[#allocation2 + $0x1]]  ;;  %v28_v6 = vld [vmem:[%s6205_s0] sm:$0xff]  ;;  %v2840_v7 = vld [vmem:[%s6205_s0 + $0x10] sm:$0xff]  ;;  %v2838_v15 = vld [vmem:[%s6205_s0 + $0x8] sm:$0xff] }
   0xa   :  { %32 = vperm.xlu0 %3450, %v29_v0   ;;  %52 = vperm.xlu1 %3451, %v2841_v1   ;;  %s3575_s23 = sld [smem:[#allocation2 + $0x2]] }
   0xb   :  { %s3577_s24 = sld [smem:[#allocation2 + $0x3]] }
   0xc   :  { %s3579_s25 = sld [smem:[#allocation2 + $0x4]] }
   0xd   :  { %s3581_s26 = sld [smem:[#allocation2 + $0x5]] }
   0xe   :  { %s3583_s27 = sld [smem:[#allocation2 + $0x6]]  ;;  %v57_v8 = vstv %s3571_s21 }
   0xf   :  { %s3585_s28 = sld [smem:[#allocation2 + $0x7]]  ;;  %v60_v16 = vstv %s3573_s22 }
  0x10   :  { %s3587_s1 = sld [smem:[#allocation2 + $0x8]]  ;;  %v64_v17 = vstv %s3575_s23 }
  0x11   :  { %s3589_s29 = sld [smem:[#allocation2 + $0x9]]  ;;  %v71_v9 = vstv %s3577_s24 }
  0x12   :  { %42 = vperm.xlu0 %3450, %v2839_v3   ;;  %s3591_s30 = sld [smem:[#allocation2 + $0xa]]  ;;  %v74_v19 = vstv %s3579_s25 }
  0x13   :  { %s3593_s4 = sld [smem:[#allocation2 + $0xb]]  ;;  %v78_v20 = vstv %s3581_s26 }
  0x14   :  { %s3595_s5 = sld [smem:[#allocation2 + $0xc]]  ;;  %v85_v10 = vstv %s3583_s27 }
  0x15   :  { %s3597_s6 = sld [smem:[#allocation2 + $0xd]]  ;;  %v88_v21 = vstv %s3585_s28 }
  0x16   :  { %s3599_s7 = sld [smem:[#allocation2 + $0xf]]  ;;  %v92_v30 = vstv %s3587_s1 }
  0x17   :  { %s3601_s8 = sld [smem:[#allocation2 + $0xe]]  ;;  %v99_v13 = vstv %s3589_s29 }
  0x18   :  { %s3603_s9 = sld [smem:[#allocation2 + $0x10]]  ;;  %v102_v22 = vstv %s3591_s30 }
  0x19   :  { %s3605_s10 = sld [smem:[#allocation2 + $0x11]]  ;;  %v106_v23 = vstv %s3593_s4 }
  0x1a   :  { %v113_v14 = vstv %s3595_s5  ;;  %s3627_s17 = sld [smem:[#allocation2 + $0x27]] }
  0x1b   :  { %s3634_s18 = sld [smem:[#allocation2 + $0x28]]  ;;  %v116_v24 = vstv %s3597_s6 }
  0x1c   :  { %v127_v18 = vstv %s3599_s7  ;;  %s3640_s19 = sld [smem:[#allocation2 + $0x29]] }
  0x1d   :  { %v120_v25 = vstv %s3601_s8  ;;  %s3644_s0 = sld [smem:[#allocation2 + $0x24]] }
  0x1e   :  { %v130_v26 = vstv %s3603_s9  ;;  %s3652_s2 = sld [smem:[#allocation2 + $0x25]] }
  0x1f   :  { %v134_v31 = vstv %s3605_s10  ;;  %s3655_s20 = sld [smem:[#allocation2 + $0x26]] }
  0x20   :  { %v110_v51 = vstv %s3627_s17  ;;  %s3711_s21 = sld [smem:[#allocation2 + $0x12]] }
  0x21   :  { %v124_v58 = vstv %s3634_s18  ;;  %s3715_s22 = sld [smem:[#allocation2 + $0x13]] }
  0x22   :  { %v138_v59 = vstv %s3640_s19  ;;  %s3720_s23 = sld [smem:[#allocation2 + $0x14]] }
  0x23   :  { %v68_v60 = vstv %s3644_s0  ;;  %s3724_s24 = sld [smem:[#allocation2 + $0x2a]] }
  0x24   :  { %v82_v0 = vstv %s3652_s2  ;;  %s3726_s25 = sld [smem:[#allocation2 + $0x15]] }
  0x25   :  { %v96_v3 = vstv %s3655_s20  ;;  %s3729_s26 = sld [smem:[#allocation2 + $0x16]] }
  0x26   :  { %s3732_s27 = sld [smem:[#allocation2 + $0x17]] }
  0x27   :  { %s3734_s28 = sld [smem:[#allocation2 + $0x2b]] }
  0x28   :  { %s3737_s1 = sld [smem:[#allocation2 + $0x18]] }
  0x29   :  { %s3739_s29 = sld [smem:[#allocation2 + $0x19]] }
  0x2a   :  { %s3742_s30 = sld [smem:[#allocation2 + $0x1a]] }
  0x2b   :  { %s3744_s4 = sld [smem:[#allocation2 + $0x2c]] }
  0x2c   :  { %s3746_s5 = sld [smem:[#allocation2 + $0x1b]] }
  0x2d   :  { %s3748_s6 = sld [smem:[#allocation2 + $0x1c]] }
  0x2e   :  { %s3750_s7 = sld [smem:[#allocation2 + $0x1d]] }
  0x2f   :  { %s3752_s8 = sld [smem:[#allocation2 + $0x2d]] }
  0x30   :  { %s3756_s9 = sld [smem:[#allocation2 + $0x1e]] }
  0x31   :  { %s3758_s10 = sld [smem:[#allocation2 + $0x1f]] }
  0x32   :  { %s3760_s11 = sld [smem:[#allocation2 + $0x20]] }
  0x33   :  { %s3762_s12 = sld [smem:[#allocation2 + $0x2e]] }
  0x34   :  { %s3764_s13 = sld [smem:[#allocation2 + $0x21]] }
  0x35   :  { %s3766_s14 = sld [smem:[#allocation2 + $0x22]] }
  0x36   :  { %s3768_s15 = sld [smem:[#allocation2 + $0x23]] }
  0x37   :  { %s3770_s16 = sld [smem:[#allocation2 + $0x2f]] }
  0x38   :  { %s3772_s17 = sld [smem:[#allocation2 + $0x30]] }
  0x39   :  { %s3774_s18 = sld [smem:[#allocation2 + $0x33]] }
  0x3a   :  { %s3778_s19 = sld [smem:[#allocation2 + $0x31]] }
  0x3b   :  { %s3782_s0 = sld [smem:[#allocation2 + $0x34]] }
  0x3c   :  { %s3787_s2 = sld [smem:[#allocation2 + $0x32]] }
  0x3d   :  { %s3791_s20 = sld [smem:[#allocation2 + $0x35]] }
  0x3e   :  { %s3795_s3 = sld [smem:[#allocation2 + $0x3c]] }
  0x3f   :  { %6336 = sst [smem:[#allocation8_spill]] %s3774_s18 }
  0x41   :  { %6337 = sst [smem:[#allocation9_spill]] %s3782_s0 }
  0x43   :  { %6338 = sst [smem:[#allocation10_spill]] %s3791_s20 }
  0x44   :  { %6339 = sst [smem:[#allocation11_spill]] %s3795_s3 }
  0x45   :  { %s3805_s20 = sld [smem:[#allocation2 + $0x3e]] }
  0x4b   :  { %6341 = sst [smem:[#allocation13_spill]] %s3805_s20 }
  0x7c   :  { %v33_v4 = vpop.permute.xlu0 %32  ;;  %v53_v5 = vpop.permute.xlu1 %52 }
  0x7d   :  { %v3616_v11 = vadd.f32 %v33_v4, %v28_v6  ;;  %v3618_v12 = vadd.f32 %v2840_v7, %v53_v5 }
  0x7f   :  { %v58_v28 = vmul.f32 %v57_v8, %v3616_v11  ;;  %v65_v29 = vmul.f32 %v64_v17, %v3618_v12  ;;  %v72_v33 = vmul.f32 %v71_v9, %v3616_v11  ;;  %v79_v34 = vmul.f32 %v78_v20, %v3618_v12 }
  0x80   :  { %v86_v35 = vmul.f32 %v85_v10, %v3616_v11  ;;  %v100_v36 = vmul.f32 %v99_v13, %v3616_v11  ;;  %v107_v37 = vmul.f32 %v106_v23, %v3618_v12  ;;  %v114_v38 = vmul.f32 %v113_v14, %v3616_v11 }
  0x81   :  { %v121_v39 = vmul.f32 %v120_v25, %v3618_v12  ;;  %v128_v45 = vmul.f32 %v127_v18, %v3616_v11  ;;  %v135_v47 = vmul.f32 %v134_v31, %v3618_v12  ;;  %v93_v53 = vmul.f32 %v92_v30, %v3618_v12 }
  0x84   :  { %v43_v27 = vpop.permute.xlu0 %42 }
  0x85   :  { %v3648_v32 = vadd.f32 %v2838_v15, %v43_v27 }
  0x87   :  { %v61_v40 = vmul.f32 %v60_v16, %v3648_v32  ;;  %v75_v41 = vmul.f32 %v74_v19, %v3648_v32  ;;  %v89_v42 = vmul.f32 %v88_v21, %v3648_v32  ;;  %v103_v43 = vmul.f32 %v102_v22, %v3648_v32 }
  0x88   :  { %v117_v44 = vmul.f32 %v116_v24, %v3648_v32  ;;  %v131_v46 = vmul.f32 %v130_v26, %v3648_v32 }
  0x89   :  { %v62_v48 = vadd.f32 %v61_v40, %v58_v28  ;;  %v76_v49 = vadd.f32 %v75_v41, %v72_v33  ;;  %v104_v50 = vadd.f32 %v103_v43, %v100_v36  ;;  %v90_v52 = vadd.f32 %v89_v42, %v86_v35 }
  0x8a   :  { %v118_v54 = vadd.f32 %v117_v44, %v114_v38  ;;  %v132_v55 = vadd.f32 %v131_v46, %v128_v45 }
  0x8b   :  { %v66_v56 = vadd.f32 %v65_v29, %v62_v48  ;;  %v108_v57 = vadd.f32 %v107_v37, %v104_v50  ;;  %v80_v61 = vadd.f32 %v79_v34, %v76_v49  ;;  %v94_v2 = vadd.f32 %v93_v53, %v90_v52 }
  0x8c   :  { %v122_v62 = vadd.f32 %v121_v39, %v118_v54  ;;  %v136_v63 = vadd.f32 %v135_v47, %v132_v55 }
  0x8d   :  { %v3675_v1 = vadd.f32 %v110_v51, %v108_v57  ;;  %v69_v6 = vadd.f32 %v68_v60, %v66_v56  ;;  %v83_v10 = vadd.f32 %v82_v0, %v80_v61  ;;  %v3690_v20 = vadd.f32 %v96_v3, %v94_v2 }
  0x8e   :  { %v3678_v4 = vadd.f32 %v124_v58, %v122_v62  ;;  %v3680_v5 = vadd.f32 %v138_v59, %v136_v63 }
  0x8f   :  { %v140_v7 = vperm.slane %v3675_v1, 0  ;;  %v148_v8 = vperm.slane %v3675_v1, 1  ;;  %v156_v9 = vperm.slane %v3675_v1, 2  ;;  %v164_v19 = vperm.slane %v3675_v1, 3 }
  0x90   :  { %v142_v13 = vperm.slane %v3678_v4, 0  ;;  %v145_v14 = vperm.slane %v3680_v5, 0  ;;  %v150_v15 = vperm.slane %v3678_v4, 1  ;;  %v158_v18 = vperm.slane %v3678_v4, 2 }
  0x91   :  { %v141_v16 = vmul.f32 %v140_v7, %v69_v6  ;;  %v149_v17 = vmul.f32 %v148_v8, %v69_v6  ;;  %v153_v23 = vperm.slane %v3680_v5, 1  ;;  %v157_v24 = vmul.f32 %v156_v9, %v69_v6 }
  0x92   :  { %v143_v21 = vmul.f32 %v142_v13, %v83_v10  ;;  %v151_v22 = vmul.f32 %v150_v15, %v83_v10  ;;  %v159_v25 = vmul.f32 %v158_v18, %v83_v10  ;;  %v166_v26 = vperm.slane %v3678_v4, 3 }
  0x93   :  { %v146_v28 = vmul.f32 %v145_v14, %v3690_v20  ;;  %v172_v30 = vperm.slane %v3675_v1, 4  ;;  %v161_v31 = vperm.slane %v3680_v5, 2  ;;  %v165_v33 = vmul.f32 %v164_v19, %v69_v6 }
  0x94   :  { %v144_v27 = vadd.f32 %v143_v21, %v141_v16  ;;  %v152_v29 = vadd.f32 %v151_v22, %v149_v17  ;;  %v167_v34 = vmul.f32 %v166_v26, %v83_v10  ;;  %v174_v35 = vperm.slane %v3678_v4, 4 }
  0x95   :  { %v154_v36 = vmul.f32 %v153_v23, %v3690_v20  ;;  %v169_v37 = vperm.slane %v3680_v5, 3  ;;  %v160_v39 = vadd.f32 %v159_v25, %v157_v24  ;;  %v173_v40 = vmul.f32 %v172_v30, %v69_v6 }
  0x96   :  { %v3700_v38 = vadd.f32 %v146_v28, %v144_v27  ;;  %v175_v41 = vmul.f32 %v174_v35, %v83_v10  ;;  %v180_v43 = vperm.slane %v3675_v1, 5  ;;  %v182_v44 = vperm.slane %v3678_v4, 5 }
  0x97   :  { %v3702_v42 = vadd.f32 %v154_v36, %v152_v29  ;;  %v188_v45 = vperm.slane %v3675_v1, 6  ;;  %v162_v46 = vmul.f32 %v161_v31, %v3690_v20  ;;  %v168_v47 = vadd.f32 %v167_v34, %v165_v33 }
  0x98   :  { %v177_v48 = vperm.slane %v3680_v5, 4  ;;  %v190_v49 = vperm.slane %v3678_v4, 6  ;;  %v170_v50 = vmul.f32 %v169_v37, %v3690_v20  ;;  %v181_v51 = vmul.f32 %v180_v43, %v69_v6 }
  0x99   :  { %v183_v52 = vmul.f32 %v182_v44, %v83_v10  ;;  %v163_v53 = vadd.f32 %v162_v46, %v160_v39  ;;  %v176_v54 = vadd.f32 %v175_v41, %v173_v40  ;;  %v185_v55 = vperm.slane %v3680_v5, 5 }
  0x9a   :  { %v196_v56 = vperm.slane %v3675_v1, 7  ;;  %v189_v57 = vmul.f32 %v188_v45, %v69_v6  ;;  %v191_v58 = vmul.f32 %v190_v49, %v83_v10  ;;  %v198_v59 = vperm.slane %v3678_v4, 7 }
  0x9b   :  { %v204_v60 = vmax.f32 %v3700_v38, %v3702_v42  ;;  %v171_v61 = vadd.f32 %v170_v50, %v168_v47  ;;  %v178_v62 = vmul.f32 %v177_v48, %v3690_v20  ;;  %v193_v63 = vperm.slane %v3680_v5, 6 }
  0x9c   :  { %v184_v0 = vadd.f32 %v183_v52, %v181_v51  ;;  %v197_v1 = vmul.f32 %v196_v56, %v69_v6  ;;  %v199_v2 = vmul.f32 %v198_v59, %v83_v10  ;;  %v186_v4 = vmul.f32 %v185_v55, %v3690_v20 }
  0x9d   :  { %v205_v3 = vmax.f32 %v204_v60, %v163_v53  ;;  %v179_v7 = vadd.f32 %v178_v62, %v176_v54  ;;  %v192_v8 = vadd.f32 %v191_v58, %v189_v57  ;;  %v201_v9 = vperm.slane %v3680_v5, 7 }
  0x9e   :  { %v187_v14 = vadd.f32 %v186_v4, %v184_v0  ;;  %v194_v6 = vmul.f32 %v193_v63, %v3690_v20  ;;  %v200_v10 = vadd.f32 %v199_v2, %v197_v1  ;;  %v255_v40 = vstv %s3715_s22  ;;  %s3801_s22 = sld [smem:[#allocation2 + $0x3d]] }
  0x9f   :  { %v206_v13 = vmax.f32 %v205_v3, %v171_v61  ;;  %v202_v17 = vmul.f32 %v201_v9, %v3690_v20  ;;  %v252_v44 = vstv %s3711_s21  ;;  %v256_v46 = vmul.f32 %v255_v40, %v3648_v32  ;;  %s3812_s21 = sld [smem:[#allocation2 + $0x9c]] }
  0xa0   :  { %v195_v16 = vadd.f32 %v194_v6, %v192_v8  ;;  %v269_v47 = vstv %s3729_s26  ;;  %v259_v49 = vstv %s3720_s23  ;;  %v253_v51 = vmul.f32 %v252_v44, %v3616_v11  ;;  %s3816_s26 = sld [smem:[#allocation2 + $0xbc]] }
  0xa1   :  { %v207_v15 = vmax.f32 %v206_v13, %v179_v7  ;;  %v203_v5 = vadd.f32 %v202_v17, %v200_v10  ;;  %v266_v52 = vstv %s3726_s25  ;;  %v270_v55 = vmul.f32 %v269_v47, %v3648_v32  ;;  %s3823_s23 = sld [smem:[#allocation2 + $0x3f]] }
  0xa2   :  { %v257_v57 = vadd.f32 %v256_v46, %v253_v51  ;;  %v260_v58 = vmul.f32 %v259_v49, %v3618_v12  ;;  %v273_v59 = vstv %s3732_s27  ;;  %v280_v60 = vstv %s3737_s1  ;;  %s3828_s25 = sld [smem:[#allocation2 + $0xdc]] }
  0xa3   :  { %v208_v18 = vmax.f32 %v207_v15, %v187_v14  ;;  %v267_v62 = vmul.f32 %v266_v52, %v3616_v11  ;;  %v287_v1 = vstv %s3742_s30  ;;  %v274_v4 = vmul.f32 %v273_v59, %v3618_v12  ;;  %s3838_s27 = sld [smem:[#allocation2 + $0x40]] }
  0xa4   :  { %6340 = sst [smem:[#allocation12_spill]] %s3801_s22  ;;  %v261_v9 = vadd.f32 %v260_v58, %v257_v57  ;;  %v288_v10 = vmul.f32 %v287_v1, %v3618_v12  ;;  %v277_v17 = vstv %s3734_s28 }
  0xa5   :  { %v209_v19 = vmax.f32 %v208_v18, %v195_v16  ;;  %6342 = sst [smem:[#allocation14_spill]] %s3812_s21  ;;  %v271_v3 = vadd.f32 %v270_v55, %v267_v62 }
  0xa6   :  { %6343 = sst [smem:[#allocation15_spill]] %s3816_s26 }
  0xa7   :  { %v210_v21 = vmax.f32 %v209_v19, %v203_v5  ;;  %6344 = sst [smem:[#allocation16_spill]] %s3823_s23  ;;  %v275_v15 = vadd.f32 %v274_v4, %v271_v3 }
  0xa8   :  { %6345 = sst [smem:[#allocation17_spill]] %s3828_s25 }
  0xa9   :  { %v211_v22 = vsub.f32 %v3700_v38, %v210_v21  ;;  %v214_v20 = vsub.f32 %v3702_v42, %v210_v21  ;;  %v217_v23 = vsub.f32 %v163_v53, %v210_v21  ;;  %v220_v24 = vsub.f32 %v171_v61, %v210_v21  ;;  %6347 = sst [smem:[#allocation19_spill]] %s3838_s27 }
  0xaa   :  { %v223_v28 = vsub.f32 %v179_v7, %v210_v21  ;;  %v226_v30 = vsub.f32 %v187_v14, %v210_v21  ;;  %v229_v33 = vsub.f32 %v195_v16, %v210_v21  ;;  %v232_v35 = vsub.f32 %v203_v5, %v210_v21  ;;  %s3842_s1 = sld [smem:[#allocation2 + $0x41]] }
  0xab   :  { %v212_v25 = vmul.f32 1.442695, %v211_v22  ;;  %v215_v26 = vmul.f32 1.442695, %v214_v20  ;;  %v218_v27 = vmul.f32 1.442695, %v217_v23  ;;  %v283_v53 = vstv %s3739_s29 }
  0xac   :  { %v221_v29 = vmul.f32 1.442695, %v220_v24  ;;  %v224_v31 = vmul.f32 1.442695, %v223_v28  ;;  %v227_v34 = vmul.f32 1.442695, %v226_v30  ;;  %v284_v63 = vmul.f32 %v283_v53, %v3648_v32 }
  0xad   :  { %3452 = vpow2.f32 %v212_v25  ;;  %v230_v38 = vmul.f32 1.442695, %v229_v33  ;;  %v233_v42 = vmul.f32 1.442695, %v232_v35  ;;  %s3833_s29 = sld [smem:[#allocation2 + $0xfc]]  ;;  %v281_v7 = vmul.f32 %v280_v60, %v3616_v11 }
  0xae   :  { %3454 = vpow2.f32 %v215_v26  ;;  %v263_v14 = vstv %s3724_s24  ;;  %s3847_s30 = sld [smem:[#allocation2 + $0x9d]]  ;;  %v291_v5 = vstv %s3744_s4  ;;  %v3863_v19 = vadd.f32 %v277_v17, %v275_v15 }
  0xaf   :  { %3456 = vpow2.f32 %v218_v27  ;;  %v285_v6 = vadd.f32 %v284_v63, %v281_v7  ;;  %s3849_s23 = sld [smem:[#allocation2 + $0xbd]]  ;;  %v3853_v16 = vadd.f32 %v263_v14, %v261_v9 }
  0xb0   :  { %3458 = vpow2.f32 %v221_v29  ;;  %6348 = sst [smem:[#allocation20_spill]] %s3842_s1  ;;  %v316_v35 = vperm.slane %v3863_v19, 0  ;;  %v333_v44 = vperm.slane %v3863_v19, 6  ;;  %v336_v53 = vperm.slane %v3863_v19, 7 }
  0xb1   :  { %3460 = vpow2.f32 %v224_v31  ;;  %s3856_s27 = sld [smem:[#allocation2 + $0xfd]]  ;;  %v289_v18 = vadd.f32 %v288_v10, %v285_v6  ;;  %v293_v21 = vperm.slane %v3853_v16, 0  ;;  %v295_v22 = vperm.slane %v3853_v16, 1 }
  0xb2   :  { %3462 = vpow2.f32 %v227_v34  ;;  %s3858_s1 = sld [smem:[#allocation2 + $0x42]]  ;;  %v298_v20 = vperm.slane %v3853_v16, 2  ;;  %v301_v23 = vperm.slane %v3853_v16, 3  ;;  %v304_v26 = vperm.slane %v3853_v16, 4 }
  0xb3   :  { %v3776_v36 = vpop.eup %3452  ;;  %3464 = vpow2.f32 %v230_v38  ;;  %6346 = sst [smem:[#allocation18_spill]] %s3833_s29  ;;  %v3873_v25 = vadd.f32 %v291_v5, %v289_v18  ;;  %v307_v27 = vperm.slane %v3853_v16, 5  ;;  %v310_v28 = vperm.slane %v3853_v16, 6 }
  0xb4   :  { %v3780_v37 = vpop.eup %3454  ;;  %3466 = vpow2.f32 %v233_v42  ;;  %6349 = sst [smem:[#allocation21_spill]] %s3847_s30  ;;  %v313_v33 = vperm.slane %v3853_v16, 7  ;;  %v318_v38 = vperm.slane %v3863_v19, 1 }
  0xb5   :  { %v235_v39 = vadd.f32 %v3780_v37, %v3776_v36  ;;  %v3789_v41 = vpop.eup %3456  ;;  %6350 = sst [smem:[#allocation22_spill]] %s3849_s23  ;;  %v350_v9 = vperm.slane %v3873_v25, 4  ;;  %v353_v17 = vperm.slane %v3873_v25, 5  ;;  %v356_v18 = vperm.slane %v3873_v25, 6 }
  0xb6   :  { %v3797_v45 = vpop.eup %3458  ;;  %s3851_s29 = sld [smem:[#allocation2 + $0xdd]] }
  0xb7   :  { %v236_v43 = vadd.f32 %v3789_v41, %v235_v39  ;;  %v3807_v50 = vpop.eup %3460  ;;  %6352 = sst [smem:[#allocation24_spill]] %s3856_s27  ;;  %v321_v39 = vperm.slane %v3863_v19, 2 }
  0xb8   :  { %v3818_v56 = vpop.eup %3462  ;;  %6353 = sst [smem:[#allocation25_spill]] %s3858_s1 }
  0xb9   :  { %v237_v48 = vadd.f32 %v3797_v45, %v236_v43  ;;  %v3830_v0 = vpop.eup %3464  ;;  %s3861_s24 = sld [smem:[#allocation2 + $0x43]]  ;;  %v330_v43 = vperm.slane %v3863_v19, 5 }
  0xba   :  { %v3840_v8 = vpop.eup %3466  ;;  %s3865_s30 = sld [smem:[#allocation2 + $0x44]] }
  0xbb   :  { %v238_v54 = vadd.f32 %v3807_v50, %v237_v48  ;;  %s3871_s28 = sld [smem:[#allocation2 + $0x9e]] }
  0xbc   :  { %6351 = sst [smem:[#allocation23_spill]] %s3851_s29 }
  0xbd   :  { %v239_v61 = vadd.f32 %v3818_v56, %v238_v54  ;;  %s3878_s4 = sld [smem:[#allocation2 + $0xbe]] }
  0xbf   :  { %v240_v2 = vadd.f32 %v3830_v0, %v239_v61  ;;  %6354 = sst [smem:[#allocation26_spill]] %s3861_s24  ;;  %v344_v61 = vperm.slane %v3873_v25, 2 }
  0xc0   :  { %6355 = sst [smem:[#allocation27_spill]] %s3865_s30 }
  0xc1   :  { %v241_v13 = vadd.f32 %v3840_v8, %v240_v2  ;;  %6356 = sst [smem:[#allocation28_spill]] %s3871_s28 }
  0xc2   :  { %s3884_s28 = sld [smem:[#allocation2 + $0xde]] }
  0xc3   :  { %3468 = vrcp.f32 %v241_v13  ;;  %6357 = sst [smem:[#allocation29_spill]] %s3878_s4 }
  0xc4   :  { %s3890_s30 = sld [smem:[#allocation2 + $0xfe]] }
  0xc5   :  { %s3894_s4 = sld [smem:[#allocation2 + $0x45]] }
  0xc8   :  { %6358 = sst [smem:[#allocation30_spill]] %s3884_s28 }
  0xc9   :  { %v3469_v24 = vpop.eup %3468  ;;  %s3900_s28 = sld [smem:[#allocation2 + $0x46]] }
  0xca   :  { %v243_v29 = vmul.f32 %v3469_v24, %v3776_v36  ;;  %v244_v30 = vmul.f32 %v3469_v24, %v3780_v37  ;;  %v245_v31 = vmul.f32 %v3469_v24, %v3789_v41  ;;  %v246_v34 = vmul.f32 %v3469_v24, %v3797_v45  ;;  %6359 = sst [smem:[#allocation31_spill]] %s3890_s30 }
  0xcb   :  { %v324_v37 = vperm.slane %v3863_v19, 3  ;;  %v327_v41 = vperm.slane %v3863_v19, 4  ;;  %6360 = sst [smem:[#allocation32_spill]] %s3894_s4  ;;  %v247_v42 = vmul.f32 %v3469_v24, %v3807_v50  ;;  %v339_v45 = vperm.slane %v3873_v25, 0 }
  0xcc   :  { %v294_v40 = vmul.f32 %v293_v21, %v243_v29  ;;  %v296_v36 = vmul.f32 %v295_v22, %v244_v30  ;;  %v299_v47 = vmul.f32 %v298_v20, %v245_v31  ;;  %v317_v48 = vmul.f32 %v316_v35, %v243_v29  ;;  %s3902_s30 = sld [smem:[#allocation2 + $0x47]] }
  0xcd   :  { %v319_v49 = vmul.f32 %v318_v38, %v244_v30  ;;  %v248_v51 = vmul.f32 %v3469_v24, %v3818_v56  ;;  %v302_v52 = vmul.f32 %v301_v23, %v246_v34  ;;  %v341_v50 = vperm.slane %v3873_v25, 1  ;;  %s3907_s4 = sld [smem:[#allocation2 + $0x9f]] }
  0xce   :  { %v297_v46 = vadd.f32 %v296_v36, %v294_v40  ;;  %v322_v57 = vmul.f32 %v321_v39, %v245_v31  ;;  %v340_v58 = vmul.f32 %v339_v45, %v243_v29  ;;  %v249_v59 = vmul.f32 %v3469_v24, %v3830_v0 }
  0xcf   :  { %6361 = sst [smem:[#allocation33_spill]] %s3900_s28  ;;  %v320_v55 = vadd.f32 %v319_v49, %v317_v48  ;;  %v342_v60 = vmul.f32 %v341_v50, %v244_v30  ;;  %v347_v56 = vperm.slane %v3873_v25, 3  ;;  %v305_v63 = vmul.f32 %v304_v26, %v247_v42 }
  0xd0   :  { %v300_v54 = vadd.f32 %v299_v47, %v297_v46  ;;  %s3909_s28 = sld [smem:[#allocation2 + $0xbf]]  ;;  %v325_v2 = vmul.f32 %v324_v37, %v246_v34  ;;  %v250_v3 = vmul.f32 %v3469_v24, %v3840_v8  ;;  %v345_v7 = vmul.f32 %v344_v61, %v245_v31 }
  0xd1   :  { %v323_v1 = vadd.f32 %v322_v57, %v320_v55  ;;  %v343_v4 = vadd.f32 %v342_v60, %v340_v58  ;;  %v308_v13 = vmul.f32 %v307_v27, %v248_v51  ;;  %v328_v6 = vmul.f32 %v327_v41, %v247_v42 }
  0xd2   :  { %6362 = sst [smem:[#allocation34_spill]] %s3902_s30  ;;  %v303_v62 = vadd.f32 %v302_v52, %v300_v54  ;;  %v348_v15 = vmul.f32 %v347_v56, %v246_v34  ;;  %v311_v5 = vmul.f32 %v310_v28, %v249_v59  ;;  %v331_v21 = vmul.f32 %v330_v43, %v248_v51 }
  0xd3   :  { %6363 = sst [smem:[#allocation35_spill]] %s3907_s4  ;;  %v326_v14 = vadd.f32 %v325_v2, %v323_v1  ;;  %v346_v10 = vadd.f32 %v345_v7, %v343_v4  ;;  %v351_v20 = vmul.f32 %v350_v9, %v247_v42  ;;  %v359_v23 = vperm.slane %v3873_v25, 7 }
  0xd4   :  { %s3914_s30 = sld [smem:[#allocation2 + $0xdf]]  ;;  %v306_v0 = vadd.f32 %v305_v63, %v303_v62  ;;  %v363_v24 = vstv %s3746_s5  ;;  %v314_v27 = vmul.f32 %v313_v33, %v250_v3  ;;  %v334_v29 = vmul.f32 %v333_v44, %v249_v59 }
  0xd5   :  { %s3916_s4 = sld [smem:[#allocation2 + $0xff]]  ;;  %v329_v19 = vadd.f32 %v328_v6, %v326_v14  ;;  %v349_v22 = vadd.f32 %v348_v15, %v346_v10  ;;  %v354_v31 = vmul.f32 %v353_v17, %v248_v51  ;;  %v377_v34 = vstv %s3756_s9 }
  0xd6   :  { %6364 = sst [smem:[#allocation36_spill]] %s3909_s28  ;;  %v309_v8 = vadd.f32 %v308_v13, %v306_v0  ;;  %v391_v35 = vstv %s3764_s13  ;;  %v337_v39 = vmul.f32 %v336_v53, %v250_v3  ;;  %v366_v40 = vstv %s3748_s6 }
  0xd7   :  { %s3920_s28 = sld [smem:[#allocation2 + $0x48]]  ;;  %v332_v28 = vadd.f32 %v331_v21, %v329_v19  ;;  %v352_v30 = vadd.f32 %v351_v20, %v349_v22  ;;  %v357_v33 = vmul.f32 %v356_v18, %v249_v59  ;;  %v380_v36 = vstv %s3758_s10 }
  0xd8   :  { %v312_v26 = vadd.f32 %v311_v5, %v309_v8  ;;  %s3945_s5 = sld [smem:[#allocation2 + $0x4b]]  ;;  %v394_v37 = vstv %s3766_s14  ;;  %v360_v46 = vmul.f32 %v359_v23, %v250_v3  ;;  %v370_v47 = vstv %s3750_s7 }
  0xd9   :  { %v335_v38 = vadd.f32 %v334_v29, %v332_v28  ;;  %v355_v16 = vadd.f32 %v354_v31, %v352_v30  ;;  %s3951_s9 = sld [smem:[#allocation2 + $0x4d]]  ;;  %v384_v48 = vstv %s3760_s11  ;;  %v398_v53 = vstv %s3768_s15 }
  0xda   :  { %6365 = sst [smem:[#allocation37_spill]] %s3914_s30  ;;  %v315_v25 = vadd.f32 %v314_v27, %v312_v26  ;;  %v374_v61 = vstv %s3752_s8  ;;  %v388_v56 = vstv %s3762_s12  ;;  %v402_v62 = vstv %s3770_s16 }
  0xdb   :  { %6366 = sst [smem:[#allocation38_spill]] %s3916_s4  ;;  %v338_v41 = vadd.f32 %v337_v39, %v335_v38  ;;  %v358_v45 = vadd.f32 %v357_v33, %v355_v16  ;;  %v432_v22 = vstv %s3772_s17  ;;  %v435_v20 = vstv %s3774_s18 }
  0xdc   :  { %s3922_s30 = sld [smem:[#allocation2 + $0x49]]  ;;  %v364_v42 = vmul.f32 %v363_v24, %v315_v25  ;;  %v378_v43 = vmul.f32 %v377_v34, %v315_v25  ;;  %v392_v44 = vmul.f32 %v391_v35, %v315_v25  ;;  %v439_v23 = vstv %s3778_s19 }
  0xdd   :  { %6367 = sst [smem:[#allocation39_spill]] %s3920_s28  ;;  %v367_v49 = vmul.f32 %v366_v40, %v338_v41  ;;  %v381_v51 = vmul.f32 %v380_v36, %v338_v41  ;;  %v395_v52 = vmul.f32 %v394_v37, %v338_v41  ;;  %v361_v50 = vadd.f32 %v360_v46, %v358_v45 }
  0xde   :  { %s3926_s4 = sld [smem:[#allocation2 + $0x4a]]  ;;  %v442_v24 = vstv %s3782_s0  ;;  %v446_v26 = vstv %s3787_s2  ;;  %v452_v28 = vstv %s3795_s3  ;;  %v455_v29 = vstv %s3801_s22 }
  0xdf   :  { %s3930_s28 = sld [smem:[#allocation2 + $0xa0]]  ;;  %v368_v54 = vadd.f32 %v367_v49, %v364_v42  ;;  %v382_v55 = vadd.f32 %v381_v51, %v378_v43  ;;  %v396_v57 = vadd.f32 %v395_v52, %v392_v44  ;;  %v371_v58 = vmul.f32 %v370_v47, %v361_v50 }
  0xe0   :  { %6375 = sst [smem:[#allocation47_spill]] %s3951_s9  ;;  %v385_v59 = vmul.f32 %v384_v48, %v361_v50  ;;  %v399_v60 = vmul.f32 %v398_v53, %v361_v50  ;;  %v459_v30 = vstv %s3805_s20  ;;  %v463_v31 = vstv %s3812_s21 }
  0xe1   :  { %s3955_s6 = sld [smem:[#allocation2 + $0xa1]]  ;;  %v372_v63 = vadd.f32 %v371_v58, %v368_v54  ;;  %v467_v34 = vstv %s3816_s26  ;;  %v470_v35 = vstv %s3828_s25  ;;  %v491_v33 = vstv %s3849_s23 }
  0xe2   :  { %6368 = sst [smem:[#allocation40_spill]] %s3922_s30  ;;  %v386_v1 = vadd.f32 %v385_v59, %v382_v55  ;;  %v400_v2 = vadd.f32 %v399_v60, %v396_v57  ;;  %v495_v36 = vstv %s3851_s29  ;;  %v499_v41 = vstv %s3856_s27 }
  0xe3   :  { %s3934_s30 = sld [smem:[#allocation2 + $0xc0]]  ;;  %v375_v3 = vadd.f32 %v374_v61, %v372_v63  ;;  %v503_v42 = vstv %s3858_s1  ;;  %v506_v43 = vstv %s3861_s24 }
  0xe4   :  { %6369 = sst [smem:[#allocation41_spill]] %s3926_s4  ;;  %v389_v4 = vadd.f32 %v388_v56, %v386_v1  ;;  %v403_v7 = vadd.f32 %v402_v62, %v400_v2  ;;  %v584_v2 = vstv %s3945_s5 }
  0xe5   :  { %6370 = sst [smem:[#allocation42_spill]] %s3930_s28  ;;  %v404_v9 = vadd.f32 %v375_v3, %v3616_v11 }
  0xe6   :  { %s3938_s4 = sld [smem:[#allocation2 + $0xe0]]  ;;  %v405_v0 = vadd.f32 %v389_v4, %v3648_v32  ;;  %v406_v13 = vadd.f32 %v403_v7, %v3618_v12  ;;  %v591_v4 = vstv %s3951_s9 }
  0xe7   :  { %s3942_s28 = sld [smem:[#allocation2 + $0x100]] }
  0xe8   :  { %6376 = sst [smem:[#allocation48_spill]] %s3955_s6  ;;  %v407_v14 = vadd.f32 %v405_v0, %v404_v9 }
  0xe9   :  { %6371 = sst [smem:[#allocation43_spill]] %s3934_s30  ;;  %v572_v63 = vstv %s3934_s30 }
  0xea   :  { %s3958_s10 = sld [smem:[#allocation2 + $0xc1]]  ;;  %v408_v6 = vadd.f32 %v407_v14, %v406_v13 }
  0xeb   :  { %s3960_s13 = sld [smem:[#allocation2 + $0xe1]] }
  0xec   :  { %6372 = sst [smem:[#allocation44_spill]] %s3938_s4  ;;  %v409_v10 = vmul.f32 0.33333334, %v408_v6 }
  0xed   :  { %6373 = sst [smem:[#allocation45_spill]] %s3942_s28 }
  0xee   :  { %s3949_s4 = sld [smem:[#allocation2 + $0x4c]]  ;;  %v3998_v11 = vsub.f32 %v404_v9, %v409_v10  ;;  %v4000_v32 = vsub.f32 %v405_v0, %v409_v10  ;;  %v4002_v12 = vsub.f32 %v406_v13, %v409_v10  ;;  %v580_v9 = vstv %s3942_s28 }
  0xef   :  { %s3962_s14 = sld [smem:[#allocation2 + $0x101]] }
  0xf0   :  { %6377 = sst [smem:[#allocation49_spill]] %s3958_s10  ;;  %v411_v15 = vmul.f32 %v3998_v11, %v3998_v11  ;;  %v413_v17 = vmul.f32 %v4000_v32, %v4000_v32  ;;  %v416_v8 = vmul.f32 %v4002_v12, %v4002_v12 }
  0xf1   :  { %6378 = sst [smem:[#allocation50_spill]] %s3960_s13 }
  0xf2   :  { %s3964_s7 = sld [smem:[#allocation2 + $0x4e]]  ;;  %v414_v18 = vadd.f32 %v413_v17, %v411_v15 }
  0xf3   :  { %s3969_s11 = sld [smem:[#allocation2 + $0x4f]] }
  0xf4   :  { %6374 = sst [smem:[#allocation46_spill]] %s3949_s4  ;;  %v417_v5 = vadd.f32 %v416_v8, %v414_v18  ;;  %v587_v3 = vstv %s3949_s4 }
  0xf5   :  { %6379 = sst [smem:[#allocation51_spill]] %s3962_s14 }
  0xf6   :  { %s3971_s15 = sld [smem:[#allocation2 + $0x50]]  ;;  %v418_v19 = vmul.f32 0.33333334, %v417_v5 }
  0xf7   :  { %s3973_s13 = sld [smem:[#allocation2 + $0xa2]] }
  0xf8   :  { %6380 = sst [smem:[#allocation52_spill]] %s3964_s7  ;;  %v4030_v21 = vadd.f32 1e-05, %v418_v19 }
  0xf9   :  { %6381 = sst [smem:[#allocation53_spill]] %s3969_s11 }
  0xfa   :  { %s3975_s14 = sld [smem:[#allocation2 + $0xc2]]  ;;  %3470 = vrsqrt.f32 %v4030_v21  ;;  %vm426_vm0 = vweird.f32 %v4030_v21 }
  0xfb   :  { %s3977_s10 = sld [smem:[#allocation2 + $0xe2]] }
  0xfc   :  { %6382 = sst [smem:[#allocation54_spill]] %s3971_s15 }
  0xfd   :  { %6383 = sst [smem:[#allocation55_spill]] %s3973_s13 }
  0xfe   :  { %s3981_s8 = sld [smem:[#allocation2 + $0x102]] }
  0xff   :  { %s3983_s12 = sld [smem:[#allocation2 + $0x51]] }
 0x100   :  { %6384 = sst [smem:[#allocation56_spill]] %s3975_s14  ;;  %v3471_v37 = vpop.eup %3470 }
 0x101   :  { %6385 = sst [smem:[#allocation57_spill]] %s3977_s10  ;;  %v421_v45 = vmul.f32 %v3471_v37, %v4030_v21  ;;  %vm427_vm1 = vweird.f32 %v3471_v37 }
 0x102   :  { %s3986_s16 = sld [smem:[#allocation2 + $0x52]]  ;;  %vm428_vm2 = vmor %vm426_vm0, %vm427_vm1 }
 0x103   :  { %s3988_s13 = sld [smem:[#allocation2 + $0x53]]  ;;  %v422_v53 = vmul.f32 %v3471_v37, %v421_v45 }
 0x104   :  { %6386 = sst [smem:[#allocation58_spill]] %s3981_s8 }
 0x105   :  { %6387 = sst [smem:[#allocation59_spill]] %s3983_s12  ;;  %v423_v61 = vmul.f32 0.5, %v422_v53 }
 0x106   :  { %s3990_s15 = sld [smem:[#allocation2 + $0xa3]] }
 0x107   :  { %s3992_s14 = sld [smem:[#allocation2 + $0xc3]]  ;;  %v424_v7 = vsub.f32 1.5, %v423_v61 }
 0x108   :  { %6388 = sst [smem:[#allocation60_spill]] %s3986_s16 }
 0x109   :  { %6389 = sst [smem:[#allocation61_spill]] %s3988_s13  ;;  %v425_v17 = vmul.f32 %v3471_v37, %v424_v7 }
 0x10a   :  { %s3994_s10 = sld [smem:[#allocation2 + $0xe3]] }
 0x10b   :  { %s3996_s11 = sld [smem:[#allocation2 + $0x103]]  ;;  %v429_v7 = vsel %vm428_vm2, %v3471_v37, %v425_v17 }
 0x10c   :  { %6390 = sst [smem:[#allocation62_spill]] %s3990_s15  ;;  %v430_v21 = vmul.f32 %v429_v7, %v3998_v11  ;;  %v437_v19 = vmul.f32 %v429_v7, %v4000_v32  ;;  %v444_v14 = vmul.f32 %v429_v7, %v4002_v12 }
 0x10d   :  { %6391 = sst [smem:[#allocation63_spill]] %s3992_s14 }
 0x10e   :  { %s4004_s8 = sld [smem:[#allocation2 + $0x54]]  ;;  %v433_v11 = vmul.f32 %v432_v22, %v430_v21  ;;  %v440_v32 = vmul.f32 %v439_v23, %v437_v19  ;;  %v447_v12 = vmul.f32 %v446_v26, %v444_v14 }
 0x10f   :  { %s4006_s16 = sld [smem:[#allocation2 + $0x55]] }
 0x110   :  { %6392 = sst [smem:[#allocation64_spill]] %s3994_s10  ;;  %v4167_v22 = vadd.f32 %v435_v20, %v433_v11  ;;  %v4171_v23 = vadd.f32 %v442_v24, %v440_v32 }
 0x111   :  { %6393 = sst [smem:[#allocation65_spill]] %s3996_s11 }
 0x112   :  { %s4012_s14 = sld [smem:[#allocation2 + $0x56]]  ;;  %v453_v24 = vmul.f32 %v452_v28, %v4167_v22  ;;  %v504_v28 = vmul.f32 %v503_v42, %v4167_v22 }
 0x113   :  { %s4014_s10 = sld [smem:[#allocation2 + $0xa4]] }
 0x114   :  { %6394 = sst [smem:[#allocation66_spill]] %s4004_s8 }
 0x115   :  { %6395 = sst [smem:[#allocation67_spill]] %s4006_s16 }
 0x116   :  { %s4018_s11 = sld [smem:[#allocation2 + $0xc4]] }
 0x117   :  { %s4020_s16 = sld [smem:[#allocation2 + $0xe4]] }
 0x118   :  { %6396 = sst [smem:[#allocation68_spill]] %s4012_s14 }
 0x119   :  { %6397 = sst [smem:[#allocation69_spill]] %s4014_s10 }
 0x11a   :  { %s4022_s8 = sld [smem:[#allocation2 + $0x104]] }
 0x11b   :  { %s6401_s15 = sld [smem:[#allocation10_spill]] }
 0x11c   :  { %6398 = sst [smem:[#allocation70_spill]] %s4018_s11 }
 0x11d   :  { %6399 = sst [smem:[#allocation71_spill]] %s4020_s16 }
 0x11e   :  { %s4024_s14 = sld [smem:[#allocation2 + $0x57]] }
 0x11f   :  { %s4026_s10 = sld [smem:[#allocation2 + $0x58]] }
 0x120   :  { %6400 = sst [smem:[#allocation72_spill]] %s4022_s8 }
 0x121   :  { %s4028_s13 = sld [smem:[#allocation2 + $0x59]]  ;;  %v449_v27 = vstv %s6401_s15 }
 0x122   :  { %s4032_s16 = sld [smem:[#allocation2 + $0xa5]]  ;;  %v4175_v26 = vadd.f32 %v449_v27, %v447_v12  ;;  %v456_v27 = vmul.f32 %v455_v29, %v4171_v23  ;;  %v507_v29 = vmul.f32 %v506_v43, %v4171_v23 }
 0x123   :  { %s4034_s11 = sld [smem:[#allocation2 + $0xc5]] }
 0x124   :  { %6402 = sst [smem:[#allocation73_spill]] %s4024_s14  ;;  %v460_v11 = vmul.f32 %v459_v30, %v4175_v26  ;;  %v457_v30 = vadd.f32 %v456_v27, %v453_v24  ;;  %v508_v19 = vadd.f32 %v507_v29, %v504_v28 }
 0x125   :  { %6403 = sst [smem:[#allocation74_spill]] %s4026_s10 }
 0x126   :  { %s4037_s8 = sld [smem:[#allocation2 + $0xe5]] }
 0x127   :  { %6404 = sst [smem:[#allocation75_spill]] %s4028_s13 }
 0x128   :  { %6405 = sst [smem:[#allocation76_spill]] %s4032_s16 }
 0x129   :  { %6406 = sst [smem:[#allocation77_spill]] %s4034_s11 }
 0x12a   :  { %s6408_s14 = sld [smem:[#allocation18_spill]] }
 0x12b   :  { %s6409_s10 = sld [smem:[#allocation16_spill]] }
 0x12c   :  { %6407 = sst [smem:[#allocation78_spill]] %s4037_s8 }
 0x12d   :  { %s6410_s12 = sld [smem:[#allocation19_spill]] }
 0x12e   :  { %s4042_s13 = sld [smem:[#allocation2 + $0x105]] }
 0x12f   :  { %s6412_s7 = sld [smem:[#allocation20_spill]] }
 0x130   :  { %s6413_s6 = sld [smem:[#allocation21_spill]]  ;;  %v473_v25 = vstv %s6408_s14 }
 0x131   :  { %s4048_s11 = sld [smem:[#allocation2 + $0x5a]]  ;;  %v476_v38 = vstv %s6409_s10 }
 0x132   :  { %s6414_s8 = sld [smem:[#allocation27_spill]]  ;;  %v477_v32 = vmul.f32 %v476_v38, %v4167_v22 }
 0x133   :  { %s4054_s18 = sld [smem:[#allocation2 + $0x5b]]  ;;  %v479_v39 = vstv %s6410_s12 }
 0x134   :  { %6411 = sst [smem:[#allocation79_spill]] %s4042_s13  ;;  %v480_v12 = vmul.f32 %v479_v39, %v4171_v23 }
 0x135   :  { %s6415_s13 = sld [smem:[#allocation28_spill]]  ;;  %v483_v40 = vstv %s6412_s7 }
 0x136   :  { %s6416_s15 = sld [smem:[#allocation29_spill]]  ;;  %v487_v16 = vstv %s6413_s6  ;;  %v484_v21 = vmul.f32 %v483_v40, %v4175_v26  ;;  %v481_v42 = vadd.f32 %v480_v12, %v477_v32 }
 0x137   :  { %s4060_s0 = sld [smem:[#allocation2 + $0x5c]]  ;;  %v719_v14 = vstv %s4048_s11 }
 0x138   :  { %s6417_s3 = sld [smem:[#allocation32_spill]]  ;;  %v510_v44 = vstv %s6414_s8 }
 0x139   :  { %s6418_s20 = sld [smem:[#allocation30_spill]]  ;;  %v722_v8 = vstv %s4054_s18  ;;  %v511_v38 = vmul.f32 %v510_v44, %v4175_v26 }
 0x13a   :  { %s6419_s21 = sld [smem:[#allocation31_spill]] }
 0x13b   :  { %s4066_s22 = sld [smem:[#allocation2 + $0xa6]]  ;;  %v514_v46 = vstv %s6415_s13  ;;  %v512_v32 = vadd.f32 %v511_v38, %v508_v19 }
 0x13c   :  { %s6421_s26 = sld [smem:[#allocation33_spill]]  ;;  %v518_v47 = vstv %s6416_s15 }
 0x13d   :  { %s6422_s14 = sld [smem:[#allocation34_spill]]  ;;  %v726_v20 = vstv %s4060_s0 }
 0x13e   :  { %s6423_s25 = sld [smem:[#allocation35_spill]]  ;;  %v530_v48 = vstv %s6417_s3 }
 0x13f   :  { %s6424_s12 = sld [smem:[#allocation36_spill]]  ;;  %v522_v49 = vstv %s6418_s20  ;;  %v531_v39 = vmul.f32 %v530_v48, %v4167_v22  ;;  %v461_v48 = vadd.f32 %v460_v11, %v457_v30  ;;  %v588_v11 = vmul.f32 %v587_v3, %v4171_v23 }
 0x140   :  { %s4072_s10 = sld [smem:[#allocation2 + $0xc6]]  ;;  %v526_v51 = vstv %s6419_s21 }
 0x141   :  { %6420 = sst [smem:[#allocation20_spill]] %s4066_s22 }
 0x142   :  { %s6426_s23 = sld [smem:[#allocation37_spill]]  ;;  %v533_v52 = vstv %s6421_s26 }
 0x143   :  { %s6427_s29 = sld [smem:[#allocation38_spill]]  ;;  %v537_v50 = vstv %s6422_s14  ;;  %v534_v40 = vmul.f32 %v533_v52, %v4171_v23 }
 0x144   :  { %s6428_s6 = sld [smem:[#allocation39_spill]]  ;;  %v541_v54 = vstv %s6423_s25  ;;  %v538_v43 = vmul.f32 %v537_v50, %v4175_v26  ;;  %v485_v50 = vadd.f32 %v484_v21, %v481_v42 }
 0x145   :  { %s6429_s22 = sld [smem:[#allocation40_spill]]  ;;  %v545_v55 = vstv %s6424_s12  ;;  %v535_v24 = vadd.f32 %v534_v40, %v531_v39 }
 0x146   :  { %6425 = sst [smem:[#allocation32_spill]] %s4072_s10  ;;  %v488_v19 = vadd.f32 %v487_v16, %v485_v50 }
 0x147   :  { %s4079_s27 = sld [smem:[#allocation2 + $0xe6]]  ;;  %v539_v12 = vadd.f32 %v538_v43, %v535_v24 }
 0x148   :  { %s6431_s24 = sld [smem:[#allocation41_spill]]  ;;  %v549_v57 = vstv %s6426_s23 }
 0x149   :  { %s6432_s8 = sld [smem:[#allocation42_spill]]  ;;  %v553_v58 = vstv %s6427_s29 }
 0x14a   :  { %s4084_s10 = sld [smem:[#allocation2 + $0x106]]  ;;  %v557_v59 = vstv %s6428_s6 }
 0x14b   :  { %s6434_s1 = sld [smem:[#allocation44_spill]]  ;;  %v560_v60 = vstv %s6429_s22  ;;  %v558_v44 = vmul.f32 %v557_v59, %v4167_v22  ;;  %v585_v59 = vmul.f32 %v584_v2, %v4167_v22  ;;  %v515_v2 = vadd.f32 %v514_v46, %v512_v32 }
 0x14c   :  { %s4089_s15 = sld [smem:[#allocation2 + $0x5d]]  ;;  %v561_v52 = vmul.f32 %v560_v60, %v4171_v23  ;;  %v464_v60 = vadd.f32 %v463_v31, %v461_v48  ;;  %v489_v46 = vmax.f32 %v488_v19, 0.0 }
 0x14d   :  { %6430 = sst [smem:[#allocation33_spill]] %s4079_s27  ;;  %v589_v3 = vadd.f32 %v588_v11, %v585_v59  ;;  %v516_v30 = vmax.f32 %v515_v2, 0.0 }
 0x14e   :  { %s6436_s27 = sld [smem:[#allocation48_spill]]  ;;  %v564_v56 = vstv %s6431_s24  ;;  %v562_v28 = vadd.f32 %v561_v52, %v558_v44  ;;  %v465_v31 = vmax.f32 %v464_v60, 0.0  ;;  %v492_v42 = vmul.f32 %v491_v33, %v489_v46 }
 0x14f   :  { %s4095_s20 = sld [smem:[#allocation2 + $0x5e]]  ;;  %v568_v62 = vstv %s6432_s8  ;;  %v565_v27 = vmul.f32 %v564_v56, %v4175_v26  ;;  %v592_v56 = vmul.f32 %v591_v4, %v4175_v26  ;;  %v542_v4 = vadd.f32 %v541_v54, %v539_v12 }
 0x150   :  { %6433 = sst [smem:[#allocation80_spill]] %s4084_s10  ;;  %v468_v54 = vmul.f32 %v467_v34, %v465_v31  ;;  %v471_v39 = vmul.f32 %v470_v35, %v465_v31  ;;  %v496_v43 = vmul.f32 %v495_v36, %v489_v46  ;;  %v519_v44 = vmul.f32 %v518_v47, %v516_v30 }
 0x151   :  { %s6440_s13 = sld [smem:[#allocation52_spill]]  ;;  %v576_v1 = vstv %s6434_s1  ;;  %v566_v29 = vadd.f32 %v565_v27, %v562_v28  ;;  %v543_v40 = vmax.f32 %v542_v4, 0.0  ;;  %v523_v34 = vmul.f32 %v522_v49, %v516_v30 }
 0x152   :  { %6435 = sst [smem:[#allocation81_spill]] %s4089_s15  ;;  %v527_v35 = vmul.f32 %v526_v51, %v516_v30  ;;  %v493_v33 = vadd.f32 %v492_v42, %v468_v54  ;;  %v497_v36 = vadd.f32 %v496_v43, %v471_v39 }
 0x153   :  { %s6441_s14 = sld [smem:[#allocation53_spill]]  ;;  %v550_v48 = vmul.f32 %v549_v57, %v543_v40  ;;  %v569_v47 = vadd.f32 %v568_v62, %v566_v29 }
 0x154   :  { %s6442_s25 = sld [smem:[#allocation54_spill]]  ;;  %v595_v0 = vstv %s6436_s27  ;;  %v520_v57 = vadd.f32 %v519_v44, %v493_v33  ;;  %v524_v52 = vadd.f32 %v523_v34, %v497_v36 }
 0x155   :  { %6438 = sst [smem:[#allocation82_spill]] %s4095_s20  ;;  %v570_v62 = vmax.f32 %v569_v47, 0.0 }
 0x156   :  { %s4100_s12 = sld [smem:[#allocation2 + $0x5f]]  ;;  %v551_v59 = vadd.f32 %v550_v48, %v524_v52 }
 0x157   :  { %s4106_s22 = sld [smem:[#allocation2 + $0xa7]]  ;;  %v611_v6 = vstv %s6440_s13  ;;  %v577_v12 = vmul.f32 %v576_v1, %v570_v62  ;;  %v581_v28 = vmul.f32 %v580_v9, %v570_v62 }
 0x158   :  { %s6449_s6 = sld [smem:[#allocation59_spill]]  ;;  %v612_v21 = vmul.f32 %v611_v6, %v4167_v22  ;;  %v593_v6 = vadd.f32 %v592_v56, %v589_v3 }
 0x159   :  { %s6450_s24 = sld [smem:[#allocation60_spill]]  ;;  %v614_v10 = vstv %s6441_s14  ;;  %v578_v1 = vadd.f32 %v577_v12, %v551_v59 }
 0x15a   :  { %s6451_s8 = sld [smem:[#allocation61_spill]]  ;;  %v618_v15 = vstv %s6442_s25  ;;  %v615_v16 = vmul.f32 %v614_v10, %v4171_v23  ;;  %v474_v10 = vmul.f32 %v473_v25, %v465_v31  ;;  %v546_v25 = vmul.f32 %v545_v55, %v543_v40 }
 0x15b   :  { %s4111_s30 = sld [smem:[#allocation2 + $0xc7]]  ;;  %v619_v38 = vmul.f32 %v618_v15, %v4175_v26  ;;  %v500_v15 = vmul.f32 %v499_v41, %v489_v46  ;;  %v554_v41 = vmul.f32 %v553_v58, %v543_v40  ;;  %v596_v49 = vadd.f32 %v595_v0, %v593_v6 }
 0x15c   :  { %6443 = sst [smem:[#allocation52_spill]] %s4100_s12  ;;  %v616_v51 = vadd.f32 %v615_v16, %v612_v21  ;;  %v547_v32 = vadd.f32 %v546_v25, %v520_v57 }
 0x15d   :  { %6447 = sst [smem:[#allocation53_spill]] %s4106_s22  ;;  %v501_v24 = vadd.f32 %v500_v15, %v474_v10  ;;  %v597_v0 = vmax.f32 %v596_v49, 0.0 }
 0x15e   :  { %s6455_s4 = sld [smem:[#allocation66_spill]]  ;;  %v638_v45 = vstv %s6449_s6 }
 0x15f   :  { %s4117_s9 = sld [smem:[#allocation2 + $0xe7]]  ;;  %v641_v53 = vstv %s6450_s24  ;;  %v639_v55 = vmul.f32 %v638_v45, %v4167_v22  ;;  %v528_v27 = vadd.f32 %v527_v35, %v501_v24  ;;  %v620_v45 = vadd.f32 %v619_v38, %v616_v51 }
 0x160   :  { %s4122_s28 = sld [smem:[#allocation2 + $0x107]]  ;;  %v645_v61 = vstv %s6451_s8  ;;  %v642_v58 = vmul.f32 %v641_v53, %v4171_v23  ;;  %v573_v53 = vmul.f32 %v572_v63, %v570_v62 }
 0x161   :  { %6452 = sst [smem:[#allocation54_spill]] %s4111_s30  ;;  %v646_v50 = vmul.f32 %v645_v61, %v4175_v26  ;;  %v555_v11 = vadd.f32 %v554_v41, %v528_v27 }
 0x162   :  { %s6461_s21 = sld [smem:[#allocation67_spill]]  ;;  %v643_v60 = vadd.f32 %v642_v58, %v639_v55  ;;  %v574_v63 = vadd.f32 %v573_v53, %v547_v32 }
 0x163   :  { %s6462_s27 = sld [smem:[#allocation68_spill]]  ;;  %v582_v9 = vadd.f32 %v581_v28, %v555_v11  ;;  %v723_v28 = vmul.f32 %v722_v8, %v4171_v23 }
 0x164   :  { %v665_v18 = vstv %s6455_s4  ;;  %s4136_s23 = sld [smem:[#allocation2 + $0x61]]  ;;  %v647_v29 = vadd.f32 %v646_v50, %v643_v60  ;;  %v720_v50 = vmul.f32 %v719_v14, %v4167_v22 }
 0x165   :  { %6456 = sst [smem:[#allocation59_spill]] %s4117_s9  ;;  %v666_v16 = vmul.f32 %v665_v18, %v4167_v22 }
 0x166   :  { %6458 = sst [smem:[#allocation83_spill]] %s4122_s28 }
 0x167   :  { %s4131_s9 = sld [smem:[#allocation2 + $0x60]] }
 0x168   :  { %s6464_s28 = sld [smem:[#allocation69_spill]]  ;;  %v668_v5 = vstv %s6461_s21 }
 0x169   :  { %s6466_s20 = sld [smem:[#allocation73_spill]]  ;;  %v669_v38 = vmul.f32 %v668_v5, %v4171_v23  ;;  %v6550_v48 = vstv %s6462_s27 }
 0x16a   :  { %6465 = sst [smem:[#allocation68_spill]] %s4136_s23  ;;  %v673_v33 = vmul.f32 %v6550_v48, %v4175_v26 }
 0x16b   :  { %s6467_s29 = sld [smem:[#allocation74_spill]]  ;;  %v670_v25 = vadd.f32 %v669_v38, %v666_v16 }
 0x16c   :  { %s6468_s15 = sld [smem:[#allocation75_spill]] }
 0x16d   :  { %6463 = sst [smem:[#allocation67_spill]] %s4131_s9  ;;  %v674_v57 = vadd.f32 %v673_v33, %v670_v25 }
 0x16e   :  { %s4142_s9 = sld [smem:[#allocation2 + $0x62]]  ;;  %v676_v7 = vstv %s6464_s28 }
 0x16f   :  { %s4148_s23 = sld [smem:[#allocation2 + $0xa8]]  ;;  %v692_v17 = vstv %s6466_s20  ;;  %v677_v59 = vadd.f32 %v676_v7, %v674_v57  ;;  %v727_v7 = vmul.f32 %v726_v20, %v4175_v26 }
 0x170   :  { %s6474_s8 = sld [smem:[#allocation70_spill]]  ;;  %v693_v18 = vmul.f32 %v692_v17, %v4167_v22 }
 0x171   :  { %s6475_s24 = sld [smem:[#allocation71_spill]]  ;;  %v695_v37 = vstv %s6467_s29  ;;  %v678_v14 = vmax.f32 %v677_v59, 0.0 }
 0x172   :  { %v699_v13 = vstv %s6468_s15  ;;  %s4163_s17 = sld [smem:[#allocation2 + $0xe8]]  ;;  %v696_v17 = vmul.f32 %v695_v37, %v4171_v23 }
 0x173   :  { %s4178_s28 = sld [smem:[#allocation2 + $0x108]]  ;;  %v700_v37 = vmul.f32 %v699_v13, %v4175_v26 }
 0x174   :  { %6469 = sst [smem:[#allocation73_spill]] %s4142_s9  ;;  %v697_v52 = vadd.f32 %v696_v17, %v693_v18 }
 0x175   :  { %6473 = sst [smem:[#allocation74_spill]] %s4148_s23 }
 0x176   :  { %s4157_s9 = sld [smem:[#allocation2 + $0xc8]]  ;;  %v701_v11 = vadd.f32 %v700_v37, %v697_v52  ;;  %v6566_v8 = vstv %s6474_s8 }
 0x177   :  { %s4184_s12 = sld [smem:[#allocation2 + $0x63]] }
 0x178   :  { %s4212_s10 = sld [smem:[#allocation2 + $0x65]] }
 0x179   :  { %6484 = sst [smem:[#allocation8_spill]] %s4178_s28 }
 0x17a   :  { %s4198_s28 = sld [smem:[#allocation2 + $0x64]] }
 0x17b   :  { %s4223_s7 = sld [smem:[#allocation2 + $0xa9]] }
 0x17c   :  { %6476 = sst [smem:[#allocation75_spill]] %s4157_s9 }
 0x17d   :  { %s4231_s16 = sld [smem:[#allocation2 + $0xc9]] }
 0x17e   :  { %6490 = sst [smem:[#allocation9_spill]] %s4212_s10 }
 0x17f   :  { %s4239_s26 = sld [smem:[#allocation2 + $0xe9]] }
 0x180   :  { %s4247_s4 = sld [smem:[#allocation2 + $0x109]] }
 0x181   :  { %6492 = sst [smem:[#allocation10_spill]] %s4223_s7 }
 0x182   :  { %s4254_s30 = sld [smem:[#allocation2 + $0x66]] }
 0x183   :  { %6495 = sst [smem:[#allocation70_spill]] %s4231_s16 }
 0x184   :  { %s4263_s19 = sld [smem:[#allocation2 + $0x67]] }
 0x185   :  { %6498 = sst [smem:[#allocation71_spill]] %s4239_s26 }
 0x186   :  { %6500 = sst [smem:[#allocation11_spill]] %s4247_s4 }
 0x187   :  { %s4270_s2 = sld [smem:[#allocation2 + $0x68]] }
 0x188   :  { %6501 = sst [smem:[#allocation12_spill]] %s4254_s30 }
 0x189   :  { %s4275_s1 = sld [smem:[#allocation2 + $0xaa]] }
 0x18a   :  { %6505 = sst [smem:[#allocation13_spill]] %s4263_s19 }
 0x18b   :  { %s4293_s25 = sld [smem:[#allocation2 + $0xea]] }
 0x18c   :  { %s4303_s22 = sld [smem:[#allocation2 + $0x10a]] }
 0x18d   :  { %6510 = sst [smem:[#allocation16_spill]] %s4270_s2 }
 0x18e   :  { %s4283_s2 = sld [smem:[#allocation2 + $0xca]] }
 0x18f   :  { %s4307_s5 = sld [smem:[#allocation2 + $0x69]] }
 0x190   :  { %s4316_s16 = sld [smem:[#allocation2 + $0x6a]] }
 0x191   :  { %6518 = sst [smem:[#allocation19_spill]] %s4293_s25 }
 0x192   :  { %6520 = sst [smem:[#allocation25_spill]] %s4303_s22 }
 0x193   :  { %s6525_s9 = sld [smem:[#allocation49_spill]] }
 0x194   :  { %s4321_s7 = sld [smem:[#allocation2 + $0x6b]] }
 0x195   :  { %s6526_s10 = sld [smem:[#allocation50_spill]] }
 0x196   :  { %s6527_s3 = sld [smem:[#allocation51_spill]] }
 0x197   :  { %s6528_s6 = sld [smem:[#allocation55_spill]] }
 0x198   :  { %s4326_s13 = sld [smem:[#allocation2 + $0xab]] }
 0x199   :  { %s4328_s4 = sld [smem:[#allocation2 + $0xcb]]  ;;  %v6532_v56 = vstv %s6525_s9 }
 0x19a   :  { %s6531_s22 = sld [smem:[#allocation62_spill]]  ;;  %v600_v61 = vmul.f32 %v6532_v56, %v597_v0 }
 0x19b   :  { %s6533_s26 = sld [smem:[#allocation72_spill]]  ;;  %v6534_v19 = vstv %s6526_s10 }
 0x19c   :  { %s4338_s25 = sld [smem:[#allocation2 + $0xeb]]  ;;  %v604_v2 = vmul.f32 %v6534_v19, %v597_v0  ;;  %v6535_v3 = vstv %s6527_s3  ;;  %v601_v39 = vadd.f32 %v600_v61, %v574_v63 }
 0x19d   :  { %v608_v21 = vmul.f32 %v6535_v3, %v597_v0  ;;  %v6536_v31 = vstv %s6528_s6  ;;  %s4346_s30 = sld [smem:[#allocation2 + $0x10b]] }
 0x19e   :  { %v623_v4 = vadd.f32 %v6536_v31, %v620_v45  ;;  %s6538_s23 = sld [smem:[#allocation56_spill]]  ;;  %v605_v10 = vadd.f32 %v604_v2, %v578_v1  ;;  %v724_v2 = vadd.f32 %v723_v28, %v720_v50 }
 0x19f   :  { %6530 = sst [smem:[#allocation26_spill]] %s4328_s4  ;;  %v609_v40 = vadd.f32 %v608_v21, %v582_v9 }
 0x1a0   :  { %s6539_s19 = sld [smem:[#allocation57_spill]]  ;;  %v624_v46 = vmax.f32 %v623_v4, 0.0  ;;  %v6541_v30 = vstv %s6531_s22  ;;  %v681_v4 = vmul.f32 %v6566_v8, %v678_v14  ;;  %v728_v20 = vadd.f32 %v727_v7, %v724_v2 }
 0x1a1   :  { %s6540_s4 = sld [smem:[#allocation58_spill]]  ;;  %v650_v6 = vadd.f32 %v6541_v30, %v647_v29  ;;  %v688_v54 = vstv %s6533_s26  ;;  %v6567_v29 = vstv %s6475_s24 }
 0x1a2   :  { %s4351_s9 = sld [smem:[#allocation2 + $0x6c]]  ;;  %v685_v63 = vmul.f32 %v6567_v29, %v678_v14  ;;  %v689_v1 = vmul.f32 %v688_v54, %v678_v14  ;;  %v792_v14 = vstv %s4163_s17 }
 0x1a3   :  { %6537 = sst [smem:[#allocation27_spill]] %s4346_s30  ;;  %v651_v35 = vmax.f32 %v650_v6, 0.0 }
 0x1a4   :  { %s6542_s10 = sld [smem:[#allocation81_spill]]  ;;  %v6544_v42 = vstv %s6538_s23 }
 0x1a5   :  { %s4359_s3 = sld [smem:[#allocation2 + $0x6d]]  ;;  %v627_v43 = vmul.f32 %v6544_v42, %v624_v46 }
 0x1a6   :  { %s6543_s6 = sld [smem:[#allocation82_spill]]  ;;  %v6546_v15 = vstv %s6539_s19 }
 0x1a7   :  { %s4364_s14 = sld [smem:[#allocation2 + $0x6e]]  ;;  %v631_v44 = vmul.f32 %v6546_v15, %v624_v46  ;;  %v6547_v34 = vstv %s6540_s4  ;;  %v628_v24 = vadd.f32 %v627_v43, %v601_v39 }
 0x1a8   :  { %s6545_s22 = sld [smem:[#allocation63_spill]]  ;;  %v635_v5 = vmul.f32 %v6547_v34, %v624_v46 }
 0x1a9   :  { %s4372_s21 = sld [smem:[#allocation2 + $0xac]]  ;;  %v632_v41 = vadd.f32 %v631_v44, %v605_v10 }
 0x1aa   :  { %s6549_s26 = sld [smem:[#allocation64_spill]]  ;;  %v746_v36 = vstv %s6542_s10  ;;  %v636_v47 = vadd.f32 %v635_v5, %v609_v40 }
 0x1ab   :  { %s6551_s20 = sld [smem:[#allocation65_spill]]  ;;  %v747_v3 = vmul.f32 %v746_v36, %v4167_v22 }
 0x1ac   :  { %s6552_s30 = sld [smem:[#allocation77_spill]]  ;;  %v749_v49 = vstv %s6543_s6 }
 0x1ad   :  { %s4381_s23 = sld [smem:[#allocation2 + $0xcc]]  ;;  %v750_v21 = vmul.f32 %v749_v49, %v4171_v23 }
 0x1ae   :  { %s6554_s19 = sld [smem:[#allocation78_spill]]  ;;  %v6555_v51 = vstv %s6545_s22 }
 0x1af   :  { %6548 = sst [smem:[#allocation34_spill]] %s4372_s21  ;;  %v654_v55 = vmul.f32 %v6555_v51, %v651_v35  ;;  %v751_v16 = vadd.f32 %v750_v21, %v747_v3 }
 0x1b0   :  { %s4384_s21 = sld [smem:[#allocation2 + $0xec]]  ;;  %v6558_v27 = vstv %s6549_s26 }
 0x1b1   :  { %s6556_s27 = sld [smem:[#allocation79_spill]]  ;;  %v658_v58 = vmul.f32 %v6558_v27, %v651_v35  ;;  %v6559_v62 = vstv %s6551_s20  ;;  %v655_v32 = vadd.f32 %v654_v55, %v628_v24 }
 0x1b2   :  { %s4391_s29 = sld [smem:[#allocation2 + $0x10c]]  ;;  %v662_v0 = vmul.f32 %v6559_v62, %v651_v35  ;;  %v707_v45 = vstv %s6552_s30 }
 0x1b3   :  { %s6560_s10 = sld [smem:[#allocation76_spill]]  ;;  %v659_v60 = vadd.f32 %v658_v58, %v632_v41  ;;  %v682_v6 = vadd.f32 %v681_v4, %v655_v32 }
 0x1b4   :  { %s6561_s6 = sld [smem:[#allocation20_spill]]  ;;  %v711_v13 = vstv %s6554_s19  ;;  %v663_v53 = vadd.f32 %v662_v0, %v636_v47 }
 0x1b5   :  { %s4401_s22 = sld [smem:[#allocation2 + $0x6f]]  ;;  %v686_v38 = vadd.f32 %v685_v63, %v659_v60  ;;  %v800_v60 = vstv %s4184_s12 }
 0x1b6   :  { %s6562_s15 = sld [smem:[#allocation52_spill]]  ;;  %v690_v39 = vadd.f32 %v689_v1, %v663_v53  ;;  %v803_v53 = vstv %s4198_s28 }
 0x1b7   :  { %v715_v12 = vstv %s6556_s27  ;;  %s4412_s11 = sld [smem:[#allocation2 + $0x71]] }
 0x1b8   :  { %6557 = sst [smem:[#allocation39_spill]] %s4391_s29 }
 0x1b9   :  { %s4406_s29 = sld [smem:[#allocation2 + $0x70]]  ;;  %v6563_v56 = vstv %s6560_s10 }
 0x1ba   :  { %v704_v61 = vadd.f32 %v6563_v56, %v701_v11  ;;  %s6564_s30 = sld [smem:[#allocation53_spill]]  ;;  %v730_v19 = vstv %s6561_s6  ;;  %v801_v56 = vmul.f32 %v800_v60, %v4167_v22 }
 0x1bb   :  { %s4420_s26 = sld [smem:[#allocation2 + $0xad]]  ;;  %v731_v40 = vadd.f32 %v730_v19, %v728_v20  ;;  %v804_v19 = vmul.f32 %v803_v53, %v4171_v23 }
 0x1bc   :  { %v753_v31 = vstv %s6562_s15  ;;  %s4425_s18 = sld [smem:[#allocation2 + $0xcd]]  ;;  %v705_v9 = vmax.f32 %v704_v61, 0.0 }
 0x1bd   :  { %s6568_s20 = sld [smem:[#allocation32_spill]]  ;;  %v754_v46 = vmul.f32 %v753_v31, %v4175_v26  ;;  %v732_v35 = vmax.f32 %v731_v40, 0.0  ;;  %v805_v4 = vadd.f32 %v804_v19, %v801_v56  ;;  %v873_v56 = vstv %s4338_s25 }
 0x1be   :  { %s4431_s0 = sld [smem:[#allocation2 + $0xed]]  ;;  %v708_v10 = vmul.f32 %v707_v45, %v705_v9  ;;  %v712_v54 = vmul.f32 %v711_v13, %v705_v9  ;;  %v716_v15 = vmul.f32 %v715_v12, %v705_v9 }
 0x1bf   :  { %s6570_s4 = sld [smem:[#allocation33_spill]]  ;;  %v755_v42 = vadd.f32 %v754_v46, %v751_v16 }
 0x1c0   :  { %s6571_s19 = sld [smem:[#allocation80_spill]]  ;;  %v757_v30 = vstv %s6564_s30  ;;  %v709_v43 = vadd.f32 %v708_v10, %v682_v6  ;;  %v713_v5 = vadd.f32 %v712_v54, %v686_v38  ;;  %v717_v33 = vadd.f32 %v716_v15, %v690_v39 }
 0x1c1   :  { %s4435_s27 = sld [smem:[#allocation2 + $0x10d]]  ;;  %v758_v25 = vadd.f32 %v757_v30, %v755_v42  ;;  %v854_v15 = vstv %s4307_s5 }
 0x1c2   :  { %6565 = sst [smem:[#allocation40_spill]] %s4425_s18 }
 0x1c3   :  { %s6573_s8 = sld [smem:[#allocation54_spill]]  ;;  %v734_v18 = vstv %s6568_s20  ;;  %v759_v49 = vmax.f32 %v758_v25, 0.0 }
 0x1c4   :  { %6569 = sst [smem:[#allocation41_spill]] %s4431_s0  ;;  %v735_v41 = vmul.f32 %v734_v18, %v732_v35 }
 0x1c5   :  { %s4437_s24 = sld [smem:[#allocation2 + $0x72]]  ;;  %v738_v44 = vstv %s6570_s4 }
 0x1c6   :  { %s6575_s10 = sld [smem:[#allocation67_spill]]  ;;  %v742_v34 = vstv %s6571_s19  ;;  %v739_v47 = vmul.f32 %v738_v44, %v732_v35  ;;  %v736_v27 = vadd.f32 %v735_v41, %v709_v43  ;;  %v838_v43 = vstv %s4275_s1 }
 0x1c7   :  { %6572 = sst [smem:[#allocation46_spill]] %s4435_s27  ;;  %v743_v55 = vmul.f32 %v742_v34, %v732_v35  ;;  %v857_v44 = vstv %s4316_s16  ;;  %v842_v41 = vstv %s4283_s2 }
 0x1c8   :  { %s6576_s6 = sld [smem:[#allocation68_spill]]  ;;  %v740_v58 = vadd.f32 %v739_v47, %v713_v5 }
 0x1c9   :  { %s6577_s15 = sld [smem:[#allocation73_spill]]  ;;  %v761_v48 = vstv %s6573_s8  ;;  %v744_v45 = vadd.f32 %v743_v55, %v717_v33  ;;  %v855_v33 = vmul.f32 %v854_v15, %v4167_v22 }
 0x1ca   :  { %s4440_s0 = sld [smem:[#allocation2 + $0x73]]  ;;  %v762_v50 = vmul.f32 %v761_v48, %v759_v49 }
 0x1cb   :  { %6574 = sst [smem:[#allocation14_spill]] %s4437_s24 }
 0x1cc   :  { %s6579_s30 = sld [smem:[#allocation59_spill]]  ;;  %v773_v17 = vstv %s6575_s10  ;;  %v763_v12 = vadd.f32 %v762_v50, %v736_v27 }
 0x1cd   :  { %s4444_s27 = sld [smem:[#allocation2 + $0x74]]  ;;  %v774_v52 = vmul.f32 %v773_v17, %v4167_v22  ;;  %v858_v17 = vmul.f32 %v857_v44, %v4171_v23 }
 0x1ce   :  { %s6580_s18 = sld [smem:[#allocation83_spill]]  ;;  %v776_v36 = vstv %s6576_s6 }
 0x1cf   :  { %s4447_s24 = sld [smem:[#allocation2 + $0xae]]  ;;  %v780_v24 = vstv %s6577_s15  ;;  %v777_v37 = vmul.f32 %v776_v36, %v4171_v23  ;;  %v861_v36 = vstv %s4321_s7 }
 0x1d0   :  { %6578 = sst [smem:[#allocation47_spill]] %s4440_s0  ;;  %v781_v62 = vmul.f32 %v780_v24, %v4175_v26 }
 0x1d1   :  { %s6581_s20 = sld [smem:[#allocation74_spill]]  ;;  %v778_v32 = vadd.f32 %v777_v37, %v774_v52  ;;  %v859_v52 = vadd.f32 %v858_v17, %v855_v33 }
 0x1d2   :  { %s4452_s0 = sld [smem:[#allocation2 + $0xce]]  ;;  %v765_v51 = vstv %s6579_s30 }
 0x1d3   :  { %s6583_s4 = sld [smem:[#allocation75_spill]]  ;;  %v766_v11 = vmul.f32 %v765_v51, %v759_v49  ;;  %v782_v28 = vadd.f32 %v781_v62, %v778_v32  ;;  %v881_v62 = vstv %s4351_s9 }
 0x1d4   :  { %s4455_s19 = sld [smem:[#allocation2 + $0xee]]  ;;  %v769_v57 = vstv %s6580_s18  ;;  %v882_v60 = vmul.f32 %v881_v62, %v4167_v22 }
 0x1d5   :  { %s4460_s8 = sld [smem:[#allocation2 + $0x10e]]  ;;  %v770_v13 = vmul.f32 %v769_v57, %v759_v49  ;;  %v767_v61 = vadd.f32 %v766_v11, %v740_v58  ;;  %v862_v49 = vmul.f32 %v861_v36, %v4175_v26  ;;  %v865_v58 = vstv %s4326_s13 }
 0x1d6   :  { %s4464_s10 = sld [smem:[#allocation2 + $0x75]] }
 0x1d7   :  { %v784_v0 = vstv %s6581_s20  ;;  %s6587_s6 = sld [smem:[#allocation8_spill]]  ;;  %v771_v3 = vadd.f32 %v770_v13, %v744_v45  ;;  %v863_v32 = vadd.f32 %v862_v49, %v859_v52 }
 0x1d8   :  { %6582 = sst [smem:[#allocation21_spill]] %s4452_s0  ;;  %v785_v21 = vadd.f32 %v784_v0, %v782_v28  ;;  %v884_v28 = vstv %s4359_s3 }
 0x1d9   :  { %s6588_s18 = sld [smem:[#allocation9_spill]]  ;;  %v788_v59 = vstv %s6583_s4 }
 0x1da   :  { %6584 = sst [smem:[#allocation28_spill]] %s4455_s19  ;;  %v786_v9 = vmax.f32 %v785_v21, 0.0 }
 0x1db   :  { %6585 = sst [smem:[#allocation35_spill]] %s4460_s8 }
 0x1dc   :  { %6586 = sst [smem:[#allocation15_spill]] %s4464_s10  ;;  %v789_v10 = vmul.f32 %v788_v59, %v786_v9  ;;  %v793_v54 = vmul.f32 %v792_v14, %v786_v9  ;;  %v888_v14 = vstv %s4364_s14 }
 0x1dd   :  { %s4467_s15 = sld [smem:[#allocation2 + $0x76]]  ;;  %v796_v7 = vstv %s6587_s6 }
 0x1de   :  { %s6589_s30 = sld [smem:[#allocation10_spill]]  ;;  %v797_v40 = vmul.f32 %v796_v7, %v786_v9  ;;  %v790_v34 = vadd.f32 %v789_v10, %v763_v12  ;;  %v794_v5 = vadd.f32 %v793_v54, %v767_v61  ;;  %v866_v12 = vadd.f32 %v865_v58, %v863_v32 }
 0x1df   :  { %s4471_s8 = sld [smem:[#allocation2 + $0x77]]  ;;  %v807_v2 = vstv %s6588_s18  ;;  %v885_v7 = vmul.f32 %v884_v28, %v4171_v23  ;;  %v896_v9 = vstv %s4381_s23 }
 0x1e0   :  { %s6591_s19 = sld [smem:[#allocation12_spill]]  ;;  %v808_v31 = vmul.f32 %v807_v2, %v4175_v26  ;;  %v798_v35 = vadd.f32 %v797_v40, %v771_v3  ;;  %v919_v40 = vstv %s4420_s26 }
 0x1e1   :  { %s6592_s20 = sld [smem:[#allocation13_spill]] }
 0x1e2   :  { %s6593_s10 = sld [smem:[#allocation16_spill]]  ;;  %v809_v30 = vadd.f32 %v808_v31, %v805_v4  ;;  %v867_v31 = vmax.f32 %v866_v12, 0.0  ;;  %v889_v4 = vmul.f32 %v888_v14, %v4175_v26 }
 0x1e3   :  { %s4475_s0 = sld [smem:[#allocation2 + $0xaf]]  ;;  %v965_v58 = vstv %s4467_s15 }
 0x1e4   :  { %s6595_s4 = sld [smem:[#allocation70_spill]]  ;;  %v811_v8 = vstv %s6589_s30 }
 0x1e5   :  { %6590 = sst [smem:[#allocation17_spill]] %s4471_s8  ;;  %v812_v42 = vadd.f32 %v811_v8, %v809_v30  ;;  %v886_v8 = vadd.f32 %v885_v7, %v882_v60 }
 0x1e6   :  { %s4480_s12 = sld [smem:[#allocation2 + $0xcf]]  ;;  %v827_v29 = vstv %s6591_s19 }
 0x1e7   :  { %s6596_s28 = sld [smem:[#allocation71_spill]]  ;;  %v830_v63 = vstv %s6592_s20  ;;  %v828_v16 = vmul.f32 %v827_v29, %v4167_v22  ;;  %v813_v48 = vmax.f32 %v812_v42, 0.0  ;;  %v908_v29 = vstv %s4401_s22 }
 0x1e8   :  { %s6597_s8 = sld [smem:[#allocation11_spill]]  ;;  %v834_v1 = vstv %s6593_s10  ;;  %v831_v46 = vmul.f32 %v830_v63, %v4171_v23  ;;  %v911_v63 = vstv %s4406_s29  ;;  %v890_v30 = vadd.f32 %v889_v4, %v886_v8 }
 0x1e9   :  { %6594 = sst [smem:[#allocation18_spill]] %s4475_s0  ;;  %v835_v39 = vmul.f32 %v834_v1, %v4175_v26 }
 0x1ea   :  { %s4484_s17 = sld [smem:[#allocation2 + $0xef]]  ;;  %v815_v20 = vstv %s6595_s4  ;;  %v832_v18 = vadd.f32 %v831_v46, %v828_v16  ;;  %v909_v16 = vmul.f32 %v908_v29, %v4167_v22  ;;  %v874_v46 = vmul.f32 %v873_v56, %v867_v31 }
 0x1eb   :  { %s4489_s0 = sld [smem:[#allocation2 + $0x10f]]  ;;  %v816_v51 = vmul.f32 %v815_v20, %v813_v48  ;;  %v900_v20 = vstv %s4384_s21 }
 0x1ec   :  { %s4494_s6 = sld [smem:[#allocation2 + $0x78]]  ;;  %v836_v25 = vadd.f32 %v835_v39, %v832_v18 }
 0x1ed   :  { %v819_v6 = vstv %s6596_s28  ;;  %s4499_s19 = sld [smem:[#allocation2 + $0x79]]  ;;  %v817_v0 = vadd.f32 %v816_v51, %v790_v34 }
 0x1ee   :  { %v823_v38 = vstv %s6597_s8  ;;  %s4501_s10 = sld [smem:[#allocation2 + $0x7a]]  ;;  %v839_v24 = vadd.f32 %v838_v43, %v836_v25  ;;  %v820_v55 = vmul.f32 %v819_v6, %v813_v48  ;;  %v912_v6 = vmul.f32 %v911_v63, %v4171_v23 }
 0x1ef   :  { %s6598_s18 = sld [smem:[#allocation19_spill]]  ;;  %v824_v57 = vmul.f32 %v823_v38, %v813_v48  ;;  %v915_v38 = vstv %s4412_s11 }
 0x1f0   :  { %s4506_s30 = sld [smem:[#allocation2 + $0xb0]]  ;;  %v840_v37 = vmax.f32 %v839_v24, 0.0  ;;  %v821_v45 = vadd.f32 %v820_v55, %v794_v5  ;;  %v913_v43 = vadd.f32 %v912_v6, %v909_v16  ;;  %v916_v15 = vmul.f32 %v915_v38, %v4175_v26 }
 0x1f1   :  { %s4508_s8 = sld [smem:[#allocation2 + $0xd0]]  ;;  %v825_v50 = vadd.f32 %v824_v57, %v798_v35  ;;  %v942_v35 = vstv %s4444_s27  ;;  %v946_v57 = vstv %s4447_s24  ;;  %v985_v6 = vstv %s4489_s0 }
 0x1f2   :  { %s6599_s20 = sld [smem:[#allocation25_spill]]  ;;  %v843_v59 = vmul.f32 %v842_v41, %v840_v37  ;;  %v917_v48 = vadd.f32 %v916_v15, %v913_v43  ;;  %v989_v29 = vstv %s4494_s6 }
 0x1f3   :  { %s4513_s1 = sld [smem:[#allocation2 + $0xf0]] }
 0x1f4   :  { %s4518_s5 = sld [smem:[#allocation2 + $0x110]]  ;;  %v844_v2 = vadd.f32 %v843_v59, %v817_v0  ;;  %v920_v55 = vadd.f32 %v919_v40, %v917_v48 }
 0x1f5   :  { %v846_v47 = vstv %s6598_s18  ;;  %s6600_s16 = sld [smem:[#allocation26_spill]] }
 0x1f6   :  { %s4520_s4 = sld [smem:[#allocation2 + $0x7b]]  ;;  %v847_v11 = vmul.f32 %v846_v47, %v840_v37  ;;  %v943_v47 = vmul.f32 %v942_v35, %v4175_v26 }
 0x1f7   :  { %s4525_s7 = sld [smem:[#allocation2 + $0x7c]]  ;;  %v1004_v43 = vstv %s4508_s8 }
 0x1f8   :  { %v850_v27 = vstv %s6599_s20  ;;  %s6601_s2 = sld [smem:[#allocation27_spill]]  ;;  %v848_v3 = vadd.f32 %v847_v11, %v821_v45  ;;  %v966_v11 = vmul.f32 %v965_v58, %v4171_v23 }
 0x1f9   :  { %s6602_s28 = sld [smem:[#allocation34_spill]]  ;;  %v851_v53 = vmul.f32 %v850_v27, %v840_v37  ;;  %v1008_v48 = vstv %s4513_s1 }
 0x1fa   :  { %s4527_s18 = sld [smem:[#allocation2 + $0x7d]]  ;;  %v875_v18 = vadd.f32 %v874_v46, %v848_v3 }
 0x1fb   :  { %v869_v13 = vstv %s6600_s16  ;;  %s4531_s20 = sld [smem:[#allocation2 + $0xb1]]  ;;  %v852_v21 = vadd.f32 %v851_v53, %v825_v50  ;;  %v921_v50 = vmax.f32 %v920_v55, 0.0 }
 0x1fc   :  { %s4535_s13 = sld [smem:[#allocation2 + $0xd1]]  ;;  %v870_v1 = vmul.f32 %v869_v13, %v867_v31 }
 0x1fd   :  { %s4541_s9 = sld [smem:[#allocation2 + $0xf1]] }
 0x1fe   :  { %v877_v61 = vstv %s6601_s2  ;;  %s4543_s16 = sld [smem:[#allocation2 + $0x111]]  ;;  %v871_v39 = vadd.f32 %v870_v1, %v844_v2  ;;  %v990_v1 = vmul.f32 %v989_v29, %v4167_v22 }
 0x1ff   :  { %v892_v19 = vstv %s6602_s28  ;;  %s6605_s3 = sld [smem:[#allocation39_spill]]  ;;  %v878_v10 = vmul.f32 %v877_v61, %v867_v31 }
 0x200   :  { %s4548_s25 = sld [smem:[#allocation2 + $0x7e]]  ;;  %v893_v42 = vadd.f32 %v892_v19, %v890_v30  ;;  %v981_v30 = vstv %s4484_s17 }
 0x201   :  { %s4553_s14 = sld [smem:[#allocation2 + $0x7f]]  ;;  %v879_v44 = vadd.f32 %v878_v10, %v852_v21  ;;  %v977_v21 = vstv %s4480_s12  ;;  %v1027_v55 = vstv %s4531_s20 }
 0x202   :  { %s6606_s2 = sld [smem:[#allocation14_spill]]  ;;  %v894_v25 = vmax.f32 %v893_v42, 0.0 }
 0x203   :  { %6603 = sst [smem:[#allocation22_spill]] %s4541_s9 }
 0x204   :  { %6604 = sst [smem:[#allocation23_spill]] %s4543_s16  ;;  %v897_v49 = vmul.f32 %v896_v9, %v894_v25  ;;  %v901_v51 = vmul.f32 %v900_v20, %v894_v25  ;;  %v992_v9 = vstv %s4499_s19  ;;  %v996_v20 = vstv %s4501_s10 }
 0x205   :  { %s6607_s28 = sld [smem:[#allocation47_spill]]  ;;  %v904_v54 = vstv %s6605_s3  ;;  %v993_v10 = vmul.f32 %v992_v9, %v4171_v23  ;;  %v997_v42 = vmul.f32 %v996_v20, %v4175_v26 }
 0x206   :  { %s4557_s22 = sld [smem:[#allocation2 + $0x80]]  ;;  %v898_v62 = vadd.f32 %v897_v49, %v871_v39  ;;  %v902_v0 = vadd.f32 %v901_v51, %v875_v18  ;;  %v905_v45 = vmul.f32 %v904_v54, %v894_v25  ;;  %v1000_v54 = vstv %s4506_s30 }
 0x207   :  { %s4561_s23 = sld [smem:[#allocation2 + $0xb2]]  ;;  %v1012_v51 = vstv %s4518_s5 }
 0x208   :  { %s6609_s21 = sld [smem:[#allocation40_spill]]  ;;  %v935_v34 = vstv %s6606_s2  ;;  %v906_v60 = vadd.f32 %v905_v45, %v879_v44  ;;  %v994_v44 = vadd.f32 %v993_v10, %v990_v1 }
 0x209   :  { %s6610_s29 = sld [smem:[#allocation41_spill]]  ;;  %v936_v33 = vmul.f32 %v935_v34, %v4167_v22  ;;  %v1016_v34 = vstv %s4520_s4 }
 0x20a   :  { %s6611_s16 = sld [smem:[#allocation46_spill]] }
 0x20b   :  { %s4564_s9 = sld [smem:[#allocation2 + $0xd2]]  ;;  %v938_v5 = vstv %s6607_s28 }
 0x20c   :  { %s4569_s11 = sld [smem:[#allocation2 + $0xf2]]  ;;  %v939_v17 = vmul.f32 %v938_v5, %v4171_v23  ;;  %v1019_v5 = vstv %s4525_s7  ;;  %v1050_v45 = vstv %s4557_s22 }
 0x20d   :  { %6608 = sst [smem:[#allocation24_spill]] %s4561_s23 }
 0x20e   :  { %s6614_s26 = sld [smem:[#allocation21_spill]]  ;;  %v923_v36 = vstv %s6609_s21  ;;  %v940_v52 = vadd.f32 %v939_v17, %v936_v33  ;;  %v1017_v33 = vmul.f32 %v1016_v34, %v4167_v22 }
 0x20f   :  { %s6615_s3 = sld [smem:[#allocation15_spill]]  ;;  %v927_v24 = vstv %s6610_s29  ;;  %v924_v53 = vmul.f32 %v923_v36, %v921_v50  ;;  %v998_v36 = vadd.f32 %v997_v42, %v994_v44 }
 0x210   :  { %s4573_s23 = sld [smem:[#allocation2 + $0x112]]  ;;  %v931_v41 = vstv %s6611_s16  ;;  %v944_v32 = vadd.f32 %v943_v47, %v940_v52  ;;  %v928_v14 = vmul.f32 %v927_v24, %v921_v50  ;;  %v1020_v24 = vmul.f32 %v1019_v5, %v4171_v23 }
 0x211   :  { %6612 = sst [smem:[#allocation29_spill]] %s4564_s9  ;;  %v925_v19 = vadd.f32 %v924_v53, %v898_v62  ;;  %v932_v2 = vmul.f32 %v931_v41, %v921_v50  ;;  %v1023_v41 = vstv %s4527_s18  ;;  %v1001_v52 = vadd.f32 %v1000_v54, %v998_v36 }
 0x212   :  { %6613 = sst [smem:[#allocation30_spill]] %s4569_s11  ;;  %v947_v56 = vadd.f32 %v946_v57, %v944_v32  ;;  %v929_v31 = vadd.f32 %v928_v14, %v902_v0  ;;  %v1043_v62 = vstv %s4548_s25  ;;  %v1046_v0 = vstv %s4553_s14 }
 0x213   :  { %s4579_s2 = sld [smem:[#allocation2 + $0x81]]  ;;  %v933_v63 = vadd.f32 %v932_v2, %v906_v60  ;;  %v1002_v50 = vmax.f32 %v1001_v52, 0.0 }
 0x214   :  { %s6616_s27 = sld [smem:[#allocation17_spill]]  ;;  %v950_v37 = vstv %s6614_s26  ;;  %v948_v8 = vmax.f32 %v947_v56, 0.0 }
 0x215   :  { %s4582_s28 = sld [smem:[#allocation2 + $0x82]]  ;;  %v962_v27 = vstv %s6615_s3  ;;  %v1009_v14 = vmul.f32 %v1008_v48, %v1002_v50 }
 0x216   :  { %s6617_s11 = sld [smem:[#allocation28_spill]]  ;;  %v963_v59 = vmul.f32 %v962_v27, %v4167_v22  ;;  %v951_v16 = vmul.f32 %v950_v37, %v948_v8  ;;  %v1021_v37 = vadd.f32 %v1020_v24, %v1017_v33  ;;  %v1024_v27 = vmul.f32 %v1023_v41, %v4175_v26 }
 0x217   :  { %s6618_s9 = sld [smem:[#allocation35_spill]] }
 0x218   :  { %s4587_s21 = sld [smem:[#allocation2 + $0x83]]  ;;  %v967_v61 = vadd.f32 %v966_v11, %v963_v59  ;;  %v952_v40 = vadd.f32 %v951_v16, %v925_v19  ;;  %v1025_v32 = vadd.f32 %v1024_v27, %v1021_v37  ;;  %v1044_v59 = vmul.f32 %v1043_v62, %v4167_v22 }
 0x219   :  { %s4589_s16 = sld [smem:[#allocation2 + $0xb3]]  ;;  %v1047_v11 = vmul.f32 %v1046_v0, %v4171_v23  ;;  %v1070_v2 = vstv %s4579_s2 }
 0x21a   :  { %s6619_s24 = sld [smem:[#allocation18_spill]]  ;;  %v969_v13 = vstv %s6616_s27  ;;  %v1028_v56 = vadd.f32 %v1027_v55, %v1025_v32 }
 0x21b   :  { %s4594_s29 = sld [smem:[#allocation2 + $0xd3]]  ;;  %v970_v7 = vmul.f32 %v969_v13, %v4175_v26  ;;  %v1031_v13 = vstv %s4535_s13 }
 0x21c   :  { %v954_v12 = vstv %s6617_s11  ;;  %s4598_s15 = sld [smem:[#allocation2 + $0xf3]] }
 0x21d   :  { %v958_v28 = vstv %s6618_s9  ;;  %s4601_s26 = sld [smem:[#allocation2 + $0x113]]  ;;  %v971_v4 = vadd.f32 %v970_v7, %v967_v61  ;;  %v955_v38 = vmul.f32 %v954_v12, %v948_v8  ;;  %v1051_v12 = vmul.f32 %v1050_v45, %v4175_v26 }
 0x21e   :  { %s4605_s11 = sld [smem:[#allocation2 + $0x84]]  ;;  %v959_v39 = vmul.f32 %v958_v28, %v948_v8  ;;  %v1005_v28 = vmul.f32 %v1004_v43, %v1002_v50  ;;  %v1048_v7 = vadd.f32 %v1047_v11, %v1044_v59  ;;  %v1013_v8 = vmul.f32 %v1012_v51, %v1002_v50 }
 0x21f   :  { %s4608_s9 = sld [smem:[#allocation2 + $0x85]]  ;;  %v956_v15 = vadd.f32 %v955_v38, %v929_v31  ;;  %v1077_v9 = vstv %s4587_s21 }
 0x220   :  { %v973_v3 = vstv %s6619_s24  ;;  %s4613_s3 = sld [smem:[#allocation2 + $0x86]]  ;;  %v960_v35 = vadd.f32 %v959_v39, %v933_v63  ;;  %v1052_v29 = vadd.f32 %v1051_v12, %v1048_v7  ;;  %v1071_v63 = vmul.f32 %v1070_v2, %v4167_v22 }
 0x221   :  { %v974_v46 = vadd.f32 %v973_v3, %v971_v4  ;;  %s4617_s12 = sld [smem:[#allocation2 + $0xb4]]  ;;  %v1073_v3 = vstv %s4582_s28  ;;  %v1029_v4 = vmax.f32 %v1028_v56, 0.0  ;;  %v1078_v10 = vmul.f32 %v1077_v9, %v4175_v26 }
 0x222   :  { %s4621_s6 = sld [smem:[#allocation2 + $0xd4]]  ;;  %v1074_v1 = vmul.f32 %v1073_v3, %v4171_v23  ;;  %v1085_v42 = vstv %s4594_s29  ;;  %v1089_v36 = vstv %s4598_s15 }
 0x223   :  { %v975_v18 = vmax.f32 %v974_v46, 0.0  ;;  %s4625_s19 = sld [smem:[#allocation2 + $0xf4]]  ;;  %v1032_v16 = vmul.f32 %v1031_v13, %v1029_v4  ;;  %v1093_v24 = vstv %s4601_s26 }
 0x224   :  { %s4629_s0 = sld [smem:[#allocation2 + $0x114]]  ;;  %v1075_v39 = vadd.f32 %v1074_v1, %v1071_v63  ;;  %v1097_v34 = vstv %s4605_s11 }
 0x225   :  { %v978_v25 = vmul.f32 %v977_v21, %v975_v18  ;;  %s4633_s17 = sld [smem:[#allocation2 + $0x87]]  ;;  %v982_v17 = vmul.f32 %v981_v30, %v975_v18  ;;  %v986_v49 = vmul.f32 %v985_v6, %v975_v18  ;;  %v1066_v30 = vstv %s4573_s23 }
 0x226   :  { %s4637_s10 = sld [smem:[#allocation2 + $0x88]]  ;;  %v1081_v18 = vstv %s4589_s16  ;;  %v1079_v44 = vadd.f32 %v1078_v10, %v1075_v39  ;;  %v1104_v48 = vstv %s4613_s3 }
 0x227   :  { %v979_v47 = vadd.f32 %v978_v25, %v952_v40  ;;  %s4641_s30 = sld [smem:[#allocation2 + $0x89]]  ;;  %v983_v57 = vadd.f32 %v982_v17, %v956_v15  ;;  %v987_v58 = vadd.f32 %v986_v49, %v960_v35  ;;  %v1098_v35 = vmul.f32 %v1097_v34, %v4167_v22 }
 0x228   :  { %s6620_s8 = sld [smem:[#allocation22_spill]]  ;;  %v1100_v25 = vstv %s4608_s9  ;;  %v1082_v17 = vadd.f32 %v1081_v18, %v1079_v44  ;;  %v1108_v51 = vstv %s4617_s12  ;;  %v1105_v52 = vmul.f32 %v1104_v48, %v4175_v26 }
 0x229   :  { %s6621_s1 = sld [smem:[#allocation23_spill]]  ;;  %v1006_v21 = vadd.f32 %v1005_v28, %v979_v47  ;;  %v1010_v31 = vadd.f32 %v1009_v14, %v983_v57  ;;  %v1014_v20 = vadd.f32 %v1013_v8, %v987_v58  ;;  %v1101_v49 = vmul.f32 %v1100_v25, %v4171_v23 }
 0x22a   :  { %s4644_s4 = sld [smem:[#allocation2 + $0xb5]]  ;;  %v1083_v57 = vmax.f32 %v1082_v17, 0.0  ;;  %v1112_v37 = vstv %s4621_s6  ;;  %v1116_v32 = vstv %s4625_s19  ;;  %v1120_v14 = vstv %s4629_s0 }
 0x22b   :  { %s6622_s7 = sld [smem:[#allocation24_spill]]  ;;  %v1033_v54 = vadd.f32 %v1032_v16, %v1006_v21  ;;  %v1102_v58 = vadd.f32 %v1101_v49, %v1098_v35  ;;  %v1124_v62 = vstv %s4633_s17 }
 0x22c   :  { %s4649_s18 = sld [smem:[#allocation2 + $0xd5]]  ;;  %v1127_v0 = vstv %s4637_s10  ;;  %v1086_v50 = vmul.f32 %v1085_v42, %v1083_v57  ;;  %v1125_v59 = vmul.f32 %v1124_v62, %v4167_v22  ;;  %v1090_v11 = vmul.f32 %v1089_v36, %v1083_v57 }
 0x22d   :  { %s6623_s5 = sld [smem:[#allocation29_spill]]  ;;  %v1106_v13 = vadd.f32 %v1105_v52, %v1102_v58  ;;  %v1094_v28 = vmul.f32 %v1093_v24, %v1083_v57 }
 0x22e   :  { %s4653_s20 = sld [smem:[#allocation2 + $0xf5]]  ;;  %v1035_v60 = vstv %s6620_s8 }
 0x22f   :  { %v1039_v53 = vstv %s6621_s1  ;;  %s4659_s25 = sld [smem:[#allocation2 + $0x115]]  ;;  %v1036_v6 = vmul.f32 %v1035_v60, %v1029_v4  ;;  %v1128_v60 = vmul.f32 %v1127_v0, %v4171_v23  ;;  %v1109_v7 = vadd.f32 %v1108_v51, %v1106_v13 }
 0x230   :  { %s4662_s14 = sld [smem:[#allocation2 + $0x8a]]  ;;  %v1040_v40 = vmul.f32 %v1039_v53, %v1029_v4  ;;  %v1131_v53 = vstv %s4641_s30  ;;  %v1135_v56 = vstv %s4644_s4 }
 0x231   :  { %v1054_v61 = vstv %s6622_s7  ;;  %s6624_s22 = sld [smem:[#allocation30_spill]]  ;;  %v1037_v43 = vadd.f32 %v1036_v6, %v1010_v31  ;;  %v1132_v2 = vmul.f32 %v1131_v53, %v4175_v26  ;;  %v1110_v4 = vmax.f32 %v1109_v7, 0.0 }
 0x232   :  { %s4667_s13 = sld [smem:[#allocation2 + $0x8b]]  ;;  %v1055_v38 = vadd.f32 %v1054_v61, %v1052_v29  ;;  %v1041_v5 = vadd.f32 %v1040_v40, %v1014_v20  ;;  %v1139_v9 = vstv %s4649_s18 }
 0x233   :  { %v1058_v19 = vstv %s6623_s5  ;;  %s4669_s27 = sld [smem:[#allocation2 + $0x8c]]  ;;  %v1117_v6 = vmul.f32 %v1116_v32, %v1110_v4 }
 0x234   :  { %s4674_s24 = sld [smem:[#allocation2 + $0xb6]]  ;;  %v1056_v15 = vmax.f32 %v1055_v38, 0.0  ;;  %v1143_v20 = vstv %s4653_s20 }
 0x235   :  { %s4678_s2 = sld [smem:[#allocation2 + $0xd6]]  ;;  %v1147_v16 = vstv %s4659_s25 }
 0x236   :  { %s4681_s28 = sld [smem:[#allocation2 + $0xf6]]  ;;  %v1059_v33 = vmul.f32 %v1058_v19, %v1056_v15  ;;  %v1067_v47 = vmul.f32 %v1066_v30, %v1056_v15  ;;  %v1129_v19 = vadd.f32 %v1128_v60, %v1125_v59  ;;  %v1151_v21 = vstv %s4662_s14 }
 0x237   :  { %v1062_v46 = vstv %s6624_s22  ;;  %s4685_s21 = sld [smem:[#allocation2 + $0x116]]  ;;  %v1152_v63 = vmul.f32 %v1151_v21, %v4167_v22  ;;  %v1113_v30 = vmul.f32 %v1112_v37, %v1110_v4 }
 0x238   :  { %s4688_s23 = sld [smem:[#allocation2 + $0x8d]]  ;;  %v1063_v41 = vmul.f32 %v1062_v46, %v1056_v15  ;;  %v1060_v55 = vadd.f32 %v1059_v33, %v1033_v54  ;;  %v1068_v45 = vadd.f32 %v1067_v47, %v1041_v5  ;;  %v1154_v31 = vstv %s4667_s13 }
 0x239   :  { %s4693_s8 = sld [smem:[#allocation2 + $0x8e]]  ;;  %v1158_v8 = vstv %s4669_s27  ;;  %v1133_v29 = vadd.f32 %v1132_v2, %v1129_v19  ;;  %v1155_v1 = vmul.f32 %v1154_v31, %v4171_v23  ;;  %v1121_v15 = vmul.f32 %v1120_v14, %v1110_v4 }
 0x23a   :  { %s4697_s16 = sld [smem:[#allocation2 + $0x8f]]  ;;  %v1064_v27 = vadd.f32 %v1063_v41, %v1037_v43  ;;  %v1087_v12 = vadd.f32 %v1086_v50, %v1060_v55  ;;  %v1095_v3 = vadd.f32 %v1094_v28, %v1068_v45  ;;  %v1159_v46 = vmul.f32 %v1158_v8, %v4175_v26 }
 0x23b   :  { %s4701_s29 = sld [smem:[#allocation2 + $0xb7]]  ;;  %v1136_v38 = vadd.f32 %v1135_v56, %v1133_v29  ;;  %v1162_v39 = vstv %s4674_s24  ;;  %v1156_v10 = vadd.f32 %v1155_v1, %v1152_v63  ;;  %v1166_v54 = vstv %s4678_s2 }
 0x23c   :  { %s4705_s11 = sld [smem:[#allocation2 + $0xd7]]  ;;  %v1091_v61 = vadd.f32 %v1090_v11, %v1064_v27  ;;  %v1114_v42 = vadd.f32 %v1113_v30, %v1087_v12  ;;  %v1122_v48 = vadd.f32 %v1121_v15, %v1095_v3  ;;  %v1170_v17 = vstv %s4681_s28 }
 0x23d   :  { %s4709_s15 = sld [smem:[#allocation2 + $0xf7]]  ;;  %v1137_v44 = vmax.f32 %v1136_v38, 0.0  ;;  %v1160_v34 = vadd.f32 %v1159_v46, %v1156_v10  ;;  %v1174_v36 = vstv %s4685_s21 }
 0x23e   :  { %s4713_s26 = sld [smem:[#allocation2 + $0x117]]  ;;  %v1178_v40 = vstv %s4688_s23  ;;  %v1118_v43 = vadd.f32 %v1117_v6, %v1091_v61 }
 0x23f   :  { %s4717_s9 = sld [smem:[#allocation2 + $0x90]]  ;;  %v1181_v18 = vstv %s4693_s8  ;;  %v1179_v5 = vmul.f32 %v1178_v40, %v4167_v22  ;;  %v1140_v33 = vmul.f32 %v1139_v9, %v1137_v44  ;;  %v1144_v24 = vmul.f32 %v1143_v20, %v1137_v44 }
 0x240   :  { %s4721_s3 = sld [smem:[#allocation2 + $0x91]]  ;;  %v1182_v35 = vmul.f32 %v1181_v18, %v4171_v23  ;;  %v1185_v25 = vstv %s4697_s16  ;;  %v1163_v41 = vadd.f32 %v1162_v39, %v1160_v34  ;;  %v1148_v55 = vmul.f32 %v1147_v16, %v1137_v44 }
 0x241   :  { %s4724_s12 = sld [smem:[#allocation2 + $0x92]]  ;;  %v1186_v49 = vmul.f32 %v1185_v25, %v4175_v26  ;;  %v1141_v51 = vadd.f32 %v1140_v33, %v1114_v42  ;;  %v1189_v57 = vstv %s4701_s29  ;;  %v1145_v37 = vadd.f32 %v1144_v24, %v1118_v43 }
 0x242   :  { %s4729_s6 = sld [smem:[#allocation2 + $0xb8]]  ;;  %v1183_v47 = vadd.f32 %v1182_v35, %v1179_v5  ;;  %v1193_v52 = vstv %s4705_s11  ;;  %v1164_v27 = vmax.f32 %v1163_v41, 0.0  ;;  %v1149_v0 = vadd.f32 %v1148_v55, %v1122_v48 }
 0x243   :  { %s4733_s19 = sld [smem:[#allocation2 + $0xd8]]  ;;  %v1197_v13 = vstv %s4709_s15 }
 0x244   :  { %s4739_s0 = sld [smem:[#allocation2 + $0xf8]]  ;;  %v1187_v58 = vadd.f32 %v1186_v49, %v1183_v47  ;;  %v1167_v59 = vmul.f32 %v1166_v54, %v1164_v27  ;;  %v1201_v60 = vstv %s4713_s26  ;;  %v1171_v53 = vmul.f32 %v1170_v17, %v1164_v27 }
 0x245   :  { %s4742_s17 = sld [smem:[#allocation2 + $0x118]]  ;;  %v1205_v62 = vstv %s4717_s9  ;;  %v1175_v12 = vmul.f32 %v1174_v36, %v1164_v27 }
 0x246   :  { %s4747_s10 = sld [smem:[#allocation2 + $0x93]]  ;;  %v1206_v45 = vmul.f32 %v1205_v62, %v4167_v22  ;;  %v1208_v50 = vstv %s4721_s3  ;;  %v1190_v11 = vadd.f32 %v1189_v57, %v1187_v58  ;;  %v1168_v56 = vadd.f32 %v1167_v59, %v1141_v51 }
 0x247   :  { %s4749_s30 = sld [smem:[#allocation2 + $0x94]]  ;;  %v1212_v32 = vstv %s4724_s12  ;;  %v1209_v28 = vmul.f32 %v1208_v50, %v4171_v23  ;;  %v1172_v2 = vadd.f32 %v1171_v53, %v1145_v37  ;;  %v1176_v8 = vadd.f32 %v1175_v12, %v1149_v0 }
 0x248   :  { %s4754_s1 = sld [smem:[#allocation2 + $0x95]]  ;;  %v1216_v14 = vstv %s4729_s6  ;;  %v1191_v61 = vmax.f32 %v1190_v11, 0.0  ;;  %v1213_v7 = vmul.f32 %v1212_v32, %v4175_v26 }
 0x249   :  { %s4758_s4 = sld [smem:[#allocation2 + $0xb9]]  ;;  %v1220_v19 = vstv %s4733_s19  ;;  %v1210_v3 = vadd.f32 %v1209_v28, %v1206_v45 }
 0x24a   :  { %s4761_s7 = sld [smem:[#allocation2 + $0xd9]]  ;;  %v1194_v4 = vmul.f32 %v1193_v52, %v1191_v61  ;;  %v1224_v29 = vstv %s4739_s0  ;;  %v1198_v1 = vmul.f32 %v1197_v13, %v1191_v61  ;;  %v1202_v30 = vmul.f32 %v1201_v60, %v1191_v61 }
 0x24b   :  { %s4765_s18 = sld [smem:[#allocation2 + $0xf9]]  ;;  %v1214_v9 = vadd.f32 %v1213_v7, %v1210_v3  ;;  %v1228_v6 = vstv %s4742_s17 }
 0x24c   :  { %s4768_s5 = sld [smem:[#allocation2 + $0x96]]  ;;  %v1232_v21 = vstv %s4747_s10  ;;  %v1195_v46 = vadd.f32 %v1194_v4, %v1168_v56  ;;  %v1199_v39 = vadd.f32 %v1198_v1, %v1172_v2  ;;  %v1203_v18 = vadd.f32 %v1202_v30, %v1176_v8 }
 0x24d   :  { %s4773_s20 = sld [smem:[#allocation2 + $0x97]]  ;;  %v1235_v31 = vstv %s4749_s30  ;;  %v1233_v63 = vmul.f32 %v1232_v21, %v4167_v22  ;;  %v1217_v10 = vadd.f32 %v1216_v14, %v1214_v9 }
 0x24e   :  { %s4777_s25 = sld [smem:[#allocation2 + $0x98]]  ;;  %v1236_v20 = vmul.f32 %v1235_v31, %v4171_v23  ;;  %v1239_v16 = vstv %s4754_s1 }
 0x24f   :  { %s4781_s14 = sld [smem:[#allocation2 + $0x119]]  ;;  %v1243_v38 = vstv %s4758_s4  ;;  %v1240_v40 = vmul.f32 %v1239_v16, %v4175_v26  ;;  %v1218_v44 = vmax.f32 %v1217_v10, 0.0 }
 0x250   :  { %s4785_s22 = sld [smem:[#allocation2 + $0xba]]  ;;  %v1237_v54 = vadd.f32 %v1236_v20, %v1233_v63  ;;  %v1247_v25 = vstv %s4761_s7 }
 0x251   :  { %s4789_s13 = sld [smem:[#allocation2 + $0x99]]  ;;  %v1251_v48 = vstv %s4765_s18  ;;  %v1221_v36 = vmul.f32 %v1220_v19, %v1218_v44  ;;  %v1225_v24 = vmul.f32 %v1224_v29, %v1218_v44  ;;  %v1229_v41 = vmul.f32 %v1228_v6, %v1218_v44 }
 0x252   :  { %s4793_s27 = sld [smem:[#allocation2 + $0x9a]]  ;;  %v1259_v42 = vstv %s4768_s5  ;;  %v1241_v34 = vadd.f32 %v1240_v40, %v1237_v54 }
 0x253   :  { %s4797_s24 = sld [smem:[#allocation2 + $0xda]]  ;;  %v1262_v43 = vstv %s4773_s20  ;;  %v1260_v5 = vmul.f32 %v1259_v42, %v4167_v22  ;;  %v1222_v52 = vadd.f32 %v1221_v36, %v1195_v46  ;;  %v1226_v37 = vadd.f32 %v1225_v24, %v1199_v39 }
 0x254   :  { %s4801_s2 = sld [smem:[#allocation2 + $0x9b]]  ;;  %v1266_v15 = vstv %s4777_s25  ;;  %v1263_v35 = vmul.f32 %v1262_v43, %v4171_v23  ;;  %v1244_v47 = vadd.f32 %v1243_v38, %v1241_v34  ;;  %v1230_v27 = vadd.f32 %v1229_v41, %v1203_v18 }
 0x255   :  { %s4804_s28 = sld [smem:[#allocation2 + $0xfa]]  ;;  %v1255_v33 = vstv %s4781_s14  ;;  %v1267_v17 = vmul.f32 %v1266_v15, %v4175_v26 }
 0x256   :  { %s4809_s21 = sld [smem:[#allocation2 + $0x11a]]  ;;  %v1264_v49 = vadd.f32 %v1263_v35, %v1260_v5  ;;  %v1270_v51 = vstv %s4785_s22  ;;  %v1245_v58 = vmax.f32 %v1244_v47, 0.0 }
 0x257   :  { %s4813_s23 = sld [smem:[#allocation2 + $0xbb]]  ;;  %v1286_v55 = vstv %s4789_s13 }
 0x258   :  { %s4819_s8 = sld [smem:[#allocation2 + $0xdb]]  ;;  %v1289_v57 = vstv %s4793_s27  ;;  %v1268_v62 = vadd.f32 %v1267_v17, %v1264_v49  ;;  %v1287_v0 = vmul.f32 %v1286_v55, %v4167_v22  ;;  %v1248_v32 = vmul.f32 %v1247_v25, %v1245_v58 }
 0x259   :  { %s4824_s16 = sld [smem:[#allocation2 + $0xfb]]  ;;  %v1290_v45 = vmul.f32 %v1289_v57, %v4171_v23  ;;  %v1252_v59 = vmul.f32 %v1251_v48, %v1245_v58  ;;  %v1274_v11 = vstv %s4797_s24  ;;  %v1256_v13 = vmul.f32 %v1255_v33, %v1245_v58 }
 0x25a   :  { %s4826_s29 = sld [smem:[#allocation2 + $0x11b]]  ;;  %v1293_v50 = vstv %s4801_s2  ;;  %v1271_v60 = vadd.f32 %v1270_v51, %v1268_v62  ;;  %v1249_v28 = vadd.f32 %v1248_v32, %v1222_v52 }
 0x25b   :  { %v1291_v53 = vadd.f32 %v1290_v45, %v1287_v0  ;;  %v1294_v12 = vmul.f32 %v1293_v50, %v4175_v26  ;;  %v1278_v14 = vstv %s4804_s28  ;;  %v1253_v7 = vadd.f32 %v1252_v59, %v1226_v37  ;;  %s3119_s11 = sld [smem:[#allocation2 + $0x11c]] }
 0x25c   :  { %v1282_v56 = vstv %s4809_s21  ;;  %v1257_v19 = vadd.f32 %v1256_v13, %v1230_v27  ;;  %v1272_v2 = vmax.f32 %v1271_v60, 0.0  ;;  %s3120_s15 = sld [smem:[#allocation2 + $0x11d]] }
 0x25d   :  { %v1297_v61 = vstv %s4813_s23  ;;  %v1295_v3 = vadd.f32 %v1294_v12, %v1291_v53  ;;  %s3121_s26 = sld [smem:[#allocation2 + $0x11e]] }
 0x25e   :  { %v1275_v21 = vmul.f32 %v1274_v11, %v1272_v2  ;;  %v1279_v31 = vmul.f32 %v1278_v14, %v1272_v2  ;;  %v1283_v8 = vmul.f32 %v1282_v56, %v1272_v2  ;;  %v1301_v29 = vstv %s4819_s8  ;;  %s4842_s9 = sld [smem:[#allocation2 + $0x36]] }
 0x25f   :  { %v1298_v4 = vadd.f32 %v1297_v61, %v1295_v3  ;;  %v1305_v63 = vstv %s4824_s16  ;;  %s4844_s3 = sld [smem:[#allocation2 + $0x39]] }
 0x260   :  { %v1309_v1 = vstv %s4826_s29  ;;  %v1276_v9 = vadd.f32 %v1275_v21, %v1249_v28  ;;  %v1280_v20 = vadd.f32 %v1279_v31, %v1253_v7  ;;  %v1284_v16 = vadd.f32 %v1283_v8, %v1257_v19  ;;  %s4846_s12 = sld [smem:[#allocation2 + $0x37]] }
 0x261   :  { %v1299_v46 = vmax.f32 %v1298_v4, 0.0  ;;  %v1314_v40 = vstv %s3119_s11  ;;  %s4848_s6 = sld [smem:[#allocation2 + $0x3a]] }
 0x262   :  { %v1318_v18 = vstv %s3120_s15  ;;  %s4850_s19 = sld [smem:[#allocation2 + $0x38]] }
 0x263   :  { %v1302_v30 = vmul.f32 %v1301_v29, %v1299_v46  ;;  %v1306_v6 = vmul.f32 %v1305_v63, %v1299_v46  ;;  %v1310_v38 = vmul.f32 %v1309_v1, %v1299_v46  ;;  %v1322_v44 = vstv %s3121_s26  ;;  %s4852_s0 = sld [smem:[#allocation2 + $0x3b]] }
 0x264   :  { %s4854_s17 = sld [smem:[#allocation2 + $0x11f]]  ;;  %v1349_v62 = vstv %s4842_s9 }
 0x265   :  { %v1303_v39 = vadd.f32 %v1302_v30, %v1276_v9  ;;  %v1307_v10 = vadd.f32 %v1306_v6, %v1280_v20  ;;  %v1311_v54 = vadd.f32 %v1310_v38, %v1284_v16  ;;  %s4856_s10 = sld [smem:[#allocation2 + $0x120]]  ;;  %v1352_v0 = vstv %s4844_s3 }
 0x266   :  { %s4858_s30 = sld [smem:[#allocation2 + $0x121]]  ;;  %v1356_v45 = vstv %s4846_s12 }
 0x267   :  { %v1312_v42 = vadd.f32 %v1303_v39, %v4167_v22  ;;  %v1316_v43 = vadd.f32 %v1307_v10, %v4171_v23  ;;  %v1320_v15 = vadd.f32 %v1311_v54, %v4175_v26  ;;  %s4860_s1 = sld [smem:[#allocation2 + $0x143]]  ;;  %v1359_v50 = vstv %s4848_s6 }
 0x268   :  { %s4862_s4 = sld [smem:[#allocation2 + $0x122]]  ;;  %v1363_v59 = vstv %s4850_s19 }
 0x269   :  { %v1315_v34 = vadd.f32 %v1314_v40, %v1312_v42  ;;  %v1319_v5 = vadd.f32 %v1318_v18, %v1316_v43  ;;  %v1323_v35 = vadd.f32 %v1322_v44, %v1320_v15  ;;  %s4864_s7 = sld [smem:[#allocation2 + $0x123]]  ;;  %v1366_v11 = vstv %s4852_s0 }
 0x26a   :  { %s4866_s18 = sld [smem:[#allocation2 + $0x124]]  ;;  %v1369_v13 = vstv %s4854_s17 }
 0x26b   :  { %v1324_v25 = vadd.f32 %v1319_v5, %v1315_v34  ;;  %s4868_s5 = sld [smem:[#allocation2 + $0x125]]  ;;  %v1372_v28 = vstv %s4856_s10 }
 0x26c   :  { %s4870_s20 = sld [smem:[#allocation2 + $0x126]]  ;;  %v1376_v14 = vstv %s4858_s30 }
 0x26d   :  { %v1325_v48 = vadd.f32 %v1324_v25, %v1323_v35  ;;  %s4872_s25 = sld [smem:[#allocation2 + $0x127]]  ;;  %v1380_v56 = vstv %s4860_s1 }
 0x26e   :  { %s4874_s14 = sld [smem:[#allocation2 + $0x128]]  ;;  %v1383_v61 = vstv %s4862_s4 }
 0x26f   :  { %v1326_v33 = vmul.f32 0.33333334, %v1325_v48  ;;  %s4876_s22 = sld [smem:[#allocation2 + $0x129]]  ;;  %v1386_v7 = vstv %s4864_s7 }
 0x270   :  { %s4878_s13 = sld [smem:[#allocation2 + $0x12a]]  ;;  %v1390_v21 = vstv %s4866_s18 }
 0x271   :  { %v1327_v17 = vsub.f32 %v1315_v34, %v1326_v33  ;;  %v1329_v36 = vsub.f32 %v1319_v5, %v1326_v33  ;;  %v1332_v24 = vsub.f32 %v1323_v35, %v1326_v33  ;;  %s4880_s27 = sld [smem:[#allocation2 + $0x146]]  ;;  %v1397_v31 = vstv %s4868_s5 }
 0x272   :  { %s4882_s24 = sld [smem:[#allocation2 + $0x12b]]  ;;  %v1400_v8 = vstv %s4870_s20 }
 0x273   :  { %v1328_v41 = vmul.f32 %v1327_v17, %v1327_v17  ;;  %v1330_v47 = vmul.f32 %v1329_v36, %v1329_v36  ;;  %v1333_v51 = vmul.f32 %v1332_v24, %v1332_v24  ;;  %s4884_s2 = sld [smem:[#allocation2 + $0x12c]]  ;;  %v1404_v4 = vstv %s4872_s25 }
 0x274   :  { %s4886_s28 = sld [smem:[#allocation2 + $0x12d]]  ;;  %v1411_v29 = vstv %s4874_s14 }
 0x275   :  { %v1331_v49 = vadd.f32 %v1330_v47, %v1328_v41  ;;  %s4892_s21 = sld [smem:[#allocation2 + $0x147]]  ;;  %v1414_v9 = vstv %s4876_s22 }
 0x276   :  { %s4897_s23 = sld [smem:[#allocation2 + $0x12e]]  ;;  %v1418_v20 = vstv %s4878_s13 }
 0x277   :  { %v1334_v22 = vadd.f32 %v1333_v51, %v1331_v49  ;;  %s4900_s8 = sld [smem:[#allocation2 + $0x12f]]  ;;  %v1422_v16 = vstv %s4880_s27 }
 0x278   :  { %s4906_s16 = sld [smem:[#allocation2 + $0x130]]  ;;  %v1425_v46 = vstv %s4882_s24 }
 0x279   :  { %v1335_v23 = vmul.f32 0.33333334, %v1334_v22  ;;  %s4919_s29 = sld [smem:[#allocation2 + $0x144]]  ;;  %v1428_v30 = vstv %s4884_s2 }
 0x27a   :  { %v1432_v6 = vstv %s4886_s28  ;;  %s4930_s11 = sld [smem:[#allocation2 + $0x148]] }
 0x27b   :  { %v1336_v26 = vadd.f32 1e-05, %v1335_v23  ;;  %s4939_s15 = sld [smem:[#allocation2 + $0x145]]  ;;  %v1436_v48 = vstv %s4892_s21 }
 0x27c   :  { %v1439_v43 = vstv %s4897_s23  ;;  %s4985_s26 = sld [smem:[#allocation2 + $0x131]] }
 0x27d   :  { %3472 = vrsqrt.f32 %v1336_v26  ;;  %vm1343_vm4 = vweird.f32 %v1336_v26  ;;  %v1442_v5 = vstv %s4900_s8  ;;  %s4987_s9 = sld [smem:[#allocation2 + $0x132]] }
 0x27e   :  { %v1446_v33 = vstv %s4906_s16  ;;  %s4990_s3 = sld [smem:[#allocation2 + $0x133]] }
 0x27f   :  { %s4993_s12 = sld [smem:[#allocation2 + $0x149]] }
 0x280   :  { %s4995_s6 = sld [smem:[#allocation2 + $0x134]] }
 0x281   :  { %s4998_s19 = sld [smem:[#allocation2 + $0x135]] }
 0x282   :  { %s5000_s0 = sld [smem:[#allocation2 + $0x136]] }
 0x283   :  { %v3473_v55 = vpop.eup %3472  ;;  %s5003_s17 = sld [smem:[#allocation2 + $0x14a]] }
 0x284   :  { %v1338_v57 = vmul.f32 %v3473_v55, %v1336_v26  ;;  %vm1344_vm3 = vweird.f32 %v3473_v55  ;;  %s5005_s10 = sld [smem:[#allocation2 + $0x137]] }
 0x285   :  { %vm1345_vm5 = vmor %vm1343_vm4, %vm1344_vm3  ;;  %s5007_s30 = sld [smem:[#allocation2 + $0x138]] }
 0x286   :  { %v1339_v52 = vmul.f32 %v3473_v55, %v1338_v57  ;;  %s5009_s1 = sld [smem:[#allocation2 + $0x139]] }
 0x287   :  { %s5011_s4 = sld [smem:[#allocation2 + $0x14b]] }
 0x288   :  { %v1340_v37 = vmul.f32 0.5, %v1339_v52  ;;  %s5013_s7 = sld [smem:[#allocation2 + $0x13a]] }
 0x289   :  { %s5016_s18 = sld [smem:[#allocation2 + $0x13b]] }
 0x28a   :  { %v1341_v27 = vsub.f32 1.5, %v1340_v37  ;;  %s5018_s5 = sld [smem:[#allocation2 + $0x13c]] }
 0x28b   :  { %s5020_s20 = sld [smem:[#allocation2 + $0x14c]] }
 0x28c   :  { %v1342_v58 = vmul.f32 %v3473_v55, %v1341_v27  ;;  %s5022_s25 = sld [smem:[#allocation2 + $0x13d]] }
 0x28d   :  { %s5024_s14 = sld [smem:[#allocation2 + $0x13e]] }
 0x28e   :  { %v1346_v32 = vsel %vm1345_vm5, %v3473_v55, %v1342_v58  ;;  %s5026_s22 = sld [smem:[#allocation2 + $0x13f]] }
 0x28f   :  { %v1347_v60 = vmul.f32 %v1346_v32, %v1327_v17  ;;  %v1354_v53 = vmul.f32 %v1346_v32, %v1329_v36  ;;  %v1361_v12 = vmul.f32 %v1346_v32, %v1332_v24  ;;  %s5028_s13 = sld [smem:[#allocation2 + $0x14d]] }
 0x290   :  { %s5030_s27 = sld [smem:[#allocation2 + $0x140]] }
 0x291   :  { %v1350_v19 = vmul.f32 %v1349_v62, %v1347_v60  ;;  %v1357_v2 = vmul.f32 %v1356_v45, %v1354_v53  ;;  %v1364_v3 = vmul.f32 %v1363_v59, %v1361_v12  ;;  %v1394_v62 = vstv %s4919_s29  ;;  %s5032_s24 = sld [smem:[#allocation2 + $0x141]] }
 0x292   :  { %s5034_s2 = sld [smem:[#allocation2 + $0x142]] }
 0x293   :  { %v4913_v63 = vadd.f32 %v1352_v0, %v1350_v19  ;;  %v4915_v1 = vadd.f32 %v1359_v50, %v1357_v2  ;;  %v4925_v38 = vadd.f32 %v1366_v11, %v1364_v3  ;;  %v1450_v50 = vstv %s4930_s11  ;;  %s5038_s28 = sld [smem:[#allocation2 + $0x14e]] }
 0x294   :  { %s5043_s21 = sld [smem:[#allocation2 + $0x14f]] }
 0x295   :  { %v1370_v39 = vmul.f32 %v1369_v13, %v4913_v63  ;;  %v1373_v10 = vmul.f32 %v1372_v28, %v4915_v1  ;;  %v1384_v54 = vmul.f32 %v1383_v61, %v4913_v63  ;;  %v1387_v40 = vmul.f32 %v1386_v7, %v4915_v1  ;;  %s5048_s23 = sld [smem:[#allocation2 + $0x152]] }
 0x296   :  { %v1398_v18 = vmul.f32 %v1397_v31, %v4913_v63  ;;  %v1401_v42 = vmul.f32 %v1400_v8, %v4915_v1  ;;  %v1412_v44 = vmul.f32 %v1411_v29, %v4913_v63  ;;  %v1415_v34 = vmul.f32 %v1414_v9, %v4915_v1  ;;  %s5052_s8 = sld [smem:[#allocation2 + $0x150]] }
 0x297   :  { %v1374_v15 = vadd.f32 %v1373_v10, %v1370_v39  ;;  %v1388_v35 = vadd.f32 %v1387_v40, %v1384_v54  ;;  %v1426_v25 = vmul.f32 %v1425_v46, %v4913_v63  ;;  %v1377_v17 = vmul.f32 %v1376_v14, %v4925_v38  ;;  %s5056_s16 = sld [smem:[#allocation2 + $0x153]] }
 0x298   :  { %v1416_v36 = vadd.f32 %v1415_v34, %v1412_v44  ;;  %v1419_v24 = vmul.f32 %v1418_v20, %v4925_v38  ;;  %v1429_v41 = vmul.f32 %v1428_v30, %v4915_v1  ;;  %v1391_v47 = vmul.f32 %v1390_v21, %v4925_v38  ;;  %s5063_s29 = sld [smem:[#allocation2 + $0x151]] }
 0x299   :  { %v1402_v49 = vadd.f32 %v1401_v42, %v1398_v18  ;;  %v1440_v51 = vmul.f32 %v1439_v43, %v4913_v63  ;;  %v1443_v22 = vmul.f32 %v1442_v5, %v4915_v1  ;;  %v1378_v23 = vadd.f32 %v1377_v17, %v1374_v15  ;;  %s5068_s11 = sld [smem:[#allocation2 + $0x154]] }
 0x29a   :  { %v1420_v26 = vadd.f32 %v1419_v24, %v1416_v36  ;;  %v1430_v55 = vadd.f32 %v1429_v41, %v1426_v25  ;;  %v1433_v57 = vmul.f32 %v1432_v6, %v4925_v38  ;;  %v1392_v52 = vadd.f32 %v1391_v47, %v1388_v35 }
 0x29b   :  { %v1405_v37 = vmul.f32 %v1404_v4, %v4925_v38  ;;  %v1444_v27 = vadd.f32 %v1443_v22, %v1440_v51  ;;  %v1447_v58 = vmul.f32 %v1446_v33, %v4925_v38  ;;  %v1381_v11 = vadd.f32 %v1380_v56, %v1378_v23  ;;  %6625 = sst [smem:[#allocation31_spill]] %s5048_s23 }
 0x29c   :  { %v4954_v0 = vadd.f32 %v1422_v16, %v1420_v26  ;;  %v1434_v45 = vadd.f32 %v1433_v57, %v1430_v55  ;;  %v1395_v12 = vadd.f32 %v1394_v62, %v1392_v52  ;;  %v1408_v28 = vstv %s4939_s15  ;;  %s5072_s15 = sld [smem:[#allocation2 + $0x15b]] }
 0x29d   :  { %v1406_v32 = vadd.f32 %v1405_v37, %v1402_v49  ;;  %v1448_v59 = vadd.f32 %v1447_v58, %v1444_v27  ;;  %6626 = sst [smem:[#allocation36_spill]] %s5056_s16 }
 0x29e   :  { %v1437_v13 = vadd.f32 %v1436_v48, %v1434_v45  ;;  %v1452_v60 = vperm.slane %v4954_v0, 0  ;;  %v1460_v53 = vperm.slane %v4954_v0, 1  ;;  %v1468_v61 = vperm.slane %v4954_v0, 2 }
 0x29f   :  { %v4960_v14 = vadd.f32 %v1450_v50, %v1448_v59  ;;  %v1476_v56 = vperm.slane %v4954_v0, 3  ;;  %v4965_v8 = vadd.f32 %v1408_v28, %v1406_v32  ;;  %v1484_v30 = vperm.slane %v4954_v0, 4  ;;  %6627 = sst [smem:[#allocation37_spill]] %s5068_s11 }
 0x2a0   :  { %v1453_v7 = vmul.f32 %v1452_v60, %v1381_v11  ;;  %v1454_v19 = vperm.slane %v1437_v13, 0  ;;  %v1461_v2 = vmul.f32 %v1460_v53, %v1381_v11  ;;  %v1462_v3 = vperm.slane %v1437_v13, 1 }
 0x2a1   :  { %v1457_v21 = vperm.slane %v4960_v14, 0  ;;  %v1470_v31 = vperm.slane %v1437_v13, 2  ;;  %v1465_v9 = vperm.slane %v4960_v14, 1  ;;  %v1469_v20 = vmul.f32 %v1468_v61, %v1381_v11 }
 0x2a2   :  { %v1455_v4 = vmul.f32 %v1454_v19, %v1395_v12  ;;  %v1463_v29 = vmul.f32 %v1462_v3, %v1395_v12  ;;  %v1478_v46 = vperm.slane %v1437_v13, 3  ;;  %v1473_v10 = vperm.slane %v4960_v14, 2  ;;  %6628 = sst [smem:[#allocation38_spill]] %s5072_s15 }
 0x2a3   :  { %v1471_v16 = vmul.f32 %v1470_v31, %v1395_v12  ;;  %v1458_v54 = vmul.f32 %v1457_v21, %v4965_v8  ;;  %v1477_v40 = vmul.f32 %v1476_v56, %v1381_v11  ;;  %v1486_v42 = vperm.slane %v1437_v13, 4 }
 0x2a4   :  { %v1456_v6 = vadd.f32 %v1455_v4, %v1453_v7  ;;  %v1464_v39 = vadd.f32 %v1463_v29, %v1461_v2  ;;  %v1479_v18 = vmul.f32 %v1478_v46, %v1395_v12  ;;  %v1466_v43 = vmul.f32 %v1465_v9, %v4965_v8 }
 0x2a5   :  { %v1492_v15 = vperm.slane %v4954_v0, 5  ;;  %v1472_v34 = vadd.f32 %v1471_v16, %v1469_v20  ;;  %v1481_v5 = vperm.slane %v4960_v14, 3  ;;  %v1485_v35 = vmul.f32 %v1484_v30, %v1381_v11 }
 0x2a6   :  { %v4973_v44 = vadd.f32 %v1458_v54, %v1456_v6  ;;  %v1467_v25 = vadd.f32 %v1466_v43, %v1464_v39  ;;  %v1487_v48 = vmul.f32 %v1486_v42, %v1395_v12  ;;  %v1494_v33 = vperm.slane %v1437_v13, 5 }
 0x2a7   :  { %v1500_v17 = vperm.slane %v4954_v0, 6  ;;  %v1474_v36 = vmul.f32 %v1473_v10, %v4965_v8  ;;  %v1480_v24 = vadd.f32 %v1479_v18, %v1477_v40  ;;  %v1489_v41 = vperm.slane %v4960_v14, 4 }
 0x2a8   :  { %v1502_v47 = vperm.slane %v1437_v13, 6  ;;  %v1493_v49 = vmul.f32 %v1492_v15, %v1381_v11  ;;  %v1495_v51 = vmul.f32 %v1494_v33, %v1395_v12  ;;  %v1508_v22 = vperm.slane %v4954_v0, 7 }
 0x2a9   :  { %v1475_v23 = vadd.f32 %v1474_v36, %v1472_v34  ;;  %v1482_v26 = vmul.f32 %v1481_v5, %v4965_v8  ;;  %v1497_v55 = vperm.slane %v4960_v14, 5  ;;  %v1510_v57 = vperm.slane %v1437_v13, 7 }
 0x2aa   :  { %v1488_v52 = vadd.f32 %v1487_v48, %v1485_v35  ;;  %v1501_v37 = vmul.f32 %v1500_v17, %v1381_v11  ;;  %v1503_v27 = vmul.f32 %v1502_v47, %v1395_v12  ;;  %v1516_v58 = vmax.f32 %v4973_v44, %v1467_v25 }
 0x2ab   :  { %v1483_v62 = vadd.f32 %v1482_v26, %v1480_v24  ;;  %v1490_v45 = vmul.f32 %v1489_v41, %v4965_v8  ;;  %v1505_v50 = vperm.slane %v4960_v14, 6  ;;  %v1496_v32 = vadd.f32 %v1495_v51, %v1493_v49 }
 0x2ac   :  { %v1509_v0 = vmul.f32 %v1508_v22, %v1381_v11  ;;  %v1511_v59 = vmul.f32 %v1510_v57, %v1395_v12  ;;  %v1517_v60 = vmax.f32 %v1516_v58, %v1475_v23  ;;  %v1498_v13 = vmul.f32 %v1497_v55, %v4965_v8 }
 0x2ad   :  { %v1491_v53 = vadd.f32 %v1490_v45, %v1488_v52  ;;  %v1504_v28 = vadd.f32 %v1503_v27, %v1501_v37  ;;  %v1513_v61 = vperm.slane %v4960_v14, 7  ;;  %v1506_v11 = vmul.f32 %v1505_v50, %v4965_v8 }
 0x2ae   :  { %v1518_v7 = vmax.f32 %v1517_v60, %v1483_v62  ;;  %v1499_v19 = vadd.f32 %v1498_v13, %v1496_v32  ;;  %v1512_v12 = vadd.f32 %v1511_v59, %v1509_v0  ;;  %v1564_v34 = vstv %s4985_s26  ;;  %s5078_s26 = sld [smem:[#allocation2 + $0x15c]] }
 0x2af   :  { %v1507_v3 = vadd.f32 %v1506_v11, %v1504_v28  ;;  %v1514_v21 = vmul.f32 %v1513_v61, %v4965_v8  ;;  %v1567_v35 = vstv %s4987_s9  ;;  %v1565_v17 = vmul.f32 %v1564_v34, %v4913_v63  ;;  %s5084_s9 = sld [smem:[#allocation2 + $0x15d]] }
 0x2b0   :  { %v1519_v2 = vmax.f32 %v1518_v7, %v1491_v53  ;;  %v1568_v24 = vmul.f32 %v1567_v35, %v4915_v1  ;;  %v1578_v41 = vstv %s4995_s6  ;;  %v1581_v47 = vstv %s4998_s19  ;;  %s5093_s6 = sld [smem:[#allocation2 + $0x1db]] }
 0x2b1   :  { %v1515_v14 = vadd.f32 %v1514_v21, %v1512_v12  ;;  %v1592_v51 = vstv %s5005_s10  ;;  %v1595_v22 = vstv %s5007_s30  ;;  %v1571_v55 = vstv %s4990_s3  ;;  %s5087_s3 = sld [smem:[#allocation2 + $0x1bb]] }
 0x2b2   :  { %v1520_v31 = vmax.f32 %v1519_v2, %v1499_v19  ;;  %v1579_v57 = vmul.f32 %v1578_v41, %v4913_v63  ;;  %v1582_v52 = vmul.f32 %v1581_v47, %v4915_v1  ;;  %v1569_v27 = vadd.f32 %v1568_v24, %v1565_v17  ;;  %s5097_s19 = sld [smem:[#allocation2 + $0x1fb]] }
 0x2b3   :  { %v1593_v58 = vmul.f32 %v1592_v51, %v4913_v63  ;;  %v1572_v32 = vmul.f32 %v1571_v55, %v4925_v38  ;;  %v1585_v0 = vstv %s5000_s0  ;;  %v1599_v13 = vstv %s5009_s1  ;;  %s5101_s10 = sld [smem:[#allocation2 + $0x21b]] }
 0x2b4   :  { %v1521_v56 = vmax.f32 %v1520_v31, %v1507_v3  ;;  %6629 = sst [smem:[#allocation42_spill]] %s5078_s26  ;;  %v1583_v60 = vadd.f32 %v1582_v52, %v1579_v57  ;;  %v1586_v11 = vmul.f32 %v1585_v0, %v4925_v38  ;;  %v1600_v12 = vmul.f32 %v1599_v13, %v4925_v38 }
 0x2b5   :  { %6630 = sst [smem:[#allocation48_spill]] %s5084_s9  ;;  %v1573_v28 = vadd.f32 %v1572_v32, %v1569_v27  ;;  %v1589_v21 = vstv %s5003_s17 }
 0x2b6   :  { %v1522_v4 = vmax.f32 %v1521_v56, %v1515_v14  ;;  %6632 = sst [smem:[#allocation61_spill]] %s5093_s6  ;;  %v1587_v2 = vadd.f32 %v1586_v11, %v1583_v60 }
 0x2b7   :  { %6631 = sst [smem:[#allocation60_spill]] %s5087_s3 }
 0x2b8   :  { %v1523_v29 = vsub.f32 %v4973_v44, %v1522_v4  ;;  %v1526_v9 = vsub.f32 %v1467_v25, %v1522_v4  ;;  %v1529_v8 = vsub.f32 %v1475_v23, %v1522_v4  ;;  %v1532_v20 = vsub.f32 %v1483_v62, %v1522_v4  ;;  %6633 = sst [smem:[#allocation43_spill]] %s5097_s19 }
 0x2b9   :  { %v1535_v6 = vsub.f32 %v1491_v53, %v1522_v4  ;;  %v1538_v10 = vsub.f32 %v1499_v19, %v1522_v4  ;;  %v1541_v40 = vsub.f32 %v1507_v3, %v1522_v4  ;;  %v1544_v42 = vsub.f32 %v1515_v14, %v1522_v4  ;;  %6634 = sst [smem:[#allocation44_spill]] %s5101_s10 }
 0x2ba   :  { %v1524_v16 = vmul.f32 1.442695, %v1523_v29  ;;  %v1527_v46 = vmul.f32 1.442695, %v1526_v9  ;;  %v1530_v30 = vmul.f32 1.442695, %v1529_v8  ;;  %v1596_v62 = vmul.f32 %v1595_v22, %v4915_v1 }
 0x2bb   :  { %v1533_v39 = vmul.f32 1.442695, %v1532_v20  ;;  %v1536_v54 = vmul.f32 1.442695, %v1535_v6  ;;  %v1539_v18 = vmul.f32 1.442695, %v1538_v10  ;;  %v1575_v19 = vstv %s4993_s12 }
 0x2bc   :  { %3474 = vpow2.f32 %v1524_v16  ;;  %v1542_v44 = vmul.f32 1.442695, %v1541_v40  ;;  %v1545_v48 = vmul.f32 1.442695, %v1544_v42  ;;  %v1597_v61 = vadd.f32 %v1596_v62, %v1593_v58  ;;  %s5106_s0 = sld [smem:[#allocation2 + $0x15e]] }
 0x2bd   :  { %3476 = vpow2.f32 %v1527_v46  ;;  %s5109_s30 = sld [smem:[#allocation2 + $0x15f]]  ;;  %v5113_v3 = vadd.f32 %v1575_v19, %v1573_v28  ;;  %v1603_v14 = vstv %s5011_s4  ;;  %v5123_v56 = vadd.f32 %v1589_v21, %v1587_v2 }
 0x2be   :  { %3478 = vpow2.f32 %v1530_v30  ;;  %s5111_s1 = sld [smem:[#allocation2 + $0x160]]  ;;  %v1601_v31 = vadd.f32 %v1600_v12, %v1597_v61 }
 0x2bf   :  { %3480 = vpow2.f32 %v1533_v39  ;;  %s5116_s10 = sld [smem:[#allocation2 + $0x1bc]]  ;;  %v1605_v29 = vperm.slane %v5113_v3, 0  ;;  %v1607_v9 = vperm.slane %v5113_v3, 1  ;;  %v1610_v8 = vperm.slane %v5113_v3, 2 }
 0x2c0   :  { %3482 = vpow2.f32 %v1536_v54  ;;  %s5119_s12 = sld [smem:[#allocation2 + $0x1dc]]  ;;  %v5127_v4 = vadd.f32 %v1603_v14, %v1601_v31  ;;  %v1613_v16 = vperm.slane %v5113_v3, 3  ;;  %v1616_v46 = vperm.slane %v5113_v3, 4 }
 0x2c1   :  { %3484 = vpow2.f32 %v1539_v18  ;;  %s5121_s19 = sld [smem:[#allocation2 + $0x1fc]]  ;;  %v1619_v30 = vperm.slane %v5113_v3, 5  ;;  %v1622_v6 = vperm.slane %v5113_v3, 6  ;;  %v1625_v40 = vperm.slane %v5113_v3, 7 }
 0x2c2   :  { %v5036_v43 = vpop.eup %3474  ;;  %3486 = vpow2.f32 %v1542_v44  ;;  %6635 = sst [smem:[#allocation45_spill]] %s5106_s0  ;;  %v1628_v42 = vperm.slane %v5123_v56, 0  ;;  %v1630_v44 = vperm.slane %v5123_v56, 1  ;;  %v1633_v34 = vperm.slane %v5123_v56, 2 }
 0x2c3   :  { %v5040_v15 = vpop.eup %3476  ;;  %3488 = vpow2.f32 %v1545_v48  ;;  %s5125_s0 = sld [smem:[#allocation2 + $0x21c]]  ;;  %v1639_v35 = vperm.slane %v5123_v56, 4  ;;  %v1642_v48 = vperm.slane %v5123_v56, 5  ;;  %v1651_v17 = vperm.slane %v5127_v4, 0 }
 0x2c4   :  { %v1547_v5 = vadd.f32 %v5040_v15, %v5036_v43  ;;  %v5050_v25 = vpop.eup %3478  ;;  %6636 = sst [smem:[#allocation49_spill]] %s5111_s1  ;;  %v1648_v22 = vperm.slane %v5123_v56, 7  ;;  %v1656_v62 = vperm.slane %v5127_v4, 2  ;;  %v1662_v61 = vperm.slane %v5127_v4, 4 }
 0x2c5   :  { %v5058_v36 = vpop.eup %3480  ;;  %6637 = sst [smem:[#allocation50_spill]] %s5116_s10  ;;  %v1665_v21 = vperm.slane %v5127_v4, 5  ;;  %v1668_v31 = vperm.slane %v5127_v4, 6 }
 0x2c6   :  { %v1548_v33 = vadd.f32 %v5050_v25, %v1547_v5  ;;  %v5070_v23 = vpop.eup %3482  ;;  %6638 = sst [smem:[#allocation51_spill]] %s5119_s12 }
 0x2c7   :  { %v5080_v37 = vpop.eup %3484  ;;  %6639 = sst [smem:[#allocation55_spill]] %s5121_s19 }
 0x2c8   :  { %v1549_v49 = vadd.f32 %v5058_v36, %v1548_v33  ;;  %v5089_v50 = vpop.eup %3486  ;;  %s5132_s17 = sld [smem:[#allocation2 + $0x161]]  ;;  %v1645_v33 = vperm.slane %v5123_v56, 6 }
 0x2c9   :  { %v5099_v53 = vpop.eup %3488  ;;  %6640 = sst [smem:[#allocation66_spill]] %s5125_s0 }
 0x2ca   :  { %v1550_v26 = vadd.f32 %v5070_v23, %v1549_v49  ;;  %s5138_s4 = sld [smem:[#allocation2 + $0x162]] }
 0x2cb   :  { %s5150_s0 = sld [smem:[#allocation2 + $0x1bd]] }
 0x2cc   :  { %v1551_v45 = vadd.f32 %v5080_v37, %v1550_v26 }
 0x2ce   :  { %v1552_v59 = vadd.f32 %v5089_v50, %v1551_v45  ;;  %6641 = sst [smem:[#allocation62_spill]] %s5132_s17 }
 0x2cf   :  { %s5144_s17 = sld [smem:[#allocation2 + $0x163]] }
 0x2d0   :  { %v1553_v7 = vadd.f32 %v5099_v53, %v1552_v59  ;;  %6642 = sst [smem:[#allocation72_spill]] %s5138_s4 }
 0x2d1   :  { %6644 = sst [smem:[#allocation57_spill]] %s5150_s0 }
 0x2d2   :  { %3490 = vrcp.f32 %v1553_v7  ;;  %s5154_s4 = sld [smem:[#allocation2 + $0x1dd]] }
 0x2d3   :  { %s5162_s0 = sld [smem:[#allocation2 + $0x21d]] }
 0x2d5   :  { %6643 = sst [smem:[#allocation56_spill]] %s5144_s17 }
 0x2d6   :  { %s5160_s17 = sld [smem:[#allocation2 + $0x1fd]] }
 0x2d8   :  { %v3491_v20 = vpop.eup %3490  ;;  %6645 = sst [smem:[#allocation58_spill]] %s5154_s4 }
 0x2d9   :  { %v1555_v39 = vmul.f32 %v3491_v20, %v5036_v43  ;;  %v1556_v10 = vmul.f32 %v3491_v20, %v5040_v15  ;;  %v1557_v54 = vmul.f32 %v3491_v20, %v5050_v25  ;;  %v1558_v18 = vmul.f32 %v3491_v20, %v5058_v36  ;;  %6647 = sst [smem:[#allocation82_spill]] %s5162_s0 }
 0x2da   :  { %v1636_v15 = vperm.slane %v5123_v56, 3  ;;  %v1559_v25 = vmul.f32 %v3491_v20, %v5070_v23  ;;  %v1560_v49 = vmul.f32 %v3491_v20, %v5080_v37  ;;  %v1653_v23 = vperm.slane %v5127_v4, 1  ;;  %s5167_s4 = sld [smem:[#allocation2 + $0x164]] }
 0x2db   :  { %v1606_v5 = vmul.f32 %v1605_v29, %v1555_v39  ;;  %v1608_v43 = vmul.f32 %v1607_v9, %v1556_v10  ;;  %v1611_v24 = vmul.f32 %v1610_v8, %v1557_v54  ;;  %v1629_v41 = vmul.f32 %v1628_v42, %v1555_v39  ;;  %s5174_s0 = sld [smem:[#allocation2 + $0x166]] }
 0x2dc   :  { %6646 = sst [smem:[#allocation81_spill]] %s5160_s17  ;;  %v1631_v47 = vmul.f32 %v1630_v44, %v1556_v10  ;;  %v1614_v51 = vmul.f32 %v1613_v16, %v1558_v18  ;;  %v1634_v57 = vmul.f32 %v1633_v34, %v1557_v54  ;;  %v1652_v52 = vmul.f32 %v1651_v17, %v1555_v39 }
 0x2dd   :  { %v1609_v36 = vadd.f32 %v1608_v43, %v1606_v5  ;;  %s5169_s17 = sld [smem:[#allocation2 + $0x165]]  ;;  %v1561_v27 = vmul.f32 %v3491_v20, %v5089_v50  ;;  %v1654_v58 = vmul.f32 %v1653_v23, %v1556_v10  ;;  %v1659_v37 = vperm.slane %v5127_v4, 3 }
 0x2de   :  { %v1632_v55 = vadd.f32 %v1631_v47, %v1629_v41  ;;  %v1617_v32 = vmul.f32 %v1616_v46, %v1559_v25  ;;  %v1637_v59 = vmul.f32 %v1636_v15, %v1558_v18  ;;  %v1562_v60 = vmul.f32 %v3491_v20, %v5099_v53 }
 0x2df   :  { %v1612_v26 = vadd.f32 %v1611_v24, %v1609_v36  ;;  %v1655_v13 = vadd.f32 %v1654_v58, %v1652_v52  ;;  %v1657_v28 = vmul.f32 %v1656_v62, %v1557_v54  ;;  %v1620_v7 = vmul.f32 %v1619_v30, %v1560_v49 }
 0x2e0   :  { %6648 = sst [smem:[#allocation63_spill]] %s5167_s4  ;;  %v1635_v0 = vadd.f32 %v1634_v57, %v1632_v55  ;;  %v1640_v11 = vmul.f32 %v1639_v35, %v1559_v25  ;;  %v1660_v2 = vmul.f32 %v1659_v37, %v1558_v18  ;;  %v1623_v14 = vmul.f32 %v1622_v6, %v1561_v27 }
 0x2e1   :  { %6650 = sst [smem:[#allocation65_spill]] %s5174_s0  ;;  %v1615_v45 = vadd.f32 %v1614_v51, %v1612_v26  ;;  %v1658_v12 = vadd.f32 %v1657_v28, %v1655_v13  ;;  %v1643_v29 = vmul.f32 %v1642_v48, %v1560_v49  ;;  %v1663_v8 = vmul.f32 %v1662_v61, %v1559_v25 }
 0x2e2   :  { %s5176_s4 = sld [smem:[#allocation2 + $0x1be]]  ;;  %v1638_v19 = vadd.f32 %v1637_v59, %v1635_v0  ;;  %v1671_v20 = vperm.slane %v5127_v4, 7  ;;  %v1675_v16 = vstv %s5013_s7  ;;  %v1626_v30 = vmul.f32 %v1625_v40, %v1562_v60 }
 0x2e3   :  { %6649 = sst [smem:[#allocation64_spill]] %s5169_s17  ;;  %v1618_v50 = vadd.f32 %v1617_v32, %v1615_v45  ;;  %v1661_v9 = vadd.f32 %v1660_v2, %v1658_v12  ;;  %v1646_v39 = vmul.f32 %v1645_v33, %v1561_v27  ;;  %v1666_v54 = vmul.f32 %v1665_v21, %v1560_v49 }
 0x2e4   :  { %s5180_s17 = sld [smem:[#allocation2 + $0x1de]]  ;;  %v1641_v56 = vadd.f32 %v1640_v11, %v1638_v19  ;;  %v1689_v18 = vstv %s5022_s25  ;;  %v1703_v42 = vstv %s5030_s27  ;;  %v1649_v34 = vmul.f32 %v1648_v22, %v1562_v60 }
 0x2e5   :  { %s5182_s0 = sld [smem:[#allocation2 + $0x1fe]]  ;;  %v1621_v53 = vadd.f32 %v1620_v7, %v1618_v50  ;;  %v1664_v10 = vadd.f32 %v1663_v8, %v1661_v9  ;;  %v1678_v5 = vstv %s5016_s18  ;;  %v1669_v40 = vmul.f32 %v1668_v31, %v1561_v27 }
 0x2e6   :  { %v1644_v6 = vadd.f32 %v1643_v29, %v1641_v56  ;;  %s5205_s7 = sld [smem:[#allocation2 + $0x1df]]  ;;  %v1692_v43 = vstv %s5024_s14  ;;  %v1706_v15 = vstv %s5032_s24  ;;  %v1672_v36 = vmul.f32 %v1671_v20, %v1562_v60 }
 0x2e7   :  { %v1624_v46 = vadd.f32 %v1623_v14, %v1621_v53  ;;  %v1667_v3 = vadd.f32 %v1666_v54, %v1664_v10  ;;  %s5211_s25 = sld [smem:[#allocation2 + $0x21f]]  ;;  %v1682_v24 = vstv %s5018_s5  ;;  %v1696_v41 = vstv %s5026_s22 }
 0x2e8   :  { %6651 = sst [smem:[#allocation77_spill]] %s5176_s4  ;;  %v1647_v44 = vadd.f32 %v1646_v39, %v1644_v6  ;;  %v1710_v22 = vstv %s5034_s2  ;;  %v1686_v62 = vstv %s5020_s20  ;;  %v1700_v37 = vstv %s5028_s13 }
 0x2e9   :  { %s5186_s4 = sld [smem:[#allocation2 + $0x21e]]  ;;  %v1627_v4 = vadd.f32 %v1626_v30, %v1624_v46  ;;  %v1670_v17 = vadd.f32 %v1669_v40, %v1667_v3  ;;  %v1714_v45 = vstv %s5038_s28  ;;  %v1744_v9 = vstv %s5043_s21 }
 0x2ea   :  { %6652 = sst [smem:[#allocation69_spill]] %s5180_s17  ;;  %v1650_v35 = vadd.f32 %v1649_v34, %v1647_v44  ;;  %v1747_v8 = vstv %s5048_s23  ;;  %v1751_v20 = vstv %s5052_s8  ;;  %v1758_v46 = vstv %s5063_s29 }
 0x2eb   :  { %6653 = sst [smem:[#allocation78_spill]] %s5182_s0  ;;  %v1676_v25 = vmul.f32 %v1675_v16, %v1627_v4  ;;  %v1690_v48 = vmul.f32 %v1689_v18, %v1627_v4  ;;  %v1704_v33 = vmul.f32 %v1703_v42, %v1627_v4  ;;  %v1673_v23 = vadd.f32 %v1672_v36, %v1670_v17 }
 0x2ec   :  { %s5190_s17 = sld [smem:[#allocation2 + $0x167]]  ;;  %v1679_v47 = vmul.f32 %v1678_v5, %v1650_v35  ;;  %v1693_v49 = vmul.f32 %v1692_v43, %v1650_v35  ;;  %v1707_v51 = vmul.f32 %v1706_v15, %v1650_v35  ;;  %v1754_v16 = vstv %s5056_s16 }
 0x2ed   :  { %s5194_s0 = sld [smem:[#allocation2 + $0x168]]  ;;  %v1683_v52 = vmul.f32 %v1682_v24, %v1673_v23  ;;  %v1697_v27 = vmul.f32 %v1696_v41, %v1673_v23  ;;  %v1711_v58 = vmul.f32 %v1710_v22, %v1673_v23  ;;  %v1761_v30 = vstv %s5068_s11 }
 0x2ee   :  { %6658 = sst [smem:[#allocation53_spill]] %s5205_s7  ;;  %v1680_v26 = vadd.f32 %v1679_v47, %v1676_v25  ;;  %v1694_v55 = vadd.f32 %v1693_v49, %v1690_v48  ;;  %v1708_v57 = vadd.f32 %v1707_v51, %v1704_v33  ;;  %v1764_v6 = vstv %s5072_s15 }
 0x2ef   :  { %6654 = sst [smem:[#allocation79_spill]] %s5186_s4  ;;  %v1767_v10 = vstv %s5078_s26  ;;  %v1771_v54 = vstv %s5084_s9  ;;  %v1775_v18 = vstv %s5087_s3  ;;  %v1779_v42 = vstv %s5093_s6 }
 0x2f0   :  { %s5198_s4 = sld [smem:[#allocation2 + $0x169]]  ;;  %v1684_v32 = vadd.f32 %v1683_v52, %v1680_v26  ;;  %v1698_v0 = vadd.f32 %v1697_v27, %v1694_v55  ;;  %v1712_v59 = vadd.f32 %v1711_v58, %v1708_v57  ;;  %v1791_v3 = vstv %s5109_s30 }
 0x2f1   :  { %6660 = sst [smem:[#allocation33_spill]] %s5211_s25  ;;  %v1795_v40 = vstv %s5111_s1  ;;  %v1799_v43 = vstv %s5116_s10  ;;  %v1803_v15 = vstv %s5119_s12  ;;  %v1807_v25 = vstv %s5121_s19 }
 0x2f2   :  { %6655 = sst [smem:[#allocation76_spill]] %s5190_s17  ;;  %v1687_v60 = vadd.f32 %v1686_v62, %v1684_v32  ;;  %v1701_v13 = vadd.f32 %v1700_v37, %v1698_v0  ;;  %v1715_v28 = vadd.f32 %v1714_v45, %v1712_v59  ;;  %v1884_v59 = vstv %s5205_s7 }
 0x2f3   :  { %s5202_s17 = sld [smem:[#allocation2 + $0x1bf]]  ;;  %v1872_v37 = vstv %s5194_s0 }
 0x2f4   :  { %s5215_s18 = sld [smem:[#allocation2 + $0x16a]]  ;;  %v1716_v61 = vadd.f32 %v1687_v60, %v4913_v63  ;;  %v1717_v50 = vadd.f32 %v1701_v13, %v4915_v1  ;;  %v1718_v7 = vadd.f32 %v1715_v28, %v4925_v38  ;;  %v1892_v13 = vstv %s5211_s25 }
 0x2f5   :  { %s5218_s14 = sld [smem:[#allocation2 + $0x16b]] }
 0x2f6   :  { %6656 = sst [smem:[#allocation20_spill]] %s5198_s4  ;;  %v1719_v19 = vadd.f32 %v1717_v50, %v1716_v61 }
 0x2f7   :  { %s5209_s4 = sld [smem:[#allocation2 + $0x1ff]] }
 0x2f8   :  { %s5220_s27 = sld [smem:[#allocation2 + $0x16c]]  ;;  %v1720_v11 = vadd.f32 %v1719_v19, %v1718_v7 }
 0x2f9   :  { %6657 = sst [smem:[#allocation52_spill]] %s5202_s17  ;;  %v1880_v32 = vstv %s5202_s17 }
 0x2fa   :  { %6661 = sst [smem:[#allocation80_spill]] %s5215_s18  ;;  %v1721_v12 = vmul.f32 0.33333334, %v1720_v11  ;;  %v1896_v28 = vstv %s5215_s18 }
 0x2fb   :  { %6662 = sst [smem:[#allocation54_spill]] %s5218_s14 }
 0x2fc   :  { %s5222_s24 = sld [smem:[#allocation2 + $0x1c0]]  ;;  %v5258_v63 = vsub.f32 %v1716_v61, %v1721_v12  ;;  %v5260_v1 = vsub.f32 %v1717_v50, %v1721_v12  ;;  %v5262_v38 = vsub.f32 %v1718_v7, %v1721_v12 }
 0x2fd   :  { %6659 = sst [smem:[#allocation32_spill]] %s5209_s4  ;;  %v1888_v60 = vstv %s5209_s4 }
 0x2fe   :  { %6663 = sst [smem:[#allocation67_spill]] %s5220_s27  ;;  %v1723_v2 = vmul.f32 %v5258_v63, %v5258_v63  ;;  %v1725_v21 = vmul.f32 %v5260_v1, %v5260_v1  ;;  %v1728_v53 = vmul.f32 %v5262_v38, %v5262_v38 }
 0x2ff   :  { %s5224_s5 = sld [smem:[#allocation2 + $0x1e0]] }
 0x300   :  { %s5229_s22 = sld [smem:[#allocation2 + $0x200]]  ;;  %v1726_v31 = vadd.f32 %v1725_v21, %v1723_v2 }
 0x301   :  { %s5231_s2 = sld [smem:[#allocation2 + $0x220]] }
 0x302   :  { %6664 = sst [smem:[#allocation68_spill]] %s5222_s24  ;;  %v1729_v14 = vadd.f32 %v1728_v53, %v1726_v31 }
 0x303   :  { %s5233_s27 = sld [smem:[#allocation2 + $0x16d]] }
 0x304   :  { %s5235_s24 = sld [smem:[#allocation2 + $0x16e]]  ;;  %v1730_v56 = vmul.f32 0.33333334, %v1729_v14 }
 0x305   :  { %6665 = sst [smem:[#allocation73_spill]] %s5224_s5  ;;  %v1911_v11 = vstv %s5224_s5 }
 0x306   :  { %6666 = sst [smem:[#allocation59_spill]] %s5229_s22  ;;  %v5290_v29 = vadd.f32 1e-05, %v1730_v56 }
 0x307   :  { %6667 = sst [smem:[#allocation83_spill]] %s5231_s2 }
 0x308   :  { %s5237_s14 = sld [smem:[#allocation2 + $0x16f]]  ;;  %3492 = vrsqrt.f32 %v5290_v29  ;;  %vm1738_vm6 = vweird.f32 %v5290_v29 }
 0x309   :  { %6668 = sst [smem:[#allocation74_spill]] %s5233_s27 }
 0x30a   :  { %6669 = sst [smem:[#allocation75_spill]] %s5235_s24 }
 0x30b   :  { %s5241_s20 = sld [smem:[#allocation2 + $0x1c1]] }
 0x30c   :  { %s5243_s13 = sld [smem:[#allocation2 + $0x1e1]] }
 0x30d   :  { %s5246_s28 = sld [smem:[#allocation2 + $0x201]] }
 0x30e   :  { %6670 = sst [smem:[#allocation8_spill]] %s5237_s14  ;;  %v3493_v39 = vpop.eup %3492 }
 0x30f   :  { %s5248_s27 = sld [smem:[#allocation2 + $0x221]]  ;;  %v1733_v4 = vmul.f32 %v3493_v39, %v5290_v29  ;;  %vm1739_vm7 = vweird.f32 %v3493_v39 }
 0x310   :  { %s5250_s2 = sld [smem:[#allocation2 + $0x170]]  ;;  %vm1740_vm8 = vmor %vm1738_vm6, %vm1739_vm7 }
 0x311   :  { %6671 = sst [smem:[#allocation9_spill]] %s5241_s20  ;;  %v1734_v35 = vmul.f32 %v3493_v39, %v1733_v4 }
 0x312   :  { %6672 = sst [smem:[#allocation10_spill]] %s5243_s13 }
 0x313   :  { %6673 = sst [smem:[#allocation12_spill]] %s5246_s28  ;;  %v1735_v47 = vmul.f32 0.5, %v1734_v35 }
 0x314   :  { %s5252_s24 = sld [smem:[#allocation2 + $0x171]] }
 0x315   :  { %6674 = sst [smem:[#allocation13_spill]] %s5248_s27  ;;  %v1736_v57 = vsub.f32 1.5, %v1735_v47 }
 0x316   :  { %6675 = sst [smem:[#allocation16_spill]] %s5250_s2 }
 0x317   :  { %s5254_s14 = sld [smem:[#allocation2 + $0x172]]  ;;  %v1737_v0 = vmul.f32 %v3493_v39, %v1736_v57 }
 0x318   :  { %s5256_s22 = sld [smem:[#allocation2 + $0x1c2]] }
 0x319   :  { %s5264_s13 = sld [smem:[#allocation2 + $0x1e2]]  ;;  %v1741_v19 = vsel %vm1740_vm8, %v3493_v39, %v1737_v0 }
 0x31a   :  { %6676 = sst [smem:[#allocation70_spill]] %s5252_s24  ;;  %v1742_v21 = vmul.f32 %v1741_v19, %v5258_v63  ;;  %v1749_v31 = vmul.f32 %v1741_v19, %v5260_v1  ;;  %v1756_v53 = vmul.f32 %v1741_v19, %v5262_v38 }
 0x31b   :  { %s5266_s28 = sld [smem:[#allocation2 + $0x202]] }
 0x31c   :  { %s5272_s24 = sld [smem:[#allocation2 + $0x222]]  ;;  %v1745_v63 = vmul.f32 %v1744_v9, %v1742_v21  ;;  %v1752_v1 = vmul.f32 %v1751_v20, %v1749_v31  ;;  %v1759_v38 = vmul.f32 %v1758_v46, %v1756_v53 }
 0x31d   :  { %6677 = sst [smem:[#allocation71_spill]] %s5254_s14 }
 0x31e   :  { %6678 = sst [smem:[#allocation11_spill]] %s5256_s22  ;;  %v5415_v9 = vadd.f32 %v1747_v8, %v1745_v63  ;;  %v5419_v20 = vadd.f32 %v1754_v16, %v1752_v1  ;;  %v5423_v46 = vadd.f32 %v1761_v30, %v1759_v38 }
 0x31f   :  { %6679 = sst [smem:[#allocation19_spill]] %s5264_s13 }
 0x320   :  { %s5274_s14 = sld [smem:[#allocation2 + $0x173]]  ;;  %v1765_v16 = vmul.f32 %v1764_v6, %v5415_v9  ;;  %v1768_v30 = vmul.f32 %v1767_v10, %v5419_v20  ;;  %v1772_v63 = vmul.f32 %v1771_v54, %v5423_v46  ;;  %v1792_v38 = vmul.f32 %v1791_v3, %v5419_v20 }
 0x321   :  { %6680 = sst [smem:[#allocation25_spill]] %s5266_s28  ;;  %v1796_v53 = vmul.f32 %v1795_v40, %v5423_v46 }
 0x322   :  { %6681 = sst [smem:[#allocation26_spill]] %s5272_s24  ;;  %v1769_v54 = vadd.f32 %v1768_v30, %v1765_v16 }
 0x323   :  { %s5278_s22 = sld [smem:[#allocation2 + $0x174]] }
 0x324   :  { %s5280_s13 = sld [smem:[#allocation2 + $0x175]] }
 0x325   :  { %s5282_s28 = sld [smem:[#allocation2 + $0x1c3]] }
 0x326   :  { %6682 = sst [smem:[#allocation27_spill]] %s5274_s14 }
 0x327   :  { %s5284_s2 = sld [smem:[#allocation2 + $0x1e3]] }
 0x328   :  { %s5286_s24 = sld [smem:[#allocation2 + $0x203]] }
 0x329   :  { %6683 = sst [smem:[#allocation34_spill]] %s5278_s22 }
 0x32a   :  { %6684 = sst [smem:[#allocation39_spill]] %s5280_s13 }
 0x32b   :  { %6685 = sst [smem:[#allocation14_spill]] %s5282_s28 }
 0x32c   :  { %s5288_s14 = sld [smem:[#allocation2 + $0x223]] }
 0x32d   :  { %6686 = sst [smem:[#allocation47_spill]] %s5284_s2 }
 0x32e   :  { %6687 = sst [smem:[#allocation40_spill]] %s5286_s24 }
 0x32f   :  { %s5292_s22 = sld [smem:[#allocation2 + $0x176]] }
 0x330   :  { %s5294_s13 = sld [smem:[#allocation2 + $0x177]] }
 0x331   :  { %s5297_s2 = sld [smem:[#allocation2 + $0x178]] }
 0x332   :  { %6688 = sst [smem:[#allocation41_spill]] %s5288_s14 }
 0x333   :  { %s5299_s28 = sld [smem:[#allocation2 + $0x1c4]] }
 0x334   :  { %s5301_s24 = sld [smem:[#allocation2 + $0x1e4]] }
 0x335   :  { %6689 = sst [smem:[#allocation46_spill]] %s5292_s22 }
 0x336   :  { %6690 = sst [smem:[#allocation21_spill]] %s5294_s13 }
 0x337   :  { %6691 = sst [smem:[#allocation15_spill]] %s5297_s2 }
 0x338   :  { %s5303_s14 = sld [smem:[#allocation2 + $0x204]] }
 0x339   :  { %6692 = sst [smem:[#allocation17_spill]] %s5299_s28 }
 0x33a   :  { %6693 = sst [smem:[#allocation28_spill]] %s5301_s24 }
 0x33b   :  { %s6695_s27 = sld [smem:[#allocation43_spill]] }
 0x33c   :  { %s6696_s22 = sld [smem:[#allocation44_spill]] }
 0x33d   :  { %s5308_s13 = sld [smem:[#allocation2 + $0x224]] }
 0x33e   :  { %6694 = sst [smem:[#allocation35_spill]] %s5303_s14 }
 0x33f   :  { %s6698_s20 = sld [smem:[#allocation45_spill]] }
 0x340   :  { %s5314_s28 = sld [smem:[#allocation2 + $0x179]] }
 0x341   :  { %s6700_s14 = sld [smem:[#allocation66_spill]]  ;;  %v1782_v44 = vstv %s6695_s27 }
 0x342   :  { %s6701_s24 = sld [smem:[#allocation62_spill]]  ;;  %v1785_v34 = vstv %s6696_s22 }
 0x343   :  { %6697 = sst [smem:[#allocation18_spill]] %s5308_s13 }
 0x344   :  { %s5320_s13 = sld [smem:[#allocation2 + $0x17a]] }
 0x345   :  { %s6703_s2 = sld [smem:[#allocation72_spill]]  ;;  %v1788_v5 = vstv %s6698_s20 }
 0x346   :  { %6699 = sst [smem:[#allocation22_spill]] %s5314_s28  ;;  %v1789_v1 = vmul.f32 %v1788_v5, %v5415_v9 }
 0x347   :  { %s6704_s15 = sld [smem:[#allocation56_spill]]  ;;  %v1811_v48 = vstv %s6700_s14 }
 0x348   :  { %s6705_s11 = sld [smem:[#allocation57_spill]]  ;;  %v1815_v33 = vstv %s6701_s24 }
 0x349   :  { %s6706_s28 = sld [smem:[#allocation58_spill]]  ;;  %v1816_v6 = vmul.f32 %v1815_v33, %v5415_v9  ;;  %v1793_v33 = vadd.f32 %v1792_v38, %v1789_v1 }
 0x34a   :  { %6702 = sst [smem:[#allocation23_spill]] %s5320_s13 }
 0x34b   :  { %s5327_s26 = sld [smem:[#allocation2 + $0x17b]]  ;;  %v1818_v17 = vstv %s6703_s2 }
 0x34c   :  { %s6708_s3 = sld [smem:[#allocation81_spill]]  ;;  %v1819_v10 = vmul.f32 %v1818_v17, %v5419_v20 }
 0x34d   :  { %s6709_s6 = sld [smem:[#allocation82_spill]]  ;;  %v1822_v36 = vstv %s6704_s15 }
 0x34e   :  { %s5333_s13 = sld [smem:[#allocation2 + $0x1c5]]  ;;  %v1826_v24 = vstv %s6705_s11  ;;  %v1823_v5 = vmul.f32 %v1822_v36, %v5423_v46  ;;  %v1820_v31 = vadd.f32 %v1819_v10, %v1816_v6 }
 0x34f   :  { %s6711_s9 = sld [smem:[#allocation63_spill]]  ;;  %v1830_v41 = vstv %s6706_s28 }
 0x350   :  { %s6712_s16 = sld [smem:[#allocation64_spill]]  ;;  %v1824_v1 = vadd.f32 %v1823_v5, %v1820_v31 }
 0x351   :  { %6707 = sst [smem:[#allocation24_spill]] %s5327_s26 }
 0x352   :  { %s6713_s23 = sld [smem:[#allocation65_spill]]  ;;  %v1834_v49 = vstv %s6708_s3 }
 0x353   :  { %s6714_s27 = sld [smem:[#allocation77_spill]]  ;;  %v1838_v51 = vstv %s6709_s6 }
 0x354   :  { %6710 = sst [smem:[#allocation29_spill]] %s5333_s13 }
 0x355   :  { %s5338_s22 = sld [smem:[#allocation2 + $0x1e5]]  ;;  %v1842_v22 = vstv %s6711_s9 }
 0x356   :  { %s6716_s26 = sld [smem:[#allocation69_spill]]  ;;  %v1845_v23 = vstv %s6712_s16  ;;  %v1843_v3 = vmul.f32 %v1842_v22, %v5415_v9  ;;  %v1773_v22 = vadd.f32 %v1772_v63, %v1769_v54 }
 0x357   :  { %s6717_s1 = sld [smem:[#allocation78_spill]]  ;;  %v1846_v40 = vmul.f32 %v1845_v23, %v5419_v20  ;;  %v1873_v23 = vmul.f32 %v1872_v37, %v5419_v20 }
 0x358   :  { %s6718_s10 = sld [smem:[#allocation79_spill]]  ;;  %v1849_v26 = vstv %s6713_s23  ;;  %v1776_v37 = vadd.f32 %v1775_v18, %v1773_v22 }
 0x359   :  { %s5344_s12 = sld [smem:[#allocation2 + $0x205]]  ;;  %v1853_v55 = vstv %s6714_s27  ;;  %v1850_v17 = vmul.f32 %v1849_v26, %v5423_v46  ;;  %v1847_v16 = vadd.f32 %v1846_v40, %v1843_v3  ;;  %v1797_v26 = vadd.f32 %v1796_v53, %v1793_v33 }
 0x35a   :  { %s6720_s13 = sld [smem:[#allocation76_spill]]  ;;  %v1777_v18 = vmax.f32 %v1776_v37, 0.0 }
 0x35b   :  { %6715 = sst [smem:[#allocation30_spill]] %s5338_s22  ;;  %v1851_v38 = vadd.f32 %v1850_v17, %v1847_v16  ;;  %v1800_v31 = vadd.f32 %v1799_v43, %v1797_v26 }
 0x35c   :  { %s6721_s19 = sld [smem:[#allocation20_spill]]  ;;  %v1857_v52 = vstv %s6716_s26  ;;  %v1783_v3 = vmul.f32 %v1782_v44, %v1777_v18 }
 0x35d   :  { %s5348_s14 = sld [smem:[#allocation2 + $0x225]]  ;;  %v1861_v27 = vstv %s6717_s1 }
 0x35e   :  { %s5354_s22 = sld [smem:[#allocation2 + $0x17c]]  ;;  %v1865_v58 = vstv %s6718_s10 }
 0x35f   :  { %6719 = sst [smem:[#allocation45_spill]] %s5344_s12 }
 0x360   :  { %s6724_s12 = sld [smem:[#allocation54_spill]]  ;;  %v1869_v62 = vstv %s6720_s13 }
 0x361   :  { %s6725_s28 = sld [smem:[#allocation67_spill]]  ;;  %v1870_v36 = vmul.f32 %v1869_v62, %v5415_v9  ;;  %v1897_v62 = vmul.f32 %v1896_v28, %v5415_v9  ;;  %v1827_v28 = vadd.f32 %v1826_v24, %v1824_v1  ;;  %v1801_v24 = vmax.f32 %v1800_v31, 0.0 }
 0x362   :  { %s6726_s3 = sld [smem:[#allocation68_spill]]  ;;  %v1876_v45 = vstv %s6721_s19 }
 0x363   :  { %6722 = sst [smem:[#allocation62_spill]] %s5348_s14  ;;  %v1877_v30 = vmul.f32 %v1876_v45, %v5423_v46  ;;  %v1874_v6 = vadd.f32 %v1873_v23, %v1870_v36  ;;  %v1828_v54 = vmax.f32 %v1827_v28, 0.0  ;;  %v1804_v33 = vmul.f32 %v1803_v15, %v1801_v24 }
 0x364   :  { %6723 = sst [smem:[#allocation72_spill]] %s5354_s22  ;;  %v1808_v17 = vmul.f32 %v1807_v25, %v1801_v24 }
 0x365   :  { %s5359_s6 = sld [smem:[#allocation2 + $0x17d]]  ;;  %v1878_v10 = vadd.f32 %v1877_v30, %v1874_v6  ;;  %v1831_v36 = vmul.f32 %v1830_v41, %v1828_v54  ;;  %v1839_v44 = vmul.f32 %v1838_v51, %v1828_v54 }
 0x366   :  { %s6728_s14 = sld [smem:[#allocation59_spill]]  ;;  %v1899_v61 = vstv %s6724_s12  ;;  %v1809_v25 = vadd.f32 %v1808_v17, %v1783_v3 }
 0x367   :  { %s6729_s11 = sld [smem:[#allocation83_spill]]  ;;  %v1903_v50 = vstv %s6725_s28  ;;  %v1900_v63 = vmul.f32 %v1899_v61, %v5419_v20  ;;  %v1881_v41 = vadd.f32 %v1880_v32, %v1878_v10 }
 0x368   :  { %s5365_s27 = sld [smem:[#allocation2 + $0x17e]]  ;;  %v1907_v7 = vstv %s6726_s3  ;;  %v1904_v45 = vmul.f32 %v1903_v50, %v5423_v46  ;;  %v1854_v50 = vadd.f32 %v1853_v55, %v1851_v38  ;;  %v1780_v55 = vmul.f32 %v1779_v42, %v1777_v18 }
 0x369   :  { %s6731_s22 = sld [smem:[#allocation74_spill]]  ;;  %v1901_v61 = vadd.f32 %v1900_v63, %v1897_v62  ;;  %v1835_v42 = vmul.f32 %v1834_v49, %v1828_v54  ;;  %v1882_v32 = vmax.f32 %v1881_v41, 0.0 }
 0x36a   :  { %s5370_s1 = sld [smem:[#allocation2 + $0x1c6]]  ;;  %v1855_v40 = vmax.f32 %v1854_v50, 0.0  ;;  %v1805_v15 = vadd.f32 %v1804_v33, %v1780_v55 }
 0x36b   :  { %6727 = sst [smem:[#allocation56_spill]] %s5359_s6  ;;  %v1836_v23 = vadd.f32 %v1835_v42, %v1809_v25  ;;  %v1889_v38 = vmul.f32 %v1888_v60, %v1882_v32  ;;  %v1893_v6 = vmul.f32 %v1892_v13, %v1882_v32 }
 0x36c   :  { %s6733_s6 = sld [smem:[#allocation75_spill]]  ;;  %v1915_v12 = vstv %s6728_s14  ;;  %v1862_v22 = vmul.f32 %v1861_v27, %v1855_v40  ;;  %v1832_v27 = vadd.f32 %v1831_v36, %v1805_v15 }
 0x36d   :  { %s6734_s10 = sld [smem:[#allocation8_spill]]  ;;  %v1919_v2 = vstv %s6729_s11 }
 0x36e   :  { %6730 = sst [smem:[#allocation63_spill]] %s5365_s27  ;;  %v1863_v62 = vadd.f32 %v1862_v22, %v1836_v23 }
 0x36f   :  { %s6735_s26 = sld [smem:[#allocation9_spill]]  ;;  %v1923_v14 = vstv %s6731_s22 }
 0x370   :  { %6732 = sst [smem:[#allocation64_spill]] %s5370_s1  ;;  %v1924_v53 = vmul.f32 %v1923_v14, %v5415_v9  ;;  %v1905_v14 = vadd.f32 %v1904_v45, %v1901_v61  ;;  %v1890_v60 = vadd.f32 %v1889_v38, %v1863_v62 }
 0x371   :  { %s6736_s17 = sld [smem:[#allocation10_spill]] }
 0x372   :  { %s5379_s27 = sld [smem:[#allocation2 + $0x1e6]]  ;;  %v1926_v56 = vstv %s6733_s6  ;;  %v1908_v49 = vadd.f32 %v1907_v7, %v1905_v14 }
 0x373   :  { %s6738_s1 = sld [smem:[#allocation12_spill]]  ;;  %v1930_v29 = vstv %s6734_s10  ;;  %v1927_v43 = vmul.f32 %v1926_v56, %v5419_v20  ;;  %v1786_v56 = vmul.f32 %v1785_v34, %v1777_v18  ;;  %v1858_v34 = vmul.f32 %v1857_v52, %v1855_v40 }
 0x374   :  { %s5384_s25 = sld [smem:[#allocation2 + $0x206]]  ;;  %v1931_v5 = vmul.f32 %v1930_v29, %v5423_v46  ;;  %v1812_v29 = vmul.f32 %v1811_v48, %v1801_v24  ;;  %v1866_v48 = vmul.f32 %v1865_v58, %v1855_v40  ;;  %v1909_v7 = vmax.f32 %v1908_v49, 0.0 }
 0x375   :  { %s6740_s4 = sld [smem:[#allocation13_spill]]  ;;  %v1934_v39 = vstv %s6735_s26  ;;  %v1928_v51 = vadd.f32 %v1927_v43, %v1924_v53  ;;  %v1859_v1 = vadd.f32 %v1858_v34, %v1832_v27 }
 0x376   :  { %s6741_s7 = sld [smem:[#allocation16_spill]]  ;;  %v1813_v16 = vadd.f32 %v1812_v29, %v1786_v56  ;;  %v1916_v31 = vmul.f32 %v1915_v12, %v1909_v7 }
 0x377   :  { %s6742_s3 = sld [smem:[#allocation70_spill]]  ;;  %v1938_v4 = vstv %s6736_s17 }
 0x378   :  { %6737 = sst [smem:[#allocation65_spill]] %s5379_s27  ;;  %v1840_v30 = vadd.f32 %v1839_v44, %v1813_v16  ;;  %v1917_v10 = vadd.f32 %v1916_v31, %v1890_v60 }
 0x379   :  { %s6743_s27 = sld [smem:[#allocation71_spill]]  ;;  %v1942_v35 = vstv %s6738_s1 }
 0x37a   :  { %6739 = sst [smem:[#allocation76_spill]] %s5384_s25  ;;  %v1867_v63 = vadd.f32 %v1866_v48, %v1840_v30 }
 0x37b   :  { %s5390_s28 = sld [smem:[#allocation2 + $0x226]]  ;;  %v6810_v40 = vstv %s6740_s4 }
 0x37c   :  { %s6748_s25 = sld [smem:[#allocation11_spill]]  ;;  %v1950_v57 = vstv %s6741_s7  ;;  %v1894_v13 = vadd.f32 %v1893_v6, %v1867_v63 }
 0x37d   :  { %s5396_s12 = sld [smem:[#allocation2 + $0x17f]]  ;;  %v1953_v0 = vstv %s6742_s3  ;;  %v1951_v52 = vmul.f32 %v1950_v57, %v5415_v9  ;;  %v1932_v57 = vadd.f32 %v1931_v5, %v1928_v51 }
 0x37e   :  { %s6749_s18 = sld [smem:[#allocation19_spill]]  ;;  %v1954_v58 = vmul.f32 %v1953_v0, %v5419_v20  ;;  %v1885_v0 = vmul.f32 %v1884_v59, %v1882_v32 }
 0x37f   :  { %s6750_s19 = sld [smem:[#allocation25_spill]]  ;;  %v1957_v19 = vstv %s6743_s27  ;;  %v1935_v28 = vadd.f32 %v1934_v39, %v1932_v57 }
 0x380   :  { %s6751_s22 = sld [smem:[#allocation27_spill]]  ;;  %v1958_v26 = vmul.f32 %v1957_v19, %v5423_v46  ;;  %v1955_v37 = vadd.f32 %v1954_v58, %v1951_v52  ;;  %v1912_v19 = vmul.f32 %v1911_v11, %v1909_v7  ;;  %v1886_v59 = vadd.f32 %v1885_v0, %v1859_v1 }
 0x381   :  { %6744 = sst [smem:[#allocation12_spill]] %s5390_s28  ;;  %v1920_v11 = vmul.f32 %v1919_v2, %v1909_v7  ;;  %v1936_v12 = vmax.f32 %v1935_v28, 0.0 }
 0x382   :  { %s6752_s28 = sld [smem:[#allocation34_spill]]  ;;  %v1961_v21 = vstv %s6748_s25  ;;  %v1959_v61 = vadd.f32 %v1958_v26, %v1955_v37  ;;  %v1913_v50 = vadd.f32 %v1912_v19, %v1886_v59 }
 0x383   :  { %s5405_s6 = sld [smem:[#allocation2 + $0x180]]  ;;  %v1921_v2 = vadd.f32 %v1920_v11, %v1894_v13  ;;  %v1939_v24 = vmul.f32 %v1938_v4, %v1936_v12  ;;  %v1947_v33 = vmul.f32 %v6810_v40, %v1936_v12 }
 0x384   :  { %s5411_s21 = sld [smem:[#allocation2 + $0x181]]  ;;  %v1962_v39 = vadd.f32 %v1961_v21, %v1959_v61  ;;  %v1943_v21 = vmul.f32 %v1942_v35, %v1936_v12  ;;  %v6813_v35 = vstv %s6749_s18 }
 0x385   :  { %s5426_s29 = sld [smem:[#allocation2 + $0x1c7]]  ;;  %v1940_v3 = vadd.f32 %v1939_v24, %v1913_v50  ;;  %v1948_v44 = vadd.f32 %v1947_v33, %v1921_v2  ;;  %v6816_v34 = vstv %s6750_s19 }
 0x386   :  { %v1977_v47 = vstv %s6751_s22  ;;  %s5432_s5 = sld [smem:[#allocation2 + $0x1e7]]  ;;  %v1963_v54 = vmax.f32 %v1962_v39, 0.0  ;;  %v1944_v56 = vadd.f32 %v1943_v21, %v1917_v10 }
 0x387   :  { %s5446_s11 = sld [smem:[#allocation2 + $0x207]]  ;;  %v1978_v53 = vmul.f32 %v1977_v47, %v5415_v9 }
 0x388   :  { %v1980_v8 = vstv %s6752_s28  ;;  %s5460_s10 = sld [smem:[#allocation2 + $0x227]]  ;;  %v1966_v17 = vmul.f32 %v6813_v35, %v1963_v54  ;;  %v1970_v22 = vmul.f32 %v6816_v34, %v1963_v54 }
 0x389   :  { %s5471_s14 = sld [smem:[#allocation2 + $0x182]]  ;;  %v1981_v18 = vmul.f32 %v1980_v8, %v5419_v20  ;;  %v2088_v35 = vstv %s5405_s6 }
 0x38a   :  { %s5479_s2 = sld [smem:[#allocation2 + $0x183]]  ;;  %v1967_v16 = vadd.f32 %v1966_v17, %v1940_v3  ;;  %v1971_v51 = vadd.f32 %v1970_v22, %v1944_v56  ;;  %v2089_v22 = vmul.f32 %v2088_v35, %v5419_v20 }
 0x38b   :  { %s5487_s8 = sld [smem:[#allocation2 + $0x184]]  ;;  %v1982_v8 = vadd.f32 %v1981_v18, %v1978_v53 }
 0x38c   :  { %6757 = sst [smem:[#allocation13_spill]] %s5432_s5 }
 0x38d   :  { %6758 = sst [smem:[#allocation16_spill]] %s5446_s11 }
 0x38e   :  { %6760 = sst [smem:[#allocation70_spill]] %s5460_s10 }
 0x38f   :  { %6763 = sst [smem:[#allocation71_spill]] %s5471_s14 }
 0x390   :  { %6766 = sst [smem:[#allocation31_spill]] %s5479_s2 }
 0x391   :  { %6770 = sst [smem:[#allocation36_spill]] %s5487_s8 }
 0x392   :  { %s5495_s10 = sld [smem:[#allocation2 + $0x1c8]] }
 0x393   :  { %s5502_s26 = sld [smem:[#allocation2 + $0x1e8]] }
 0x394   :  { %s5511_s24 = sld [smem:[#allocation2 + $0x208]] }
 0x395   :  { %s5518_s20 = sld [smem:[#allocation2 + $0x228]] }
 0x396   :  { %s5523_s23 = sld [smem:[#allocation2 + $0x185]] }
 0x397   :  { %s5541_s11 = sld [smem:[#allocation2 + $0x187]] }
 0x398   :  { %6773 = sst [smem:[#allocation37_spill]] %s5495_s10 }
 0x399   :  { %6775 = sst [smem:[#allocation11_spill]] %s5502_s26 }
 0x39a   :  { %6779 = sst [smem:[#allocation19_spill]] %s5511_s24 }
 0x39b   :  { %6784 = sst [smem:[#allocation25_spill]] %s5518_s20 }
 0x39c   :  { %s5531_s20 = sld [smem:[#allocation2 + $0x186]] }
 0x39d   :  { %s5551_s10 = sld [smem:[#allocation2 + $0x1c9]] }
 0x39e   :  { %s5555_s5 = sld [smem:[#allocation2 + $0x1e9]] }
 0x39f   :  { %s5564_s8 = sld [smem:[#allocation2 + $0x209]] }
 0x3a0   :  { %s6795_s17 = sld [smem:[#allocation39_spill]] }
 0x3a1   :  { %s5569_s2 = sld [smem:[#allocation2 + $0x229]] }
 0x3a2   :  { %s5574_s15 = sld [smem:[#allocation2 + $0x188]] }
 0x3a3   :  { %s5576_s3 = sld [smem:[#allocation2 + $0x189]] }
 0x3a4   :  { %s5585_s27 = sld [smem:[#allocation2 + $0x18a]] }
 0x3a5   :  { %s6800_s16 = sld [smem:[#allocation26_spill]] }
 0x3a6   :  { %v1984_v45 = vstv %s6795_s17  ;;  %s6801_s13 = sld [smem:[#allocation14_spill]] }
 0x3a7   :  { %s5593_s0 = sld [smem:[#allocation2 + $0x1ca]]  ;;  %v1985_v14 = vmul.f32 %v1984_v45, %v5423_v46 }
 0x3a8   :  { %s5598_s30 = sld [smem:[#allocation2 + $0x1ea]] }
 0x3a9   :  { %s6803_s17 = sld [smem:[#allocation46_spill]]  ;;  %v1986_v29 = vadd.f32 %v1985_v14, %v1982_v8 }
 0x3aa   :  { %s6804_s14 = sld [smem:[#allocation21_spill]] }
 0x3ab   :  { %s5607_s24 = sld [smem:[#allocation2 + $0x20a]]  ;;  %v1973_v43 = vstv %s6800_s16 }
 0x3ac   :  { %s6806_s22 = sld [smem:[#allocation47_spill]]  ;;  %v1988_v47 = vstv %s6801_s13  ;;  %v1974_v48 = vmul.f32 %v1973_v43, %v1963_v54 }
 0x3ad   :  { %s5611_s7 = sld [smem:[#allocation2 + $0x22a]]  ;;  %v1989_v41 = vadd.f32 %v1988_v47, %v1986_v29 }
 0x3ae   :  { %s6808_s25 = sld [smem:[#allocation40_spill]]  ;;  %v1975_v57 = vadd.f32 %v1974_v48, %v1948_v44 }
 0x3af   :  { %s5617_s28 = sld [smem:[#allocation2 + $0x18b]]  ;;  %v2004_v5 = vstv %s6803_s17  ;;  %v1990_v30 = vmax.f32 %v1989_v41, 0.0  ;;  %v2096_v41 = vstv %s5426_s29 }
 0x3b0   :  { %s6809_s9 = sld [smem:[#allocation15_spill]]  ;;  %v2007_v55 = vstv %s6804_s14  ;;  %v2005_v42 = vmul.f32 %v2004_v5, %v5415_v9 }
 0x3b1   :  { %6805 = sst [smem:[#allocation27_spill]] %s5607_s24  ;;  %v2008_v15 = vmul.f32 %v2007_v55, %v5419_v20 }
 0x3b2   :  { %s5622_s16 = sld [smem:[#allocation2 + $0x18c]]  ;;  %v1992_v4 = vstv %s6806_s22 }
 0x3b3   :  { %6807 = sst [smem:[#allocation34_spill]] %s5611_s7  ;;  %v2009_v52 = vadd.f32 %v2008_v15, %v2005_v42  ;;  %v1993_v6 = vmul.f32 %v1992_v4, %v1990_v30  ;;  %v2085_v4 = vstv %s5396_s12  ;;  %v2092_v15 = vstv %s5411_s21 }
 0x3b4   :  { %s6811_s13 = sld [smem:[#allocation41_spill]]  ;;  %v1996_v36 = vstv %s6808_s25  ;;  %v2086_v42 = vmul.f32 %v2085_v4, %v5415_v9  ;;  %v2169_v4 = vstv %s5576_s3 }
 0x3b5   :  { %s5627_s1 = sld [smem:[#allocation2 + $0x18d]]  ;;  %v1997_v45 = vmul.f32 %v1996_v36, %v1990_v30  ;;  %v1994_v39 = vadd.f32 %v1993_v6, %v1967_v16 }
 0x3b6   :  { %s6814_s26 = sld [smem:[#allocation17_spill]]  ;;  %v2011_v25 = vstv %s6809_s9 }
 0x3b7   :  { %s5633_s17 = sld [smem:[#allocation2 + $0x1cb]]  ;;  %v2012_v27 = vmul.f32 %v2011_v25, %v5423_v46  ;;  %v1998_v43 = vadd.f32 %v1997_v45, %v1971_v51 }
 0x3b8   :  { %s6817_s14 = sld [smem:[#allocation22_spill]] }
 0x3b9   :  { %s6818_s4 = sld [smem:[#allocation23_spill]]  ;;  %v2013_v26 = vadd.f32 %v2012_v27, %v2009_v52  ;;  %v2090_v52 = vadd.f32 %v2089_v22, %v2086_v42  ;;  %v2093_v27 = vmul.f32 %v2092_v15, %v5423_v46  ;;  %v2162_v22 = vstv %s5569_s2 }
 0x3ba   :  { %s6819_s7 = sld [smem:[#allocation24_spill]]  ;;  %v2000_v49 = vstv %s6811_s13 }
 0x3bb   :  { %6812 = sst [smem:[#allocation38_spill]] %s5627_s1  ;;  %v2001_v28 = vmul.f32 %v2000_v49, %v1990_v30 }
 0x3bc   :  { %s5639_s22 = sld [smem:[#allocation2 + $0x1eb]]  ;;  %v2015_v23 = vstv %s6814_s26 }
 0x3bd   :  { %6815 = sst [smem:[#allocation42_spill]] %s5633_s17  ;;  %v2016_v19 = vadd.f32 %v2015_v23, %v2013_v26  ;;  %v2002_v47 = vadd.f32 %v2001_v28, %v1975_v57  ;;  %v2094_v57 = vadd.f32 %v2093_v27, %v2090_v52  ;;  %v2181_v52 = vstv %s5598_s30 }
 0x3be   :  { %s5642_s18 = sld [smem:[#allocation2 + $0x20b]]  ;;  %v2031_v58 = vstv %s6817_s14 }
 0x3bf   :  { %s6822_s25 = sld [smem:[#allocation28_spill]]  ;;  %v2034_v32 = vstv %s6818_s4  ;;  %v2032_v1 = vmul.f32 %v2031_v58, %v5415_v9  ;;  %v2017_v13 = vmax.f32 %v2016_v19, 0.0  ;;  %v2097_v6 = vadd.f32 %v2096_v41, %v2094_v57 }
 0x3c0   :  { %s6823_s17 = sld [smem:[#allocation35_spill]]  ;;  %v2038_v7 = vstv %s6819_s7  ;;  %v2035_v62 = vmul.f32 %v2034_v32, %v5419_v20 }
 0x3c1   :  { %s6824_s19 = sld [smem:[#allocation18_spill]]  ;;  %v2039_v38 = vmul.f32 %v2038_v7, %v5423_v46 }
 0x3c2   :  { %6820 = sst [smem:[#allocation48_spill]] %s5639_s22  ;;  %v2036_v31 = vadd.f32 %v2035_v62, %v2032_v1 }
 0x3c3   :  { %s5646_s1 = sld [smem:[#allocation2 + $0x22b]] }
 0x3c4   :  { %6821 = sst [smem:[#allocation49_spill]] %s5642_s18  ;;  %v2040_v53 = vadd.f32 %v2039_v38, %v2036_v31 }
 0x3c5   :  { %s5651_s9 = sld [smem:[#allocation2 + $0x18e]]  ;;  %v2019_v63 = vstv %s6822_s25 }
 0x3c6   :  { %s6826_s13 = sld [smem:[#allocation29_spill]]  ;;  %v2023_v37 = vstv %s6823_s17  ;;  %v2020_v21 = vmul.f32 %v2019_v63, %v2017_v13 }
 0x3c7   :  { %s6827_s18 = sld [smem:[#allocation30_spill]]  ;;  %v2027_v0 = vstv %s6824_s19  ;;  %v2024_v5 = vmul.f32 %v2023_v37, %v2017_v13 }
 0x3c8   :  { %s6828_s22 = sld [smem:[#allocation45_spill]]  ;;  %v2028_v55 = vmul.f32 %v2027_v0, %v2017_v13  ;;  %v2021_v40 = vadd.f32 %v2020_v21, %v1994_v39  ;;  %v2139_v13 = vstv %s5523_s23 }
 0x3c9   :  { %6825 = sst [smem:[#allocation20_spill]] %s5646_s1  ;;  %v2025_v17 = vadd.f32 %v2024_v5, %v1998_v43  ;;  %v2150_v5 = vstv %s5551_s10 }
 0x3ca   :  { %s5655_s24 = sld [smem:[#allocation2 + $0x18f]]  ;;  %v2029_v29 = vadd.f32 %v2028_v55, %v2002_v47  ;;  %v2154_v55 = vstv %s5555_s5 }
 0x3cb   :  { %s6830_s26 = sld [smem:[#allocation72_spill]] }
 0x3cc   :  { %s6831_s14 = sld [smem:[#allocation56_spill]]  ;;  %v2042_v61 = vstv %s6826_s13 }
 0x3cd   :  { %s5661_s7 = sld [smem:[#allocation2 + $0x190]]  ;;  %v2046_v59 = vstv %s6827_s18  ;;  %v2043_v2 = vadd.f32 %v2042_v61, %v2040_v53  ;;  %v2142_v53 = vstv %s5531_s20 }
 0x3ce   :  { %s6832_s4 = sld [smem:[#allocation63_spill]]  ;;  %v2050_v60 = vstv %s6828_s22 }
 0x3cf   :  { %s5663_s1 = sld [smem:[#allocation2 + $0x1cc]]  ;;  %v2044_v3 = vmax.f32 %v2043_v2, 0.0 }
 0x3d0   :  { %6829 = sst [smem:[#allocation80_spill]] %s5655_s24 }
 0x3d1   :  { %s6834_s24 = sld [smem:[#allocation62_spill]]  ;;  %v2058_v11 = vstv %s6830_s26  ;;  %v2047_v44 = vmul.f32 %v2046_v59, %v2044_v3  ;;  %v2051_v25 = vmul.f32 %v2050_v60, %v2044_v3  ;;  %v2098_v60 = vmax.f32 %v2097_v6, 0.0 }
 0x3d2   :  { %s5668_s17 = sld [smem:[#allocation2 + $0x1ec]]  ;;  %v2061_v12 = vstv %s6831_s14  ;;  %v2059_v18 = vmul.f32 %v2058_v11, %v5415_v9  ;;  %v2146_v11 = vstv %s5541_s11 }
 0x3d3   :  { %s6835_s25 = sld [smem:[#allocation64_spill]]  ;;  %v2062_v50 = vmul.f32 %v2061_v12, %v5419_v20  ;;  %v2048_v49 = vadd.f32 %v2047_v44, %v2021_v40  ;;  %v2052_v23 = vadd.f32 %v2051_v25, %v2025_v17  ;;  %v2147_v2 = vmul.f32 %v2146_v11, %v5423_v46 }
 0x3d4   :  { %s5672_s19 = sld [smem:[#allocation2 + $0x20c]]  ;;  %v2065_v10 = vstv %s6832_s4 }
 0x3d5   :  { %6833 = sst [smem:[#allocation54_spill]] %s5663_s1  ;;  %v2063_v54 = vadd.f32 %v2062_v50, %v2059_v18  ;;  %v2066_v8 = vmul.f32 %v2065_v10, %v5423_v46  ;;  %v2140_v18 = vmul.f32 %v2139_v13, %v5415_v9  ;;  %v2143_v50 = vmul.f32 %v2142_v53, %v5419_v20 }
 0x3d6   :  { %s6837_s1 = sld [smem:[#allocation65_spill]]  ;;  %v2227_v53 = vstv %s5661_s7 }
 0x3d7   :  { %s5677_s13 = sld [smem:[#allocation2 + $0x22c]]  ;;  %v2054_v24 = vstv %s6834_s24  ;;  %v2067_v33 = vadd.f32 %v2066_v8, %v2063_v54  ;;  %v2144_v8 = vadd.f32 %v2143_v50, %v2140_v18 }
 0x3d8   :  { %s5680_s22 = sld [smem:[#allocation2 + $0x191]]  ;;  %v2055_v16 = vmul.f32 %v2054_v24, %v2044_v3  ;;  %v2158_v3 = vstv %s5564_s8 }
 0x3d9   :  { %s6839_s18 = sld [smem:[#allocation76_spill]]  ;;  %v2069_v14 = vstv %s6835_s25  ;;  %v2148_v40 = vadd.f32 %v2147_v2, %v2144_v8 }
 0x3da   :  { %6836 = sst [smem:[#allocation60_spill]] %s5672_s19  ;;  %v2070_v34 = vadd.f32 %v2069_v14, %v2067_v33  ;;  %v2056_v7 = vadd.f32 %v2055_v16, %v2029_v29  ;;  %v2166_v33 = vstv %s5574_s15  ;;  %v2170_v29 = vmul.f32 %v2169_v4, %v5419_v20 }
 0x3db   :  { %s5684_s26 = sld [smem:[#allocation2 + $0x192]]  ;;  %v2167_v17 = vmul.f32 %v2166_v33, %v5415_v9 }
 0x3dc   :  { %v2073_v56 = vstv %s6837_s1  ;;  %s5687_s14 = sld [smem:[#allocation2 + $0x193]]  ;;  %v2071_v51 = vmax.f32 %v2070_v34, 0.0  ;;  %v2151_v34 = vadd.f32 %v2150_v5, %v2148_v40 }
 0x3dd   :  { %6838 = sst [smem:[#allocation67_spill]] %s5677_s13  ;;  %v2171_v25 = vadd.f32 %v2170_v29, %v2167_v17 }
 0x3de   :  { %s6840_s24 = sld [smem:[#allocation12_spill]]  ;;  %v2074_v62 = vmul.f32 %v2073_v56, %v2071_v51 }
 0x3df   :  { %s5691_s4 = sld [smem:[#allocation2 + $0x1cd]]  ;;  %v2077_v36 = vstv %s6839_s18 }
 0x3e0   :  { %s5695_s25 = sld [smem:[#allocation2 + $0x1ed]]  ;;  %v2078_v63 = vmul.f32 %v2077_v36, %v2071_v51  ;;  %v2075_v31 = vadd.f32 %v2074_v62, %v2048_v49  ;;  %v2173_v36 = vstv %s5585_s27 }
 0x3e1   :  { %s6843_s13 = sld [smem:[#allocation71_spill]]  ;;  %v2174_v16 = vmul.f32 %v2173_v36, %v5423_v46  ;;  %v2250_v40 = vstv %s5684_s26  ;;  %v2235_v36 = vstv %s5668_s17 }
 0x3e2   :  { %s6844_s1 = sld [smem:[#allocation31_spill]]  ;;  %v2079_v28 = vadd.f32 %v2078_v63, %v2052_v23  ;;  %v2254_v33 = vstv %s5687_s14  ;;  %v2251_v29 = vmul.f32 %v2250_v40, %v5419_v20 }
 0x3e3   :  { %s6845_s19 = sld [smem:[#allocation36_spill]]  ;;  %v2175_v23 = vadd.f32 %v2174_v16, %v2171_v25 }
 0x3e4   :  { %s5699_s12 = sld [smem:[#allocation2 + $0x20d]]  ;;  %v2081_v48 = vstv %s6840_s24 }
 0x3e5   :  { %6841 = sst [smem:[#allocation50_spill]] %s5691_s4  ;;  %v2082_v38 = vmul.f32 %v2081_v48, %v2071_v51  ;;  %v2177_v48 = vstv %s5593_s0  ;;  %v2152_v51 = vmax.f32 %v2151_v34, 0.0  ;;  %v2255_v34 = vmul.f32 %v2254_v33, %v5423_v46 }
 0x3e6   :  { %6842 = sst [smem:[#allocation57_spill]] %s5695_s25  ;;  %v2178_v62 = vadd.f32 %v2177_v48, %v2175_v23 }
 0x3e7   :  { %s6847_s6 = sld [smem:[#allocation13_spill]]  ;;  %v2112_v30 = vstv %s6843_s13  ;;  %v2083_v12 = vadd.f32 %v2082_v38, %v2056_v7  ;;  %v2163_v38 = vmul.f32 %v2162_v22, %v2152_v51 }
 0x3e8   :  { %s6848_s4 = sld [smem:[#allocation16_spill]]  ;;  %v2115_v58 = vstv %s6844_s1  ;;  %v2113_v37 = vmul.f32 %v2112_v30, %v5415_v9  ;;  %v2193_v30 = vstv %s5617_s28 }
 0x3e9   :  { %s5703_s18 = sld [smem:[#allocation2 + $0x22d]]  ;;  %v2119_v32 = vstv %s6845_s19  ;;  %v2116_v0 = vmul.f32 %v2115_v58, %v5419_v20  ;;  %v2196_v58 = vstv %s5622_s16 }
 0x3ea   :  { %6846 = sst [smem:[#allocation74_spill]] %s5699_s12  ;;  %v2120_v19 = vmul.f32 %v2119_v32, %v5423_v46  ;;  %v2197_v63 = vmul.f32 %v2196_v58, %v5419_v20 }
 0x3eb   :  { %s5706_s25 = sld [smem:[#allocation2 + $0x194]]  ;;  %v2117_v61 = vadd.f32 %v2116_v0, %v2113_v37  ;;  %v2159_v0 = vmul.f32 %v2158_v3, %v2152_v51 }
 0x3ec   :  { %s6850_s21 = sld [smem:[#allocation70_spill]] }
 0x3ed   :  { %s5711_s12 = sld [smem:[#allocation2 + $0x195]]  ;;  %v2100_v26 = vstv %s6847_s6  ;;  %v2121_v39 = vadd.f32 %v2120_v19, %v2117_v61 }
 0x3ee   :  { %s6851_s29 = sld [smem:[#allocation37_spill]]  ;;  %v2104_v1 = vstv %s6848_s4  ;;  %v2101_v24 = vmul.f32 %v2100_v26, %v2098_v60  ;;  %v2194_v26 = vmul.f32 %v2193_v30, %v5415_v9 }
 0x3ef   :  { %6849 = sst [smem:[#allocation77_spill]] %s5703_s18  ;;  %v2105_v21 = vmul.f32 %v2104_v1, %v2098_v60  ;;  %v2155_v1 = vmul.f32 %v2154_v55, %v2152_v51 }
 0x3f0   :  { %s5715_s24 = sld [smem:[#allocation2 + $0x196]]  ;;  %v2102_v35 = vadd.f32 %v2101_v24, %v2075_v31  ;;  %v2179_v31 = vmax.f32 %v2178_v62, 0.0 }
 0x3f1   :  { %s5719_s13 = sld [smem:[#allocation2 + $0x1ce]]  ;;  %v2106_v42 = vadd.f32 %v2105_v21, %v2079_v28  ;;  %v2198_v28 = vadd.f32 %v2197_v63, %v2194_v26  ;;  %v2274_v23 = vstv %s5706_s25 }
 0x3f2   :  { %v2108_v45 = vstv %s6850_s21  ;;  %s5723_s19 = sld [smem:[#allocation2 + $0x1ee]]  ;;  %v2182_v50 = vmul.f32 %v2181_v52, %v2179_v31 }
 0x3f3   :  { %s6853_s4 = sld [smem:[#allocation11_spill]]  ;;  %v2109_v14 = vmul.f32 %v2108_v45, %v2098_v60  ;;  %v2220_v60 = vstv %s5651_s9  ;;  %v2277_v30 = vstv %s5711_s12 }
 0x3f4   :  { %s6854_s1 = sld [smem:[#allocation19_spill]]  ;;  %v2123_v59 = vstv %s6851_s29 }
 0x3f5   :  { %s6855_s6 = sld [smem:[#allocation25_spill]]  ;;  %v2124_v54 = vadd.f32 %v2123_v59, %v2121_v39  ;;  %v2110_v44 = vadd.f32 %v2109_v14, %v2083_v12 }
 0x3f6   :  { %s5726_s18 = sld [smem:[#allocation2 + $0x20e]] }
 0x3f7   :  { %6852 = sst [smem:[#allocation75_spill]] %s5719_s13  ;;  %v2125_v56 = vmax.f32 %v2124_v54, 0.0  ;;  %v2228_v54 = vmul.f32 %v2227_v53, %v5423_v46 }
 0x3f8   :  { %s5731_s13 = sld [smem:[#allocation2 + $0x22e]] }
 0x3f9   :  { %s5735_s21 = sld [smem:[#allocation2 + $0x197]]  ;;  %v2127_v10 = vstv %s6853_s4 }
 0x3fa   :  { %v2131_v43 = vstv %s6854_s1  ;;  %s5741_s20 = sld [smem:[#allocation2 + $0x198]]  ;;  %v2128_v15 = vmul.f32 %v2127_v10, %v2125_v56 }
 0x3fb   :  { %v2135_v47 = vstv %s6855_s6  ;;  %s5743_s23 = sld [smem:[#allocation2 + $0x199]]  ;;  %v2132_v41 = vmul.f32 %v2131_v43, %v2125_v56  ;;  %v2221_v43 = vmul.f32 %v2220_v60, %v5415_v9 }
 0x3fc   :  { %s5748_s11 = sld [smem:[#allocation2 + $0x1cf]]  ;;  %v2136_v49 = vmul.f32 %v2135_v47, %v2125_v56  ;;  %v2129_v27 = vadd.f32 %v2128_v15, %v2102_v35  ;;  %v2247_v56 = vstv %s5680_s22 }
 0x3fd   :  { %s5752_s29 = sld [smem:[#allocation2 + $0x1ef]]  ;;  %v2133_v32 = vadd.f32 %v2132_v41, %v2106_v42  ;;  %v2248_v17 = vmul.f32 %v2247_v56, %v5415_v9 }
 0x3fe   :  { %s5757_s10 = sld [smem:[#allocation2 + $0x20f]]  ;;  %v2137_v7 = vadd.f32 %v2136_v49, %v2110_v44  ;;  %v2156_v19 = vadd.f32 %v2155_v1, %v2129_v27 }
 0x3ff   :  { %s5760_s5 = sld [smem:[#allocation2 + $0x22f]]  ;;  %v2160_v59 = vadd.f32 %v2159_v0, %v2133_v32  ;;  %v2252_v16 = vadd.f32 %v2251_v29, %v2248_v17  ;;  %v2275_v32 = vmul.f32 %v2274_v23, %v5415_v9  ;;  %v2301_v60 = vstv %s5735_s21 }
 0x400   :  { %s6856_s8 = sld [smem:[#allocation27_spill]]  ;;  %v2164_v11 = vadd.f32 %v2163_v38, %v2137_v7  ;;  %v2183_v8 = vadd.f32 %v2182_v50, %v2156_v19  ;;  %v2278_v7 = vmul.f32 %v2277_v30, %v5419_v20 }
 0x401   :  { %s5764_s15 = sld [smem:[#allocation2 + $0x19a]]  ;;  %v2256_v27 = vadd.f32 %v2255_v34, %v2252_v16 }
 0x402   :  { %s6857_s3 = sld [smem:[#allocation38_spill]]  ;;  %v2279_v0 = vadd.f32 %v2278_v7, %v2275_v32 }
 0x403   :  { %s5767_s27 = sld [smem:[#allocation2 + $0x19b]] }
 0x404   :  { %s6858_s2 = sld [smem:[#allocation34_spill]]  ;;  %v2320_v17 = vstv %s5757_s10 }
 0x405   :  { %s6859_s4 = sld [smem:[#allocation42_spill]] }
 0x406   :  { %s5771_s1 = sld [smem:[#allocation2 + $0x19c]]  ;;  %v2185_v57 = vstv %s6856_s8 }
 0x407   :  { %s5775_s0 = sld [smem:[#allocation2 + $0x1d0]]  ;;  %v2186_v10 = vmul.f32 %v2185_v57, %v2179_v31  ;;  %v2281_v57 = vstv %s5715_s24 }
 0x408   :  { %s6861_s30 = sld [smem:[#allocation80_spill]]  ;;  %v2200_v37 = vstv %s6857_s3  ;;  %v2282_v38 = vmul.f32 %v2281_v57, %v5423_v46 }
 0x409   :  { %s5779_s28 = sld [smem:[#allocation2 + $0x1f0]]  ;;  %v2201_v61 = vmul.f32 %v2200_v37, %v5423_v46  ;;  %v2187_v14 = vadd.f32 %v2186_v10, %v2160_v59  ;;  %v2331_v56 = vstv %s5767_s27 }
 0x40a   :  { %s6863_s16 = sld [smem:[#allocation48_spill]]  ;;  %v2189_v6 = vstv %s6858_s2  ;;  %v2283_v59 = vadd.f32 %v2282_v38, %v2279_v0 }
 0x40b   :  { %s6864_s6 = sld [smem:[#allocation49_spill]]  ;;  %v2204_v45 = vstv %s6859_s4  ;;  %v2202_v12 = vadd.f32 %v2201_v61, %v2198_v28  ;;  %v2190_v2 = vmul.f32 %v2189_v6, %v2179_v31  ;;  %v2289_v28 = vstv %s5723_s19 }
 0x40c   :  { %s5783_s8 = sld [smem:[#allocation2 + $0x210]]  ;;  %v2335_v40 = vstv %s5771_s1 }
 0x40d   :  { %6860 = sst [smem:[#allocation8_spill]] %s5775_s0  ;;  %v2205_v24 = vadd.f32 %v2204_v45, %v2202_v12  ;;  %v2191_v4 = vadd.f32 %v2190_v2, %v2164_v11  ;;  %v2293_v12 = vstv %s5726_s18 }
 0x40e   :  { %s5786_s0 = sld [smem:[#allocation2 + $0x230]]  ;;  %v2223_v13 = vstv %s6861_s30 }
 0x40f   :  { %6862 = sst [smem:[#allocation61_spill]] %s5779_s28  ;;  %v2224_v47 = vmul.f32 %v2223_v13, %v5419_v20  ;;  %v2206_v3 = vmax.f32 %v2205_v24, 0.0  ;;  %v2304_v13 = vstv %s5741_s20  ;;  %v2297_v24 = vstv %s5731_s13 }
 0x410   :  { %s6867_s3 = sld [smem:[#allocation20_spill]]  ;;  %v2208_v39 = vstv %s6863_s16  ;;  %v2305_v10 = vmul.f32 %v2304_v13, %v5419_v20 }
 0x411   :  { %s5791_s28 = sld [smem:[#allocation2 + $0x19d]]  ;;  %v2212_v18 = vstv %s6864_s6  ;;  %v2225_v5 = vadd.f32 %v2224_v47, %v2221_v43  ;;  %v2209_v22 = vmul.f32 %v2208_v39, %v2206_v3  ;;  %v2302_v39 = vmul.f32 %v2301_v60, %v5415_v9 }
 0x412   :  { %6865 = sst [smem:[#allocation43_spill]] %s5783_s8  ;;  %v2213_v15 = vmul.f32 %v2212_v18, %v2206_v3  ;;  %v2308_v43 = vstv %s5743_s23 }
 0x413   :  { %s6868_s2 = sld [smem:[#allocation54_spill]]  ;;  %v2229_v35 = vadd.f32 %v2228_v54, %v2225_v5  ;;  %v2210_v58 = vadd.f32 %v2209_v22, %v2183_v8  ;;  %v2309_v5 = vmul.f32 %v2308_v43, %v5423_v46 }
 0x414   :  { %6866 = sst [smem:[#allocation44_spill]] %s5786_s0  ;;  %v2214_v26 = vadd.f32 %v2213_v15, %v2187_v14  ;;  %v2306_v14 = vadd.f32 %v2305_v10, %v2302_v39  ;;  %v2324_v15 = vstv %s5760_s5 }
 0x415   :  { %s5795_s4 = sld [smem:[#allocation2 + $0x19e]] }
 0x416   :  { %s5799_s9 = sld [smem:[#allocation2 + $0x19f]]  ;;  %v2216_v21 = vstv %s6867_s3 }
 0x417   :  { %s5803_s7 = sld [smem:[#allocation2 + $0x1d1]]  ;;  %v2217_v48 = vmul.f32 %v2216_v21, %v2206_v3  ;;  %v2312_v21 = vstv %s5748_s11  ;;  %v2328_v3 = vstv %s5764_s15 }
 0x418   :  { %s6871_s30 = sld [smem:[#allocation60_spill]] }
 0x419   :  { %s6872_s16 = sld [smem:[#allocation67_spill]]  ;;  %v2231_v55 = vstv %s6868_s2  ;;  %v2218_v1 = vadd.f32 %v2217_v48, %v2191_v4  ;;  %v2310_v4 = vadd.f32 %v2309_v5, %v2306_v14 }
 0x41a   :  { %s5806_s6 = sld [smem:[#allocation2 + $0x1f1]]  ;;  %v2232_v25 = vadd.f32 %v2231_v55, %v2229_v35  ;;  %v2316_v35 = vstv %s5752_s29 }
 0x41b   :  { %s5811_s0 = sld [smem:[#allocation2 + $0x211]]  ;;  %v2313_v22 = vadd.f32 %v2312_v21, %v2310_v4 }
 0x41c   :  { %6869 = sst [smem:[#allocation51_spill]] %s5799_s9  ;;  %v2233_v52 = vmax.f32 %v2232_v25, 0.0  ;;  %v2336_v25 = vmul.f32 %v2335_v40, %v5423_v46 }
 0x41d   :  { %6870 = sst [smem:[#allocation55_spill]] %s5803_s7 }
 0x41e   :  { %s6873_s3 = sld [smem:[#allocation50_spill]]  ;;  %v2239_v42 = vstv %s6871_s30  ;;  %v2236_v37 = vmul.f32 %v2235_v36, %v2233_v52 }
 0x41f   :  { %s6874_s7 = sld [smem:[#allocation57_spill]]  ;;  %v2243_v44 = vstv %s6872_s16  ;;  %v2240_v45 = vmul.f32 %v2239_v42, %v2233_v52  ;;  %v2329_v42 = vmul.f32 %v2328_v3, %v5415_v9 }
 0x420   :  { %s6875_s8 = sld [smem:[#allocation74_spill]]  ;;  %v2244_v19 = vmul.f32 %v2243_v44, %v2233_v52  ;;  %v2237_v61 = vadd.f32 %v2236_v37, %v2210_v58  ;;  %v2332_v44 = vmul.f32 %v2331_v56, %v5419_v20  ;;  %v2355_v52 = vstv %s5791_s28 }
 0x421   :  { %s5815_s9 = sld [smem:[#allocation2 + $0x231]]  ;;  %v2241_v53 = vadd.f32 %v2240_v45, %v2214_v26  ;;  %v2356_v32 = vmul.f32 %v2355_v52, %v5415_v9 }
 0x422   :  { %s5821_s22 = sld [smem:[#allocation2 + $0x1a0]]  ;;  %v2245_v11 = vadd.f32 %v2244_v19, %v2218_v1  ;;  %v2370_v19 = vstv %s5806_s6 }
 0x423   :  { %s5823_s26 = sld [smem:[#allocation2 + $0x1a1]] }
 0x424   :  { %v2258_v41 = vstv %s6873_s3  ;;  %s6876_s14 = sld [smem:[#allocation77_spill]] }
 0x425   :  { %v2262_v49 = vstv %s6874_s7  ;;  %s5828_s17 = sld [smem:[#allocation2 + $0x1a2]]  ;;  %v2259_v62 = vadd.f32 %v2258_v41, %v2256_v27  ;;  %v2333_v41 = vadd.f32 %v2332_v44, %v2329_v42  ;;  %v2358_v27 = vstv %s5795_s4 }
 0x426   :  { %v2266_v51 = vstv %s6875_s8  ;;  %s6877_s2 = sld [smem:[#allocation75_spill]]  ;;  %v2359_v7 = vmul.f32 %v2358_v27, %v5419_v20 }
 0x427   :  { %s5832_s30 = sld [smem:[#allocation2 + $0x1d2]]  ;;  %v2260_v31 = vmax.f32 %v2259_v62, 0.0  ;;  %v2337_v58 = vadd.f32 %v2336_v25, %v2333_v41  ;;  %v2378_v10 = vstv %s5815_s9 }
 0x428   :  { %s5837_s16 = sld [smem:[#allocation2 + $0x1f2]]  ;;  %v2360_v38 = vadd.f32 %v2359_v7, %v2356_v32 }
 0x429   :  { %s5840_s25 = sld [smem:[#allocation2 + $0x212]]  ;;  %v2263_v18 = vmul.f32 %v2262_v49, %v2260_v31  ;;  %v2267_v47 = vmul.f32 %v2266_v51, %v2260_v31  ;;  %v2314_v51 = vmax.f32 %v2313_v22, 0.0  ;;  %v2385_v60 = vstv %s5823_s26 }
 0x42a   :  { %v2270_v63 = vstv %s6876_s14  ;;  %s5844_s12 = sld [smem:[#allocation2 + $0x232]] }
 0x42b   :  { %s5847_s24 = sld [smem:[#allocation2 + $0x1a3]]  ;;  %v2271_v2 = vmul.f32 %v2270_v63, %v2260_v31  ;;  %v2264_v54 = vadd.f32 %v2263_v18, %v2237_v61  ;;  %v2268_v55 = vadd.f32 %v2267_v47, %v2241_v53  ;;  %v2317_v63 = vmul.f32 %v2316_v35, %v2314_v51 }
 0x42c   :  { %v2285_v6 = vstv %s6877_s2  ;;  %s5851_s8 = sld [smem:[#allocation2 + $0x1a4]]  ;;  %v2321_v37 = vmul.f32 %v2320_v17, %v2314_v51  ;;  %v2374_v31 = vstv %s5811_s0 }
 0x42d   :  { %s5855_s7 = sld [smem:[#allocation2 + $0x1a5]]  ;;  %v2286_v50 = vadd.f32 %v2285_v6, %v2283_v59  ;;  %v2272_v33 = vadd.f32 %v2271_v2, %v2245_v11  ;;  %v2325_v6 = vmul.f32 %v2324_v15, %v2314_v51  ;;  %v2382_v59 = vstv %s5821_s22 }
 0x42e   :  { %s5859_s19 = sld [smem:[#allocation2 + $0x1d3]]  ;;  %v2383_v53 = vmul.f32 %v2382_v59, %v5415_v9  ;;  %v2386_v11 = vmul.f32 %v2385_v60, %v5419_v20  ;;  %v2397_v14 = vstv %s5837_s16 }
 0x42f   :  { %s5863_s18 = sld [smem:[#allocation2 + $0x1f3]]  ;;  %v2287_v8 = vmax.f32 %v2286_v50, 0.0  ;;  %v2401_v4 = vstv %s5840_s25 }
 0x430   :  { %s5866_s21 = sld [smem:[#allocation2 + $0x213]]  ;;  %v2387_v47 = vadd.f32 %v2386_v11, %v2383_v53  ;;  %v2405_v22 = vstv %s5844_s12 }
 0x431   :  { %s5871_s20 = sld [smem:[#allocation2 + $0x233]]  ;;  %v2290_v29 = vmul.f32 %v2289_v28, %v2287_v8  ;;  %v2294_v36 = vmul.f32 %v2293_v12, %v2287_v8  ;;  %v2298_v34 = vmul.f32 %v2297_v24, %v2287_v8  ;;  %v2389_v12 = vstv %s5828_s17 }
 0x432   :  { %s6878_s13 = sld [smem:[#allocation8_spill]]  ;;  %v2390_v2 = vmul.f32 %v2389_v12, %v5423_v46  ;;  %v2393_v24 = vstv %s5832_s30  ;;  %v2409_v3 = vstv %s5847_s24  ;;  %v2412_v56 = vstv %s5851_s8 }
 0x433   :  { %s5875_s23 = sld [smem:[#allocation2 + $0x1a6]]  ;;  %v2291_v16 = vadd.f32 %v2290_v29, %v2264_v54  ;;  %v2295_v48 = vadd.f32 %v2294_v36, %v2268_v55  ;;  %v2299_v30 = vadd.f32 %v2298_v34, %v2272_v33  ;;  %v2410_v35 = vmul.f32 %v2409_v3, %v5415_v9 }
 0x434   :  { %s6879_s11 = sld [smem:[#allocation51_spill]]  ;;  %v2391_v55 = vadd.f32 %v2390_v2, %v2387_v47  ;;  %v2413_v36 = vmul.f32 %v2412_v56, %v5419_v20  ;;  %v2416_v42 = vstv %s5855_s7  ;;  %v2420_v15 = vstv %s5859_s19 }
 0x435   :  { %s5879_s15 = sld [smem:[#allocation2 + $0x1a7]]  ;;  %v2318_v13 = vadd.f32 %v2317_v63, %v2291_v16  ;;  %v2322_v39 = vadd.f32 %v2321_v37, %v2295_v48  ;;  %v2326_v18 = vadd.f32 %v2325_v6, %v2299_v30  ;;  %v2417_v41 = vmul.f32 %v2416_v42, %v5423_v46 }
 0x436   :  { %s5883_s29 = sld [smem:[#allocation2 + $0x1a8]]  ;;  %v2394_v29 = vadd.f32 %v2393_v24, %v2391_v55  ;;  %v2414_v48 = vadd.f32 %v2413_v36, %v2410_v35  ;;  %v2428_v32 = vstv %s5866_s21 }
 0x437   :  { %s6880_s10 = sld [smem:[#allocation61_spill]]  ;;  %v2432_v37 = vstv %s5871_s20 }
 0x438   :  { %s6881_s27 = sld [smem:[#allocation43_spill]]  ;;  %v2339_v49 = vstv %s6878_s13  ;;  %v2395_v16 = vmax.f32 %v2394_v29, 0.0  ;;  %v2418_v30 = vadd.f32 %v2417_v41, %v2414_v48 }
 0x439   :  { %s6882_s1 = sld [smem:[#allocation44_spill]]  ;;  %v2340_v0 = vadd.f32 %v2339_v49, %v2337_v58  ;;  %v2436_v51 = vstv %s5875_s23  ;;  %v2424_v58 = vstv %s5863_s18 }
 0x43a   :  { %s5886_s3 = sld [smem:[#allocation2 + $0x1d4]]  ;;  %v2362_v23 = vstv %s6879_s11  ;;  %v2398_v7 = vmul.f32 %v2397_v14, %v2395_v16  ;;  %v2421_v63 = vadd.f32 %v2420_v15, %v2418_v30 }
 0x43b   :  { %s5891_s14 = sld [smem:[#allocation2 + $0x1f4]]  ;;  %v2363_v62 = vmul.f32 %v2362_v23, %v5423_v46  ;;  %v2341_v28 = vmax.f32 %v2340_v0, 0.0  ;;  %v2439_v52 = vstv %s5879_s15 }
 0x43c   :  { %s6883_s5 = sld [smem:[#allocation55_spill]]  ;;  %v2443_v27 = vstv %s5883_s29 }
 0x43d   :  { %s5895_s2 = sld [smem:[#allocation2 + $0x214]]  ;;  %v2343_v57 = vstv %s6880_s10  ;;  %v2364_v61 = vadd.f32 %v2363_v62, %v2360_v38  ;;  %v2406_v62 = vmul.f32 %v2405_v22, %v2395_v16  ;;  %v2444_v0 = vmul.f32 %v2443_v27, %v5423_v46 }
 0x43e   :  { %v2347_v26 = vstv %s6881_s27  ;;  %s5901_s28 = sld [smem:[#allocation2 + $0x234]]  ;;  %v2344_v43 = vmul.f32 %v2343_v57, %v2341_v28  ;;  %v2402_v57 = vmul.f32 %v2401_v4, %v2395_v16 }
 0x43f   :  { %v2351_v1 = vstv %s6882_s1  ;;  %s5903_s4 = sld [smem:[#allocation2 + $0x1a9]]  ;;  %v2348_v21 = vmul.f32 %v2347_v26, %v2341_v28  ;;  %v2437_v26 = vmul.f32 %v2436_v51, %v5415_v9 }
 0x440   :  { %s5908_s13 = sld [smem:[#allocation2 + $0x1aa]]  ;;  %v2352_v54 = vmul.f32 %v2351_v1, %v2341_v28  ;;  %v2345_v5 = vadd.f32 %v2344_v43, %v2318_v13  ;;  %v2440_v1 = vmul.f32 %v2439_v52, %v5419_v20 }
 0x441   :  { %s5912_s11 = sld [smem:[#allocation2 + $0x1ab]]  ;;  %v2349_v40 = vadd.f32 %v2348_v21, %v2322_v39  ;;  %v2451_v12 = vstv %s5891_s14 }
 0x442   :  { %v2366_v45 = vstv %s6883_s5  ;;  %s5917_s10 = sld [smem:[#allocation2 + $0x1d5]]  ;;  %v2353_v33 = vadd.f32 %v2352_v54, %v2326_v18 }
 0x443   :  { %v2367_v50 = vadd.f32 %v2366_v45, %v2364_v61  ;;  %s5920_s0 = sld [smem:[#allocation2 + $0x1f5]]  ;;  %v2441_v45 = vadd.f32 %v2440_v1, %v2437_v26  ;;  %v2455_v39 = vstv %s5895_s2 }
 0x444   :  { %s5924_s6 = sld [smem:[#allocation2 + $0x215]]  ;;  %v2459_v18 = vstv %s5901_s28 }
 0x445   :  { %v2368_v8 = vmax.f32 %v2367_v50, 0.0  ;;  %s5927_s22 = sld [smem:[#allocation2 + $0x235]]  ;;  %v2463_v28 = vstv %s5903_s4  ;;  %v2445_v13 = vadd.f32 %v2444_v0, %v2441_v45 }
 0x446   :  { %s5931_s9 = sld [smem:[#allocation2 + $0x1ac]]  ;;  %v2466_v61 = vstv %s5908_s13  ;;  %v2464_v53 = vmul.f32 %v2463_v28, %v5415_v9 }
 0x447   :  { %s5935_s26 = sld [smem:[#allocation2 + $0x1ad]]  ;;  %v2371_v17 = vmul.f32 %v2370_v19, %v2368_v8  ;;  %v2375_v44 = vmul.f32 %v2374_v31, %v2368_v8  ;;  %v2379_v34 = vmul.f32 %v2378_v10, %v2368_v8  ;;  %v2447_v19 = vstv %s5886_s3 }
 0x448   :  { %s5939_s17 = sld [smem:[#allocation2 + $0x1ae]]  ;;  %v2422_v31 = vmax.f32 %v2421_v63, 0.0  ;;  %v2470_v59 = vstv %s5912_s11  ;;  %v2467_v11 = vmul.f32 %v2466_v61, %v5419_v20  ;;  %v2448_v47 = vadd.f32 %v2447_v19, %v2445_v13 }
 0x449   :  { %s5943_s30 = sld [smem:[#allocation2 + $0x1d6]]  ;;  %v2372_v25 = vadd.f32 %v2371_v17, %v2345_v5  ;;  %v2376_v49 = vadd.f32 %v2375_v44, %v2349_v40  ;;  %v2380_v23 = vadd.f32 %v2379_v34, %v2353_v33  ;;  %v2471_v50 = vmul.f32 %v2470_v59, %v5423_v46 }
 0x44a   :  { %s5946_s16 = sld [smem:[#allocation2 + $0x1f6]]  ;;  %v2425_v10 = vmul.f32 %v2424_v58, %v2422_v31  ;;  %v2429_v43 = vmul.f32 %v2428_v32, %v2422_v31  ;;  %v2468_v2 = vadd.f32 %v2467_v11, %v2464_v53  ;;  %v2433_v24 = vmul.f32 %v2432_v37, %v2422_v31 }
 0x44b   :  { %s5951_s25 = sld [smem:[#allocation2 + $0x216]]  ;;  %v2399_v38 = vadd.f32 %v2398_v7, %v2372_v25  ;;  %v2403_v6 = vadd.f32 %v2402_v57, %v2376_v49  ;;  %v2407_v60 = vadd.f32 %v2406_v62, %v2380_v23  ;;  %v2474_v21 = vstv %s5917_s10 }
 0x44c   :  { %s5955_s12 = sld [smem:[#allocation2 + $0x236]]  ;;  %v2478_v54 = vstv %s5920_s0  ;;  %v2482_v8 = vstv %s5924_s6  ;;  %v2449_v14 = vmax.f32 %v2448_v47, 0.0  ;;  %v2472_v5 = vadd.f32 %v2471_v50, %v2468_v2 }
 0x44d   :  { %s5959_s24 = sld [smem:[#allocation2 + $0x1af]]  ;;  %v2490_v55 = vstv %s5931_s9  ;;  %v2493_v3 = vstv %s5935_s26  ;;  %v2426_v56 = vadd.f32 %v2425_v10, %v2399_v38  ;;  %v2430_v35 = vadd.f32 %v2429_v43, %v2403_v6 }
 0x44e   :  { %s5963_s8 = sld [smem:[#allocation2 + $0x1b0]]  ;;  %v2491_v40 = vmul.f32 %v2490_v55, %v5415_v9  ;;  %v2494_v33 = vmul.f32 %v2493_v3, %v5419_v20  ;;  %v2497_v4 = vstv %s5939_s17  ;;  %v2434_v17 = vadd.f32 %v2433_v24, %v2407_v60 }
 0x44f   :  { %s5966_s7 = sld [smem:[#allocation2 + $0x1b1]]  ;;  %v2475_v29 = vadd.f32 %v2474_v21, %v2472_v5  ;;  %v2486_v36 = vstv %s5927_s22  ;;  %v2452_v42 = vmul.f32 %v2451_v12, %v2449_v14  ;;  %v2498_v34 = vmul.f32 %v2497_v4, %v5423_v46 }
 0x450   :  { %s5971_s19 = sld [smem:[#allocation2 + $0x1d7]]  ;;  %v2495_v44 = vadd.f32 %v2494_v33, %v2491_v40  ;;  %v2501_v22 = vstv %s5943_s30  ;;  %v2456_v15 = vmul.f32 %v2455_v39, %v2449_v14  ;;  %v2460_v25 = vmul.f32 %v2459_v18, %v2449_v14 }
 0x451   :  { %s5975_s18 = sld [smem:[#allocation2 + $0x1f7]]  ;;  %v2476_v16 = vmax.f32 %v2475_v29, 0.0  ;;  %v2505_v48 = vstv %s5946_s16  ;;  %v2453_v41 = vadd.f32 %v2452_v42, %v2426_v56  ;;  %v2509_v30 = vstv %s5951_s25 }
 0x452   :  { %s5981_s21 = sld [smem:[#allocation2 + $0x217]]  ;;  %v2499_v49 = vadd.f32 %v2498_v34, %v2495_v44  ;;  %v2457_v27 = vadd.f32 %v2456_v15, %v2430_v35  ;;  %v2461_v23 = vadd.f32 %v2460_v25, %v2434_v17  ;;  %v2513_v63 = vstv %s5955_s12 }
 0x453   :  { %s5983_s20 = sld [smem:[#allocation2 + $0x237]]  ;;  %v2517_v51 = vstv %s5959_s24  ;;  %v2479_v32 = vmul.f32 %v2478_v54, %v2476_v16  ;;  %v2483_v1 = vmul.f32 %v2482_v8, %v2476_v16  ;;  %v2487_v62 = vmul.f32 %v2486_v36, %v2476_v16 }
 0x454   :  { %s5988_s23 = sld [smem:[#allocation2 + $0x1b2]]  ;;  %v2520_v52 = vstv %s5963_s8  ;;  %v2518_v58 = vmul.f32 %v2517_v51, %v5415_v9  ;;  %v2502_v7 = vadd.f32 %v2501_v22, %v2499_v49 }
 0x455   :  { %s5992_s15 = sld [smem:[#allocation2 + $0x1b3]]  ;;  %v2521_v57 = vmul.f32 %v2520_v52, %v5419_v20  ;;  %v2524_v26 = vstv %s5966_s7  ;;  %v2480_v0 = vadd.f32 %v2479_v32, %v2453_v41  ;;  %v2484_v19 = vadd.f32 %v2483_v1, %v2457_v27 }
 0x456   :  { %s5997_s29 = sld [smem:[#allocation2 + $0x1b4]]  ;;  %v2528_v37 = vstv %s5971_s19  ;;  %v2503_v38 = vmax.f32 %v2502_v7, 0.0  ;;  %v2525_v45 = vmul.f32 %v2524_v26, %v5423_v46  ;;  %v2488_v59 = vadd.f32 %v2487_v62, %v2461_v23 }
 0x457   :  { %s6000_s27 = sld [smem:[#allocation2 + $0x1d8]]  ;;  %v2522_v6 = vadd.f32 %v2521_v57, %v2518_v58  ;;  %v2532_v13 = vstv %s5975_s18 }
 0x458   :  { %s6004_s1 = sld [smem:[#allocation2 + $0x1f8]]  ;;  %v2536_v53 = vstv %s5981_s21  ;;  %v2506_v11 = vmul.f32 %v2505_v48, %v2503_v38  ;;  %v2510_v12 = vmul.f32 %v2509_v30, %v2503_v38  ;;  %v2514_v50 = vmul.f32 %v2513_v63, %v2503_v38 }
 0x459   :  { %s6007_s3 = sld [smem:[#allocation2 + $0x218]]  ;;  %v2526_v60 = vadd.f32 %v2525_v45, %v2522_v6  ;;  %v2540_v43 = vstv %s5983_s20 }
 0x45a   :  { %s6011_s14 = sld [smem:[#allocation2 + $0x1b5]]  ;;  %v2544_v31 = vstv %s5988_s23  ;;  %v2507_v2 = vadd.f32 %v2506_v11, %v2480_v0  ;;  %v2511_v24 = vadd.f32 %v2510_v12, %v2484_v19  ;;  %v2515_v3 = vadd.f32 %v2514_v50, %v2488_v59 }
 0x45b   :  { %s6015_s5 = sld [smem:[#allocation2 + $0x1b6]]  ;;  %v2547_v28 = vstv %s5992_s15  ;;  %v2545_v39 = vmul.f32 %v2544_v31, %v5415_v9  ;;  %v2529_v10 = vadd.f32 %v2528_v37, %v2526_v60 }
 0x45c   :  { %s6019_s2 = sld [smem:[#allocation2 + $0x1b7]]  ;;  %v2551_v61 = vstv %s5997_s29  ;;  %v2548_v18 = vmul.f32 %v2547_v28, %v5419_v20 }
 0x45d   :  { %s6023_s28 = sld [smem:[#allocation2 + $0x238]]  ;;  %v2552_v47 = vmul.f32 %v2551_v61, %v5423_v46  ;;  %v2555_v54 = vstv %s6000_s27  ;;  %v2530_v8 = vmax.f32 %v2529_v10, 0.0 }
 0x45e   :  { %s6026_s4 = sld [smem:[#allocation2 + $0x1d9]]  ;;  %v2549_v21 = vadd.f32 %v2548_v18, %v2545_v39  ;;  %v2559_v17 = vstv %s6004_s1 }
 0x45f   :  { %s6031_s13 = sld [smem:[#allocation2 + $0x1f9]]  ;;  %v2533_v4 = vmul.f32 %v2532_v13, %v2530_v8  ;;  %v2537_v35 = vmul.f32 %v2536_v53, %v2530_v8  ;;  %v2563_v29 = vstv %s6007_s3  ;;  %v2541_v25 = vmul.f32 %v2540_v43, %v2530_v8 }
 0x460   :  { %s6035_s11 = sld [smem:[#allocation2 + $0x1b8]]  ;;  %v2571_v14 = vstv %s6011_s14  ;;  %v2553_v56 = vadd.f32 %v2552_v47, %v2549_v21 }
 0x461   :  { %s6039_s10 = sld [smem:[#allocation2 + $0x1b9]]  ;;  %v2574_v5 = vstv %s6015_s5  ;;  %v2572_v40 = vmul.f32 %v2571_v14, %v5415_v9  ;;  %v2534_v22 = vadd.f32 %v2533_v4, %v2507_v2  ;;  %v2538_v15 = vadd.f32 %v2537_v35, %v2511_v24 }
 0x462   :  { %s6043_s0 = sld [smem:[#allocation2 + $0x1ba]]  ;;  %v2578_v55 = vstv %s6019_s2  ;;  %v2575_v33 = vmul.f32 %v2574_v5, %v5419_v20  ;;  %v2556_v36 = vadd.f32 %v2555_v54, %v2553_v56  ;;  %v2542_v52 = vadd.f32 %v2541_v25, %v2515_v3 }
 0x463   :  { %s6046_s6 = sld [smem:[#allocation2 + $0x219]]  ;;  %v2567_v42 = vstv %s6023_s28  ;;  %v2579_v34 = vmul.f32 %v2578_v55, %v5423_v46 }
 0x464   :  { %s6051_s22 = sld [smem:[#allocation2 + $0x239]]  ;;  %v2576_v44 = vadd.f32 %v2575_v33, %v2572_v40  ;;  %v2582_v16 = vstv %s6026_s4  ;;  %v2557_v48 = vmax.f32 %v2556_v36, 0.0 }
 0x465   :  { %s6055_s9 = sld [smem:[#allocation2 + $0x1da]]  ;;  %v2586_v7 = vstv %s6031_s13 }
 0x466   :  { %s6061_s26 = sld [smem:[#allocation2 + $0x1fa]]  ;;  %v2580_v41 = vadd.f32 %v2579_v34, %v2576_v44  ;;  %v2598_v49 = vstv %s6035_s11  ;;  %v2560_v58 = vmul.f32 %v2559_v17, %v2557_v48  ;;  %v2564_v57 = vmul.f32 %v2563_v29, %v2557_v48 }
 0x467   :  { %s6064_s17 = sld [smem:[#allocation2 + $0x21a]]  ;;  %v2601_v51 = vstv %s6039_s10  ;;  %v2599_v27 = vmul.f32 %v2598_v49, %v5415_v9  ;;  %v2568_v26 = vmul.f32 %v2567_v42, %v2557_v48 }
 0x468   :  { %s6068_s30 = sld [smem:[#allocation2 + $0x23a]]  ;;  %v2602_v23 = vmul.f32 %v2601_v51, %v5419_v20  ;;  %v2605_v30 = vstv %s6043_s0  ;;  %v2583_v32 = vadd.f32 %v2582_v16, %v2580_v41  ;;  %v2561_v6 = vadd.f32 %v2560_v58, %v2534_v22 }
 0x469   :  { %v2606_v62 = vmul.f32 %v2605_v30, %v5423_v46  ;;  %v2590_v37 = vstv %s6046_s6  ;;  %v2565_v45 = vadd.f32 %v2564_v57, %v2538_v15  ;;  %v2569_v19 = vadd.f32 %v2568_v26, %v2542_v52  ;;  %s3406_s16 = sld [smem:[#allocation2 + $0x23b]] }
 0x46a   :  { %v2603_v1 = vadd.f32 %v2602_v23, %v2599_v27  ;;  %v2584_v63 = vmax.f32 %v2583_v32, 0.0  ;;  %v2594_v0 = vstv %s6051_s22  ;;  %s3407_s25 = sld [smem:[#allocation2 + $0x23c]] }
 0x46b   :  { %v2609_v38 = vstv %s6055_s9  ;;  %s3408_s12 = sld [smem:[#allocation2 + $0x23d]] }
 0x46c   :  { %v2607_v31 = vadd.f32 %v2606_v62, %v2603_v1  ;;  %v2587_v28 = vmul.f32 %v2586_v7, %v2584_v63  ;;  %v2591_v61 = vmul.f32 %v2590_v37, %v2584_v63  ;;  %v2595_v59 = vmul.f32 %v2594_v0, %v2584_v63  ;;  %s6084_s24 = sld [smem:[#allocation2 + $0x155]] }
 0x46d   :  { %v2613_v13 = vstv %s6061_s26  ;;  %v2617_v53 = vstv %s6064_s17  ;;  %s6086_s8 = sld [smem:[#allocation2 + $0x158]] }
 0x46e   :  { %v2610_v60 = vadd.f32 %v2609_v38, %v2607_v31  ;;  %v2621_v11 = vstv %s6068_s30  ;;  %v2588_v12 = vadd.f32 %v2587_v28, %v2561_v6  ;;  %v2592_v39 = vadd.f32 %v2591_v61, %v2565_v45  ;;  %s6088_s7 = sld [smem:[#allocation2 + $0x156]] }
 0x46f   :  { %v2596_v18 = vadd.f32 %v2595_v59, %v2569_v19  ;;  %v2626_v54 = vstv %s3406_s16  ;;  %s6090_s19 = sld [smem:[#allocation2 + $0x159]] }
 0x470   :  { %v2611_v50 = vmax.f32 %v2610_v60, 0.0  ;;  %v2630_v8 = vstv %s3407_s25  ;;  %s6092_s18 = sld [smem:[#allocation2 + $0x157]] }
 0x471   :  { %v2634_v3 = vstv %s3408_s12  ;;  %s6094_s21 = sld [smem:[#allocation2 + $0x15a]] }
 0x472   :  { %v2614_v10 = vmul.f32 %v2613_v13, %v2611_v50  ;;  %v2618_v43 = vmul.f32 %v2617_v53, %v2611_v50  ;;  %v2622_v47 = vmul.f32 %v2621_v11, %v2611_v50  ;;  %s6096_s20 = sld [smem:[#allocation2 + $0x23e]]  ;;  %v2661_v27 = vstv %s6084_s24 }
 0x473   :  { %s6098_s23 = sld [smem:[#allocation2 + $0x23f]]  ;;  %v2664_v57 = vstv %s6086_s8 }
 0x474   :  { %v2615_v2 = vadd.f32 %v2614_v10, %v2588_v12  ;;  %v2619_v24 = vadd.f32 %v2618_v43, %v2592_v39  ;;  %v2623_v21 = vadd.f32 %v2622_v47, %v2596_v18  ;;  %s6100_s15 = sld [smem:[#allocation2 + $0x240]]  ;;  %v2668_v23 = vstv %s6088_s7 }
 0x475   :  { %s6102_s29 = sld [smem:[#allocation2 + $0x256]]  ;;  %v2671_v26 = vstv %s6090_s19 }
 0x476   :  { %v2624_v14 = vadd.f32 %v2615_v2, %v5415_v9  ;;  %v2628_v5 = vadd.f32 %v2619_v24, %v5419_v20  ;;  %v2632_v55 = vadd.f32 %v2623_v21, %v5423_v46  ;;  %s6104_s27 = sld [smem:[#allocation2 + $0x241]]  ;;  %v2675_v30 = vstv %s6092_s18 }
 0x477   :  { %s6106_s1 = sld [smem:[#allocation2 + $0x242]]  ;;  %v2678_v1 = vstv %s6094_s21 }
 0x478   :  { %v2627_v56 = vadd.f32 %v2626_v54, %v2624_v14  ;;  %v2631_v40 = vadd.f32 %v2630_v8, %v2628_v5  ;;  %v2635_v33 = vadd.f32 %v2634_v3, %v2632_v55  ;;  %s6108_s3 = sld [smem:[#allocation2 + $0x243]]  ;;  %v2702_v60 = vstv %s6096_s20 }
 0x479   :  { %s6110_s14 = sld [smem:[#allocation2 + $0x257]]  ;;  %v2705_v13 = vstv %s6098_s23  ;;  %s3538_s23 = smov [#allocation5]  }
 0x47a   :  { %v2636_v4 = vadd.f32 %v2631_v40, %v2627_v56  ;;  %s6112_s5 = sld [smem:[#allocation2 + $0x244]]  ;;  %v2709_v53 = vstv %s6100_s15  ;;  %s2826_s15 = sshll.u32 %s3538_s23, 4  ;;  %s2827_s15 = int_to_ptr.vmem [resolvable:$true] %s2826_s15 }
 0x47b   :  { %s6114_s2 = sld [smem:[#allocation2 + $0x245]]  ;;  %v2713_v11 = vstv %s6102_s29 }
 0x47c   :  { %v2637_v35 = vadd.f32 %v2636_v4, %v2635_v33  ;;  %s6116_s28 = sld [smem:[#allocation2 + $0x246]]  ;;  %v2717_v50 = vstv %s6104_s27 }
 0x47d   :  { %s6118_s4 = sld [smem:[#allocation2 + $0x258]]  ;;  %v2720_v10 = vstv %s6106_s1 }
 0x47e   :  { %v2638_v17 = vmul.f32 0.33333334, %v2637_v35  ;;  %s6120_s13 = sld [smem:[#allocation2 + $0x247]]  ;;  %v2724_v43 = vstv %s6108_s3 }
 0x47f   :  { %s6122_s11 = sld [smem:[#allocation2 + $0x248]]  ;;  %v2728_v47 = vstv %s6110_s14 }
 0x480   :  { %v2639_v29 = vsub.f32 %v2627_v56, %v2638_v17  ;;  %v2641_v36 = vsub.f32 %v2631_v40, %v2638_v17  ;;  %v2644_v42 = vsub.f32 %v2635_v33, %v2638_v17  ;;  %s6124_s10 = sld [smem:[#allocation2 + $0x249]]  ;;  %v2732_v2 = vstv %s6112_s5 }
 0x481   :  { %s6126_s0 = sld [smem:[#allocation2 + $0x259]]  ;;  %v2735_v8 = vstv %s6114_s2 }
 0x482   :  { %v2640_v44 = vmul.f32 %v2639_v29, %v2639_v29  ;;  %v2642_v34 = vmul.f32 %v2641_v36, %v2641_v36  ;;  %v2645_v15 = vmul.f32 %v2644_v42, %v2644_v42  ;;  %s6131_s6 = sld [smem:[#allocation2 + $0x24a]]  ;;  %v2739_v14 = vstv %s6116_s28 }
 0x483   :  { %s6133_s22 = sld [smem:[#allocation2 + $0x24b]]  ;;  %v2743_v5 = vstv %s6118_s4 }
 0x484   :  { %v2643_v22 = vadd.f32 %v2642_v34, %v2640_v44  ;;  %s6138_s9 = sld [smem:[#allocation2 + $0x24c]]  ;;  %v2747_v55 = vstv %s6120_s13 }
 0x485   :  { %s6140_s26 = sld [smem:[#allocation2 + $0x25a]]  ;;  %v2750_v3 = vstv %s6122_s11 }
 0x486   :  { %v2646_v25 = vadd.f32 %v2645_v15, %v2643_v22  ;;  %s6142_s17 = sld [smem:[#allocation2 + $0x24d]]  ;;  %v2754_v4 = vstv %s6124_s10 }
 0x487   :  { %s6144_s30 = sld [smem:[#allocation2 + $0x24e]]  ;;  %v2758_v35 = vstv %s6126_s0 }
 0x488   :  { %v2647_v9 = vmul.f32 0.33333334, %v2646_v25  ;;  %s6146_s16 = sld [smem:[#allocation2 + $0x24f]]  ;;  %v2762_v17 = vstv %s6131_s6 }
 0x489   :  { %s6148_s25 = sld [smem:[#allocation2 + $0x25b]] }
 0x48a   :  { %v2648_v20 = vadd.f32 1e-05, %v2647_v9  ;;  %s6150_s12 = sld [smem:[#allocation2 + $0x250]] }
 0x48b   :  { %s6152_s24 = sld [smem:[#allocation2 + $0x251]]  ;;  %v2773_v22 = vstv %s6140_s26 }
 0x48c   :  { %3494 = vrsqrt.f32 %v2648_v20  ;;  %vm2655_vm10 = vweird.f32 %v2648_v20  ;;  %s6158_s8 = sld [smem:[#allocation2 + $0x252]]  ;;  %v2777_v15 = vstv %s6142_s17 }
 0x48d   :  { %s6161_s7 = sld [smem:[#allocation2 + $0x253]]  ;;  %v2780_v25 = vstv %s6144_s30 }
 0x48e   :  { %s6167_s19 = sld [smem:[#allocation2 + $0x254]]  ;;  %v2784_v9 = vstv %s6146_s16 }
 0x48f   :  { %s6189_s18 = sld [smem:[#allocation2 + $0x255]] }
 0x490   :  { %s6191_s21 = sld [smem:[#allocation2 + $0x25c]] }
 0x491   :  { %s6193_s20 = sld [smem:[#allocation2 + $0x25d]] }
 0x492   :  { %v3495_v46 = vpop.eup %3494  ;;  %s6884_s1 = sld [smem:[#allocation84_spill]] }
 0x493   :  { %v2650_v16 = vmul.f32 %v3495_v46, %v2648_v20  ;;  %vm2656_vm9 = vweird.f32 %v3495_v46  ;;  %v2788_v20 = vstv %s6148_s25 }
 0x494   :  { %vm2657_vm11 = vmor %vm2655_vm10, %vm2656_vm9 }
 0x495   :  { %v2651_v48 = vmul.f32 %v3495_v46, %v2650_v16 }
 0x497   :  { %v2652_v41 = vmul.f32 0.5, %v2651_v48 }
 0x498   :  { %s2828_s3 = sshll.u32 %s6884_s1, 4  ;;  %s2829_s3 = int_to_ptr.hbm [resolvable:$true] %s2828_s3 }
 0x499   :  { %v2653_v49 = vsub.f32 1.5, %v2652_v41  ;;  %v2792_v41 = vstv %s6150_s12 }
 0x49b   :  { %v2654_v51 = vmul.f32 %v3495_v46, %v2653_v49  ;;  %v2795_v49 = vstv %s6152_s24 }
 0x49d   :  { %v2658_v52 = vsel %vm2657_vm11, %v3495_v46, %v2654_v51  ;;  %v2799_v51 = vstv %s6158_s8 }
 0x49e   :  { %v2659_v58 = vmul.f32 %v2658_v52, %v2639_v29  ;;  %v2666_v32 = vmul.f32 %v2658_v52, %v2641_v36  ;;  %v2673_v7 = vmul.f32 %v2658_v52, %v2644_v42  ;;  %v2765_v29 = vstv %s6133_s22 }
 0x49f   :  { %v2769_v36 = vstv %s6138_s9  ;;  %v2807_v52 = vstv %s6161_s7 }
 0x4a0   :  { %v2662_v62 = vmul.f32 %v2661_v27, %v2659_v58  ;;  %v2669_v63 = vmul.f32 %v2668_v23, %v2666_v32  ;;  %v2676_v37 = vmul.f32 %v2675_v30, %v2673_v7  ;;  %v2810_v27 = vstv %s6167_s19 }
 0x4a2   :  { %v2665_v0 = vadd.f32 %v2664_v57, %v2662_v62  ;;  %v2672_v38 = vadd.f32 %v2671_v26, %v2669_v63  ;;  %v2679_v6 = vadd.f32 %v2678_v1, %v2676_v37 }
 0x4a4   :  { %v2680_v45 = vrot.slane %v2665_v0, 4  ;;  %v2687_v19 = vrot.slane %v2672_v38, 4  ;;  %v2694_v31 = vrot.slane %v2679_v6, 4 }
 0x4a6   :  { %v2681_v28 = vadd.f32 %v2680_v45, %v2665_v0  ;;  %v2688_v61 = vadd.f32 %v2687_v19, %v2672_v38  ;;  %v2695_v59 = vadd.f32 %v2694_v31, %v2679_v6 }
 0x4a8   :  { %v2682_v12 = vrot.slane %v2681_v28, 2  ;;  %v2689_v39 = vrot.slane %v2688_v61, 2  ;;  %v2696_v18 = vrot.slane %v2695_v59, 2 }
 0x4aa   :  { %v2683_v24 = vadd.f32 %v2682_v12, %v2681_v28  ;;  %v2690_v21 = vadd.f32 %v2689_v39, %v2688_v61  ;;  %v2697_v54 = vadd.f32 %v2696_v18, %v2695_v59 }
 0x4ac   :  { %v2684_v56 = vrot.slane %v2683_v24, 1  ;;  %v2691_v40 = vrot.slane %v2690_v21, 1  ;;  %v2698_v33 = vrot.slane %v2697_v54, 1 }
 0x4ae   :  { %v2685_v42 = vadd.f32 %v2684_v56, %v2683_v24  ;;  %v2692_v44 = vadd.f32 %v2691_v40, %v2690_v21  ;;  %v2699_v34 = vadd.f32 %v2698_v33, %v2697_v54 }
 0x4b0   :  { %v2686_v46 = vmul.f32 0.125, %v2685_v42  ;;  %v2693_v16 = vmul.f32 0.125, %v2692_v44  ;;  %v2700_v48 = vmul.f32 0.125, %v2699_v34 }
 0x4b2   :  { %v2703_v23 = vmul.f32 %v2702_v60, %v2686_v46  ;;  %v2706_v30 = vmul.f32 %v2705_v13, %v2693_v16  ;;  %v2710_v58 = vmul.f32 %v2709_v53, %v2700_v48  ;;  %v2718_v32 = vmul.f32 %v2717_v50, %v2686_v46 }
 0x4b3   :  { %v2721_v7 = vmul.f32 %v2720_v10, %v2693_v16  ;;  %v2725_v57 = vmul.f32 %v2724_v43, %v2700_v48  ;;  %v2733_v26 = vmul.f32 %v2732_v2, %v2686_v46  ;;  %v2736_v1 = vmul.f32 %v2735_v8, %v2693_v16 }
 0x4b4   :  { %v2707_v62 = vadd.f32 %v2706_v30, %v2703_v23  ;;  %v2740_v63 = vmul.f32 %v2739_v14, %v2700_v48  ;;  %v2748_v37 = vmul.f32 %v2747_v55, %v2686_v46  ;;  %v2751_v0 = vmul.f32 %v2750_v3, %v2693_v16 }
 0x4b5   :  { %v2722_v38 = vadd.f32 %v2721_v7, %v2718_v32  ;;  %v2737_v6 = vadd.f32 %v2736_v1, %v2733_v26  ;;  %v2755_v45 = vmul.f32 %v2754_v4, %v2700_v48  ;;  %v2763_v19 = vmul.f32 %v2762_v17, %v2686_v46 }
 0x4b6   :  { %v2711_v31 = vadd.f32 %v2710_v58, %v2707_v62  ;;  %v2752_v28 = vadd.f32 %v2751_v0, %v2748_v37  ;;  %v2766_v61 = vmul.f32 %v2765_v29, %v2693_v16  ;;  %v2770_v59 = vmul.f32 %v2769_v36, %v2700_v48 }
 0x4b7   :  { %v2726_v60 = vadd.f32 %v2725_v57, %v2722_v38  ;;  %v2741_v13 = vadd.f32 %v2740_v63, %v2737_v6  ;;  %v2778_v53 = vmul.f32 %v2777_v15, %v2686_v46  ;;  %v2781_v12 = vmul.f32 %v2780_v25, %v2693_v16 }
 0x4b8   :  { %v2714_v39 = vadd.f32 %v2713_v11, %v2711_v31  ;;  %v2756_v18 = vadd.f32 %v2755_v45, %v2752_v28  ;;  %v2767_v50 = vadd.f32 %v2766_v61, %v2763_v19  ;;  %v2785_v10 = vmul.f32 %v2784_v9, %v2700_v48 }
 0x4b9   :  { %v2729_v43 = vadd.f32 %v2728_v47, %v2726_v60  ;;  %v2744_v2 = vadd.f32 %v2743_v5, %v2741_v13  ;;  %v2782_v24 = vadd.f32 %v2781_v12, %v2778_v53  ;;  %v2793_v21 = vmul.f32 %v2792_v41, %v2686_v46 }
 0x4ba   :  { %2715 = vst [vmem:[#allocation5] sm:$0x1] %v2714_v39  ;;  %v2759_v54 = vadd.f32 %v2758_v35, %v2756_v18  ;;  %v2771_v8 = vadd.f32 %v2770_v59, %v2767_v50  ;;  %v2796_v14 = vmul.f32 %v2795_v49, %v2693_v16  ;;  %v2814_v55 = vstv %s6189_s18 }
 0x4bb   :  { %2730 = vst [vmem:[#allocation5 + $0x1] sm:$0x1] %v2729_v43  ;;  %v2786_v3 = vadd.f32 %v2785_v10, %v2782_v24  ;;  %v2808_v56 = vmul.f32 %v2807_v52, %v2686_v46  ;;  %v2811_v40 = vmul.f32 %v2810_v27, %v2693_v16  ;;  %v2800_v4 = vmul.f32 %v2799_v51, %v2700_v48 }
 0x4bc   :  { %2745 = vst [vmem:[#allocation5 + $0x2] sm:$0x1] %v2744_v2  ;;  %v2774_v11 = vadd.f32 %v2773_v22, %v2771_v8  ;;  %v2797_v33 = vadd.f32 %v2796_v14, %v2793_v21  ;;  %v2803_v5 = vstv %s6191_s21  ;;  %v2815_v29 = vmul.f32 %v2814_v55, %v2700_v48 }
 0x4bd   :  { %2760 = vst [vmem:[#allocation5 + $0x3] sm:$0x1] %v2759_v54  ;;  %v2789_v47 = vadd.f32 %v2788_v20, %v2786_v3  ;;  %v2812_v17 = vadd.f32 %v2811_v40, %v2808_v56  ;;  %v2818_v35 = vstv %s6193_s20 }
 0x4be   :  { %2775 = vst [vmem:[#allocation5 + $0x4] sm:$0x1] %v2774_v11  ;;  %v2801_v36 = vadd.f32 %v2800_v4, %v2797_v33 }
 0x4bf   :  { %2790 = vst [vmem:[#allocation5 + $0x5] sm:$0x1] %v2789_v47  ;;  %v2816_v42 = vadd.f32 %v2815_v29, %v2812_v17 }
 0x4c0   :  { %v2804_v44 = vadd.f32 %v2803_v5, %v2801_v36 }
 0x4c1   :  { %v2819_v34 = vadd.f32 %v2818_v35, %v2816_v42 }
 0x4c2   :  { %2805 = vst [vmem:[#allocation5 + $0x6] sm:$0x1] %v2804_v44 }
 0x4c3   :  { %2820 = vst [vmem:[#allocation5 + $0x7] sm:$0x1] %v2819_v34 }
 0x4c4   :  { %2831 = dma.vmem_to_hbm [thread:$0]  %s2827_s15, 128, %s2829_s3, [#allocation3]  }
 0x4c5   :  { %3534 = dma.done.wait [#allocation3], 128  }
 0x4c6   :  { %3535 = vsyncadd [#allocation3], 4294967168 }
 0x4c7   :  { %2836 = vsyncpa [#allocation3], 1 }
 0x4c8   :  { %2837 = vsyncpa [#allocation4], 1 }

</bundles_post_ra>
